<compile_context>
chip_gen: v5e
topology: v5e:2x2
jax: 0.10.0
libtpu: 0.0.40
codegen_flags: <defaults>
</compile_context>

<pallas_src>
import functools
import math

import numpy as np
import jax
import jax.numpy as jnp
from jax.experimental import pallas as pl
from jax.experimental.pallas import tpu as pltpu


def _round_up(x: int, m: int) -> int:
    return ((x + m - 1) // m) * m


def make_log_basis(in_features: int, out_features: int, scale=1.0,
                   compute_sin=True, compute_cos=False) -> jnp.ndarray:
    """Deterministic 'log' init, matching FourierMapping.__init__ (init='log').

    Returns basis of shape (in_features, out_size) (already transposed, as in
    the PyTorch module after `basis = basis.t()`).
    """
    out_size = out_features // 2 if (compute_sin and compute_cos) else out_features
    assert out_size >= 3, "log init needs out_size >= 3 (logspace steps + [0, 0.1])"
    if isinstance(scale, (int, float)):
        scale = [float(scale)] * in_features
    assert len(scale) == in_features
    cols = []
    for i in range(in_features):
        # torch.logspace(start=-3, end=scale[i], base=2.0, steps=out_size-2) * pi
        exps = np.linspace(-3.0, scale[i], out_size - 2, dtype=np.float64)
        col = (2.0 ** exps) * np.pi
        col = np.concatenate([col, np.array([0.0, 0.1])])
        cols.append(col)
    basis = np.stack(cols, axis=1)      # (out_size, in_features)
    basis = basis.T                     # (in_features, out_size)
    return jnp.asarray(basis, dtype=jnp.float32)


def _fourier_kernel(x_ref, w_ref, o_ref, *, use_cos, use_mxu):
    # x_ref: (tb, Kp) f32   w_ref: (Kp, N) f32   o_ref: (tb, N) out_dtype
    x = x_ref[...]
    w = w_ref[...]
    if use_mxu:
        # Only used for large contraction dims (rare for Fourier features).
        # Default MXU precision (single bf16 pass) is usually enough here; if
        # strict fp32 parity is needed for a large-K config, lower the
        # use_mxu threshold instead (VPU path is exact f32).
        phase = jnp.dot(x, w, preferred_element_type=jnp.float32)
    else:
        # Unrolled VPU broadcast-FMAs: exact f32, no MXU push/drain latency.
        # (With fold>1 only c_in of these Kp FMAs are nonzero per lane; fine
        # while c_in is tiny — the single transcendental below dominates.)
        phase = x[:, 0:1] * w[0:1, :]
        for k in range(1, x.shape[1]):
            phase = phase + x[:, k:k + 1] * w[k:k + 1, :]

    # In the sin+cos configuration the pi/2 bias for the cos half is already
    # baked into `phase` (constant-1 column of x times the bias row of w), so
    # exactly ONE transcendental is evaluated per output lane.
    out = jnp.cos(phase) if use_cos else jnp.sin(phase)
    o_ref[...] = out.astype(o_ref.dtype)


def fourier_mapping(x: jnp.ndarray, basis: jnp.ndarray, *,
                    compute_sin: bool = True, compute_cos: bool = False,
                    init: str = "log", out_dtype=jnp.float32,
                    target_block_bytes: int = 2 * 1024 * 1024) -> jnp.ndarray:
    """Forward pass of FourierMapping.

    x: (B, C_in), basis: (C_in, C_mid) (the module's transposed basis).
    Returns (B, C_out) where C_out = 2*C_mid if sin&cos else C_mid.
    `out_dtype=jnp.bfloat16` halves the dominant HBM write traffic if the
    consumer allows it; default f32 for parity with the PyTorch module.
    """
    assert compute_sin or compute_cos
    B, c_in = x.shape
    c_mid = basis.shape[1]
    both = compute_sin and compute_cos
    c_out = 2 * c_mid if both else c_mid

    x = x.astype(jnp.float32)
    weight = ((2.0 * np.pi) * basis if init == "standard" else basis).astype(jnp.float32)

    # ---- lane-dense folding: pack `fold` batch rows per output row so the
    #      output block's last dim is a multiple of 128 lanes (unmasked full
    #      width stores).  N = lcm(c_out, 128). ----
    fold = 128 // math.gcd(c_out, 128)
    N = fold * c_out
    K = fold * c_in

    # Per-row weight block; for sin&cos the phase is duplicated into both
    # halves of each c_out group so one sin(phase+bias) covers sin and cos.
    block = (jnp.concatenate([weight, weight], axis=1)
             if both else weight)                                    # (c_in, c_out)
    w_big = block if fold == 1 else jnp.kron(jnp.eye(fold, dtype=jnp.float32), block)

    if both:
        # Phase-bias row: 0 on the sin half of every c_out block, pi/2 on the
        # cos half.  Contracted against a constant-1 column of x.
        lane = np.arange(N)
        bias = np.where((lane % c_out) < c_mid, 0.0, np.pi / 2.0).astype(np.float32)
        w_big = jnp.concatenate([w_big, jnp.asarray(bias)[None, :]], axis=0)
    Kp = int(w_big.shape[0])                       # K, or K+1 with the bias row

    # ---- batch padding: only to the fold * sublane boundary (cheap; x is
    #      tiny).  No padding to a tile multiple -> no full-output re-copy. ----
    out_itemsize = jnp.dtype(out_dtype).itemsize
    sub = max(8, 32 // out_itemsize)               # 8 f32, 16 bf16, 32 int8
    rows = -(-B // fold)                           # folded rows needed
    rows_pad = _round_up(rows, sub)
    b_pad = rows_pad * fold
    if b_pad != B:
        x = jnp.pad(x, ((0, b_pad - B), (0, 0)))
    x_folded = x.reshape(rows_pad, K)
    if both:
        x_folded = jnp.concatenate(
            [x_folded, jnp.ones((rows_pad, 1), jnp.float32)], axis=1)  # (rows_pad, Kp)

    # ---- tiling: size the tile by bytes (~target_block_bytes of output per
    #      step); total live VMEM = 2*out + 2*in + weight stays ~2.2x that,
    #      inside every generation's scoped-VMEM default. ----
    tb_out = target_block_bytes // (N * out_itemsize)
    tb_in = target_block_bytes // (Kp * 4)
    tb = max(sub, (min(tb_out, tb_in) // sub) * sub)
    tb = min(tb, rows_pad)
    grid = pl.cdiv(rows_pad, tb)
    if grid > 1 and grid % 2 == 1:
        # Keep the grid even & balanced so both v7x TensorCores get equal
        # work; on 1-TC chips blocks stay large enough that this is free.
        tb = max(sub, _round_up(pl.cdiv(rows_pad, grid + 1), sub))
        tb = min(tb, rows_pad)
        grid = pl.cdiv(rows_pad, tb)

    use_mxu = Kp > 64
    kernel = functools.partial(_fourier_kernel,
                               use_cos=(compute_cos and not compute_sin),
                               use_mxu=use_mxu)

    cost = pl.CostEstimate(
        flops=2 * rows_pad * N * Kp,
        transcendentals=rows_pad * N,
        bytes_accessed=rows_pad * Kp * 4 + Kp * N * 4 + rows_pad * N * out_itemsize)

    out_folded = pl.pallas_call(
        kernel,
        out_shape=jax.ShapeDtypeStruct((rows_pad, N), out_dtype),
        grid_spec=pltpu.PrefetchScalarGridSpec(
            num_scalar_prefetch=0,
            grid=(grid,),
            in_specs=[
                # x tile: (tb, Kp); Kp is the full last dim -> (8,128) rule ok.
                pl.BlockSpec((tb, Kp), lambda i: (i, 0)),
                # folded weight is tiny; fully resident every step.
                pl.BlockSpec((Kp, N), lambda i: (0, 0)),
            ],
            out_specs=pl.BlockSpec((tb, N), lambda i: (i, 0)),
        ),
        compiler_params=pltpu.CompilerParams(
            dimension_semantics=("parallel",)),
        cost_estimate=cost,
    )(x_folded, w_big)

    # (rows_pad, fold*c_out) and (rows_pad*fold, c_out) share the same
    # row-major memory layout, so unfolding is a free reshape; the [:B] slice
    # (a copy) only happens when B isn't a multiple of fold*sublane.
    out = out_folded.reshape(b_pad, c_out)
    return out if b_pad == B else out[:B]


if __name__ == "__main__":
    key0, key1, key2 = jax.random.split(jax.random.PRNGKey(0), 3)

    # ---- case 1: module defaults (in=2, out=32, init='log', sin only) ----
    in_features, out_features, B = 2, 32, 1024
    basis = make_log_basis(in_features, out_features, scale=1.0,
                           compute_sin=True, compute_cos=False)
    x = jax.random.normal(key0, (B, in_features), dtype=jnp.float32)
    out = jax.block_until_ready(
        fourier_mapping(x, basis, compute_sin=True, compute_cos=False, init="log"))
    ref = jnp.sin(jnp.dot(x, basis, precision=jax.lax.Precision.HIGHEST))
    assert out.shape == (B, out_features), out.shape
    np.testing.assert_allclose(np.asarray(out), np.asarray(ref),
                               rtol=1e-5, atol=1e-5)

    # ---- case 2: sin+cos branch, odd batch (padding + baked-in pi/2 bias) ----
    B2 = 257
    basis2 = make_log_basis(in_features, out_features, scale=1.0,
                            compute_sin=True, compute_cos=True)
    x2 = jax.random.normal(key1, (B2, in_features), dtype=jnp.float32)
    out2 = jax.block_until_ready(
        fourier_mapping(x2, basis2, compute_sin=True, compute_cos=True, init="log"))
    p2 = jnp.dot(x2, basis2, precision=jax.lax.Precision.HIGHEST)
    ref2 = jnp.concatenate([jnp.sin(p2), jnp.cos(p2)], axis=1)
    assert out2.shape == (B2, out_features), out2.shape
    np.testing.assert_allclose(np.asarray(out2), np.asarray(ref2),
                               rtol=1e-5, atol=1e-5)

    # ---- case 3: larger batch with a small block-byte target to exercise a
    #      multi-step grid, even-grid rebalancing and ragged last block. ----
    B3 = 5000
    x3 = jax.random.normal(key2, (B3, in_features), dtype=jnp.float32)
    out3 = jax.block_until_ready(
        fourier_mapping(x3, basis, compute_sin=True, compute_cos=False,
                        init="log", target_block_bytes=128 * 1024))
    ref3 = jnp.sin(jnp.dot(x3, basis, precision=jax.lax.Precision.HIGHEST))
    assert out3.shape == (B3, out_features), out3.shape
    np.testing.assert_allclose(np.asarray(out3), np.asarray(ref3),
                               rtol=1e-5, atol=1e-5)

    print("KERNEL_OK")
</pallas_src>

<mosaic_0001>
module attributes {stable_mosaic.version = 11 : i64} {
  func.func @_fourier_kernel(%arg0: i32, %arg1: memref<256x8xf32, #tpu.memory_space<vmem>>, %arg2: memref<8x128xf32, #tpu.memory_space<vmem>>, %arg3: memref<256x128xf32, #tpu.memory_space<vmem>>) attributes {dimension_semantics = [#tpu.dimension_semantics<parallel>], iteration_bounds = array<i64: 1>, scalar_prefetch = 0 : i64, scratch_operands = 0 : i64, tpu.core_type = #tpu.core_type<tc>, window_params = [{transform_indices = @transform_0, window_bounds = array<i64: 256, 8>}, {pipeline_mode = #tpu.pipeline_mode<synchronous>, transform_indices = @transform_1, window_bounds = array<i64: 8, 128>}, {transform_indices = @transform_2, window_bounds = array<i64: 256, 128>}]} {
    %c0 = arith.constant 0 : index
    %c0_0 = arith.constant 0 : index
    %0 = vector.load %arg1[%c0, %c0_0] : memref<256x8xf32, #tpu.memory_space<vmem>>, vector<256x8xf32>
    %c0_1 = arith.constant 0 : index
    %c0_2 = arith.constant 0 : index
    %1 = vector.load %arg2[%c0_1, %c0_2] : memref<8x128xf32, #tpu.memory_space<vmem>>, vector<8x128xf32>
    %2 = vector.extract_strided_slice %0 {offsets = [0, 0], sizes = [256, 1], strides = [1, 1]} : vector<256x8xf32> to vector<256x1xf32>
    %3 = vector.extract_strided_slice %1 {offsets = [0, 0], sizes = [1, 128], strides = [1, 1]} : vector<8x128xf32> to vector<1x128xf32>
    %4 = vector.broadcast %2 : vector<256x1xf32> to vector<256x128xf32>
    %5 = vector.broadcast %3 : vector<1x128xf32> to vector<256x128xf32>
    %6 = arith.mulf %4, %5 : vector<256x128xf32>
    %7 = vector.extract_strided_slice %0 {offsets = [0, 1], sizes = [256, 1], strides = [1, 1]} : vector<256x8xf32> to vector<256x1xf32>
    %8 = vector.extract_strided_slice %1 {offsets = [1, 0], sizes = [1, 128], strides = [1, 1]} : vector<8x128xf32> to vector<1x128xf32>
    %9 = vector.broadcast %7 : vector<256x1xf32> to vector<256x128xf32>
    %10 = vector.broadcast %8 : vector<1x128xf32> to vector<256x128xf32>
    %11 = arith.mulf %9, %10 : vector<256x128xf32>
    %12 = arith.addf %6, %11 : vector<256x128xf32>
    %13 = vector.extract_strided_slice %0 {offsets = [0, 2], sizes = [256, 1], strides = [1, 1]} : vector<256x8xf32> to vector<256x1xf32>
    %14 = vector.extract_strided_slice %1 {offsets = [2, 0], sizes = [1, 128], strides = [1, 1]} : vector<8x128xf32> to vector<1x128xf32>
    %15 = vector.broadcast %13 : vector<256x1xf32> to vector<256x128xf32>
    %16 = vector.broadcast %14 : vector<1x128xf32> to vector<256x128xf32>
    %17 = arith.mulf %15, %16 : vector<256x128xf32>
    %18 = arith.addf %12, %17 : vector<256x128xf32>
    %19 = vector.extract_strided_slice %0 {offsets = [0, 3], sizes = [256, 1], strides = [1, 1]} : vector<256x8xf32> to vector<256x1xf32>
    %20 = vector.extract_strided_slice %1 {offsets = [3, 0], sizes = [1, 128], strides = [1, 1]} : vector<8x128xf32> to vector<1x128xf32>
    %21 = vector.broadcast %19 : vector<256x1xf32> to vector<256x128xf32>
    %22 = vector.broadcast %20 : vector<1x128xf32> to vector<256x128xf32>
    %23 = arith.mulf %21, %22 : vector<256x128xf32>
    %24 = arith.addf %18, %23 : vector<256x128xf32>
    %25 = vector.extract_strided_slice %0 {offsets = [0, 4], sizes = [256, 1], strides = [1, 1]} : vector<256x8xf32> to vector<256x1xf32>
    %26 = vector.extract_strided_slice %1 {offsets = [4, 0], sizes = [1, 128], strides = [1, 1]} : vector<8x128xf32> to vector<1x128xf32>
    %27 = vector.broadcast %25 : vector<256x1xf32> to vector<256x128xf32>
    %28 = vector.broadcast %26 : vector<1x128xf32> to vector<256x128xf32>
    %29 = arith.mulf %27, %28 : vector<256x128xf32>
    %30 = arith.addf %24, %29 : vector<256x128xf32>
    %31 = vector.extract_strided_slice %0 {offsets = [0, 5], sizes = [256, 1], strides = [1, 1]} : vector<256x8xf32> to vector<256x1xf32>
    %32 = vector.extract_strided_slice %1 {offsets = [5, 0], sizes = [1, 128], strides = [1, 1]} : vector<8x128xf32> to vector<1x128xf32>
    %33 = vector.broadcast %31 : vector<256x1xf32> to vector<256x128xf32>
    %34 = vector.broadcast %32 : vector<1x128xf32> to vector<256x128xf32>
    %35 = arith.mulf %33, %34 : vector<256x128xf32>
    %36 = arith.addf %30, %35 : vector<256x128xf32>
    %37 = vector.extract_strided_slice %0 {offsets = [0, 6], sizes = [256, 1], strides = [1, 1]} : vector<256x8xf32> to vector<256x1xf32>
    %38 = vector.extract_strided_slice %1 {offsets = [6, 0], sizes = [1, 128], strides = [1, 1]} : vector<8x128xf32> to vector<1x128xf32>
    %39 = vector.broadcast %37 : vector<256x1xf32> to vector<256x128xf32>
    %40 = vector.broadcast %38 : vector<1x128xf32> to vector<256x128xf32>
    %41 = arith.mulf %39, %40 : vector<256x128xf32>
    %42 = arith.addf %36, %41 : vector<256x128xf32>
    %43 = vector.extract_strided_slice %0 {offsets = [0, 7], sizes = [256, 1], strides = [1, 1]} : vector<256x8xf32> to vector<256x1xf32>
    %44 = vector.extract_strided_slice %1 {offsets = [7, 0], sizes = [1, 128], strides = [1, 1]} : vector<8x128xf32> to vector<1x128xf32>
    %45 = vector.broadcast %43 : vector<256x1xf32> to vector<256x128xf32>
    %46 = vector.broadcast %44 : vector<1x128xf32> to vector<256x128xf32>
    %47 = arith.mulf %45, %46 : vector<256x128xf32>
    %48 = arith.addf %42, %47 : vector<256x128xf32>
    %49 = math.sin %48 : vector<256x128xf32>
    %c0_3 = arith.constant 0 : index
    %c0_4 = arith.constant 0 : index
    %50 = vector.load %arg3[%c0_3, %c0_4] : memref<256x128xf32, #tpu.memory_space<vmem>>, vector<256x128xf32>
    tpu.vector_store %arg3[%c0_3, %c0_4], %49 {strides = array<i32>} : memref<256x128xf32, #tpu.memory_space<vmem>>, vector<256x128xf32>,
    return
  }
  func.func @transform_0(%arg0: i32) -> (i32, i32) {
    %c0_i32 = arith.constant 0 : i32
    %c0_i32_0 = arith.constant 0 : i32
    return %arg0, %c0_i32 : i32, i32
  }
  func.func @transform_1(%arg0: i32) -> (i32, i32) {
    %c0_i32 = arith.constant 0 : i32
    %c0_i32_0 = arith.constant 0 : i32
    %c0_i32_1 = arith.constant 0 : i32
    return %c0_i32, %c0_i32_0 : i32, i32
  }
  func.func @transform_2(%arg0: i32) -> (i32, i32) {
    %c0_i32 = arith.constant 0 : i32
    %c0_i32_0 = arith.constant 0 : i32
    return %arg0, %c0_i32 : i32, i32
  }
}

</mosaic_0001>

<bundles_post_ra>
// kernel: tpu_custom_call.1
= control target key start
LH: loop header
LB: loop body
LE: loop exit
PB: predicated region body
PF: predicated region fallthrough
CT: control target
= control target key end

     0   :  { %v11804_v3 = vmov 0   ;;  %s11801_s0 = inlined_call_operand.vmem [shape: f32[256,8], index: 0, kind: input, shape index: {}]   ;;  %s11802_s1 = inlined_call_operand.vmem [shape: f32[8,128], index: 1, kind: input, shape index: {}]   ;;  %s11803_s2 = inlined_call_operand.hbm [shape: f32[256,128], index: 2, kind: output, shape index: {}]  }
   0x1   :  { %v6830_v0 = vld [vmem:[%s11801_s0 + $0x20] sm:$0xff]  ;;  %v6835_v1 = vld [vmem:[%s11801_s0 + $0x10] sm:$0xff]  ;;  %6714 = vset.pattern.permute.xlu2 %v11804_v3  ;;  %6713 = vset.pattern.permute.xlu1 %v11804_v3 }
   0x2   :  { %v6840_v2 = vld [vmem:[%s11801_s0] sm:$0xff]  ;;  %6712 = vset.pattern.permute.xlu0 %v11804_v3  ;;  %67 = vperm.xlu2 %6714, %v6830_v0  }
   0x3   :  { %57 = vperm.xlu1 %6713, %v6835_v1   ;;  %47 = vperm.xlu0 %6712, %v6840_v2  }
   0x4   :  { %7 = vsyncpa [#allocation3], 0  ;;  %v6851_v4 = vld [vmem:[%s11801_s0 + $0x28] sm:$0xff]  ;;  %v6856_v5 = vld [vmem:[%s11801_s0 + $0x18] sm:$0xff]  ;;  %v6796_v33 = vmov 1   ;;  %v6797_v58 = vmov 2  }
   0x5   :  { %v6861_v6 = vld [vmem:[%s11801_s0 + $0x8] sm:$0xff]  ;;  %v6869_v7 = vld [vmem:[%s11801_s0 + $0x40] sm:$0xff]  ;;  %v6874_v8 = vld [vmem:[%s11801_s0 + $0x38] sm:$0xff]  ;;  %s6587_s3 = sshll.u32 %s11803_s2, 4  ;;  %s6810_s4 = smov 128   ;;  %s6588_s3 = int_to_ptr.hbm [resolvable:$true] %s6587_s3 }
   0x6   :  { %v6879_v9 = vld [vmem:[%s11801_s0 + $0x30] sm:$0xff]  ;;  %v6887_v10 = vld [vmem:[%s11801_s0 + $0x58] sm:$0xff]  ;;  %v6897_v12 = vld [vmem:[%s11801_s0 + $0x48] sm:$0xff]  ;;  %s6811_s5 = smov 8  }
   0x7   :  { %v6892_v11 = vld [vmem:[%s11801_s0 + $0x50] sm:$0xff]  ;;  %v6910_v14 = vld [vmem:[%s11801_s0 + $0x68] sm:$0xff]  ;;  %v6915_v15 = vld [vmem:[%s11801_s0 + $0x60] sm:$0xff] }
   0x8   :  { %v6905_v13 = vld [vmem:[%s11801_s0 + $0x70] sm:$0xff]  ;;  %v6923_v16 = vld [vmem:[%s11801_s0 + $0x88] sm:$0xff]  ;;  %v6928_v17 = vld [vmem:[%s11801_s0 + $0x80] sm:$0xff] }
   0x9   :  { %v6933_v18 = vld [vmem:[%s11801_s0 + $0x78] sm:$0xff]  ;;  %v6941_v19 = vld [vmem:[%s11801_s0 + $0xa0] sm:$0xff]  ;;  %v6951_v21 = vld [vmem:[%s11801_s0 + $0x90] sm:$0xff] }
   0xa   :  { %72 = vperm.xlu2 %6714, %v6851_v4   ;;  %11839 = vst [vmem:[#allocation5_spill] sm:$0xff] %v6941_v19  ;;  %v6946_v20 = vld [vmem:[%s11801_s0 + $0x98] sm:$0xff]  ;;  %v6964_v23 = vld [vmem:[%s11801_s0 + $0xb0] sm:$0xff]  ;;  %v6969_v24 = vld [vmem:[%s11801_s0 + $0xa8] sm:$0xff] }
   0xb   :  { %62 = vperm.xlu1 %6713, %v6856_v5   ;;  %52 = vperm.xlu0 %6712, %v6861_v6   ;;  %11840 = vst [vmem:[#allocation6_spill] sm:$0xff] %v6946_v20  ;;  %v6959_v22 = vld [vmem:[%s11801_s0 + $0xb8] sm:$0xff]  ;;  %v6977_v25 = vld [vmem:[%s11801_s0 + $0xd0] sm:$0xff]  ;;  %v6982_v26 = vld [vmem:[%s11801_s0 + $0xc8] sm:$0xff] }
   0xc   :  { %11841 = vst [vmem:[#allocation7_spill] sm:$0xff] %v6959_v22  ;;  %v6987_v27 = vld [vmem:[%s11801_s0 + $0xc0] sm:$0xff]  ;;  %v6995_v28 = vld [vmem:[%s11801_s0 + $0xe8] sm:$0xff]  ;;  %v7005_v30 = vld [vmem:[%s11801_s0 + $0xd8] sm:$0xff] }
   0xd   :  { %11842 = vst [vmem:[#allocation8_spill] sm:$0xff] %v6964_v23  ;;  %v7000_v29 = vld [vmem:[%s11801_s0 + $0xe0] sm:$0xff]  ;;  %v7013_v31 = vld [vmem:[%s11801_s0 + $0xf8] sm:$0xff]  ;;  %v7018_v32 = vld [vmem:[%s11801_s0 + $0xf0] sm:$0xff] }
   0xe   :  { %11843 = vst [vmem:[#allocation9_spill] sm:$0xff] %v6982_v26 }
   0xf   :  { %11844 = vst [vmem:[#allocation10_spill] sm:$0xff] %v6995_v28 }
  0x10   :  { %11845 = vst [vmem:[#allocation11_spill] sm:$0xff] %v7000_v29 }
  0x11   :  { %11846 = vst [vmem:[#allocation12_spill] sm:$0xff] %v7013_v31 }
  0x12   :  { %87 = vperm.xlu2 %6714, %v6869_v7  }
  0x13   :  { %82 = vperm.xlu1 %6713, %v6874_v8   ;;  %77 = vperm.xlu0 %6712, %v6879_v9  }
  0x1a   :  { %102 = vperm.xlu2 %6714, %v6887_v10  }
  0x1b   :  { %97 = vperm.xlu1 %6713, %v6892_v11   ;;  %92 = vperm.xlu0 %6712, %v6897_v12  }
  0x22   :  { %117 = vperm.xlu2 %6714, %v6905_v13  }
  0x23   :  { %112 = vperm.xlu1 %6713, %v6910_v14   ;;  %107 = vperm.xlu0 %6712, %v6915_v15  }
  0x2a   :  { %132 = vperm.xlu2 %6714, %v6923_v16  }
  0x2b   :  { %127 = vperm.xlu1 %6713, %v6928_v17   ;;  %122 = vperm.xlu0 %6712, %v6933_v18  }
  0x32   :  { %147 = vperm.xlu2 %6714, %v6941_v19  }
  0x33   :  { %142 = vperm.xlu1 %6713, %v6946_v20   ;;  %137 = vperm.xlu0 %6712, %v6951_v21  }
  0x3a   :  { %162 = vperm.xlu2 %6714, %v6959_v22  }
  0x3b   :  { %157 = vperm.xlu1 %6713, %v6964_v23   ;;  %152 = vperm.xlu0 %6712, %v6969_v24  }
  0x42   :  { %177 = vperm.xlu2 %6714, %v6977_v25  }
  0x43   :  { %172 = vperm.xlu1 %6713, %v6982_v26   ;;  %167 = vperm.xlu0 %6712, %v6987_v27  }
  0x4a   :  { %192 = vperm.xlu2 %6714, %v6995_v28  }
  0x4b   :  { %187 = vperm.xlu1 %6713, %v7000_v29   ;;  %182 = vperm.xlu0 %6712, %v7005_v30  }
  0x52   :  { %6715 = vset.pattern.permute.xlu2 %v6796_v33 }
  0x53   :  { %202 = vperm.xlu1 %6713, %v7013_v31   ;;  %197 = vperm.xlu0 %6712, %v7018_v32  }
  0x54   :  { %239 = vperm.xlu2 %6715, %v6840_v2  }
  0x5b   :  { %6717 = vset.pattern.permute.xlu1 %v6796_v33  ;;  %6716 = vset.pattern.permute.xlu0 %v6796_v33 }
  0x5c   :  { %247 = vperm.xlu1 %6717, %v6835_v1   ;;  %251 = vperm.xlu2 %6715, %v6856_v5   ;;  %v7025_v34 = vpop.permute.xlu2 %67 }
  0x5d   :  { %11847 = vst [vmem:[#allocation13_spill] sm:$0xff] %v7025_v34  ;;  %243 = vperm.xlu0 %6716, %v6861_v6  }
  0x64   :  { %255 = vperm.xlu1 %6717, %v6830_v0   ;;  %259 = vperm.xlu2 %6715, %v6851_v4   ;;  %v7030_v35 = vpop.permute.xlu2 %72 }
  0x65   :  { %11848 = vst [vmem:[#allocation14_spill] sm:$0xff] %v7030_v35  ;;  %263 = vperm.xlu0 %6716, %v6879_v9  }
  0x6c   :  { %267 = vperm.xlu1 %6717, %v6874_v8   ;;  %271 = vperm.xlu2 %6715, %v6869_v7   ;;  %v7035_v36 = vpop.permute.xlu2 %87 }
  0x6d   :  { %11849 = vst [vmem:[#allocation15_spill] sm:$0xff] %v7035_v36  ;;  %275 = vperm.xlu0 %6716, %v6897_v12  }
  0x74   :  { %279 = vperm.xlu1 %6717, %v6892_v11   ;;  %283 = vperm.xlu2 %6715, %v6887_v10   ;;  %v7040_v37 = vpop.permute.xlu2 %102 }
  0x75   :  { %11850 = vst [vmem:[#allocation16_spill] sm:$0xff] %v7040_v37  ;;  %287 = vperm.xlu0 %6716, %v6915_v15   ;;  %v7043_v38 = vpop.permute.xlu1 %57  ;;  %v7045_v39 = vpop.permute.xlu0 %47 }
  0x76   :  { %11851 = vst [vmem:[#allocation17_spill] sm:$0xff] %v7043_v38 }
  0x77   :  { %11852 = vst [vmem:[#allocation18_spill] sm:$0xff] %v7045_v39 }
  0x7c   :  { %291 = vperm.xlu1 %6717, %v6910_v14   ;;  %295 = vperm.xlu2 %6715, %v6905_v13   ;;  %v7049_v40 = vpop.permute.xlu2 %117 }
  0x7d   :  { %11853 = vst [vmem:[#allocation19_spill] sm:$0xff] %v7049_v40  ;;  %299 = vperm.xlu0 %6716, %v6933_v18   ;;  %v7052_v41 = vpop.permute.xlu1 %62  ;;  %v7054_v42 = vpop.permute.xlu0 %52 }
  0x7e   :  { %11854 = vst [vmem:[#allocation20_spill] sm:$0xff] %v7052_v41 }
  0x7f   :  { %11855 = vst [vmem:[#allocation21_spill] sm:$0xff] %v7054_v42 }
  0x84   :  { %303 = vperm.xlu1 %6717, %v6928_v17   ;;  %307 = vperm.xlu2 %6715, %v6923_v16   ;;  %v7058_v43 = vpop.permute.xlu2 %132 }
  0x85   :  { %311 = vperm.xlu0 %6716, %v6951_v21   ;;  %v7061_v44 = vpop.permute.xlu1 %82  ;;  %v7063_v45 = vpop.permute.xlu0 %77 }
  0x86   :  { %11856 = vst [vmem:[#allocation22_spill] sm:$0xff] %v7061_v44 }
  0x8c   :  { %315 = vperm.xlu1 %6717, %v6946_v20   ;;  %319 = vperm.xlu2 %6715, %v6941_v19   ;;  %v7067_v46 = vpop.permute.xlu2 %147 }
  0x8d   :  { %323 = vperm.xlu0 %6716, %v6969_v24   ;;  %v7070_v47 = vpop.permute.xlu1 %97  ;;  %v7072_v48 = vpop.permute.xlu0 %92 }
  0x8e   :  { %11857 = vst [vmem:[#allocation23_spill] sm:$0xff] %v7070_v47 }
  0x94   :  { %327 = vperm.xlu1 %6717, %v6964_v23   ;;  %331 = vperm.xlu2 %6715, %v6959_v22   ;;  %v7076_v49 = vpop.permute.xlu2 %162 }
  0x95   :  { %11858 = vst [vmem:[#allocation24_spill] sm:$0xff] %v7076_v49  ;;  %335 = vperm.xlu0 %6716, %v6987_v27   ;;  %v7079_v50 = vpop.permute.xlu1 %112  ;;  %v7081_v51 = vpop.permute.xlu0 %107 }
  0x96   :  { %11859 = vst [vmem:[#allocation25_spill] sm:$0xff] %v7079_v50 }
  0x9c   :  { %339 = vperm.xlu1 %6717, %v6982_v26   ;;  %343 = vperm.xlu2 %6715, %v6977_v25   ;;  %v7085_v52 = vpop.permute.xlu2 %177 }
  0x9d   :  { %11860 = vst [vmem:[#allocation26_spill] sm:$0xff] %v7085_v52  ;;  %347 = vperm.xlu0 %6716, %v7005_v30   ;;  %v7088_v53 = vpop.permute.xlu1 %127  ;;  %v7090_v54 = vpop.permute.xlu0 %122 }
  0x9e   :  { %11861 = vst [vmem:[#allocation27_spill] sm:$0xff] %v7088_v53 }
  0xa4   :  { %351 = vperm.xlu1 %6717, %v7000_v29   ;;  %355 = vperm.xlu2 %6715, %v6995_v28   ;;  %v7094_v55 = vpop.permute.xlu2 %192 }
  0xa5   :  { %11862 = vst [vmem:[#allocation28_spill] sm:$0xff] %v7094_v55  ;;  %359 = vperm.xlu0 %6716, %v7018_v32   ;;  %v7097_v56 = vpop.permute.xlu1 %142  ;;  %v7099_v57 = vpop.permute.xlu0 %137 }
  0xa6   :  { %11863 = vst [vmem:[#allocation29_spill] sm:$0xff] %v7097_v56 }
  0xac   :  { %363 = vperm.xlu1 %6717, %v7013_v31   ;;  %6718 = vset.pattern.permute.xlu2 %v6797_v58 }
  0xad   :  { %6719 = vset.pattern.permute.xlu0 %v6797_v58  ;;  %v7102_v59 = vpop.permute.xlu1 %157  ;;  %432 = vperm.xlu2 %6718, %v6840_v2   ;;  %v7105_v60 = vpop.permute.xlu0 %152 }
  0xae   :  { %11864 = vst [vmem:[#allocation30_spill] sm:$0xff] %v7102_v59  ;;  %436 = vperm.xlu0 %6719, %v6861_v6   ;;  %v7108_v61 = vpop.permute.xlu2 %239 }
  0xaf   :  { %11865 = vst [vmem:[#allocation31_spill] sm:$0xff] %v7105_v60 }
  0xb0   :  { %11866 = vst [vmem:[#allocation32_spill] sm:$0xff] %v7108_v61 }
  0xb4   :  { %6720 = vset.pattern.permute.xlu1 %v6797_v58 }
  0xb5   :  { %440 = vperm.xlu1 %6720, %v6835_v1   ;;  %v7111_v62 = vpop.permute.xlu1 %172  ;;  %444 = vperm.xlu2 %6718, %v6856_v5   ;;  %v7114_v63 = vpop.permute.xlu0 %167 }
  0xb6   :  { %11867 = vst [vmem:[#allocation33_spill] sm:$0xff] %v7111_v62  ;;  %456 = vperm.xlu0 %6719, %v6879_v9   ;;  %v7117_v33 = vpop.permute.xlu2 %251 }
  0xb7   :  { %11868 = vst [vmem:[#allocation34_spill] sm:$0xff] %v7114_v63 }
  0xb8   :  { %11869 = vst [vmem:[#allocation35_spill] sm:$0xff] %v7117_v33 }
  0xbd   :  { %448 = vperm.xlu1 %6720, %v6830_v0   ;;  %v7120_v3 = vpop.permute.xlu1 %187  ;;  %452 = vperm.xlu2 %6718, %v6851_v4   ;;  %v7123_v53 = vpop.permute.xlu0 %182 }
  0xbe   :  { %11870 = vst [vmem:[#allocation36_spill] sm:$0xff] %v7120_v3  ;;  %468 = vperm.xlu0 %6719, %v6897_v12   ;;  %v7126_v58 = vpop.permute.xlu2 %259 }
  0xbf   :  { %11871 = vst [vmem:[#allocation37_spill] sm:$0xff] %v7123_v53 }
  0xc0   :  { %11872 = vst [vmem:[#allocation38_spill] sm:$0xff] %v7126_v58 }
  0xc5   :  { %460 = vperm.xlu1 %6720, %v6874_v8   ;;  %v7129_v50 = vpop.permute.xlu1 %202  ;;  %464 = vperm.xlu2 %6718, %v6869_v7   ;;  %v7132_v47 = vpop.permute.xlu0 %197 }
  0xc6   :  { %11873 = vst [vmem:[#allocation39_spill] sm:$0xff] %v7129_v50  ;;  %480 = vperm.xlu0 %6719, %v6915_v15   ;;  %v7135_v44 = vpop.permute.xlu2 %271 }
  0xc7   :  { %11874 = vst [vmem:[#allocation40_spill] sm:$0xff] %v7132_v47 }
  0xc8   :  { %11875 = vst [vmem:[#allocation41_spill] sm:$0xff] %v7135_v44 }
  0xcd   :  { %472 = vperm.xlu1 %6720, %v6892_v11   ;;  %476 = vperm.xlu2 %6718, %v6887_v10  }
  0xce   :  { %492 = vperm.xlu0 %6719, %v6933_v18   ;;  %v7140_v40 = vpop.permute.xlu1 %247  ;;  %v7142_v34 = vpop.permute.xlu2 %283 }
  0xcf   :  { %11876 = vst [vmem:[#allocation42_spill] sm:$0xff] %v7140_v40  ;;  %v7144_v38 = vpop.permute.xlu0 %243 }
  0xd0   :  { %11877 = vst [vmem:[#allocation43_spill] sm:$0xff] %v7142_v34 }
  0xd1   :  { %11878 = vst [vmem:[#allocation44_spill] sm:$0xff] %v7144_v38 }
  0xd5   :  { %484 = vperm.xlu1 %6720, %v6910_v14   ;;  %488 = vperm.xlu2 %6718, %v6905_v13  }
  0xd6   :  { %504 = vperm.xlu0 %6719, %v6951_v21   ;;  %v7149_v37 = vpop.permute.xlu1 %255  ;;  %v7151_v50 = vpop.permute.xlu2 %295 }
  0xd7   :  { %11879 = vst [vmem:[#allocation45_spill] sm:$0xff] %v7149_v37  ;;  %v7153_v36 = vpop.permute.xlu0 %263 }
  0xd8   :  { %11880 = vst [vmem:[#allocation46_spill] sm:$0xff] %v7151_v50 }
  0xdd   :  { %496 = vperm.xlu1 %6720, %v6928_v17   ;;  %500 = vperm.xlu2 %6718, %v6923_v16  }
  0xde   :  { %516 = vperm.xlu0 %6719, %v6969_v24   ;;  %v7158_v34 = vpop.permute.xlu1 %267  ;;  %v7160_v40 = vpop.permute.xlu2 %307 }
  0xdf   :  { %11881 = vst [vmem:[#allocation47_spill] sm:$0xff] %v7158_v34  ;;  %v7162_v44 = vpop.permute.xlu0 %275 }
  0xe5   :  { %508 = vperm.xlu1 %6720, %v6946_v20   ;;  %512 = vperm.xlu2 %6718, %v6941_v19  }
  0xe6   :  { %528 = vperm.xlu0 %6719, %v6987_v27   ;;  %v7167_v50 = vpop.permute.xlu1 %279  ;;  %v7169_v37 = vpop.permute.xlu2 %319 }
  0xe7   :  { %11882 = vst [vmem:[#allocation48_spill] sm:$0xff] %v7167_v50  ;;  %v7171_v3 = vpop.permute.xlu0 %287 }
  0xed   :  { %520 = vperm.xlu1 %6720, %v6964_v23   ;;  %524 = vperm.xlu2 %6718, %v6959_v22  }
  0xee   :  { %540 = vperm.xlu0 %6719, %v7005_v30   ;;  %v7176_v34 = vpop.permute.xlu1 %291  ;;  %v7178_v35 = vpop.permute.xlu2 %331 }
  0xef   :  { %11883 = vst [vmem:[#allocation49_spill] sm:$0xff] %v7176_v34  ;;  %v7180_v58 = vpop.permute.xlu0 %299  ;;  %v6798_v34 = vmov 3  }
  0xf0   :  { %11884 = vst [vmem:[#allocation50_spill] sm:$0xff] %v7178_v35 }
  0xf5   :  { %532 = vperm.xlu1 %6720, %v6982_v26   ;;  %536 = vperm.xlu2 %6718, %v6977_v25  }
  0xf6   :  { %552 = vperm.xlu0 %6719, %v7018_v32   ;;  %v7185_v50 = vpop.permute.xlu1 %303  ;;  %v7187_v62 = vpop.permute.xlu2 %343 }
  0xf7   :  { %11885 = vst [vmem:[#allocation51_spill] sm:$0xff] %v7185_v50  ;;  %v7189_v33 = vpop.permute.xlu0 %311 }
  0xf8   :  { %11886 = vst [vmem:[#allocation52_spill] sm:$0xff] %v7187_v62 }
  0xfd   :  { %544 = vperm.xlu1 %6720, %v7000_v29   ;;  %548 = vperm.xlu2 %6718, %v6995_v28  }
  0xfe   :  { %6722 = vset.pattern.permute.xlu0 %v6798_v34  ;;  %v7193_v41 = vpop.permute.xlu1 %315  ;;  %v7195_v59 = vpop.permute.xlu2 %355 }
  0xff   :  { %11887 = vst [vmem:[#allocation53_spill] sm:$0xff] %v7193_v41  ;;  %629 = vperm.xlu0 %6722, %v6861_v6   ;;  %v7198_v38 = vpop.permute.xlu0 %323 }
 0x100   :  { %11888 = vst [vmem:[#allocation54_spill] sm:$0xff] %v7195_v59 }
 0x105   :  { %556 = vperm.xlu1 %6720, %v7013_v31   ;;  %6721 = vset.pattern.permute.xlu2 %v6798_v34 }
 0x106   :  { %v7201_v50 = vpop.permute.xlu1 %327  ;;  %625 = vperm.xlu2 %6721, %v6840_v2  }
 0x107   :  { %11889 = vst [vmem:[#allocation55_spill] sm:$0xff] %v7201_v50  ;;  %649 = vperm.xlu0 %6722, %v6879_v9   ;;  %v7205_v61 = vpop.permute.xlu0 %335  ;;  %v7207_v42 = vpop.permute.xlu2 %432 }
 0x108   :  { %11890 = vst [vmem:[#allocation56_spill] sm:$0xff] %v7205_v61 }
 0x109   :  { %11891 = vst [vmem:[#allocation57_spill] sm:$0xff] %v7207_v42 }
 0x10d   :  { %6723 = vset.pattern.permute.xlu1 %v6798_v34 }
 0x10e   :  { %633 = vperm.xlu1 %6723, %v6835_v1   ;;  %v7210_v39 = vpop.permute.xlu1 %339  ;;  %637 = vperm.xlu2 %6721, %v6856_v5  }
 0x10f   :  { %11892 = vst [vmem:[#allocation58_spill] sm:$0xff] %v7210_v39  ;;  %661 = vperm.xlu0 %6722, %v6897_v12   ;;  %v7214_v47 = vpop.permute.xlu0 %347  ;;  %v7216_v50 = vpop.permute.xlu2 %444 }
 0x110   :  { %11893 = vst [vmem:[#allocation59_spill] sm:$0xff] %v7214_v47 }
 0x111   :  { %11894 = vst [vmem:[#allocation60_spill] sm:$0xff] %v7216_v50 }
 0x116   :  { %641 = vperm.xlu1 %6723, %v6830_v0   ;;  %v7219_v56 = vpop.permute.xlu1 %351  ;;  %645 = vperm.xlu2 %6721, %v6851_v4  }
 0x117   :  { %11895 = vst [vmem:[#allocation61_spill] sm:$0xff] %v7219_v56  ;;  %673 = vperm.xlu0 %6722, %v6915_v15   ;;  %v7223_v34 = vpop.permute.xlu0 %359  ;;  %v7225_v42 = vpop.permute.xlu2 %452 }
 0x118   :  { %11896 = vst [vmem:[#allocation62_spill] sm:$0xff] %v7223_v34 }
 0x119   :  { %11897 = vst [vmem:[#allocation63_spill] sm:$0xff] %v7225_v42 }
 0x11e   :  { %653 = vperm.xlu1 %6723, %v6874_v8   ;;  %v7228_v39 = vpop.permute.xlu1 %363  ;;  %657 = vperm.xlu2 %6721, %v6869_v7  }
 0x11f   :  { %11898 = vst [vmem:[#allocation64_spill] sm:$0xff] %v7228_v39  ;;  %685 = vperm.xlu0 %6722, %v6933_v18   ;;  %v7232_v50 = vpop.permute.xlu2 %464 }
 0x120   :  { %11899 = vst [vmem:[#allocation65_spill] sm:$0xff] %v7232_v50  ;;  %v7234_v55 = vpop.permute.xlu0 %436 }
 0x121   :  { %11900 = vst [vmem:[#allocation66_spill] sm:$0xff] %v7234_v55 }
 0x126   :  { %665 = vperm.xlu1 %6723, %v6892_v11   ;;  %669 = vperm.xlu2 %6721, %v6887_v10  }
 0x127   :  { %697 = vperm.xlu0 %6722, %v6951_v21   ;;  %v7239_v56 = vpop.permute.xlu1 %440  ;;  %v7241_v42 = vpop.permute.xlu2 %476 }
 0x128   :  { %11901 = vst [vmem:[#allocation67_spill] sm:$0xff] %v7239_v56  ;;  %v7243_v34 = vpop.permute.xlu0 %456 }
 0x129   :  { %11902 = vst [vmem:[#allocation68_spill] sm:$0xff] %v7241_v42 }
 0x12e   :  { %677 = vperm.xlu1 %6723, %v6910_v14   ;;  %681 = vperm.xlu2 %6721, %v6905_v13  }
 0x12f   :  { %709 = vperm.xlu0 %6722, %v6969_v24   ;;  %v7248_v50 = vpop.permute.xlu1 %448  ;;  %v7250_v39 = vpop.permute.xlu2 %488 }
 0x130   :  { %11903 = vst [vmem:[#allocation69_spill] sm:$0xff] %v7248_v50  ;;  %v7252_v55 = vpop.permute.xlu0 %468 }
 0x131   :  { %11904 = vst [vmem:[#allocation70_spill] sm:$0xff] %v7250_v39 }
 0x136   :  { %689 = vperm.xlu1 %6723, %v6928_v17   ;;  %693 = vperm.xlu2 %6721, %v6923_v16  }
 0x137   :  { %721 = vperm.xlu0 %6722, %v6987_v27   ;;  %v7257_v42 = vpop.permute.xlu1 %460  ;;  %v7259_v56 = vpop.permute.xlu2 %500 }
 0x138   :  { %11905 = vst [vmem:[#allocation71_spill] sm:$0xff] %v7257_v42  ;;  %v7261_v59 = vpop.permute.xlu0 %480 }
 0x13e   :  { %701 = vperm.xlu1 %6723, %v6946_v20   ;;  %705 = vperm.xlu2 %6721, %v6941_v19  }
 0x13f   :  { %733 = vperm.xlu0 %6722, %v7005_v30   ;;  %v7266_v39 = vpop.permute.xlu1 %472  ;;  %v7268_v50 = vpop.permute.xlu2 %512 }
 0x140   :  { %11906 = vst [vmem:[#allocation72_spill] sm:$0xff] %v7266_v39  ;;  %v7270_v41 = vpop.permute.xlu0 %492  ;;  %v6799_v39 = vmov 4  }
 0x141   :  { %11907 = vst [vmem:[#allocation73_spill] sm:$0xff] %v7268_v50 }
 0x146   :  { %713 = vperm.xlu1 %6723, %v6964_v23   ;;  %717 = vperm.xlu2 %6721, %v6959_v22  }
 0x147   :  { %745 = vperm.xlu0 %6722, %v7018_v32   ;;  %v7275_v42 = vpop.permute.xlu1 %484  ;;  %v7277_v53 = vpop.permute.xlu2 %524 }
 0x148   :  { %11908 = vst [vmem:[#allocation74_spill] sm:$0xff] %v7275_v42  ;;  %v7279_v52 = vpop.permute.xlu0 %504 }
 0x149   :  { %11909 = vst [vmem:[#allocation75_spill] sm:$0xff] %v7277_v53 }
 0x14e   :  { %725 = vperm.xlu1 %6723, %v6982_v26   ;;  %729 = vperm.xlu2 %6721, %v6977_v25  }
 0x14f   :  { %6725 = vset.pattern.permute.xlu0 %v6799_v39  ;;  %v7283_v47 = vpop.permute.xlu1 %496  ;;  %v7285_v62 = vpop.permute.xlu2 %536 }
 0x150   :  { %11910 = vst [vmem:[#allocation76_spill] sm:$0xff] %v7283_v47  ;;  %822 = vperm.xlu0 %6725, %v6861_v6   ;;  %v7288_v63 = vpop.permute.xlu0 %516 }
 0x151   :  { %11911 = vst [vmem:[#allocation77_spill] sm:$0xff] %v7285_v62 }
 0x152   :  { %11912 = vst [vmem:[#allocation78_spill] sm:$0xff] %v7288_v63 }
 0x156   :  { %737 = vperm.xlu1 %6723, %v7000_v29   ;;  %741 = vperm.xlu2 %6721, %v6995_v28  }
 0x157   :  { %v7292_v42 = vpop.permute.xlu1 %508  ;;  %v7294_v53 = vpop.permute.xlu2 %548 }
 0x158   :  { %11913 = vst [vmem:[#allocation79_spill] sm:$0xff] %v7292_v42  ;;  %842 = vperm.xlu0 %6725, %v6879_v9   ;;  %v7297_v49 = vpop.permute.xlu0 %528 }
 0x159   :  { %11914 = vst [vmem:[#allocation80_spill] sm:$0xff] %v7294_v53 }
 0x15a   :  { %11915 = vst [vmem:[#allocation81_spill] sm:$0xff] %v7297_v49 }
 0x15e   :  { %749 = vperm.xlu1 %6723, %v7013_v31   ;;  %6724 = vset.pattern.permute.xlu2 %v6799_v39 }
 0x15f   :  { %v7300_v47 = vpop.permute.xlu1 %520  ;;  %818 = vperm.xlu2 %6724, %v6840_v2  }
 0x160   :  { %11916 = vst [vmem:[#allocation82_spill] sm:$0xff] %v7300_v47  ;;  %854 = vperm.xlu0 %6725, %v6897_v12   ;;  %v7304_v62 = vpop.permute.xlu0 %540  ;;  %v7306_v61 = vpop.permute.xlu2 %625 }
 0x161   :  { %11917 = vst [vmem:[#allocation83_spill] sm:$0xff] %v7304_v62 }
 0x162   :  { %11918 = vst [vmem:[#allocation84_spill] sm:$0xff] %v7306_v61 }
 0x166   :  { %6726 = vset.pattern.permute.xlu1 %v6799_v39 }
 0x167   :  { %826 = vperm.xlu1 %6726, %v6835_v1   ;;  %v7309_v53 = vpop.permute.xlu1 %532  ;;  %830 = vperm.xlu2 %6724, %v6856_v5  }
 0x168   :  { %11919 = vst [vmem:[#allocation85_spill] sm:$0xff] %v7309_v53  ;;  %866 = vperm.xlu0 %6725, %v6915_v15   ;;  %v7313_v42 = vpop.permute.xlu0 %552  ;;  %v7315_v47 = vpop.permute.xlu2 %637 }
 0x169   :  { %11920 = vst [vmem:[#allocation86_spill] sm:$0xff] %v7313_v42 }
 0x16a   :  { %11921 = vst [vmem:[#allocation87_spill] sm:$0xff] %v7315_v47 }
 0x16f   :  { %834 = vperm.xlu1 %6726, %v6830_v0   ;;  %v7318_v49 = vpop.permute.xlu1 %544  ;;  %838 = vperm.xlu2 %6724, %v6851_v4  }
 0x170   :  { %11922 = vst [vmem:[#allocation88_spill] sm:$0xff] %v7318_v49  ;;  %878 = vperm.xlu0 %6725, %v6933_v18   ;;  %v7322_v39 = vpop.permute.xlu2 %645 }
 0x171   :  { %11923 = vst [vmem:[#allocation89_spill] sm:$0xff] %v7322_v39  ;;  %v7324_v61 = vpop.permute.xlu0 %629 }
 0x172   :  { %11924 = vst [vmem:[#allocation90_spill] sm:$0xff] %v7324_v61 }
 0x177   :  { %846 = vperm.xlu1 %6726, %v6874_v8   ;;  %v7327_v53 = vpop.permute.xlu1 %556  ;;  %850 = vperm.xlu2 %6724, %v6869_v7  }
 0x178   :  { %11925 = vst [vmem:[#allocation91_spill] sm:$0xff] %v7327_v53  ;;  %890 = vperm.xlu0 %6725, %v6951_v21   ;;  %v7331_v47 = vpop.permute.xlu2 %657 }
 0x179   :  { %11926 = vst [vmem:[#allocation92_spill] sm:$0xff] %v7331_v47  ;;  %v7333_v42 = vpop.permute.xlu0 %649 }
 0x17f   :  { %858 = vperm.xlu1 %6726, %v6892_v11   ;;  %862 = vperm.xlu2 %6724, %v6887_v10  }
 0x180   :  { %902 = vperm.xlu0 %6725, %v6969_v24   ;;  %v7338_v39 = vpop.permute.xlu1 %633  ;;  %v7340_v49 = vpop.permute.xlu2 %669 }
 0x181   :  { %11927 = vst [vmem:[#allocation93_spill] sm:$0xff] %v7338_v39  ;;  %v7342_v61 = vpop.permute.xlu0 %661 }
 0x182   :  { %11928 = vst [vmem:[#allocation94_spill] sm:$0xff] %v7340_v49 }
 0x187   :  { %870 = vperm.xlu1 %6726, %v6910_v14   ;;  %874 = vperm.xlu2 %6724, %v6905_v13  }
 0x188   :  { %914 = vperm.xlu0 %6725, %v6987_v27   ;;  %v7347_v47 = vpop.permute.xlu1 %641  ;;  %v7349_v53 = vpop.permute.xlu2 %681 }
 0x189   :  { %11929 = vst [vmem:[#allocation95_spill] sm:$0xff] %v7347_v47  ;;  %v7351_v62 = vpop.permute.xlu0 %673 }
 0x18a   :  { %11930 = vst [vmem:[#allocation96_spill] sm:$0xff] %v7349_v53 }
 0x18f   :  { %882 = vperm.xlu1 %6726, %v6928_v17   ;;  %886 = vperm.xlu2 %6724, %v6923_v16  }
 0x190   :  { %926 = vperm.xlu0 %6725, %v7005_v30   ;;  %v7356_v49 = vpop.permute.xlu1 %653  ;;  %v7358_v39 = vpop.permute.xlu2 %693 }
 0x191   :  { %11931 = vst [vmem:[#allocation97_spill] sm:$0xff] %v7356_v49  ;;  %v7360_v35 = vpop.permute.xlu0 %685  ;;  %v6800_v49 = vmov 5  }
 0x197   :  { %894 = vperm.xlu1 %6726, %v6946_v20   ;;  %898 = vperm.xlu2 %6724, %v6941_v19  }
 0x198   :  { %938 = vperm.xlu0 %6725, %v7018_v32   ;;  %v7365_v53 = vpop.permute.xlu1 %665  ;;  %v7367_v47 = vpop.permute.xlu2 %705 }
 0x199   :  { %11932 = vst [vmem:[#allocation98_spill] sm:$0xff] %v7365_v53  ;;  %v7369_v63 = vpop.permute.xlu0 %697 }
 0x19f   :  { %906 = vperm.xlu1 %6726, %v6964_v23   ;;  %910 = vperm.xlu2 %6724, %v6959_v22  }
 0x1a0   :  { %6728 = vset.pattern.permute.xlu0 %v6800_v49  ;;  %v7373_v60 = vpop.permute.xlu1 %677  ;;  %v7375_v50 = vpop.permute.xlu2 %717 }
 0x1a1   :  { %11933 = vst [vmem:[#allocation99_spill] sm:$0xff] %v7373_v60  ;;  %1015 = vperm.xlu0 %6728, %v6861_v6   ;;  %v7378_v19 = vpop.permute.xlu0 %709 }
 0x1a7   :  { %918 = vperm.xlu1 %6726, %v6982_v26   ;;  %922 = vperm.xlu2 %6724, %v6977_v25  }
 0x1a8   :  { %v7382_v53 = vpop.permute.xlu1 %689  ;;  %v7384_v20 = vpop.permute.xlu2 %729 }
 0x1a9   :  { %11934 = vst [vmem:[#allocation100_spill] sm:$0xff] %v7382_v53  ;;  %1035 = vperm.xlu0 %6728, %v6879_v9   ;;  %v7387_v22 = vpop.permute.xlu0 %721 }
 0x1af   :  { %930 = vperm.xlu1 %6726, %v7000_v29   ;;  %934 = vperm.xlu2 %6724, %v6995_v28  }
 0x1b0   :  { %v7391_v60 = vpop.permute.xlu1 %701  ;;  %v7393_v23 = vpop.permute.xlu2 %741 }
 0x1b1   :  { %11935 = vst [vmem:[#allocation101_spill] sm:$0xff] %v7391_v60  ;;  %1047 = vperm.xlu0 %6728, %v6897_v12   ;;  %v7396_v26 = vpop.permute.xlu0 %733 }
 0x1b2   :  { %11936 = vst [vmem:[#allocation102_spill] sm:$0xff] %v7393_v23  ;;  %v7410_v23 = vld [vmem:[%s11802_s1] sm:$0xff] }
 0x1b3   :  { %v7446_v60 = vperm.slane %v7410_v23, 4 }
 0x1b7   :  { %942 = vperm.xlu1 %6726, %v7013_v31   ;;  %6727 = vset.pattern.permute.xlu2 %v6800_v49 }
 0x1b8   :  { %v7399_v53 = vpop.permute.xlu1 %713  ;;  %1011 = vperm.xlu2 %6727, %v6840_v2   ;;  %v7417_v2 = vperm.slane %v7410_v23, 1 }
 0x1b9   :  { %11937 = vst [vmem:[#allocation103_spill] sm:$0xff] %v7399_v53  ;;  %1059 = vperm.xlu0 %6728, %v6915_v15   ;;  %v7403_v29 = vpop.permute.xlu0 %745  ;;  %v7405_v28 = vpop.permute.xlu2 %818 }
 0x1ba   :  { %11938 = vst [vmem:[#allocation104_spill] sm:$0xff] %v7403_v29  ;;  %v373_v53 = vmul.f32 %v7417_v2, %v7153_v36 }
 0x1bb   :  { %11939 = vst [vmem:[#allocation105_spill] sm:$0xff] %v7405_v28 }
 0x1bf   :  { %6729 = vset.pattern.permute.xlu1 %v6800_v49  ;;  %v7425_v49 = vperm.slane %v7410_v23, 0 }
 0x1c0   :  { %1019 = vperm.xlu1 %6729, %v6835_v1   ;;  %v7413_v31 = vpop.permute.xlu1 %725  ;;  %1023 = vperm.xlu2 %6727, %v6856_v5   ;;  %v7430_v1 = vperm.slane %v7410_v23, 2 }
 0x1c1   :  { %11940 = vst [vmem:[#allocation106_spill] sm:$0xff] %v7413_v31  ;;  %1071 = vperm.xlu0 %6728, %v6933_v18   ;;  %v7420_v15 = vpop.permute.xlu2 %830  ;;  %v212_v5 = vmul.f32 %v7425_v49, %v7063_v45  ;;  %v7437_v18 = vperm.slane %v7410_v23, 3 }
 0x1c2   :  { %11941 = vst [vmem:[#allocation107_spill] sm:$0xff] %v7420_v15  ;;  %v7422_v28 = vpop.permute.xlu0 %822  ;;  %v566_v31 = vmul.f32 %v7430_v1, %v7243_v34 }
 0x1c3   :  { %11942 = vst [vmem:[#allocation108_spill] sm:$0xff] %v7422_v28  ;;  %v405_v15 = vadd.f32 %v373_v53, %v212_v5  ;;  %v759_v28 = vmul.f32 %v7437_v18, %v7333_v42  ;;  %v376_v53 = vmul.f32 %v7417_v2, %v7162_v44 }
 0x1c5   :  { %v598_v36 = vadd.f32 %v566_v31, %v405_v15 }
 0x1c7   :  { %v791_v5 = vadd.f32 %v759_v28, %v598_v36 }
 0x1c8   :  { %1027 = vperm.xlu1 %6729, %v6830_v0   ;;  %v7442_v29 = vpop.permute.xlu1 %737  ;;  %1031 = vperm.xlu2 %6727, %v6851_v4   ;;  %v215_v0 = vmul.f32 %v7425_v49, %v7072_v48  ;;  %v569_v4 = vmul.f32 %v7430_v1, %v7252_v55  ;;  %v379_v55 = vmul.f32 %v7417_v2, %v7171_v3 }
 0x1c9   :  { %1083 = vperm.xlu0 %6728, %v6951_v21   ;;  %v7449_v45 = vpop.permute.xlu2 %838  ;;  %v762_v21 = vmul.f32 %v7437_v18, %v7342_v61  ;;  %v218_v61 = vmul.f32 %v7425_v49, %v7081_v51 }
 0x1ca   :  { %11943 = vst [vmem:[#allocation109_spill] sm:$0xff] %v7449_v45  ;;  %v843_v34 = vpop.permute.xlu0 %842  ;;  %v408_v15 = vadd.f32 %v376_v53, %v215_v0 }
 0x1cb   :  { %v952_v42 = vmul.f32 %v7446_v60, %v843_v34 }
 0x1cc   :  { %v601_v28 = vadd.f32 %v569_v4, %v408_v15  ;;  %v768_v15 = vmul.f32 %v7437_v18, %v7360_v35 }
 0x1cd   :  { %v7458_v31 = vadd.f32 %v952_v42, %v791_v5 }
 0x1ce   :  { %v794_v36 = vadd.f32 %v762_v21, %v601_v28 }
 0x1d0   :  { %1039 = vperm.xlu1 %6729, %v6874_v8   ;;  %v7463_v45 = vpop.permute.xlu1 %749  ;;  %1043 = vperm.xlu2 %6727, %v6869_v7   ;;  %v572_v8 = vmul.f32 %v7430_v1, %v7261_v59  ;;  %v411_v7 = vadd.f32 %v379_v55, %v218_v61  ;;  %v382_v59 = vmul.f32 %v7417_v2, %v7180_v58 }
 0x1d1   :  { %1095 = vperm.xlu0 %6728, %v6969_v24   ;;  %v7467_v44 = vpop.permute.xlu2 %850  ;;  %v765_v24 = vmul.f32 %v7437_v18, %v7351_v62  ;;  %v221_v62 = vmul.f32 %v7425_v49, %v7090_v54 }
 0x1d2   :  { %v855_v48 = vpop.permute.xlu0 %854  ;;  %v604_v3 = vadd.f32 %v572_v8, %v411_v7  ;;  %v771_v8 = vmul.f32 %v7437_v18, %v7369_v63  ;;  %v387_v7 = vmul.f32 %v7417_v2, %v7169_v37  ;;  %v388_v63 = vmul.f32 %v7417_v2, %v7198_v38 }
 0x1d3   :  { %v955_v34 = vmul.f32 %v7446_v60, %v855_v48  ;;  %v385_v48 = vmul.f32 %v7417_v2, %v7189_v33  ;;  %v770_v33 = vmul.f32 %v7437_v18, %v7358_v39 }
 0x1d4   :  { %v797_v0 = vadd.f32 %v765_v24, %v604_v3 }
 0x1d5   :  { %v7476_v53 = vadd.f32 %v955_v34, %v794_v36  ;;  %v578_v36 = vmul.f32 %v7430_v1, %v7279_v52 }
 0x1d8   :  { %1051 = vperm.xlu1 %6729, %v6892_v11   ;;  %1055 = vperm.xlu2 %6727, %v6887_v10   ;;  %v575_v10 = vmul.f32 %v7430_v1, %v7270_v41  ;;  %v384_v41 = vmul.f32 %v7417_v2, %v7160_v40 }
 0x1d9   :  { %1107 = vperm.xlu0 %6728, %v6987_v27   ;;  %v7483_v5 = vpop.permute.xlu1 %826  ;;  %v7485_v42 = vpop.permute.xlu2 %862  ;;  %v414_v27 = vadd.f32 %v382_v59, %v221_v62  ;;  %v11946_v62 = vld [vmem:[#allocation78_spill] sm:$0xff] }
 0x1da   :  { %v867_v51 = vpop.permute.xlu0 %866 }
 0x1db   :  { %v958_v4 = vmul.f32 %v7446_v60, %v867_v51  ;;  %v607_v58 = vadd.f32 %v575_v10, %v414_v27  ;;  %v581_v10 = vmul.f32 %v7430_v1, %v11946_v62  ;;  %v11955_v62 = vld [vmem:[#allocation8_spill] sm:$0xff] }
 0x1dd   :  { %v7494_v11 = vadd.f32 %v958_v4, %v797_v0  ;;  %v800_v55 = vadd.f32 %v768_v15, %v607_v58  ;;  %v11945_v4 = vld [vmem:[#allocation31_spill] sm:$0xff]  ;;  %v773_v15 = vmul.f32 %v7437_v18, %v7367_v47 }
 0x1de   :  { %v227_v37 = vmul.f32 %v7425_v49, %v11945_v4  ;;  %v777_v4 = vmul.f32 %v7437_v18, %v7387_v22 }
 0x1e0   :  { %1063 = vperm.xlu1 %6729, %v6910_v14   ;;  %1067 = vperm.xlu2 %6727, %v6905_v13   ;;  %v223_v13 = vmul.f32 %v7425_v49, %v7058_v43  ;;  %v577_v14 = vmul.f32 %v7430_v1, %v7259_v56  ;;  %v420_v58 = vadd.f32 %v388_v63, %v227_v37 }
 0x1e1   :  { %1119 = vperm.xlu0 %6728, %v7005_v30   ;;  %v7501_v21 = vpop.permute.xlu1 %834  ;;  %v7503_v28 = vpop.permute.xlu2 %874  ;;  %v224_v30 = vmul.f32 %v7425_v49, %v7099_v57 }
 0x1e2   :  { %v879_v54 = vpop.permute.xlu0 %878  ;;  %v416_v34 = vadd.f32 %v384_v41, %v223_v13 }
 0x1e3   :  { %v961_v35 = vmul.f32 %v7446_v60, %v879_v54  ;;  %v417_v61 = vadd.f32 %v385_v48, %v224_v30  ;;  %v11947_v54 = vld [vmem:[#allocation6_spill] sm:$0xff]  ;;  %v11948_v48 = vld [vmem:[#allocation5_spill] sm:$0xff] }
 0x1e4   :  { %v609_v43 = vadd.f32 %v577_v14, %v416_v34  ;;  %v11949_v30 = vld [vmem:[#allocation50_spill] sm:$0xff] }
 0x1e5   :  { %v7518_v40 = vadd.f32 %v961_v35, %v800_v55  ;;  %v610_v56 = vadd.f32 %v578_v36, %v417_v61  ;;  %v613_v55 = vadd.f32 %v581_v10, %v420_v58  ;;  %v6801_v35 = vmov 6   ;;  %v11956_v10 = vld [vmem:[#allocation7_spill] sm:$0xff] }
 0x1e6   :  { %v802_v24 = vadd.f32 %v770_v33, %v609_v43  ;;  %v390_v36 = vmul.f32 %v7417_v2, %v11949_v30  ;;  %v11950_v33 = vld [vmem:[#allocation56_spill] sm:$0xff] }
 0x1e7   :  { %v803_v51 = vadd.f32 %v771_v8, %v610_v56  ;;  %v391_v61 = vmul.f32 %v7417_v2, %v11950_v33  ;;  %v11951_v56 = vld [vmem:[#allocation24_spill] sm:$0xff] }
 0x1e8   :  { %1075 = vperm.xlu1 %6729, %v6928_v17   ;;  %1079 = vperm.xlu2 %6727, %v6923_v16   ;;  %v226_v16 = vmul.f32 %v7425_v49, %v7067_v46  ;;  %v774_v46 = vmul.f32 %v7437_v18, %v7378_v19 }
 0x1e9   :  { %1131 = vperm.xlu0 %6728, %v7018_v32   ;;  %v7527_v57 = vpop.permute.xlu1 %846  ;;  %v887_v52 = vpop.permute.xlu2 %886  ;;  %v11944_v32 = vld [vmem:[#allocation73_spill] sm:$0xff] }
 0x1ea   :  { %v963_v39 = vmul.f32 %v7446_v60, %v887_v52  ;;  %v891_v3 = vpop.permute.xlu0 %890  ;;  %v580_v59 = vmul.f32 %v7430_v1, %v11944_v32  ;;  %v419_v38 = vadd.f32 %v387_v7, %v226_v16  ;;  %v806_v8 = vadd.f32 %v774_v46, %v613_v55  ;;  %v11952_v7 = vld [vmem:[#allocation75_spill] sm:$0xff]  ;;  %v11957_v46 = vld [vmem:[#allocation52_spill] sm:$0xff] }
 0x1eb   :  { %v964_v17 = vmul.f32 %v7446_v60, %v891_v3  ;;  %v229_v52 = vmul.f32 %v7425_v49, %v11951_v56  ;;  %v11953_v3 = vld [vmem:[#allocation34_spill] sm:$0xff]  ;;  %v776_v32 = vmul.f32 %v7437_v18, %v7375_v50  ;;  %v11958_v55 = vld [vmem:[#allocation59_spill] sm:$0xff] }
 0x1ec   :  { %v7539_v0 = vadd.f32 %v963_v39, %v802_v24  ;;  %v612_v41 = vadd.f32 %v580_v59, %v419_v38  ;;  %v583_v24 = vmul.f32 %v7430_v1, %v11952_v7  ;;  %v230_v63 = vmul.f32 %v7425_v49, %v11953_v3 }
 0x1ed   :  { %v7545_v27 = vadd.f32 %v964_v17, %v803_v51  ;;  %v11954_v51 = vld [vmem:[#allocation81_spill] sm:$0xff]  ;;  %v422_v16 = vadd.f32 %v390_v36, %v229_v52  ;;  %v394_v22 = vmul.f32 %v7417_v2, %v11958_v55  ;;  %v11959_v36 = vld [vmem:[#allocation26_spill] sm:$0xff]  ;;  %v779_v7 = vmul.f32 %v7437_v18, %v7384_v20  ;;  %v11969_v55 = vld [vmem:[#allocation79_spill] sm:$0xff] }
 0x1ee   :  { %v805_v47 = vadd.f32 %v773_v15, %v612_v41  ;;  %v423_v59 = vadd.f32 %v391_v61, %v230_v63  ;;  %v393_v41 = vmul.f32 %v7417_v2, %v11957_v46  ;;  %v11961_v61 = vld [vmem:[#allocation37_spill] sm:$0xff]  ;;  %v780_v3 = vmul.f32 %v7437_v18, %v7396_v26 }
 0x1ef   :  { %v615_v37 = vadd.f32 %v583_v24, %v422_v16 }
 0x1f0   :  { %1087 = vperm.xlu1 %6729, %v11947_v54   ;;  %1091 = vperm.xlu2 %6727, %v11948_v48  }
 0x1f1   :  { %6731 = vset.pattern.permute.xlu0 %v6801_v35  ;;  %v7554_v13 = vpop.permute.xlu1 %858  ;;  %v899_v14 = vpop.permute.xlu2 %898  ;;  %v808_v54 = vadd.f32 %v776_v32, %v615_v37  ;;  %v11965_v37 = vld [vmem:[#allocation54_spill] sm:$0xff] }
 0x1f2   :  { %v966_v34 = vmul.f32 %v7446_v60, %v899_v14  ;;  %1208 = vperm.xlu0 %6731, %v6861_v6   ;;  %v903_v19 = vpop.permute.xlu0 %902  ;;  %v584_v6 = vmul.f32 %v7430_v1, %v11954_v51  ;;  %v11963_v51 = vld [vmem:[#allocation9_spill] sm:$0xff] }
 0x1f3   :  { %v967_v43 = vmul.f32 %v7446_v60, %v903_v19 }
 0x1f4   :  { %v7567_v39 = vadd.f32 %v966_v34, %v805_v47  ;;  %v616_v38 = vadd.f32 %v584_v6, %v423_v59  ;;  %v232_v47 = vmul.f32 %v7425_v49, %v11959_v36  ;;  %v11960_v34 = vld [vmem:[#allocation77_spill] sm:$0xff]  ;;  %v11971_v36 = vld [vmem:[#allocation40_spill] sm:$0xff] }
 0x1f5   :  { %v7573_v17 = vadd.f32 %v967_v43, %v806_v8  ;;  %v586_v19 = vmul.f32 %v7430_v1, %v11960_v34  ;;  %v233_v8 = vmul.f32 %v7425_v49, %v11961_v61  ;;  %v11962_v43 = vld [vmem:[#allocation83_spill] sm:$0xff]  ;;  %v11964_v59 = vld [vmem:[#allocation53_spill] sm:$0xff]  ;;  %v11972_v34 = vld [vmem:[#allocation86_spill] sm:$0xff] }
 0x1f6   :  { %v809_v14 = vadd.f32 %v777_v4, %v616_v38  ;;  %v425_v52 = vadd.f32 %v393_v41, %v232_v47  ;;  %v386_v4 = vmul.f32 %v7417_v2, %v11964_v59  ;;  %v11966_v38 = vld [vmem:[#allocation28_spill] sm:$0xff]  ;;  %v236_v47 = vmul.f32 %v7425_v49, %v11971_v36  ;;  %v11977_v59 = vld [vmem:[#allocation21_spill] sm:$0xff] }
 0x1f7   :  { %v426_v24 = vadd.f32 %v394_v22, %v233_v8  ;;  %v579_v22 = vmul.f32 %v7430_v1, %v11969_v55  ;;  %v7658_v36 = vld [vmem:[%s11801_s0 + $0x60] sm:$0xff] }
 0x1f8   :  { %1099 = vperm.xlu1 %6729, %v11955_v62   ;;  %1103 = vperm.xlu2 %6727, %v11956_v10   ;;  %v618_v63 = vadd.f32 %v586_v19, %v425_v52  ;;  %v396_v62 = vmul.f32 %v7417_v2, %v11965_v37  ;;  %v590_v19 = vmul.f32 %v7430_v1, %v11972_v34  ;;  %v11983_v34 = vld [vmem:[#allocation30_spill] sm:$0xff] }
 0x1f9   :  { %v7581_v15 = vpop.permute.xlu1 %870  ;;  %v911_v58 = vpop.permute.xlu2 %910  ;;  %v207_v37 = vmul.f32 %v7425_v49, %v11977_v59 }
 0x1fa   :  { %v969_v48 = vmul.f32 %v7446_v60, %v911_v58  ;;  %1228 = vperm.xlu0 %6731, %v6879_v9   ;;  %v915_v50 = vpop.permute.xlu0 %914  ;;  %v587_v9 = vmul.f32 %v7430_v1, %v11962_v43  ;;  %v811_v20 = vadd.f32 %v779_v7, %v618_v63  ;;  %v235_v58 = vmul.f32 %v7425_v49, %v11966_v38  ;;  %v11974_v7 = vld [vmem:[#allocation102_spill] sm:$0xff] }
 0x1fb   :  { %v970_v30 = vmul.f32 %v7446_v60, %v915_v50 }
 0x1fc   :  { %v7594_v33 = vadd.f32 %v969_v48, %v808_v54  ;;  %v619_v6 = vadd.f32 %v587_v9, %v426_v24  ;;  %v11968_v48 = vld [vmem:[#allocation29_spill] sm:$0xff]  ;;  %v428_v43 = vadd.f32 %v396_v62, %v235_v58  ;;  %v782_v24 = vmul.f32 %v7437_v18, %v11974_v7  ;;  %v11979_v62 = vld [vmem:[#allocation10_spill] sm:$0xff]  ;;  %v11981_v58 = vld [vmem:[#allocation44_spill] sm:$0xff] }
 0x1fd   :  { %v7600_v56 = vadd.f32 %v970_v30, %v809_v14  ;;  %v225_v50 = vmul.f32 %v7425_v49, %v11968_v48  ;;  %v11970_v14 = vld [vmem:[#allocation80_spill] sm:$0xff]  ;;  %v11973_v9 = vld [vmem:[#allocation101_spill] sm:$0xff]  ;;  %v11985_v7 = vld [vmem:[#allocation66_spill] sm:$0xff] }
 0x1fe   :  { %v812_v41 = vadd.f32 %v780_v3, %v619_v6  ;;  %v589_v30 = vmul.f32 %v7430_v1, %v11970_v14  ;;  %v772_v52 = vmul.f32 %v7437_v18, %v11973_v9  ;;  %v11975_v3 = vld [vmem:[#allocation18_spill] sm:$0xff]  ;;  %v11976_v6 = vld [vmem:[#allocation104_spill] sm:$0xff] }
 0x1ff   :  { %v418_v8 = vadd.f32 %v386_v4, %v225_v50  ;;  %v206_v63 = vmul.f32 %v7425_v49, %v11975_v3  ;;  %v11978_v4 = vld [vmem:[#allocation11_spill] sm:$0xff]  ;;  %v11986_v3 = vld [vmem:[#allocation82_spill] sm:$0xff] }
 0x200   :  { %1111 = vperm.xlu1 %6729, %v11963_v51   ;;  %1115 = vperm.xlu2 %6727, %v6977_v25   ;;  %v11967_v25 = vld [vmem:[#allocation62_spill] sm:$0xff] }
 0x201   :  { %v7608_v16 = vpop.permute.xlu1 %882  ;;  %v923_v32 = vpop.permute.xlu2 %922  ;;  %v397_v46 = vmul.f32 %v7417_v2, %v11967_v25  ;;  %v368_v25 = vmul.f32 %v7417_v2, %v11981_v58  ;;  %v11988_v58 = vld [vmem:[#allocation90_spill] sm:$0xff] }
 0x202   :  { %v972_v10 = vmul.f32 %v7446_v60, %v923_v32  ;;  %1240 = vperm.xlu0 %6731, %v6897_v12   ;;  %v927_v26 = vpop.permute.xlu0 %926  ;;  %v783_v32 = vmul.f32 %v7437_v18, %v11976_v6 }
 0x203   :  { %v973_v54 = vmul.f32 %v7446_v60, %v927_v26  ;;  %v429_v51 = vadd.f32 %v397_v46, %v236_v47  ;;  %v11980_v26 = vld [vmem:[#allocation32_spill] sm:$0xff] }
 0x204   :  { %v7627_v12 = vadd.f32 %v972_v10, %v811_v20  ;;  %v611_v20 = vadd.f32 %v579_v22, %v418_v8  ;;  %v621_v10 = vadd.f32 %v589_v30, %v428_v43  ;;  %v367_v38 = vmul.f32 %v7417_v2, %v11980_v26 }
 0x205   :  { %v7633_v61 = vadd.f32 %v973_v54, %v812_v41  ;;  %v11982_v41 = vld [vmem:[#allocation55_spill] sm:$0xff]  ;;  %v622_v54 = vadd.f32 %v590_v19, %v429_v51  ;;  %v228_v8 = vmul.f32 %v7425_v49, %v11983_v34  ;;  %v11984_v19 = vld [vmem:[#allocation57_spill] sm:$0xff]  ;;  %v582_v51 = vmul.f32 %v7430_v1, %v11986_v3 }
 0x206   :  { %v389_v46 = vmul.f32 %v7417_v2, %v11982_v41  ;;  %v804_v55 = vadd.f32 %v772_v52, %v611_v20  ;;  %v814_v14 = vadd.f32 %v782_v24, %v621_v10  ;;  %v560_v43 = vmul.f32 %v7430_v1, %v11984_v19  ;;  %v11987_v10 = vld [vmem:[#allocation84_spill] sm:$0xff]  ;;  %v11994_v34 = vld [vmem:[#allocation35_spill] sm:$0xff] }
 0x207   :  { %v815_v9 = vadd.f32 %v783_v32, %v622_v54  ;;  %v561_v24 = vmul.f32 %v7430_v1, %v11985_v7  ;;  %v399_v20 = vadd.f32 %v367_v38, %v206_v63  ;;  %v400_v26 = vadd.f32 %v368_v25, %v207_v37  ;;  %v11989_v54 = vld [vmem:[#allocation103_spill] sm:$0xff]  ;;  %v11992_v37 = vld [vmem:[#allocation12_spill] sm:$0xff] }
 0x208   :  { %1123 = vperm.xlu1 %6729, %v11978_v4   ;;  %1127 = vperm.xlu2 %6727, %v11979_v62   ;;  %v753_v4 = vmul.f32 %v7437_v18, %v11987_v10  ;;  %v421_v32 = vadd.f32 %v389_v46, %v228_v8  ;;  %v754_v41 = vmul.f32 %v7437_v18, %v11988_v58  ;;  %v11993_v25 = vld [vmem:[#allocation20_spill] sm:$0xff] }
 0x209   :  { %v895_v48 = vpop.permute.xlu1 %894  ;;  %v935_v50 = vpop.permute.xlu2 %934  ;;  %v593_v63 = vadd.f32 %v561_v24, %v400_v26  ;;  %v209_v46 = vmul.f32 %v7425_v49, %v11993_v25  ;;  %v370_v8 = vmul.f32 %v7417_v2, %v11994_v34  ;;  %v11999_v25 = vld [vmem:[#allocation87_spill] sm:$0xff] }
 0x20a   :  { %v965_v22 = vmul.f32 %v7446_v60, %v895_v48  ;;  %v975_v30 = vmul.f32 %v7446_v60, %v935_v50  ;;  %1252 = vperm.xlu0 %6731, %v7658_v36   ;;  %v939_v47 = vpop.permute.xlu0 %938  ;;  %v775_v48 = vmul.f32 %v7437_v18, %v11989_v54  ;;  %v592_v50 = vadd.f32 %v560_v43, %v399_v20  ;;  %v7707_v20 = vld [vmem:[%s11801_s0 + $0x78] sm:$0xff] }
 0x20b   :  { %v976_v52 = vmul.f32 %v7446_v60, %v939_v47  ;;  %v11990_v47 = vld [vmem:[#allocation105_spill] sm:$0xff]  ;;  %v614_v38 = vadd.f32 %v582_v51, %v421_v32  ;;  %v786_v24 = vadd.f32 %v754_v41, %v593_v63  ;;  %v11997_v32 = vld [vmem:[#allocation60_spill] sm:$0xff]  ;;  %v756_v34 = vmul.f32 %v7437_v18, %v11999_v25 }
 0x20c   :  { %v7670_v6 = vadd.f32 %v965_v22, %v804_v55  ;;  %v7672_v59 = vadd.f32 %v975_v30, %v814_v14  ;;  %v946_v55 = vmul.f32 %v7446_v60, %v11990_v47  ;;  %v7685_v14 = vperm.slane %v7410_v23, 5  ;;  %v11991_v22 = vld [vmem:[#allocation108_spill] sm:$0xff] }
 0x20d   :  { %v7676_v62 = vadd.f32 %v976_v52, %v815_v9  ;;  %v947_v30 = vmul.f32 %v7446_v60, %v11991_v22  ;;  %v785_v19 = vadd.f32 %v753_v4, %v592_v50  ;;  %v7698_v9 = vld [vmem:[%s11801_s0] sm:$0xff]  ;;  %v11995_v52 = vld [vmem:[#allocation58_spill] sm:$0xff]  ;;  %v807_v3 = vadd.f32 %v775_v48, %v614_v38 }
 0x20e   :  { %v392_v7 = vmul.f32 %v7417_v2, %v11995_v52  ;;  %v11996_v4 = vld [vmem:[#allocation33_spill] sm:$0xff]  ;;  %v563_v58 = vmul.f32 %v7430_v1, %v11997_v32  ;;  %v12001_v32 = vld [vmem:[#allocation107_spill] sm:$0xff] }
 0x20f   :  { %v231_v26 = vmul.f32 %v7425_v49, %v11996_v4  ;;  %v978_v54 = vadd.f32 %v946_v55, %v785_v19  ;;  %v11998_v50 = vld [vmem:[#allocation85_spill] sm:$0xff]  ;;  %v979_v63 = vadd.f32 %v947_v30, %v786_v24  ;;  %v12000_v4 = vld [vmem:[#allocation106_spill] sm:$0xff]  ;;  %v949_v30 = vmul.f32 %v7446_v60, %v12001_v32 }
 0x210   :  { %1135 = vperm.xlu1 %6729, %v11992_v37   ;;  %6730 = vset.pattern.permute.xlu2 %v6801_v35  ;;  %v585_v47 = vmul.f32 %v7430_v1, %v11998_v50  ;;  %v402_v37 = vadd.f32 %v370_v8, %v209_v46  ;;  %v778_v55 = vmul.f32 %v7437_v18, %v12000_v4  ;;  %v12007_v4 = vld [vmem:[#allocation36_spill] sm:$0xff] }
 0x211   :  { %v907_v43 = vpop.permute.xlu1 %906  ;;  %1204 = vperm.xlu2 %6730, %v7698_v9   ;;  %v424_v52 = vadd.f32 %v392_v7, %v231_v26  ;;  %v7736_v7 = vld [vmem:[%s11801_s0 + $0x10] sm:$0xff]  ;;  %v7742_v26 = vld [vmem:[%s11801_s0 + $0x18] sm:$0xff] }
 0x212   :  { %v968_v51 = vmul.f32 %v7446_v60, %v907_v43  ;;  %1264 = vperm.xlu0 %6731, %v7707_v20   ;;  %v1012_v10 = vpop.permute.xlu2 %1011  ;;  %12003 = vst [vmem:[#allocation73_spill] sm:$0xff] %v7742_v26 }
 0x213   :  { %v1139_v41 = vmul.f32 %v7685_v14, %v1012_v10  ;;  %v1016_v48 = vpop.permute.xlu0 %1015  ;;  %v595_v10 = vadd.f32 %v563_v58, %v402_v37  ;;  %v617_v24 = vadd.f32 %v585_v47, %v424_v52  ;;  %v12005_v47 = vld [vmem:[#allocation14_spill] sm:$0xff] }
 0x214   :  { %v7717_v38 = vadd.f32 %v968_v51, %v807_v3  ;;  %v1140_v22 = vmul.f32 %v7685_v14, %v1016_v48  ;;  %v12002_v3 = vld [vmem:[#allocation38_spill] sm:$0xff]  ;;  %v7751_v48 = vld [vmem:[%s11801_s0 + $0x90] sm:$0xff] }
 0x215   :  { %v7722_v43 = vadd.f32 %v1139_v41, %v978_v54  ;;  %v372_v46 = vmul.f32 %v7417_v2, %v12002_v3  ;;  %v788_v8 = vadd.f32 %v756_v34, %v595_v10  ;;  %v810_v54 = vadd.f32 %v778_v55, %v617_v24  ;;  %v12008_v10 = vld [vmem:[#allocation88_spill] sm:$0xff] }
 0x216   :  { %v7726_v19 = vadd.f32 %v1140_v22, %v979_v63  ;;  %v211_v63 = vmul.f32 %v7425_v49, %v12005_v47  ;;  %v12006_v22 = vld [vmem:[#allocation63_spill] sm:$0xff]  ;;  %v234_v55 = vmul.f32 %v7425_v49, %v12007_v4  ;;  %v588_v32 = vmul.f32 %v7430_v1, %v12008_v10  ;;  %v12012_v4 = vld [vmem:[#allocation109_spill] sm:$0xff] }
 0x217   :  { %v565_v37 = vmul.f32 %v7430_v1, %v12006_v22  ;;  %v981_v25 = vadd.f32 %v949_v30, %v788_v8  ;;  %v781_v8 = vmul.f32 %v7437_v18, %v7442_v29  ;;  %v12013_v10 = vld [vmem:[#allocation41_spill] sm:$0xff] }
 0x218   :  { %6732 = vset.pattern.permute.xlu1 %v6801_v35  ;;  %v12004_v35 = vld [vmem:[#allocation61_spill] sm:$0xff] }
 0x219   :  { %1212 = vperm.xlu1 %6732, %v7736_v7   ;;  %v919_v51 = vpop.permute.xlu1 %918  ;;  %1216 = vperm.xlu2 %6730, %v7742_v26   ;;  %v395_v58 = vmul.f32 %v7417_v2, %v12004_v35  ;;  %v12010_v35 = vld [vmem:[#allocation89_spill] sm:$0xff] }
 0x21a   :  { %v971_v41 = vmul.f32 %v7446_v60, %v919_v51  ;;  %1276 = vperm.xlu0 %6731, %v7751_v48   ;;  %v1024_v50 = vpop.permute.xlu2 %1023  ;;  %v404_v51 = vadd.f32 %v372_v46, %v211_v63  ;;  %v758_v47 = vmul.f32 %v7437_v18, %v12010_v35  ;;  %v375_v46 = vmul.f32 %v7417_v2, %v12013_v10  ;;  %v12018_v35 = vld [vmem:[#allocation65_spill] sm:$0xff]  ;;  %v12020_v10 = vld [vmem:[#allocation91_spill] sm:$0xff] }
 0x21b   :  { %v1142_v34 = vmul.f32 %v7685_v14, %v1024_v50  ;;  %v1036_v52 = vpop.permute.xlu0 %1035  ;;  %v427_v30 = vadd.f32 %v395_v58, %v234_v55  ;;  %v12016_v58 = vld [vmem:[#allocation64_spill] sm:$0xff]  ;;  %v7797_v55 = vld [vmem:[%s11801_s0 + $0xa8] sm:$0xff] }
 0x21c   :  { %v7763_v24 = vadd.f32 %v971_v41, %v810_v54  ;;  %v1145_v3 = vmul.f32 %v7685_v14, %v1036_v52  ;;  %v597_v22 = vadd.f32 %v565_v37, %v404_v51  ;;  %v951_v54 = vmul.f32 %v7446_v60, %v12012_v4  ;;  %v12019_v4 = vld [vmem:[#allocation39_spill] sm:$0xff] }
 0x21d   :  { %v7768_v26 = vadd.f32 %v1142_v34, %v981_v25  ;;  %v620_v41 = vadd.f32 %v588_v32, %v427_v30  ;;  %v7782_v25 = vld [vmem:[%s11801_s0 + $0x20] sm:$0xff]  ;;  %v398_v37 = vmul.f32 %v7417_v2, %v12016_v58 }
 0x21e   :  { %12009 = vst [vmem:[#allocation31_spill] sm:$0xff] %v7763_v24  ;;  %v7773_v50 = vadd.f32 %v1145_v3, %v7458_v31  ;;  %v790_v63 = vadd.f32 %v758_v47, %v597_v22  ;;  %v7788_v31 = vld [vmem:[%s11801_s0 + $0x28] sm:$0xff]  ;;  %v12017_v3 = vld [vmem:[#allocation15_spill] sm:$0xff]  ;;  %v568_v47 = vmul.f32 %v7430_v1, %v12018_v35 }
 0x21f   :  { %12011 = vst [vmem:[#allocation78_spill] sm:$0xff] %v7768_v26  ;;  %v813_v34 = vadd.f32 %v781_v8, %v620_v41  ;;  %v214_v51 = vmul.f32 %v7425_v49, %v12017_v3  ;;  %v237_v41 = vmul.f32 %v7425_v49, %v12019_v4  ;;  %v12022_v26 = vld [vmem:[#allocation92_spill] sm:$0xff] }
 0x220   :  { %12014 = vst [vmem:[#allocation6_spill] sm:$0xff] %v7782_v25  ;;  %v983_v30 = vadd.f32 %v951_v54, %v790_v63  ;;  %v761_v3 = vmul.f32 %v7437_v18, %v12022_v26  ;;  %v784_v63 = vmul.f32 %v7437_v18, %v7463_v45 }
 0x221   :  { %1220 = vperm.xlu1 %6732, %v7782_v25   ;;  %v931_v29 = vpop.permute.xlu1 %930  ;;  %12015 = vst [vmem:[#allocation5_spill] sm:$0xff] %v7788_v31  ;;  %1224 = vperm.xlu2 %6730, %v7788_v31   ;;  %v407_v25 = vadd.f32 %v375_v46, %v214_v51  ;;  %v430_v54 = vadd.f32 %v398_v37, %v237_v41  ;;  %v12025_v51 = vld [vmem:[#allocation43_spill] sm:$0xff]  ;;  %v7830_v37 = vld [vmem:[%s11801_s0 + $0x38] sm:$0xff]  ;;  %v7847_v41 = vld [vmem:[%s11801_s0 + $0xc0] sm:$0xff] }
 0x222   :  { %v974_v52 = vmul.f32 %v7446_v60, %v931_v29  ;;  %1288 = vperm.xlu0 %6731, %v7797_v55   ;;  %v1032_v32 = vpop.permute.xlu2 %1031  ;;  %v591_v29 = vmul.f32 %v7430_v1, %v12020_v10  ;;  %v378_v26 = vmul.f32 %v7417_v2, %v12025_v51  ;;  %12026 = vst [vmem:[#allocation24_spill] sm:$0xff] %v7830_v37 }
 0x223   :  { %v1144_v22 = vmul.f32 %v7685_v14, %v1032_v32  ;;  %v1048_v8 = vpop.permute.xlu0 %1047  ;;  %v600_v35 = vadd.f32 %v568_v47, %v407_v25 }
 0x224   :  { %v7809_v58 = vadd.f32 %v974_v52, %v813_v34  ;;  %v1148_v31 = vmul.f32 %v7685_v14, %v1048_v8  ;;  %v954_v34 = vmul.f32 %v7446_v60, %v7467_v44  ;;  %v12024_v52 = vld [vmem:[#allocation42_spill] sm:$0xff]  ;;  %v623_v46 = vadd.f32 %v591_v29, %v430_v54  ;;  %v7836_v44 = vld [vmem:[%s11801_s0 + $0x40] sm:$0xff]  ;;  %v12030_v29 = vld [vmem:[#allocation67_spill] sm:$0xff] }
 0x225   :  { %v7814_v24 = vadd.f32 %v1144_v22, %v983_v30  ;;  %v369_v8 = vmul.f32 %v7417_v2, %v12024_v52  ;;  %v793_v30 = vadd.f32 %v761_v3, %v600_v35  ;;  %12027 = vst [vmem:[#allocation75_spill] sm:$0xff] %v7836_v44  ;;  %v562_v3 = vmul.f32 %v7430_v1, %v12030_v29  ;;  %v12031_v54 = vld [vmem:[#allocation68_spill] sm:$0xff] }
 0x226   :  { %12021 = vst [vmem:[#allocation50_spill] sm:$0xff] %v7809_v58  ;;  %v7819_v32 = vadd.f32 %v1148_v31, %v7476_v53  ;;  %v12028_v53 = vld [vmem:[#allocation16_spill] sm:$0xff]  ;;  %v12029_v31 = vld [vmem:[#allocation17_spill] sm:$0xff]  ;;  %v816_v22 = vadd.f32 %v784_v63, %v623_v46  ;;  %v571_v35 = vmul.f32 %v7430_v1, %v12031_v54 }
 0x227   :  { %12023 = vst [vmem:[#allocation56_spill] sm:$0xff] %v7814_v24  ;;  %v217_v25 = vmul.f32 %v7425_v49, %v12028_v53  ;;  %v208_v47 = vmul.f32 %v7425_v49, %v12029_v31  ;;  %v986_v52 = vadd.f32 %v954_v34, %v793_v30  ;;  %v12034_v24 = vld [vmem:[#allocation94_spill] sm:$0xff] }
 0x228   :  { %v764_v58 = vmul.f32 %v7437_v18, %v12034_v24 }
 0x229   :  { %1232 = vperm.xlu1 %6732, %v7830_v37   ;;  %v943_v45 = vpop.permute.xlu1 %942  ;;  %1236 = vperm.xlu2 %6730, %v7836_v44   ;;  %v401_v46 = vadd.f32 %v369_v8, %v208_v47  ;;  %v410_v31 = vadd.f32 %v378_v26, %v217_v25  ;;  %v12033_v44 = vld [vmem:[#allocation93_spill] sm:$0xff]  ;;  %v948_v8 = vmul.f32 %v7446_v60, %v7483_v5  ;;  %v7884_v5 = vld [vmem:[%s11801_s0 + $0x58] sm:$0xff] }
 0x22a   :  { %v977_v4 = vmul.f32 %v7446_v60, %v943_v45  ;;  %1300 = vperm.xlu0 %6731, %v7847_v41   ;;  %v1044_v10 = vpop.permute.xlu2 %1043  ;;  %v755_v37 = vmul.f32 %v7437_v18, %v12033_v44  ;;  %v957_v47 = vmul.f32 %v7446_v60, %v7485_v42  ;;  %v12036_v26 = vld [vmem:[#allocation45_spill] sm:$0xff]  ;;  %v12037_v44 = vld [vmem:[#allocation46_spill] sm:$0xff]  ;;  %12039 = vst [vmem:[#allocation7_spill] sm:$0xff] %v7884_v5 }
 0x22b   :  { %v1147_v51 = vmul.f32 %v7685_v14, %v1044_v10  ;;  %v1060_v63 = vpop.permute.xlu0 %1059  ;;  %v594_v34 = vadd.f32 %v562_v3, %v401_v46  ;;  %v603_v30 = vadd.f32 %v571_v35, %v410_v31  ;;  %v371_v25 = vmul.f32 %v7417_v2, %v12036_v26  ;;  %v12040_v42 = vld [vmem:[#allocation13_spill] sm:$0xff]  ;;  %v12041_v3 = vld [vmem:[#allocation19_spill] sm:$0xff] }
 0x22c   :  { %v7855_v45 = vadd.f32 %v977_v4, %v816_v22  ;;  %v1151_v53 = vmul.f32 %v7685_v14, %v1060_v63  ;;  %v381_v22 = vmul.f32 %v7417_v2, %v12037_v44  ;;  %v210_v10 = vmul.f32 %v7425_v49, %v12040_v42  ;;  %v7898_v63 = vld [vmem:[%s11801_s0 + $0xd8] sm:$0xff] }
 0x22d   :  { %v7862_v29 = vadd.f32 %v1147_v51, %v986_v52  ;;  %v787_v24 = vadd.f32 %v755_v37, %v594_v34  ;;  %v796_v4 = vadd.f32 %v764_v58, %v603_v30  ;;  %v220_v58 = vmul.f32 %v7425_v49, %v12041_v3  ;;  %v12042_v37 = vld [vmem:[#allocation69_spill] sm:$0xff]  ;;  %v12043_v52 = vld [vmem:[#allocation70_spill] sm:$0xff]  ;;  %12044 = vst [vmem:[#allocation52_spill] sm:$0xff] %v7898_v63 }
 0x22e   :  { %12032 = vst [vmem:[#allocation34_spill] sm:$0xff] %v7855_v45  ;;  %v7865_v54 = vadd.f32 %v1151_v53, %v7494_v11  ;;  %v7878_v11 = vld [vmem:[%s11801_s0 + $0x50] sm:$0xff]  ;;  %v564_v35 = vmul.f32 %v7430_v1, %v12042_v37  ;;  %v574_v51 = vmul.f32 %v7430_v1, %v12043_v52  ;;  %v403_v42 = vadd.f32 %v371_v25, %v210_v10 }
 0x22f   :  { %12035 = vst [vmem:[#allocation81_spill] sm:$0xff] %v7862_v29  ;;  %v980_v31 = vadd.f32 %v948_v8, %v787_v24  ;;  %v989_v34 = vadd.f32 %v957_v47, %v796_v4  ;;  %v413_v3 = vadd.f32 %v381_v22, %v220_v58  ;;  %v12045_v52 = vld [vmem:[#allocation95_spill] sm:$0xff]  ;;  %v950_v25 = vmul.f32 %v7446_v60, %v7501_v21  ;;  %v12048_v21 = vld [vmem:[#allocation22_spill] sm:$0xff] }
 0x230   :  { %12038 = vst [vmem:[#allocation8_spill] sm:$0xff] %v7878_v11  ;;  %v596_v47 = vadd.f32 %v564_v35, %v403_v42  ;;  %v960_v22 = vmul.f32 %v7446_v60, %v7503_v28  ;;  %v12047_v4 = vld [vmem:[#allocation47_spill] sm:$0xff]  ;;  %v213_v28 = vmul.f32 %v7425_v49, %v12048_v21 }
 0x231   :  { %1244 = vperm.xlu1 %6732, %v7878_v11   ;;  %1248 = vperm.xlu2 %6730, %v7884_v5   ;;  %v757_v5 = vmul.f32 %v7437_v18, %v12045_v52  ;;  %v12046_v11 = vld [vmem:[#allocation96_spill] sm:$0xff]  ;;  %v606_v24 = vadd.f32 %v574_v51, %v413_v3  ;;  %v374_v10 = vmul.f32 %v7417_v2, %v12047_v4  ;;  %v12049_v35 = vld [vmem:[#allocation71_spill] sm:$0xff] }
 0x232   :  { %1312 = vperm.xlu0 %6731, %v7898_v63   ;;  %v1020_v46 = vpop.permute.xlu1 %1019  ;;  %v1056_v53 = vpop.permute.xlu2 %1055  ;;  %v767_v29 = vmul.f32 %v7437_v18, %v12046_v11 }
 0x233   :  { %v1141_v30 = vmul.f32 %v7685_v14, %v1020_v46  ;;  %v1150_v26 = vmul.f32 %v7685_v14, %v1056_v53  ;;  %v1072_v44 = vpop.permute.xlu0 %1071  ;;  %v789_v58 = vadd.f32 %v757_v5, %v596_v47  ;;  %v7924_v46 = vld [vmem:[%s11801_s0 + $0x68] sm:$0xff]  ;;  %v7940_v5 = vld [vmem:[%s11801_s0 + $0xf0] sm:$0xff]  ;;  %v406_v3 = vadd.f32 %v374_v10, %v213_v28  ;;  %v7962_v10 = vld [vmem:[%s11801_s0 + $0x80] sm:$0xff] }
 0x234   :  { %v1154_v37 = vmul.f32 %v7685_v14, %v1072_v44  ;;  %v799_v11 = vadd.f32 %v767_v29, %v606_v24  ;;  %v567_v29 = vmul.f32 %v7430_v1, %v12049_v35  ;;  %v12052_v28 = vld [vmem:[#allocation23_spill] sm:$0xff]  ;;  %v11822_v35 = vmov 7  }
 0x235   :  { %v7908_v45 = vadd.f32 %v1141_v30, %v980_v31  ;;  %v7910_v63 = vadd.f32 %v1150_v26, %v989_v34  ;;  %v982_v31 = vadd.f32 %v950_v25, %v789_v58  ;;  %v12051_v58 = vld [vmem:[#allocation48_spill] sm:$0xff] }
 0x236   :  { %v7913_v8 = vadd.f32 %v1154_v37, %v7518_v40  ;;  %v7930_v40 = vld [vmem:[%s11801_s0 + $0x70] sm:$0xff]  ;;  %v992_v34 = vadd.f32 %v960_v22, %v799_v11  ;;  %v12050_v37 = vld [vmem:[#allocation97_spill] sm:$0xff]  ;;  %v599_v25 = vadd.f32 %v567_v29, %v406_v3  ;;  %v953_v22 = vmul.f32 %v7446_v60, %v7527_v57 }
 0x237   :  { %v760_v52 = vmul.f32 %v7437_v18, %v12050_v37  ;;  %v377_v11 = vmul.f32 %v7417_v2, %v12051_v58  ;;  %v216_v57 = vmul.f32 %v7425_v49, %v12052_v28 }
 0x239   :  { %1256 = vperm.xlu1 %6732, %v7924_v46   ;;  %1260 = vperm.xlu2 %6730, %v7930_v40   ;;  %v792_v21 = vadd.f32 %v760_v52, %v599_v25  ;;  %v409_v37 = vadd.f32 %v377_v11, %v216_v57  ;;  %v12054_v52 = vld [vmem:[#allocation98_spill] sm:$0xff]  ;;  %v7999_v11 = vld [vmem:[%s11801_s0 + $0x98] sm:$0xff] }
 0x23a   :  { %1324 = vperm.xlu0 %6731, %v7940_v5   ;;  %v1028_v51 = vpop.permute.xlu1 %1027  ;;  %v1068_v53 = vpop.permute.xlu2 %1067  ;;  %v763_v25 = vmul.f32 %v7437_v18, %v12054_v52 }
 0x23b   :  { %v1143_v30 = vmul.f32 %v7685_v14, %v1028_v51  ;;  %v1153_v26 = vmul.f32 %v7685_v14, %v1068_v53  ;;  %v1084_v44 = vpop.permute.xlu0 %1083  ;;  %v12053_v53 = vld [vmem:[#allocation72_spill] sm:$0xff] }
 0x23c   :  { %v1157_v42 = vmul.f32 %v7685_v14, %v1084_v44  ;;  %v6756_v44 = vld [vmem:[%s11801_s0 + $0x8] sm:$0xff] }
 0x23d   :  { %v7948_v47 = vadd.f32 %v1143_v30, %v982_v31  ;;  %v7950_v24 = vadd.f32 %v1153_v26, %v992_v34  ;;  %v570_v31 = vmul.f32 %v7430_v1, %v12053_v53  ;;  %v985_v34 = vadd.f32 %v953_v22, %v792_v21 }
 0x23e   :  { %v7953_v4 = vadd.f32 %v1157_v42, %v7545_v27  ;;  %v7968_v27 = vld [vmem:[%s11801_s0 + $0x88] sm:$0xff] }
 0x23f   :  { %v602_v28 = vadd.f32 %v570_v31, %v409_v37  ;;  %v6759_v37 = vld [vmem:[%s11801_s0 + $0x30] sm:$0xff] }
 0x241   :  { %1268 = vperm.xlu1 %6732, %v7962_v10   ;;  %1272 = vperm.xlu2 %6730, %v7968_v27  }
 0x242   :  { %6734 = vset.pattern.permute.xlu0 %v11822_v35  ;;  %v1040_v29 = vpop.permute.xlu1 %1039  ;;  %v1080_v51 = vpop.permute.xlu2 %1079 }
 0x243   :  { %v1146_v30 = vmul.f32 %v7685_v14, %v1040_v29  ;;  %v1156_v26 = vmul.f32 %v7685_v14, %v1080_v51  ;;  %1401 = vperm.xlu0 %6734, %v6756_v44   ;;  %v1096_v42 = vpop.permute.xlu0 %1095  ;;  %v956_v29 = vmul.f32 %v7446_v60, %v7554_v13  ;;  %v12055_v51 = vld [vmem:[#allocation49_spill] sm:$0xff]  ;;  %v795_v44 = vadd.f32 %v763_v25, %v602_v28 }
 0x244   :  { %v1160_v3 = vmul.f32 %v7685_v14, %v1096_v42  ;;  %v380_v53 = vmul.f32 %v7417_v2, %v12055_v51  ;;  %v12058_v51 = vld [vmem:[#allocation99_spill] sm:$0xff] }
 0x245   :  { %v7984_v58 = vadd.f32 %v1146_v30, %v985_v34  ;;  %v7987_v22 = vadd.f32 %v1156_v26, %v7539_v0  ;;  %v8005_v0 = vld [vmem:[%s11801_s0 + $0xa0] sm:$0xff]  ;;  %v12057_v34 = vld [vmem:[#allocation74_spill] sm:$0xff]  ;;  %v988_v26 = vadd.f32 %v956_v29, %v795_v44 }
 0x246   :  { %v7990_v21 = vadd.f32 %v1160_v3, %v7573_v17  ;;  %v12056_v17 = vld [vmem:[#allocation25_spill] sm:$0xff]  ;;  %v573_v30 = vmul.f32 %v7430_v1, %v12057_v34  ;;  %v12059_v34 = vld [vmem:[#allocation51_spill] sm:$0xff] }
 0x247   :  { %v219_v13 = vmul.f32 %v7425_v49, %v12056_v17  ;;  %v766_v17 = vmul.f32 %v7437_v18, %v12058_v51 }
 0x249   :  { %1280 = vperm.xlu1 %6732, %v7999_v11   ;;  %1284 = vperm.xlu2 %6730, %v8005_v0   ;;  %v412_v28 = vadd.f32 %v380_v53, %v219_v13  ;;  %v8035_v53 = vld [vmem:[%s11801_s0 + $0xb0] sm:$0xff] }
 0x24a   :  { %v1052_v57 = vpop.permute.xlu1 %1051  ;;  %v1092_v31 = vpop.permute.xlu2 %1091 }
 0x24b   :  { %v1149_v42 = vmul.f32 %v7685_v14, %v1052_v57  ;;  %v1159_v3 = vmul.f32 %v7685_v14, %v1092_v31  ;;  %1421 = vperm.xlu0 %6734, %v6759_v37   ;;  %v1108_v52 = vpop.permute.xlu0 %1107  ;;  %v605_v57 = vadd.f32 %v573_v30, %v412_v28  ;;  %v959_v31 = vmul.f32 %v7446_v60, %v7581_v15  ;;  %v12061_v30 = vld [vmem:[#allocation76_spill] sm:$0xff]  ;;  %v6762_v28 = vld [vmem:[%s11801_s0 + $0x48] sm:$0xff] }
 0x24c   :  { %v1163_v25 = vmul.f32 %v7685_v14, %v1108_v52  ;;  %v383_v37 = vmul.f32 %v7417_v2, %v12059_v34 }
 0x24d   :  { %v8020_v35 = vadd.f32 %v1149_v42, %v988_v26  ;;  %v8023_v29 = vadd.f32 %v1159_v3, %v7567_v39  ;;  %v798_v52 = vadd.f32 %v766_v17, %v605_v57  ;;  %v8041_v39 = vld [vmem:[%s11801_s0 + $0xb8] sm:$0xff]  ;;  %v576_v26 = vmul.f32 %v7430_v1, %v12061_v30 }
 0x24e   :  { %v8026_v44 = vadd.f32 %v1163_v25, %v7600_v56  ;;  %v12060_v56 = vld [vmem:[#allocation27_spill] sm:$0xff] }
 0x24f   :  { %v222_v15 = vmul.f32 %v7425_v49, %v12060_v56  ;;  %v991_v42 = vadd.f32 %v959_v31, %v798_v52  ;;  %v12062_v49 = vld [vmem:[#allocation100_spill] sm:$0xff] }
 0x250   :  { %v769_v34 = vmul.f32 %v7437_v18, %v12062_v49  ;;  %v8075_v18 = vld [vmem:[%s11801_s0 + $0xd0] sm:$0xff] }
 0x251   :  { %1292 = vperm.xlu1 %6732, %v8035_v53   ;;  %1296 = vperm.xlu2 %6730, %v8041_v39   ;;  %v415_v57 = vadd.f32 %v383_v37, %v222_v15  ;;  %v8069_v37 = vld [vmem:[%s11801_s0 + $0xc8] sm:$0xff] }
 0x252   :  { %v1064_v13 = vpop.permute.xlu1 %1063  ;;  %v1104_v2 = vpop.permute.xlu2 %1103 }
 0x253   :  { %v1152_v3 = vmul.f32 %v7685_v14, %v1064_v13  ;;  %v1162_v25 = vmul.f32 %v7685_v14, %v1104_v2  ;;  %1433 = vperm.xlu0 %6734, %v6762_v28   ;;  %v1120_v51 = vpop.permute.xlu0 %1119  ;;  %v608_v52 = vadd.f32 %v576_v26, %v415_v57  ;;  %v962_v13 = vmul.f32 %v7446_v60, %v7608_v16  ;;  %v8093_v28 = vld [vmem:[%s11801_s0 + $0xe0] sm:$0xff] }
 0x254   :  { %v1166_v17 = vmul.f32 %v7685_v14, %v1120_v51 }
 0x255   :  { %v8056_v56 = vadd.f32 %v1152_v3, %v991_v42  ;;  %v8059_v1 = vadd.f32 %v1162_v25, %v7594_v33  ;;  %v801_v2 = vadd.f32 %v769_v34, %v608_v52 }
 0x256   :  { %v8062_v31 = vadd.f32 %v1166_v17, %v7633_v61 }
 0x257   :  { %v994_v15 = vadd.f32 %v962_v13, %v801_v2  ;;  %v8121_v2 = vld [vmem:[%s11801_s0 + $0xf8] sm:$0xff] }
 0x259   :  { %1304 = vperm.xlu1 %6732, %v8069_v37   ;;  %1308 = vperm.xlu2 %6730, %v8075_v18  }
 0x25a   :  { %v1076_v33 = vpop.permute.xlu1 %1075  ;;  %v1116_v61 = vpop.permute.xlu2 %1115 }
 0x25b   :  { %v1155_v60 = vmul.f32 %v7685_v14, %v1076_v33  ;;  %v1165_v16 = vmul.f32 %v7685_v14, %v1116_v61  ;;  %1445 = vperm.xlu0 %6734, %v7658_v36   ;;  %v1132_v30 = vpop.permute.xlu0 %1131  ;;  %v8099_v36 = vld [vmem:[%s11801_s0 + $0xe8] sm:$0xff] }
 0x25c   :  { %v1169_v26 = vmul.f32 %v7685_v14, %v1132_v30 }
 0x25d   :  { %v8082_v42 = vadd.f32 %v1155_v60, %v994_v15  ;;  %v8085_v3 = vadd.f32 %v1165_v16, %v7627_v12  ;;  %v8103_v12 = vperm.slane %v7410_v23, 6 }
 0x25e   :  { %v8088_v25 = vadd.f32 %v1169_v26, %v7676_v62 }
 0x261   :  { %1316 = vperm.xlu1 %6732, %v8093_v28   ;;  %1320 = vperm.xlu2 %6730, %v8099_v36  }
 0x262   :  { %v1088_v51 = vpop.permute.xlu1 %1087  ;;  %v1128_v62 = vpop.permute.xlu2 %1127 }
 0x263   :  { %v1158_v17 = vmul.f32 %v7685_v14, %v1088_v51  ;;  %v1168_v57 = vmul.f32 %v7685_v14, %v1128_v62  ;;  %1457 = vperm.xlu0 %6734, %v7707_v20   ;;  %v12063_v20 = vmov 7  }
 0x264   :  { %v1209_v49 = vpop.permute.xlu0 %1208 }
 0x265   :  { %v8109_v34 = vadd.f32 %v1158_v17, %v7670_v6  ;;  %v8112_v52 = vadd.f32 %v1168_v57, %v7672_v59  ;;  %v1333_v13 = vmul.f32 %v8103_v12, %v1209_v49  ;;  %v12067_v57 = vld [vmem:[#allocation78_spill] sm:$0xff] }
 0x267   :  { %v8116_v23 = vadd.f32 %v1333_v13, %v7726_v19  ;;  %v12068_v13 = vld [vmem:[#allocation6_spill] sm:$0xff] }
 0x269   :  { %1328 = vperm.xlu1 %6732, %v8121_v2   ;;  %6733 = vset.pattern.permute.xlu2 %v12063_v20 }
 0x26a   :  { %v1100_v33 = vpop.permute.xlu1 %1099  ;;  %1397 = vperm.xlu2 %6733, %v7698_v9  }
 0x26b   :  { %v1161_v6 = vmul.f32 %v7685_v14, %v1100_v33  ;;  %1469 = vperm.xlu0 %6734, %v7751_v48   ;;  %v1205_v59 = vpop.permute.xlu2 %1204  ;;  %v12065_v48 = vld [vmem:[#allocation73_spill] sm:$0xff] }
 0x26c   :  { %v1332_v19 = vmul.f32 %v8103_v12, %v1205_v59  ;;  %v1229_v61 = vpop.permute.xlu0 %1228  ;;  %v12069_v33 = vld [vmem:[#allocation5_spill] sm:$0xff] }
 0x26d   :  { %v8130_v15 = vadd.f32 %v1161_v6, %v7717_v38  ;;  %v1338_v60 = vmul.f32 %v8103_v12, %v1229_v61  ;;  %v12070_v61 = vld [vmem:[#allocation50_spill] sm:$0xff] }
 0x26e   :  { %v8134_v16 = vadd.f32 %v1332_v19, %v7722_v43  ;;  %v12066_v43 = vld [vmem:[#allocation31_spill] sm:$0xff] }
 0x26f   :  { %12064 = vst [vmem:[#allocation59_spill] sm:$0xff] %v8130_v15  ;;  %v8137_v30 = vadd.f32 %v1338_v60, %v7773_v50 }
 0x271   :  { %6735 = vset.pattern.permute.xlu1 %v12063_v20 }
 0x272   :  { %1405 = vperm.xlu1 %6735, %v7736_v7   ;;  %v1112_v9 = vpop.permute.xlu1 %1111  ;;  %1409 = vperm.xlu2 %6733, %v12065_v48  }
 0x273   :  { %v1164_v26 = vmul.f32 %v7685_v14, %v1112_v9  ;;  %1481 = vperm.xlu0 %6734, %v7797_v55   ;;  %v1217_v38 = vpop.permute.xlu2 %1216 }
 0x274   :  { %v1335_v51 = vmul.f32 %v8103_v12, %v1217_v38  ;;  %v1241_v62 = vpop.permute.xlu0 %1240  ;;  %v12072_v38 = vld [vmem:[#allocation24_spill] sm:$0xff] }
 0x275   :  { %v8146_v17 = vadd.f32 %v1164_v26, %v12066_v43  ;;  %v1341_v50 = vmul.f32 %v8103_v12, %v1241_v62  ;;  %v12073_v62 = vld [vmem:[#allocation75_spill] sm:$0xff]  ;;  %v12074_v43 = vld [vmem:[#allocation52_spill] sm:$0xff] }
 0x276   :  { %v8150_v49 = vadd.f32 %v1335_v51, %v12067_v57 }
 0x277   :  { %v8153_v7 = vadd.f32 %v1341_v50, %v7819_v32  ;;  %v12071_v32 = vld [vmem:[#allocation56_spill] sm:$0xff] }
 0x27a   :  { %1413 = vperm.xlu1 %6735, %v12068_v13   ;;  %v1124_v20 = vpop.permute.xlu1 %1123  ;;  %1417 = vperm.xlu2 %6733, %v12069_v33  }
 0x27b   :  { %v1167_v55 = vmul.f32 %v7685_v14, %v1124_v20  ;;  %1493 = vperm.xlu0 %6734, %v7847_v41   ;;  %v1225_v6 = vpop.permute.xlu2 %1224  ;;  %v12075_v20 = vld [vmem:[#allocation34_spill] sm:$0xff] }
 0x27c   :  { %v1337_v59 = vmul.f32 %v8103_v12, %v1225_v6  ;;  %v1253_v19 = vpop.permute.xlu0 %1252 }
 0x27d   :  { %v8161_v60 = vadd.f32 %v1167_v55, %v12070_v61  ;;  %v1344_v9 = vmul.f32 %v8103_v12, %v1253_v19  ;;  %v12078_v19 = vld [vmem:[#allocation8_spill] sm:$0xff] }
 0x27e   :  { %v8165_v48 = vadd.f32 %v1337_v59, %v12071_v32 }
 0x27f   :  { %v8168_v26 = vadd.f32 %v1344_v9, %v7865_v54  ;;  %v12077_v54 = vld [vmem:[#allocation81_spill] sm:$0xff] }
 0x282   :  { %1425 = vperm.xlu1 %6735, %v12072_v38   ;;  %v1136_v51 = vpop.permute.xlu1 %1135  ;;  %1429 = vperm.xlu2 %6733, %v12073_v62  }
 0x283   :  { %v1170_v41 = vmul.f32 %v7685_v14, %v1136_v51  ;;  %1505 = vperm.xlu0 %6734, %v12074_v43   ;;  %v1237_v50 = vpop.permute.xlu2 %1236  ;;  %v12079_v14 = vld [vmem:[#allocation7_spill] sm:$0xff] }
 0x284   :  { %v1340_v57 = vmul.f32 %v8103_v12, %v1237_v50  ;;  %v1265_v13 = vpop.permute.xlu0 %1264 }
 0x285   :  { %v8176_v33 = vadd.f32 %v1170_v41, %v12075_v20  ;;  %v1347_v55 = vmul.f32 %v8103_v12, %v1265_v13 }
 0x286   :  { %v8180_v6 = vadd.f32 %v1340_v57, %v12077_v54 }
 0x287   :  { %12076 = vst [vmem:[#allocation26_spill] sm:$0xff] %v8176_v33  ;;  %v8183_v59 = vadd.f32 %v1347_v55, %v7913_v8 }
 0x28a   :  { %1437 = vperm.xlu1 %6735, %v12078_v19   ;;  %1441 = vperm.xlu2 %6733, %v12079_v14  }
 0x28b   :  { %1517 = vperm.xlu0 %6734, %v7940_v5   ;;  %v1213_v61 = vpop.permute.xlu1 %1212  ;;  %v1249_v9 = vpop.permute.xlu2 %1248 }
 0x28c   :  { %v1334_v32 = vmul.f32 %v8103_v12, %v1213_v61  ;;  %v1343_v38 = vmul.f32 %v8103_v12, %v1249_v9  ;;  %v1277_v51 = vpop.permute.xlu0 %1276 }
 0x28d   :  { %v1350_v62 = vmul.f32 %v8103_v12, %v1277_v51 }
 0x28e   :  { %v8192_v41 = vadd.f32 %v1334_v32, %v7908_v45  ;;  %v8195_v8 = vadd.f32 %v1343_v38, %v7910_v63 }
 0x28f   :  { %v8198_v43 = vadd.f32 %v1350_v62, %v7953_v4 }
 0x292   :  { %1449 = vperm.xlu1 %6735, %v7924_v46   ;;  %1453 = vperm.xlu2 %6733, %v7930_v40  }
 0x293   :  { %v1221_v5 = vpop.permute.xlu1 %1220  ;;  %v1261_v50 = vpop.permute.xlu2 %1260 }
 0x294   :  { %v1336_v57 = vmul.f32 %v8103_v12, %v1221_v5  ;;  %v1346_v13 = vmul.f32 %v8103_v12, %v1261_v50  ;;  %v1289_v20 = vpop.permute.xlu0 %1288 }
 0x295   :  { %v1353_v45 = vmul.f32 %v8103_v12, %v1289_v20 }
 0x296   :  { %v8206_v55 = vadd.f32 %v1336_v57, %v7948_v47  ;;  %v8209_v63 = vadd.f32 %v1346_v13, %v7950_v24 }
 0x297   :  { %v8212_v4 = vadd.f32 %v1353_v45, %v7990_v21 }
 0x298   :  { %12080 = vst [vmem:[#allocation77_spill] sm:$0xff] %v8206_v55 }
 0x299   :  { %12081 = vst [vmem:[#allocation37_spill] sm:$0xff] %v8209_v63 }
 0x29a   :  { %12082 = vst [vmem:[#allocation83_spill] sm:$0xff] %v8212_v4  ;;  %1461 = vperm.xlu1 %6735, %v7962_v10   ;;  %1465 = vperm.xlu2 %6733, %v7968_v27  }
 0x29b   :  { %v1233_v46 = vpop.permute.xlu1 %1232  ;;  %v1273_v40 = vpop.permute.xlu2 %1272 }
 0x29c   :  { %v1339_v54 = vmul.f32 %v8103_v12, %v1233_v46  ;;  %v1349_v19 = vmul.f32 %v8103_v12, %v1273_v40  ;;  %v1301_v14 = vpop.permute.xlu0 %1300 }
 0x29d   :  { %v1356_v47 = vmul.f32 %v8103_v12, %v1301_v14 }
 0x29e   :  { %v8220_v61 = vadd.f32 %v1339_v54, %v7984_v58  ;;  %v8223_v24 = vadd.f32 %v1349_v19, %v7987_v22 }
 0x29f   :  { %v8226_v21 = vadd.f32 %v1356_v47, %v8026_v44 }
 0x2a0   :  { %12083 = vst [vmem:[#allocation9_spill] sm:$0xff] %v8220_v61 }
 0x2a1   :  { %12084 = vst [vmem:[#allocation53_spill] sm:$0xff] %v8223_v24 }
 0x2a2   :  { %12085 = vst [vmem:[#allocation54_spill] sm:$0xff] %v8226_v21  ;;  %1473 = vperm.xlu1 %6735, %v7999_v11   ;;  %1477 = vperm.xlu2 %6733, %v8005_v0  }
 0x2a3   :  { %v1245_v10 = vpop.permute.xlu1 %1244  ;;  %v1285_v27 = vpop.permute.xlu2 %1284 }
 0x2a4   :  { %v1342_v9 = vmul.f32 %v8103_v12, %v1245_v10  ;;  %v1352_v32 = vmul.f32 %v8103_v12, %v1285_v27  ;;  %v1313_v38 = vpop.permute.xlu0 %1312 }
 0x2a5   :  { %v1359_v58 = vmul.f32 %v8103_v12, %v1313_v38 }
 0x2a6   :  { %v8234_v51 = vadd.f32 %v1342_v9, %v8020_v35  ;;  %v8237_v22 = vadd.f32 %v1352_v32, %v8023_v29 }
 0x2a7   :  { %v8240_v44 = vadd.f32 %v1359_v58, %v8062_v31 }
 0x2a8   :  { %12086 = vst [vmem:[#allocation28_spill] sm:$0xff] %v8234_v51 }
 0x2a9   :  { %12087 = vst [vmem:[#allocation62_spill] sm:$0xff] %v8237_v22 }
 0x2aa   :  { %12088 = vst [vmem:[#allocation29_spill] sm:$0xff] %v8240_v44  ;;  %1485 = vperm.xlu1 %6735, %v8035_v53   ;;  %1489 = vperm.xlu2 %6733, %v8041_v39   ;;  %v6768_v53 = vld [vmem:[%s11802_s1] sm:$0xff]  ;;  %s6809_s1 = smov [#allocation2]  }
 0x2ab   :  { %v1257_v11 = vpop.permute.xlu1 %1256  ;;  %v1297_v0 = vpop.permute.xlu2 %1296  ;;  %v8261_v39 = vperm.slane %v6768_v53, 7  ;;  %s6585_s28 = sshll.u32 %s6809_s1, 4  ;;  %s6586_s28 = int_to_ptr.vmem [resolvable:$true] %s6585_s28 }
 0x2ac   :  { %v1345_v62 = vmul.f32 %v8103_v12, %v1257_v11  ;;  %v1355_v5 = vmul.f32 %v8103_v12, %v1297_v0  ;;  %v1325_v50 = vpop.permute.xlu0 %1324 }
 0x2ad   :  { %v1362_v35 = vmul.f32 %v8103_v12, %v1325_v50 }
 0x2ae   :  { %v8248_v57 = vadd.f32 %v1345_v62, %v8056_v56  ;;  %v8251_v29 = vadd.f32 %v1355_v5, %v8059_v1 }
 0x2af   :  { %v8254_v31 = vadd.f32 %v1362_v35, %v8088_v25 }
 0x2b0   :  { %12089 = vst [vmem:[#allocation79_spill] sm:$0xff] %v8248_v57 }
 0x2b1   :  { %12090 = vst [vmem:[#allocation80_spill] sm:$0xff] %v8251_v29 }
 0x2b2   :  { %12091 = vst [vmem:[#allocation40_spill] sm:$0xff] %v8254_v31  ;;  %1497 = vperm.xlu1 %6735, %v8069_v37   ;;  %1501 = vperm.xlu2 %6733, %v8075_v18  }
 0x2b3   :  { %v1269_v13 = vpop.permute.xlu1 %1268  ;;  %v1309_v20 = vpop.permute.xlu2 %1308 }
 0x2b4   :  { %v1348_v56 = vmul.f32 %v8103_v12, %v1269_v13  ;;  %v1358_v1 = vmul.f32 %v8103_v12, %v1309_v20  ;;  %v11836_v13 = vmov 683565275  }
 0x2b5   :  { %v1402_v45 = vpop.permute.xlu0 %1401 }
 0x2b6   :  { %v8266_v25 = vadd.f32 %v1348_v56, %v8082_v42  ;;  %v8269_v37 = vadd.f32 %v1358_v1, %v8085_v3  ;;  %v1526_v18 = vmul.f32 %v8261_v39, %v1402_v45  ;;  %v11832_v56 = vmov 2475754826  }
 0x2b7   :  { %v11830_v45 = vmov 2131351028  }
 0x2b8   :  { %12092 = vst [vmem:[#allocation86_spill] sm:$0xff] %v8266_v25  ;;  %v8273_v46 = vadd.f32 %v1526_v18, %v8116_v23  ;;  %v11826_v18 = vmov 2102212464  }
 0x2b9   :  { %12093 = vst [vmem:[#allocation101_spill] sm:$0xff] %v8269_v37 }
 0x2ba   :  { %v11825_v40 = vand.u32 2147483647, %v8273_v46  ;;  %v1747_v54 = vand.u32 2139095040, %v8273_v46  ;;  %1509 = vperm.xlu1 %6735, %v8093_v28   ;;  %1513 = vperm.xlu2 %6733, %v8099_v36  }
 0x2bb   :  { %v1281_v19 = vpop.permute.xlu1 %1280  ;;  %v1321_v14 = vpop.permute.xlu2 %1320 }
 0x2bc   :  { %v1748_v42 = vshrl.u32 %v1747_v54, 23  ;;  %v1751_v3 = vand.u32 8388607, %v11825_v40  ;;  %v1351_v47 = vmul.f32 %v8103_v12, %v1281_v19  ;;  %v1361_v10 = vmul.f32 %v8103_v12, %v1321_v14 }
 0x2bd   :  { %v1422_v23 = vpop.permute.xlu0 %1421 }
 0x2be   :  { %v6602_v27 = vadd.s32 4294967169, %v1748_v42  ;;  %v1752_v9 = vor.u32 8388608, %v1751_v3  ;;  %v8284_v32 = vadd.f32 %v1351_v47, %v8109_v34  ;;  %v1531_v28 = vmul.f32 %v8261_v39, %v1422_v23 }
 0x2bf   :  { %v8288_v36 = vadd.f32 %v1361_v10, %v8112_v52  ;;  %v11828_v3 = vmov 920167782   ;;  %v11834_v23 = vmov 1326507024  }
 0x2c0   :  { %12094 = vst [vmem:[#allocation102_spill] sm:$0xff] %v8284_v32  ;;  %v1754_v38 = vadd.s32 1, %v6602_v27  ;;  %v8291_v58 = vadd.f32 %v1531_v28, %v8137_v30  ;;  %v8293_v11 = vshll.u32 %v1752_v9, 8 }
 0x2c1   :  { %12095 = vst [vmem:[#allocation18_spill] sm:$0xff] %v8288_v36 }
 0x2c2   :  { %vm1755_vm0 = vcmp.gt.s32.totalorder %v1754_v38, 0  ;;  %v11824_v0 = vand.u32 2147483647, %v8291_v58  ;;  %1521 = vperm.xlu1 %6735, %v8121_v2   ;;  %v2522_v34 = vand.u32 2139095040, %v8291_v58  ;;  %v1793_v52 = vand.u32 65535, %v8293_v11 }
 0x2c3   :  { %v1756_v62 = vsel %vm1755_vm0, %v1754_v38, 0 }
 0x2c4   :  { %v1758_v5 = vand.u32 31, %v1756_v62  ;;  %v1757_v50 = vshrl.u32 %v1756_v62, 5  ;;  %v2523_v53 = vshrl.u32 %v2522_v34, 23  ;;  %v2526_v30 = vand.u32 8388607, %v11824_v0 }
 0x2c6   :  { %v1759_v35 = vsub.s32 32, %v1758_v5  ;;  %v1761_v20 = vshll.u32 %v11836_v13, %v1758_v5  ;;  %v1764_v1 = vshll.u32 %v11832_v56, %v1758_v5  ;;  %v1767_v2 = vshll.u32 %v11830_v45, %v1758_v5 }
 0x2c7   :  { %v1770_v54 = vshll.u32 %v11826_v18, %v1758_v5  ;;  %v1773_v47 = vshll.u32 %v11828_v3, %v1758_v5  ;;  %vm1776_vm1 = vcmp.lt.s32.totalorder %v1757_v50, 1  ;;  %vm1777_vm2 = vcmp.lt.s32.totalorder %v1757_v50, 2 }
 0x2c8   :  { %v1762_v19 = vshrl.u32 %v11832_v56, %v1759_v35  ;;  %v1765_v14 = vshrl.u32 %v11830_v45, %v1759_v35  ;;  %v1768_v42 = vshrl.u32 %v11826_v18, %v1759_v35  ;;  %v1771_v10 = vshrl.u32 %v11828_v3, %v1759_v35 }
 0x2c9   :  { %v1774_v27 = vshrl.u32 %v11834_v23, %v1759_v35  ;;  %v6617_v62 = vadd.s32 4294967169, %v2523_v53  ;;  %v1760_v34 = vshrl.u32 %v11836_v13, %v1759_v35  ;;  %vm1779_vm3 = vcmp.lt.s32.totalorder %v1757_v50, 4 }
 0x2ca   :  { %v1763_v9 = vor.u32 %v1762_v19, %v1761_v20  ;;  %v1766_v28 = vor.u32 %v1765_v14, %v1764_v1  ;;  %v1769_v38 = vor.u32 %v1768_v42, %v1767_v2  ;;  %v1772_v0 = vor.u32 %v1771_v10, %v1770_v54 }
 0x2cb   :  { %v1775_v40 = vor.u32 %v1774_v27, %v1773_v47  ;;  %vm1778_vm4 = vcmp.lt.s32.totalorder %v1757_v50, 3  ;;  %v2527_v23 = vor.u32 8388608, %v2526_v30  ;;  %v2529_v33 = vadd.s32 1, %v6617_v62 }
 0x2cc   :  { %v1781_v18 = vsel %vm1779_vm3, %v1769_v38, 2102212464  ;;  %v1784_v5 = vsel %vm1776_vm1, %v1763_v9, %v1766_v28  ;;  %v1788_v3 = vsel %vm1776_vm1, %v1766_v28, %v1769_v38  ;;  %v1785_v45 = vsel %vm1779_vm3, %v1772_v0, 920167782 }
 0x2cd   :  { %v1789_v56 = vsel %vm1779_vm3, %v1775_v40, 1326507024  ;;  %v1780_v20 = vsel %vm1776_vm1, %v1760_v34, %v1763_v9  ;;  %v1782_v1 = vsel %vm1778_vm4, %v1766_v28, %v1781_v18  ;;  %v1786_v2 = vsel %vm1778_vm4, %v1769_v38, %v1785_v45 }
 0x2ce   :  { %v1790_v53 = vsel %vm1778_vm4, %v1772_v0, %v1789_v56  ;;  %v1787_v35 = vsel %vm1777_vm2, %v1784_v5, %v1786_v2  ;;  %v1794_v19 = vshrl.u32 %v8293_v11, 16  ;;  %vm2530_vm5 = vcmp.gt.s32.totalorder %v2529_v33, 0 }
 0x2cf   :  { %v1791_v54 = vsel %vm1777_vm2, %v1788_v3, %v1790_v53  ;;  %v1817_v47 = vand.u32 65535, %v1787_v35  ;;  %v1818_v10 = vshrl.u32 %v1787_v35, 16  ;;  %v8319_v40 = vsel %vm1777_vm2, %v1780_v20, %v1782_v1 }
 0x2d0   :  { %v1795_v14 = vand.u32 65535, %v1791_v54  ;;  %v1796_v42 = vshrl.u32 %v1791_v54, 16  ;;  %v2531_v9 = vsel %vm2530_vm5, %v2529_v33, 0  ;;  %v8321_v18 = vshll.u32 %v2527_v23, 8 }
 0x2d1   :  { %v1820_v45 = vmul.u32 %v1818_v10, %v1793_v52  ;;  %v1821_v28 = vmul.u32 %v1817_v47, %v1794_v19  ;;  %v1819_v62 = vmul.u32 %v1817_v47, %v1793_v52  ;;  %v1822_v34 = vmul.u32 %v1818_v10, %v1794_v19 }
 0x2d2   :  { %v1798_v30 = vmul.u32 %v1796_v42, %v1793_v52  ;;  %v1799_v27 = vmul.u32 %v1795_v14, %v1794_v19  ;;  %v1797_v0 = vmul.u32 %v1795_v14, %v1793_v52  ;;  %v1800_v56 = vmul.u32 %v1796_v42, %v1794_v19 }
 0x2d3   :  { %v1823_v53 = vshll.u32 %v1820_v45, 16  ;;  %v1824_v35 = vshrl.u32 %v1820_v45, 16  ;;  %v1825_v20 = vshll.u32 %v1821_v28, 16  ;;  %v2533_v1 = vand.u32 31, %v2531_v9 }
 0x2d4   :  { %v1801_v3 = vshll.u32 %v1798_v30, 16  ;;  %v1802_v38 = vshrl.u32 %v1798_v30, 16  ;;  %v1803_v5 = vshll.u32 %v1799_v27, 16  ;;  %v1804_v2 = vshrl.u32 %v1799_v27, 16 }
 0x2d5   :  { %v12096_v54 = vmov 0   ;;  %v1826_v23 = vshrl.u32 %v1821_v28, 16  ;;  %vm1827_vm7 = vc.u32 %v1819_v62, %v1823_v53  ;;  %v1829_v14 = vadd.s32 %v1823_v53, %v1819_v62 }
 0x2d6   :  { %vm1805_vm6 = vc.u32 %v1797_v0, %v1801_v3  ;;  %v1807_v50 = vadd.s32 %v1801_v3, %v1797_v0  ;;  %v1828_v13 = vsel %vm1827_vm7, 1, %v12096_v54  ;;  %v8325_v30 = vsub.s32 32, %v2533_v1 }
 0x2d7   :  { %v1806_v33 = vsel %vm1805_vm6, 1, %v12096_v54  ;;  %v1830_v19 = vadd.s32 %v1828_v13, %v1822_v34  ;;  %vm1831_vm9 = vc.u32 %v1829_v14, %v1825_v20  ;;  %v8328_v47 = vshrl.u32 %v2531_v9, 5 }
 0x2d8   :  { %v1808_v42 = vadd.s32 %v1806_v33, %v1800_v56  ;;  %vm1809_vm8 = vc.u32 %v1807_v50, %v1803_v5  ;;  %v1832_v27 = vsel %vm1831_vm9, 1, %v12096_v54  ;;  %v8331_v0 = vadd.s32 %v1829_v14, %v1825_v20  ;;  %v1398_v14 = vpop.permute.xlu2 %1397 }
 0x2d9   :  { %v1810_v52 = vsel %vm1809_vm8, 1, %v12096_v54  ;;  %v12097_v45 = vmov 683565275   ;;  %v1834_v3 = vadd.s32 %v1832_v27, %v1830_v19  ;;  %v12098_v56 = vmov 2475754826  }
 0x2da   :  { %v1812_v10 = vadd.s32 %v1810_v52, %v1808_v42  ;;  %v2536_v28 = vshll.u32 %v12097_v45, %v2533_v1  ;;  %v2537_v62 = vshrl.u32 %v12098_v56, %v8325_v30  ;;  %v2539_v5 = vshll.u32 %v12098_v56, %v2533_v1 }
 0x2db   :  { %v12099_v53 = vmov 2131351028   ;;  %v12100_v34 = vmov 2102212464   ;;  %v1835_v42 = vadd.s32 %v1834_v3, %v1824_v35  ;;  %v12101_v27 = vmov 920167782  }
 0x2dc   :  { %v2540_v50 = vshrl.u32 %v12099_v53, %v8325_v30  ;;  %v1813_v13 = vadd.s32 %v1812_v10, %v1802_v38  ;;  %v2542_v9 = vshll.u32 %v12099_v53, %v2533_v1  ;;  %v2543_v33 = vshrl.u32 %v12100_v34, %v8325_v30 }
 0x2dd   :  { %v2545_v20 = vshll.u32 %v12100_v34, %v2533_v1  ;;  %v8343_v52 = vor.u32 %v2537_v62, %v2536_v28  ;;  %v2546_v15 = vshrl.u32 %v12101_v27, %v8325_v30  ;;  %v2548_v38 = vshll.u32 %v12101_v27, %v2533_v1 }
 0x2de   :  { %v8345_v19 = vor.u32 %v2540_v50, %v2539_v5  ;;  %v8349_v36 = vadd.s32 %v1813_v13, %v1804_v2  ;;  %v2544_v32 = vor.u32 %v2543_v33, %v2542_v9  ;;  %v12102_v10 = vmov 1326507024  }
 0x2df   :  { %v2549_v37 = vshrl.u32 %v12102_v10, %v8325_v30  ;;  %v1836_v25 = vadd.s32 %v1835_v42, %v1826_v23  ;;  %v2547_v29 = vor.u32 %v2546_v15, %v2545_v20  ;;  %v1525_v57 = vmul.f32 %v8261_v39, %v1398_v14 }
 0x2e0   :  { %v1837_v35 = vmul.u32 %v8293_v11, %v8319_v40  ;;  %vm1839_vm10 = vc.u32 %v8349_v36, %v8331_v0  ;;  %vm2551_vm11 = vcmp.lt.s32.totalorder %v8328_v47, 1  ;;  %vm2554_vm12 = vcmp.lt.s32.totalorder %v8328_v47, 4 }
 0x2e1   :  { %v2550_v28 = vor.u32 %v2549_v37, %v2548_v38  ;;  %v1840_v2 = vadd.s32 1, %v1836_v25  ;;  %v2559_v1 = vsel %vm2551_vm11, %v8343_v52, %v8345_v19  ;;  %v2568_v15 = vand.u32 65535, %v8321_v18 }
 0x2e2   :  { %vm2553_vm13 = vcmp.lt.s32.totalorder %v8328_v47, 3  ;;  %v2560_v11 = vsel %vm2554_vm12, %v2547_v29, 920167782  ;;  %v2563_v37 = vsel %vm2551_vm11, %v8345_v19, %v2544_v32  ;;  %vm2552_vm14 = vcmp.lt.s32.totalorder %v8328_v47, 2 }
 0x2e3   :  { %v2564_v40 = vsel %vm2554_vm12, %v2550_v28, 1326507024  ;;  %v1841_v23 = vsel %vm1839_vm10, %v1840_v2, %v1836_v25  ;;  %v2561_v3 = vsel %vm2553_vm13, %v2544_v32, %v2560_v11  ;;  %v2569_v9 = vshrl.u32 %v8321_v18, 16 }
 0x2e4   :  { %v2565_v62 = vsel %vm2553_vm13, %v2547_v29, %v2564_v40  ;;  %v1842_v5 = vadd.s32 %v1841_v23, %v1837_v35  ;;  %v2562_v50 = vsel %vm2552_vm14, %v2559_v1, %v2561_v3  ;;  %v8385_v14 = vadd.f32 %v1525_v57, %v8134_v16 }
 0x2e5   :  { %v2566_v13 = vsel %vm2552_vm14, %v2563_v37, %v2565_v62  ;;  %v2593_v25 = vshrl.u32 %v2562_v50, 16  ;;  %v2592_v38 = vand.u32 65535, %v2562_v50  ;;  %v2556_v57 = vsel %vm2554_vm12, %v2544_v32, 2102212464 }
 0x2e6   :  { %v2570_v33 = vand.u32 65535, %v2566_v13  ;;  %v2571_v20 = vshrl.u32 %v2566_v13, 16  ;;  %v1843_v42 = vadd.s32 536870912, %v1842_v5  ;;  %vm1746_vm3 = vcmp.lt.s32.totalorder %v8273_v46, 0 }
 0x2e7   :  { %v2595_v35 = vmul.u32 %v2593_v25, %v2568_v15  ;;  %v2596_v3 = vmul.u32 %v2592_v38, %v2569_v9  ;;  %v2594_v22 = vmul.u32 %v2592_v38, %v2568_v15  ;;  %vm2521_vm9 = vcmp.lt.s32.totalorder %v8291_v58, 0 }
 0x2e8   :  { %v2573_v28 = vmul.u32 %v2571_v20, %v2568_v15  ;;  %v2574_v2 = vmul.u32 %v2570_v33, %v2569_v9  ;;  %v1844_v29 = vshrl.u32 %v1843_v42, 30  ;;  %v2572_v11 = vmul.u32 %v2570_v33, %v2568_v15 }
 0x2e9   :  { %v2575_v37 = vmul.u32 %v2571_v20, %v2569_v9  ;;  %v2598_v62 = vshll.u32 %v2595_v35, 16  ;;  %v2597_v33 = vmul.u32 %v2593_v25, %v2569_v9  ;;  %v2600_v44 = vshll.u32 %v2596_v3, 16 }
 0x2ea   :  { %v2576_v40 = vshll.u32 %v2573_v28, 16  ;;  %v1845_v23 = vshll.u32 %v1844_v29, 30  ;;  %v2578_v31 = vshll.u32 %v2574_v2, 16  ;;  %v2577_v50 = vshrl.u32 %v2573_v28, 16 }
 0x2eb   :  { %vm2602_vm1 = vc.u32 %v2594_v22, %v2598_v62  ;;  %v2604_v15 = vadd.s32 %v2598_v62, %v2594_v22  ;;  %v1868_v32 = vsub.s32 4, %v1844_v29  ;;  %v2535_v28 = vshrl.u32 %v12097_v45, %v8325_v30 }
 0x2ec   :  { %vm2580_vm15 = vc.u32 %v2572_v11, %v2576_v40  ;;  %v2582_v13 = vadd.s32 %v2576_v40, %v2572_v11  ;;  %v1846_v16 = vsub.s32 %v1842_v5, %v1845_v23  ;;  %v2603_v11 = vsel %vm2602_vm1, 1, %v12096_v54 }
 0x2ed   :  { %v2581_v42 = vsel %vm2580_vm15, 1, %v12096_v54  ;;  %v1592_v5 = vand.u32 2139095040, %v8385_v14  ;;  %v2605_v40 = vadd.s32 %v2603_v11, %v2597_v33  ;;  %vm2606_vm4 = vc.u32 %v2604_v15, %v2600_v44 }
 0x2ee   :  { %v2583_v51 = vadd.s32 %v2581_v42, %v2575_v37  ;;  %vm2584_vm0 = vc.u32 %v2582_v13, %v2578_v31  ;;  %vm1847_vm2 = vcmp.lt.s32.totalorder %v1846_v16, 0  ;;  %v1848_v1 = vsub.s32 0, %v1846_v16 }
 0x2ef   :  { %v2585_v20 = vsel %vm2584_vm0, 1, %v12096_v54  ;;  %v2557_v22 = vsel %vm2553_vm13, %v8345_v19, %v2556_v57  ;;  %v2579_v25 = vshrl.u32 %v2574_v2, 16  ;;  %v2599_v37 = vshrl.u32 %v2595_v35, 16 }
 0x2f0   :  { %v2587_v24 = vadd.s32 %v2585_v20, %v2583_v51  ;;  %v1849_v38 = vsel %vm1847_vm2, %v1848_v1, %v1846_v16  ;;  %v2555_v51 = vsel %vm2551_vm11, %v2535_v28, %v8343_v52  ;;  %v2607_v1 = vsel %vm2606_vm4, 1, %v12096_v54 }
 0x2f1   :  { %v1850_v31 = vclz %v1849_v38  ;;  %v2609_v30 = vadd.s32 %v2607_v1, %v2605_v40  ;;  %v1593_v62 = vshrl.u32 %v1592_v5, 23  ;;  %v12103_v13 = vand.u32 2147483647, %v8273_v46 }
 0x2f2   :  { %v2588_v9 = vadd.s32 %v2587_v24, %v2577_v50  ;;  %v1869_v52 = vsel %vm1746_vm3, %v1868_v32, %v1844_v29  ;;  %v12106_v42 = vand.u32 2147483647, %v8385_v14  ;;  %v1838_v2 = vadd.s32 %v8331_v0, %v8349_v36 }
 0x2f3   :  { %v6603_v23 = vadd.s32 4294967294, %v1850_v31  ;;  %vm8406_vm5 = vcmp.le.f32.partialorder %v12103_v13, 0.7853982  ;;  %v2601_v35 = vshrl.u32 %v2596_v3, 16  ;;  %v2610_v57 = vadd.s32 %v2609_v30, %v2599_v37 }
 0x2f4   :  { %v2589_v50 = vadd.s32 %v2588_v9, %v2579_v25  ;;  %v1596_v19 = vand.u32 8388607, %v12106_v42  ;;  %v2558_v20 = vsel %vm2552_vm14, %v2555_v51, %v2557_v22  ;;  %v2608_v11 = vadd.s32 %v2604_v15, %v2600_v44  ;;  %v1434_v25 = vpop.permute.xlu0 %1433 }
 0x2f5   :  { %vm6604_vm6 = vcmp.lt.s32.totalorder %v6603_v23, 0  ;;  %v6599_v5 = vadd.s32 4294967169, %v1593_v62  ;;  %v1871_v29 = vsel %vm8406_vm5, 0, %v1869_v52  ;;  %v2611_v32 = vadd.s32 %v2610_v57, %v2601_v35 }
 0x2f6   :  { %v1853_v33 = vsel %vm6604_vm6, 0, %v6603_v23  ;;  %vm2614_vm7 = vc.u32 %v2589_v50, %v2608_v11  ;;  %v1597_v40 = vor.u32 8388608, %v1596_v19  ;;  %v1888_v1 = vadd.s32 3, %v1871_v29 }
 0x2f7   :  { %v1854_v38 = vsub.s32 32, %v1853_v33  ;;  %v1858_v28 = vsub.s32 4294967266, %v1853_v33  ;;  %v1599_v31 = vadd.s32 1, %v6599_v5  ;;  %v1855_v9 = vshll.u32 %v1846_v16, %v1853_v33 }
 0x2f8   :  { %v2615_v3 = vadd.s32 1, %v2611_v32  ;;  %v2612_v47 = vmul.u32 %v8321_v18, %v2558_v20  ;;  %v1534_v30 = vmul.f32 %v8261_v39, %v1434_v25  ;;  %v8422_v13 = vshll.u32 %v1597_v40, 8 }
 0x2f9   :  { %v1856_v36 = vshrl.u32 %v1838_v2, %v1854_v38  ;;  %v1859_v0 = vadd.s32 127, %v1858_v28  ;;  %vm1600_vm8 = vcmp.gt.s32.totalorder %v1599_v31, 0  ;;  %v8426_v2 = vand.u32 3, %v1888_v1 }
 0x2fa   :  { %v2616_v51 = vsel %vm2614_vm7, %v2615_v3, %v2611_v32  ;;  %v1601_v22 = vsel %vm1600_vm8, %v1599_v31, 0  ;;  %v8428_v18 = vadd.s32 %v2608_v11, %v2589_v50  ;;  %v8435_v20 = vadd.f32 %v1534_v30, %v8153_v7 }
 0x2fb   :  { %v1857_v44 = vor.u32 %v1856_v36, %v1855_v9  ;;  %v1860_v15 = vshll.u32 %v1859_v0, 23  ;;  %v2617_v23 = vadd.s32 %v2616_v51, %v2612_v47  ;;  %v1603_v37 = vand.u32 31, %v1601_v22 }
 0x2fc   :  { %v8441_v29 = vand.u32 65535, %v8422_v13  ;;  %v8447_v7 = vshrl.u32 %v1601_v22, 5  ;;  %v11838_v51 = vand.u32 2147483647, %v8435_v20  ;;  %vm1891_vm0 = vcmp.eq.s32.totalorder %v8426_v2, 0 }
 0x2fd   :  { %v1861_v62 = vor.u32 4788187, %v1860_v15  ;;  %v2618_v16 = vadd.s32 536870912, %v2617_v23  ;;  %v8424_v52 = vsub.s32 32, %v1603_v37  ;;  %v1864_v19 = vcvt.s32.f32 %v1857_v44 }
 0x2fe   :  { %v1606_v38 = vshll.u32 %v12097_v45, %v1603_v37  ;;  %v1609_v11 = vshll.u32 %v12098_v56, %v1603_v37  ;;  %v1615_v40 = vshll.u32 %v12100_v34, %v1603_v37  ;;  %v1612_v9 = vshll.u32 %v12099_v53, %v1603_v37 }
 0x2ff   :  { %v1862_v42 = vand.u32 2147483647, %v1861_v62  ;;  %v2619_v35 = vshrl.u32 %v2618_v16, 30  ;;  %v1607_v57 = vshrl.u32 %v12098_v56, %v8424_v52  ;;  %v1610_v33 = vshrl.u32 %v12099_v53, %v8424_v52 }
 0x300   :  { %v1616_v28 = vshrl.u32 %v12101_v27, %v8424_v52  ;;  %v1613_v32 = vshrl.u32 %v12100_v34, %v8424_v52  ;;  %v1619_v36 = vshrl.u32 %v12102_v10, %v8424_v52  ;;  %v1618_v44 = vshll.u32 %v12101_v27, %v1603_v37 }
 0x301   :  { %v1865_v5 = vmul.f32 %v1864_v19, %v1862_v42  ;;  %v2620_v50 = vshll.u32 %v2619_v35, 30  ;;  %v8454_v3 = vor.u32 %v1607_v57, %v1606_v38  ;;  %v8456_v25 = vor.u32 %v1610_v33, %v1609_v11 }
 0x302   :  { %v1617_v1 = vor.u32 %v1616_v28, %v1615_v40  ;;  %v8463_v15 = vshrl.u32 %v8422_v13, 16  ;;  %v1614_v30 = vor.u32 %v1613_v32, %v1612_v9  ;;  %vm1621_vm11 = vcmp.lt.s32.totalorder %v8447_v7, 1 }
 0x303   :  { %v1866_v31 = vxor.u32 2147483648, %v1865_v5  ;;  %v8452_v0 = vsub.s32 %v2617_v23, %v2620_v50  ;;  %vm1624_vm12 = vcmp.lt.s32.totalorder %v8447_v7, 4  ;;  %v2987_v37 = vand.u32 2139095040, %v8435_v20 }
 0x304   :  { %v1620_v42 = vor.u32 %v1619_v36, %v1618_v44  ;;  %v1629_v24 = vsel %vm1621_vm11, %v8454_v3, %v8456_v25  ;;  %v1630_v19 = vsel %vm1624_vm12, %v1617_v1, 920167782  ;;  %vm1623_vm13 = vcmp.lt.s32.totalorder %v8447_v7, 3 }
 0x305   :  { %v1867_v47 = vsel %vm1746_vm3, %v1866_v31, %v1865_v5  ;;  %vm2622_vm10 = vcmp.lt.s32.totalorder %v8452_v0, 0  ;;  %v2623_v23 = vsub.s32 0, %v8452_v0  ;;  %v2643_v38 = vsub.s32 4, %v2619_v35 }
 0x306   :  { %v8469_v22 = vsel %vm8406_vm5, %v8273_v46, %v1867_v47  ;;  %vm1622_vm14 = vcmp.lt.s32.totalorder %v8447_v7, 2  ;;  %v1631_v28 = vsel %vm1623_vm13, %v1614_v30, %v1630_v19  ;;  %v8491_v50 = vand.u32 8388607, %v11838_v51 }
 0x307   :  { %v1872_v62 = vmul.f32 %v8469_v22, %v8469_v22  ;;  %v2624_v16 = vsel %vm2622_vm10, %v2623_v23, %v8452_v0  ;;  %v1632_v31 = vsel %vm1622_vm14, %v1629_v24, %v1631_v28  ;;  %v1633_v9 = vsel %vm1621_vm11, %v8456_v25, %v1614_v30 }
 0x308   :  { %v2625_v5 = vclz %v2624_v16  ;;  %v1634_v36 = vsel %vm1624_vm12, %v1620_v42, 1326507024  ;;  %v1663_v47 = vshrl.u32 %v1632_v31, 16  ;;  %v8500_v44 = vshrl.u32 %v2987_v37, 23 }
 0x309   :  { %v1873_v57 = vmul.f32 -0.001358992, %v1872_v62  ;;  %v1880_v33 = vmul.f32 -0.00019511016, %v1872_v62  ;;  %v1635_v19 = vsel %vm1623_vm13, %v1617_v1, %v1634_v36  ;;  %v8506_v24 = vsel %vm2521_vm9, %v2643_v38, %v2619_v35 }
 0x30a   :  { %v6618_v40 = vadd.s32 4294967294, %v2625_v5  ;;  %v1636_v42 = vsel %vm1622_vm14, %v1633_v9, %v1635_v19  ;;  %vm1894_vm1 = vcmp.eq.s32.totalorder %v8426_v2, 2  ;;  %v1626_v35 = vsel %vm1624_vm12, %v1614_v30, 2102212464 }
 0x30b   :  { %v1874_v11 = vadd.f32 0.041655596, %v1873_v57  ;;  %v1881_v32 = vadd.f32 0.008332121, %v1880_v33  ;;  %v8510_v33 = vshrl.u32 %v12097_v45, %v8424_v52  ;;  %v1640_v38 = vand.u32 65535, %v1636_v42 }
 0x30c   :  { %vm6619_vm15 = vcmp.lt.s32.totalorder %v6618_v40, 0  ;;  %v1641_v52 = vshrl.u32 %v1636_v42, 16  ;;  %vm1890_vm2 = vcmp.lt.s32.totalorder %v8426_v2, 2  ;;  %vm1887_vm3 = vweird.f32 %v8273_v46 }
 0x30d   :  { %v1875_v23 = vmul.f32 %v1874_v11, %v1872_v62  ;;  %v1882_v16 = vmul.f32 %v1881_v32, %v1872_v62  ;;  %v2628_v57 = vsel %vm6619_vm15, 0, %v6618_v40  ;;  %v1662_v11 = vand.u32 65535, %v1632_v31  ;;  %v8516_v32 = vpop.permute.xlu1 %1292 }
 0x30e   :  { %v2629_v28 = vsub.s32 32, %v2628_v57  ;;  %v2633_v1 = vsub.s32 4294967266, %v2628_v57  ;;  %12107 = vst [vmem:[#allocation104_spill] sm:$0xff] %v8516_v32  ;;  %v8523_v31 = vmul.u32 %v1663_v47, %v8441_v29  ;;  %v1643_v19 = vmul.u32 %v1641_v52, %v8441_v29 }
 0x30f   :  { %v1876_v37 = vadd.f32 -0.4999988, %v1875_v23  ;;  %v1883_v5 = vadd.f32 -0.16666654, %v1882_v16  ;;  %v2630_v23 = vshll.u32 %v8452_v0, %v2628_v57  ;;  %v1644_v30 = vmul.u32 %v1640_v38, %v8463_v15 }
 0x310   :  { %v2631_v9 = vshrl.u32 %v8428_v18, %v2629_v28  ;;  %v2634_v16 = vadd.s32 127, %v2633_v1  ;;  %v1664_v18 = vmul.u32 %v1662_v11, %v8441_v29  ;;  %v1642_v57 = vmul.u32 %v1640_v38, %v8441_v29 }
 0x311   :  { %v1877_v40 = vmul.f32 %v1876_v37, %v1872_v62  ;;  %v1884_v36 = vmul.f32 %v1883_v5, %v1872_v62  ;;  %v12108_v62 = vand.u32 2147483647, %v8291_v58  ;;  %v8537_v5 = vmul.u32 %v1662_v11, %v8463_v15 }
 0x312   :  { %v2632_v28 = vor.u32 %v2631_v9, %v2630_v23  ;;  %v2635_v0 = vshll.u32 %v2634_v16, 23  ;;  %v1646_v1 = vshll.u32 %v1643_v19, 16  ;;  %v1648_v61 = vshll.u32 %v1644_v30, 16 }
 0x313   :  { %v1878_v51 = vadd.f32 1.0, %v1877_v40  ;;  %v1885_v42 = vadd.f32 1.0, %v1884_v36  ;;  %vm8531_vm4 = vcmp.le.f32.partialorder %v12108_v62, 0.7853982  ;;  %v1645_v36 = vmul.u32 %v1641_v52, %v8463_v15 }
 0x314   :  { %v2636_v62 = vor.u32 4788187, %v2635_v0  ;;  %vm1650_vm5 = vc.u32 %v1642_v57, %v1646_v1  ;;  %v1652_v21 = vadd.s32 %v1646_v1, %v1642_v57  ;;  %v1668_v63 = vshll.u32 %v8523_v31, 16 }
 0x315   :  { %v1886_v32 = vmul.f32 %v1885_v42, %v8469_v22  ;;  %v1895_v40 = vxor.u32 2147483648, %v1878_v51  ;;  %v1647_v4 = vshrl.u32 %v1643_v19, 16  ;;  %v1651_v11 = vsel %vm1650_vm5, 1, %v12096_v54 }
 0x316   :  { %v1667_v9 = vmul.u32 %v1663_v47, %v8463_v15  ;;  %v2637_v23 = vand.u32 2147483647, %v2636_v62  ;;  %v2639_v29 = vcvt.s32.f32 %v2632_v28  ;;  %v1653_v38 = vadd.s32 %v1651_v11, %v1645_v36  ;;  %v1305_v47 = vpop.permute.xlu1 %1304 }
 0x317   :  { %v1892_v55 = vxor.u32 2147483648, %v1886_v32  ;;  %vm1654_vm6 = vc.u32 %v1652_v21, %v1648_v61  ;;  %v1896_v52 = vsel %vm1894_vm1, %v1895_v40, %v1886_v32  ;;  %vm1672_vm7 = vc.u32 %v1664_v18, %v1668_v63 }
 0x318   :  { %v1655_v16 = vsel %vm1654_vm6, 1, %v12096_v54  ;;  %v2640_v42 = vmul.f32 %v2639_v29, %v2637_v23  ;;  %v1673_v15 = vsel %vm1672_vm7, 1, %v12096_v54  ;;  %v1670_v21 = vshll.u32 %v8537_v5, 16 }
 0x319   :  { %v1893_v22 = vsel %vm1891_vm0, %v1878_v51, %v1892_v55  ;;  %v1657_v0 = vadd.s32 %v1655_v16, %v1653_v38  ;;  %v1674_v55 = vadd.s32 %v1668_v63, %v1664_v18  ;;  %v1675_v51 = vadd.s32 %v1673_v15, %v1667_v9 }
 0x31a   :  { %v1897_v19 = vsel %vm1890_vm2, %v1893_v22, %v1896_v52  ;;  %v2641_v32 = vxor.u32 2147483648, %v2640_v42  ;;  %v2646_v28 = vsel %vm8531_vm4, 0, %v8506_v24  ;;  %v6626_v57 = vadd.s32 4294967169, %v8500_v44 }
 0x31b   :  { %v1898_v61 = vsel %vm1887_vm3, nan, %v1897_v19  ;;  %v1658_v2 = vadd.s32 %v1657_v0, %v1647_v4  ;;  %v1625_v1 = vsel %vm1621_vm11, %v8510_v33, %v8454_v3  ;;  %v1627_v46 = vsel %vm1623_vm13, %v8456_v25, %v1626_v35 }
 0x31c   :  { %6550 = vst [vmem:[#allocation2 + $0x8] sm:$0xff] %v1898_v61  ;;  %vm1676_vm8 = vc.u32 %v1674_v55, %v1670_v21  ;;  %v1357_v63 = vmul.f32 %v8103_v12, %v1305_v47  ;;  %v2642_v18 = vsel %vm2521_vm9, %v2641_v32, %v2640_v42  ;;  %v1649_v40 = vshrl.u32 %v1644_v30, 16 }
 0x31d   :  { %v1677_v4 = vsel %vm1676_vm8, 1, %v12096_v54  ;;  %v2994_v24 = vadd.s32 1, %v6626_v57  ;;  %v2645_v44 = vsel %vm8531_vm4, %v8291_v58, %v2642_v18  ;;  %v2663_v36 = vadd.s32 3, %v2646_v28 }
 0x31e   :  { %v1669_v3 = vshrl.u32 %v8523_v31, 16  ;;  %v1679_v33 = vadd.s32 %v1677_v4, %v1675_v51  ;;  %v2647_v62 = vmul.f32 %v2645_v44, %v2645_v44  ;;  %v1628_v25 = vsel %vm1622_vm14, %v1625_v1, %v1627_v46 }
 0x31f   :  { %v8577_v35 = vadd.s32 %v1658_v2, %v1649_v40  ;;  %vm2995_vm10 = vcmp.gt.s32.totalorder %v2994_v24, 0  ;;  %v1671_v30 = vshrl.u32 %v8537_v5, 16  ;;  %v8581_v23 = vadd.f32 %v1357_v63, %v8146_v17 }
 0x320   :  { %v1680_v11 = vadd.s32 %v1679_v33, %v1669_v3  ;;  %v2996_v9 = vsel %vm2995_vm10, %v2994_v24, 0  ;;  %v2648_v37 = vmul.f32 -0.001358992, %v2647_v62  ;;  %v2655_v29 = vmul.f32 -0.00019511016, %v2647_v62 }
 0x321   :  { %v8583_v38 = vadd.s32 %v1674_v55, %v1670_v21  ;;  %v2998_v31 = vand.u32 31, %v2996_v9  ;;  %v8585_v22 = vand.u32 3, %v2663_v36  ;;  %v1682_v7 = vmul.u32 %v8422_v13, %v1628_v25 }
 0x322   :  { %v1681_v52 = vadd.s32 %v1680_v11, %v1671_v30  ;;  %v2992_v16 = vor.u32 8388608, %v8491_v50  ;;  %v2649_v19 = vadd.f32 0.041655596, %v2648_v37  ;;  %v2656_v42 = vadd.f32 0.008332121, %v2655_v29 }
 0x323   :  { %vm1684_vm9 = vc.u32 %v8577_v35, %v8583_v38  ;;  %v2999_v5 = vsub.s32 32, %v2998_v31  ;;  %v8591_v0 = vshrl.u32 %v2996_v9, 5  ;;  %v3001_v15 = vshll.u32 %v12097_v45, %v2998_v31 }
 0x324   :  { %v1685_v17 = vadd.s32 1, %v1681_v52  ;;  %v3004_v47 = vshll.u32 %v12098_v56, %v2998_v31  ;;  %v2650_v61 = vmul.f32 %v2649_v19, %v2647_v62  ;;  %v2657_v21 = vmul.f32 %v2656_v42, %v2647_v62  ;;  %v1410_v19 = vpop.permute.xlu2 %1409 }
 0x325   :  { %v3002_v55 = vshrl.u32 %v12098_v56, %v2999_v5  ;;  %v3010_v13 = vshll.u32 %v12100_v34, %v2998_v31  ;;  %v3005_v51 = vshrl.u32 %v12099_v53, %v2999_v5  ;;  %v3008_v32 = vshrl.u32 %v12100_v34, %v2999_v5 }
 0x326   :  { %v1686_v50 = vsel %vm1684_vm9, %v1685_v17, %v1681_v52  ;;  %v3011_v28 = vshrl.u32 %v12101_v27, %v2999_v5  ;;  %v2651_v2 = vadd.f32 -0.4999988, %v2650_v61  ;;  %v2658_v57 = vadd.f32 -0.16666654, %v2657_v21 }
 0x327   :  { %v1687_v1 = vadd.s32 %v1686_v50, %v1682_v7  ;;  %v3007_v46 = vshll.u32 %v12099_v53, %v2998_v31  ;;  %v3003_v63 = vor.u32 %v3002_v55, %v3001_v15  ;;  %v8601_v18 = vor.u32 %v3005_v51, %v3004_v47 }
 0x328   :  { %v3012_v40 = vor.u32 %v3011_v28, %v3010_v13  ;;  %v3013_v4 = vshll.u32 %v12101_v27, %v2998_v31  ;;  %v2652_v24 = vmul.f32 %v2651_v2, %v2647_v62  ;;  %v2659_v36 = vmul.f32 %v2658_v57, %v2647_v62 }
 0x329   :  { %v1688_v3 = vadd.s32 536870912, %v1687_v1  ;;  %v3014_v33 = vshrl.u32 %v12102_v10, %v2999_v5  ;;  %vm2662_vm11 = vweird.f32 %v8291_v58  ;;  %vm2665_vm12 = vcmp.lt.s32.totalorder %v8585_v22, 2 }
 0x32a   :  { %v3009_v25 = vor.u32 %v3008_v32, %v3007_v46  ;;  %vm3019_vm13 = vcmp.lt.s32.totalorder %v8591_v0, 4  ;;  %v8608_v30 = vshll.u32 %v2992_v16, 8  ;;  %v2653_v11 = vadd.f32 1.0, %v2652_v24 }
 0x32b   :  { %v2660_v9 = vadd.f32 1.0, %v2659_v36  ;;  %v8610_v37 = vshrl.u32 %v1688_v3, 30  ;;  %v3015_v29 = vor.u32 %v3014_v33, %v3013_v4  ;;  %vm2666_vm14 = vcmp.eq.s32.totalorder %v8585_v22, 0 }
 0x32c   :  { %vm3016_vm15 = vcmp.lt.s32.totalorder %v8591_v0, 1  ;;  %vm3018_vm0 = vcmp.lt.s32.totalorder %v8591_v0, 3  ;;  %v3025_v62 = vsel %vm3019_vm13, %v3012_v40, 920167782  ;;  %v2670_v52 = vxor.u32 2147483648, %v2653_v11 }
 0x32d   :  { %v2661_v31 = vmul.f32 %v2660_v9, %v2645_v44  ;;  %v1690_v7 = vshll.u32 %v8610_v37, 30  ;;  %v3024_v16 = vsel %vm3016_vm15, %v3003_v63, %v8601_v18  ;;  %vm2669_vm1 = vcmp.eq.s32.totalorder %v8585_v22, 2 }
 0x32e   :  { %v3026_v42 = vsel %vm3018_vm0, %v3009_v25, %v3025_v62  ;;  %v3029_v17 = vsel %vm3019_vm13, %v3015_v29, 1326507024  ;;  %v3033_v15 = vand.u32 65535, %v8608_v30  ;;  %vm3017_vm2 = vcmp.lt.s32.totalorder %v8591_v0, 2 }
 0x32f   :  { %v2667_v47 = vxor.u32 2147483648, %v2661_v31  ;;  %v1691_v44 = vsub.s32 %v1687_v1, %v1690_v7  ;;  %v3028_v61 = vsel %vm3016_vm15, %v8601_v18, %v3009_v25  ;;  %v3027_v21 = vsel %vm3017_vm2, %v3024_v16, %v3026_v42 }
 0x330   :  { %v3030_v55 = vsel %vm3018_vm0, %v3012_v40, %v3029_v17  ;;  %v3034_v13 = vshrl.u32 %v8608_v30, 16  ;;  %v1528_v50 = vmul.f32 %v8261_v39, %v1410_v19  ;;  %v2671_v32 = vsel %vm2669_vm1, %v2670_v52, %v2661_v31 }
 0x331   :  { %v2668_v51 = vsel %vm2666_vm14, %v2653_v11, %v2667_v47  ;;  %vm1692_vm3 = vcmp.lt.s32.totalorder %v1691_v44, 0  ;;  %v1693_v28 = vsub.s32 0, %v1691_v44  ;;  %v3000_v57 = vshrl.u32 %v12097_v45, %v2999_v5 }
 0x332   :  { %v2672_v2 = vsel %vm2665_vm12, %v2668_v51, %v2671_v32  ;;  %v3031_v1 = vsel %vm3017_vm2, %v3028_v61, %v3030_v55  ;;  %v3058_v46 = vshrl.u32 %v3027_v21, 16  ;;  %v3057_v36 = vand.u32 65535, %v3027_v21 }
 0x333   :  { %v2673_v40 = vsel %vm2662_vm11, nan, %v2672_v2  ;;  %v1694_v4 = vsel %vm1692_vm3, %v1693_v28, %v1691_v44  ;;  %v3035_v24 = vand.u32 65535, %v3031_v1  ;;  %v3021_v33 = vsel %vm3019_vm13, %v3009_v25, 2102212464 }
 0x334   :  { %6555 = vst [vmem:[#allocation2 + $0x30] sm:$0xff] %v2673_v40  ;;  %v1695_v3 = vclz %v1694_v4  ;;  %v3036_v11 = vshrl.u32 %v3031_v1, 16  ;;  %v3060_v22 = vmul.u32 %v3058_v46, %v3033_v15  ;;  %v1683_v5 = vadd.s32 %v8583_v38, %v8577_v35 }
 0x335   :  { %v3020_v9 = vsel %vm3016_vm15, %v3000_v57, %v3003_v63  ;;  %v8653_v29 = vadd.f32 %v1528_v50, %v8150_v49  ;;  %v1713_v62 = vsub.s32 4, %v8610_v37  ;;  %v3039_v52 = vmul.u32 %v3035_v24, %v3034_v13 }
 0x336   :  { %v6600_v58 = vadd.s32 4294967294, %v1695_v3  ;;  %v3038_v31 = vmul.u32 %v3036_v11, %v3033_v15  ;;  %vm1591_vm4 = vcmp.lt.s32.totalorder %v8385_v14, 0  ;;  %v3022_v25 = vsel %vm3018_vm0, %v8601_v18, %v3021_v33 }
 0x337   :  { %v3059_v7 = vmul.u32 %v3057_v36, %v3033_v15  ;;  %v3061_v16 = vmul.u32 %v3057_v36, %v3034_v13  ;;  %v3063_v35 = vshll.u32 %v3060_v22, 16  ;;  %v3037_v38 = vmul.u32 %v3035_v24, %v3033_v15 }
 0x338   :  { %vm6601_vm5 = vcmp.lt.s32.totalorder %v6600_v58, 0  ;;  %v3040_v63 = vmul.u32 %v3036_v11, %v3034_v13  ;;  %v3041_v19 = vshll.u32 %v3038_v31, 16  ;;  %v3043_v42 = vshll.u32 %v3039_v52, 16 }
 0x339   :  { %v1698_v49 = vsel %vm6601_vm5, 0, %v6600_v58  ;;  %v3062_v17 = vmul.u32 %v3058_v46, %v3034_v13  ;;  %v3065_v47 = vshll.u32 %v3061_v16, 16  ;;  %vm3067_vm7 = vc.u32 %v3059_v7, %v3063_v35  ;;  %v1446_v58 = vpop.permute.xlu0 %1445 }
 0x33a   :  { %v1699_v61 = vsub.s32 32, %v1698_v49  ;;  %v1700_v21 = vshll.u32 %v1691_v44, %v1698_v49  ;;  %v1703_v55 = vsub.s32 4294967266, %v1698_v49  ;;  %vm3045_vm6 = vc.u32 %v3037_v38, %v3041_v19 }
 0x33b   :  { %v3046_v50 = vsel %vm3045_vm6, 1, %v12096_v54  ;;  %v3047_v51 = vadd.s32 %v3041_v19, %v3037_v38  ;;  %v3069_v18 = vadd.s32 %v3063_v35, %v3059_v7  ;;  %v3068_v15 = vsel %vm3067_vm7, 1, %v12096_v54 }
 0x33c   :  { %v1701_v32 = vshrl.u32 %v1683_v5, %v1699_v61  ;;  %v1704_v28 = vadd.s32 127, %v1703_v55  ;;  %v3048_v2 = vadd.s32 %v3046_v50, %v3040_v63  ;;  %v3064_v57 = vshrl.u32 %v3060_v22, 16 }
 0x33d   :  { %vm3049_vm8 = vc.u32 %v3047_v51, %v3043_v42  ;;  %v3070_v1 = vadd.s32 %v3068_v15, %v3062_v17  ;;  %vm3071_vm10 = vc.u32 %v3069_v18, %v3065_v47  ;;  %v3042_v4 = vshrl.u32 %v3038_v31, 16 }
 0x33e   :  { %v1702_v13 = vor.u32 %v1701_v32, %v1700_v21  ;;  %v1705_v46 = vshll.u32 %v1704_v28, 23  ;;  %v3050_v44 = vsel %vm3049_vm8, 1, %v12096_v54  ;;  %v3072_v40 = vsel %vm3071_vm10, 1, %v12096_v54 }
 0x33f   :  { %v3052_v24 = vadd.s32 %v3050_v44, %v3048_v2  ;;  %v3074_v36 = vadd.s32 %v3072_v40, %v3070_v1  ;;  %v2054_v3 = vand.u32 2147483647, %v8653_v29  ;;  %v1714_v11 = vsel %vm1591_vm4, %v1713_v62, %v8610_v37 }
 0x340   :  { %v1706_v33 = vor.u32 4788187, %v1705_v46  ;;  %v3023_v22 = vsel %vm3017_vm2, %v3020_v9, %v3022_v25  ;;  %v2057_v5 = vand.u32 2139095040, %v8653_v29  ;;  %v3044_v7 = vshrl.u32 %v3039_v52, 16 }
 0x341   :  { %v3053_v35 = vadd.s32 %v3052_v24, %v3042_v4  ;;  %v3066_v38 = vshrl.u32 %v3061_v16, 16  ;;  %v3075_v63 = vadd.s32 %v3074_v36, %v3064_v57  ;;  %v1709_v19 = vcvt.s32.f32 %v1702_v13 }
 0x342   :  { %v1707_v31 = vand.u32 2147483647, %v1706_v33  ;;  %v2058_v49 = vshrl.u32 %v2057_v5, 23  ;;  %v2061_v42 = vand.u32 8388607, %v2054_v3  ;;  %v3073_v61 = vadd.s32 %v3069_v18, %v3065_v47 }
 0x343   :  { %v3054_v17 = vadd.s32 %v3053_v35, %v3044_v7  ;;  %v3076_v21 = vadd.s32 %v3075_v63, %v3066_v38  ;;  %v1537_v37 = vmul.f32 %v8261_v39, %v1446_v58  ;;  %v12111_v0 = vand.u32 2147483647, %v8385_v14 }
 0x344   :  { %v1710_v62 = vmul.f32 %v1709_v19, %v1707_v31  ;;  %v6608_v52 = vadd.s32 4294967169, %v2058_v49  ;;  %v3077_v50 = vmul.u32 %v8608_v30, %v3023_v22  ;;  %v2062_v47 = vor.u32 8388608, %v2061_v42 }
 0x345   :  { %vm8676_vm9 = vcmp.le.f32.partialorder %v12111_v0, 0.7853982  ;;  %vm3079_vm11 = vc.u32 %v3054_v17, %v3073_v61  ;;  %v3080_v16 = vadd.s32 1, %v3076_v21  ;;  %v8684_v32 = vadd.f32 %v1537_v37, %v8168_v26 }
 0x346   :  { %v1716_v25 = vsel %vm8676_vm9, 0, %v1714_v11  ;;  %v1711_v55 = vxor.u32 2147483648, %v1710_v62  ;;  %v2064_v51 = vadd.s32 1, %v6608_v52  ;;  %v8691_v44 = vshll.u32 %v2062_v47, 8 }
 0x347   :  { %v3081_v18 = vsel %vm3079_vm11, %v3080_v16, %v3076_v21  ;;  %v1733_v57 = vadd.s32 3, %v1716_v25  ;;  %v3449_v40 = vand.u32 2147483647, %v8684_v32  ;;  %v3452_v26 = vand.u32 2139095040, %v8684_v32 }
 0x348   :  { %v1712_v28 = vsel %vm1591_vm4, %v1711_v55, %v1710_v62  ;;  %v3082_v2 = vadd.s32 %v3081_v18, %v3077_v50  ;;  %vm2065_vm12 = vcmp.gt.s32.totalorder %v2064_v51, 0  ;;  %vm2986_vm13 = vcmp.lt.s32.totalorder %v8435_v20, 0 }
 0x349   :  { %v1715_v15 = vsel %vm8676_vm9, %v8385_v14, %v1712_v28  ;;  %v2066_v1 = vsel %vm2065_vm12, %v2064_v51, 0  ;;  %v8695_v33 = vand.u32 3, %v1733_v57  ;;  %v8698_v11 = vadd.s32 %v3073_v61, %v3054_v17 }
 0x34a   :  { %v1717_v13 = vmul.f32 %v1715_v15, %v1715_v15  ;;  %v3083_v46 = vadd.s32 536870912, %v3082_v2  ;;  %v2068_v30 = vand.u32 31, %v2066_v1  ;;  %v12114_v7 = vand.u32 2147483647, %v8435_v20 }
 0x34b   :  { %v8707_v63 = vand.u32 65535, %v8691_v44  ;;  %v8710_v19 = vshrl.u32 %v8691_v44, 16  ;;  %v8712_v49 = vshrl.u32 %v3452_v26, 23  ;;  %v8716_v42 = vand.u32 8388607, %v3449_v40 }
 0x34c   :  { %v1718_v4 = vmul.f32 -0.001358992, %v1717_v13  ;;  %v1725_v24 = vmul.f32 -0.00019511016, %v1717_v13  ;;  %v3084_v36 = vshrl.u32 %v3083_v46, 30  ;;  %v2069_v22 = vsub.s32 32, %v2068_v30 }
 0x34d   :  { %vm8702_vm14 = vcmp.le.f32.partialorder %v12114_v7, 0.7853982  ;;  %v8720_v37 = vshrl.u32 %v2066_v1, 5  ;;  %v2071_v0 = vshll.u32 %v12097_v45, %v2068_v30  ;;  %v2074_v62 = vshll.u32 %v12098_v56, %v2068_v30 }
 0x34e   :  { %v1719_v5 = vadd.f32 0.041655596, %v1718_v4  ;;  %v1726_v58 = vadd.f32 0.008332121, %v1725_v24  ;;  %v3085_v38 = vshll.u32 %v3084_v36, 30  ;;  %v3108_v31 = vsub.s32 4, %v3084_v36 }
 0x34f   :  { %v2072_v9 = vshrl.u32 %v12098_v56, %v2069_v22  ;;  %v2075_v52 = vshrl.u32 %v12099_v53, %v2069_v22  ;;  %vm1739_vm15 = vcmp.eq.s32.totalorder %v8695_v33, 2  ;;  %vm1736_vm1 = vcmp.eq.s32.totalorder %v8695_v33, 0 }
 0x350   :  { %v1720_v17 = vmul.f32 %v1719_v5, %v1717_v13  ;;  %v1727_v61 = vmul.f32 %v1726_v58, %v1717_v13  ;;  %v8718_v21 = vsub.s32 %v3082_v2, %v3085_v38  ;;  %v3109_v50 = vsel %vm2986_vm13, %v3108_v31, %v3084_v36 }
 0x351   :  { %v2078_v47 = vshrl.u32 %v12100_v34, %v2069_v22  ;;  %v2080_v51 = vshll.u32 %v12100_v34, %v2068_v30  ;;  %v2081_v18 = vshrl.u32 %v12101_v27, %v2069_v22  ;;  %vm1735_vm2 = vcmp.lt.s32.totalorder %v8695_v33, 2 }
 0x352   :  { %v1721_v25 = vadd.f32 -0.4999988, %v1720_v17  ;;  %v1728_v16 = vadd.f32 -0.16666654, %v1727_v61  ;;  %vm3087_vm0 = vcmp.lt.s32.totalorder %v8718_v21, 0  ;;  %v3088_v55 = vsub.s32 0, %v8718_v21 }
 0x353   :  { %v2084_v1 = vshrl.u32 %v12102_v10, %v2069_v22  ;;  %vm1732_vm3 = vweird.f32 %v8385_v14  ;;  %v2073_v26 = vor.u32 %v2072_v9, %v2071_v0  ;;  %v2077_v4 = vshll.u32 %v12099_v53, %v2068_v30 }
 0x354   :  { %v1722_v28 = vmul.f32 %v1721_v25, %v1717_v13  ;;  %v1729_v2 = vmul.f32 %v1728_v16, %v1717_v13  ;;  %v3089_v57 = vsel %vm3087_vm0, %v3088_v55, %v8718_v21  ;;  %v2082_v24 = vor.u32 %v2081_v18, %v2080_v51 }
 0x355   :  { %v3090_v46 = vclz %v3089_v57  ;;  %v2076_v58 = vor.u32 %v2075_v52, %v2074_v62  ;;  %v2083_v7 = vshll.u32 %v12101_v27, %v2068_v30  ;;  %v3111_v13 = vsel %vm8702_vm14, 0, %v3109_v50 }
 0x356   :  { %v1723_v36 = vadd.f32 1.0, %v1722_v28  ;;  %v1730_v5 = vadd.f32 1.0, %v1729_v2  ;;  %v2070_v31 = vshrl.u32 %v12097_v45, %v2069_v22  ;;  %v2079_v17 = vor.u32 %v2078_v47, %v2077_v4 }
 0x357   :  { %v6627_v38 = vadd.s32 4294967294, %v3090_v46  ;;  %v2085_v16 = vor.u32 %v2084_v1, %v2083_v7  ;;  %vm2089_vm4 = vcmp.lt.s32.totalorder %v8720_v37, 4  ;;  %vm2086_vm6 = vcmp.lt.s32.totalorder %v8720_v37, 1 }
 0x358   :  { %v1731_v61 = vmul.f32 %v1730_v5, %v1715_v15  ;;  %v1740_v25 = vxor.u32 2147483648, %v1723_v36  ;;  %vm2087_vm7 = vcmp.lt.s32.totalorder %v8720_v37, 2  ;;  %v2095_v30 = vsel %vm2089_vm4, %v2082_v24, 920167782 }
 0x359   :  { %vm6628_vm5 = vcmp.lt.s32.totalorder %v6627_v38, 0  ;;  %vm2088_vm8 = vcmp.lt.s32.totalorder %v8720_v37, 3  ;;  %v2094_v22 = vsel %vm2086_vm6, %v2073_v26, %v2076_v58  ;;  %v2098_v51 = vsel %vm2086_vm6, %v2076_v58, %v2079_v17 }
 0x35a   :  { %v1737_v0 = vxor.u32 2147483648, %v1731_v61  ;;  %v3093_v9 = vsel %vm6628_vm5, 0, %v6627_v38  ;;  %v1741_v15 = vsel %vm1739_vm15, %v1740_v25, %v1731_v61  ;;  %v2096_v47 = vsel %vm2088_vm8, %v2079_v17, %v2095_v30 }
 0x35b   :  { %v3094_v62 = vsub.s32 32, %v3093_v9  ;;  %v3095_v52 = vshll.u32 %v8718_v21, %v3093_v9  ;;  %v3098_v55 = vsub.s32 4294967266, %v3093_v9  ;;  %v2099_v18 = vsel %vm2089_vm4, %v2085_v16, 1326507024 }
 0x35c   :  { %v1738_v50 = vsel %vm1736_vm1, %v1723_v36, %v1737_v0  ;;  %v2097_v21 = vsel %vm2087_vm7, %v2094_v22, %v2096_v47  ;;  %v2100_v46 = vsel %vm2088_vm8, %v2082_v24, %v2099_v18  ;;  %v2091_v33 = vsel %vm2089_vm4, %v2079_v17, 2102212464 }
 0x35d   :  { %v1742_v28 = vsel %vm1735_vm2, %v1738_v50, %v1741_v15  ;;  %v3096_v2 = vshrl.u32 %v8698_v11, %v3094_v62  ;;  %v3099_v57 = vadd.s32 127, %v3098_v55  ;;  %v2127_v4 = vand.u32 65535, %v2097_v21 }
 0x35e   :  { %v1743_v1 = vsel %vm1732_vm3, nan, %v1742_v28  ;;  %v2128_v36 = vshrl.u32 %v2097_v21, 16  ;;  %v2101_v11 = vsel %vm2087_vm7, %v2098_v51, %v2100_v46  ;;  %v6635_v14 = vadd.s32 4294967169, %v8712_v49 }
 0x35f   :  { %6549 = vst [vmem:[#allocation2] sm:$0xff] %v1743_v1  ;;  %v3097_v5 = vor.u32 %v3096_v2, %v3095_v52  ;;  %v3100_v7 = vshll.u32 %v3099_v57, 23  ;;  %v2105_v38 = vand.u32 65535, %v2101_v11  ;;  %v2106_v61 = vshrl.u32 %v2101_v11, 16 }
 0x360   :  { %v2130_v25 = vmul.u32 %v2128_v36, %v8707_v63  ;;  %v3128_v30 = vadd.s32 3, %v3111_v13  ;;  %v2090_v24 = vsel %vm2086_vm6, %v2070_v31, %v2073_v26  ;;  %v2131_v0 = vmul.u32 %v2127_v4, %v8710_v19 }
 0x361   :  { %v3101_v16 = vor.u32 4788187, %v3100_v7  ;;  %v2092_v9 = vsel %vm2088_vm8, %v2076_v58, %v2091_v33  ;;  %v2108_v17 = vmul.u32 %v2106_v61, %v8707_v63  ;;  %v2109_v22 = vmul.u32 %v2105_v38, %v8710_v19 }
 0x362   :  { %v2129_v15 = vmul.u32 %v2127_v4, %v8707_v63  ;;  %v3104_v52 = vcvt.s32.f32 %v3097_v5  ;;  %v2132_v49 = vmul.u32 %v2128_v36, %v8710_v19  ;;  %v2133_v55 = vshll.u32 %v2130_v25, 16 }
 0x363   :  { %v3102_v62 = vand.u32 2147483647, %v3101_v16  ;;  %v2107_v13 = vmul.u32 %v2105_v38, %v8707_v63  ;;  %v2110_v26 = vmul.u32 %v2106_v61, %v8710_v19  ;;  %v2111_v31 = vshll.u32 %v2108_v17, 16 }
 0x364   :  { %v2135_v50 = vshll.u32 %v2131_v0, 16  ;;  %v2113_v51 = vshll.u32 %v2109_v22, 16  ;;  %vm2137_vm10 = vc.u32 %v2129_v15, %v2133_v55  ;;  %v2139_v58 = vadd.s32 %v2133_v55, %v2129_v15 }
 0x365   :  { %v3105_v47 = vmul.f32 %v3104_v52, %v3102_v62  ;;  %vm2115_vm9 = vc.u32 %v2107_v13, %v2111_v31  ;;  %v2117_v18 = vadd.s32 %v2111_v31, %v2107_v13  ;;  %v2138_v28 = vsel %vm2137_vm10, 1, %v12096_v54 }
 0x366   :  { %v3459_v2 = vadd.s32 1, %v6635_v14  ;;  %v2116_v21 = vsel %vm2115_vm9, 1, %v12096_v54  ;;  %v2140_v1 = vadd.s32 %v2138_v28, %v2132_v49  ;;  %vm2141_vm11 = vc.u32 %v2139_v58, %v2135_v50 }
 0x367   :  { %v3106_v57 = vxor.u32 2147483648, %v3105_v47  ;;  %v2118_v46 = vadd.s32 %v2116_v21, %v2110_v26  ;;  %vm2119_vm12 = vc.u32 %v2117_v18, %v2113_v51  ;;  %v2134_v63 = vshrl.u32 %v2130_v25, 16 }
 0x368   :  { %v2142_v19 = vsel %vm2141_vm11, 1, %v12096_v54  ;;  %v2120_v36 = vsel %vm2119_vm12, 1, %v12096_v54  ;;  %vm3460_vm15 = vcmp.gt.s32.totalorder %v3459_v2, 0  ;;  %v2112_v33 = vshrl.u32 %v2108_v17, 16 }
 0x369   :  { %v3107_v4 = vsel %vm2986_vm13, %v3106_v57, %v3105_v47  ;;  %v2144_v5 = vadd.s32 %v2142_v19, %v2140_v1  ;;  %v2122_v11 = vadd.s32 %v2120_v36, %v2118_v46  ;;  %v3461_v38 = vsel %vm3460_vm15, %v3459_v2, 0 }
 0x36a   :  { %v3110_v7 = vsel %vm8702_vm14, %v8435_v20, %v3107_v4  ;;  %v2136_v14 = vshrl.u32 %v2131_v0, 16  ;;  %v3463_v25 = vand.u32 31, %v3461_v38  ;;  %v2093_v15 = vsel %vm2087_vm7, %v2090_v24, %v2092_v9 }
 0x36b   :  { %v3112_v61 = vmul.f32 %v3110_v7, %v3110_v7  ;;  %v2145_v16 = vadd.s32 %v2144_v5, %v2134_v63  ;;  %v2114_v62 = vshrl.u32 %v2109_v22, 16  ;;  %v2123_v52 = vadd.s32 %v2122_v11, %v2112_v33 }
 0x36c   :  { %v3464_v26 = vsub.s32 32, %v3463_v25  ;;  %v8800_v31 = vand.u32 3, %v3128_v30  ;;  %v8804_v17 = vadd.s32 %v2139_v58, %v2135_v50  ;;  %v3457_v47 = vor.u32 8388608, %v8716_v42 }
 0x36d   :  { %v3113_v49 = vmul.f32 -0.001358992, %v3112_v61  ;;  %v3120_v55 = vmul.f32 -0.00019511016, %v3112_v61  ;;  %v2146_v13 = vadd.s32 %v2145_v16, %v2136_v14  ;;  %v8802_v35 = vadd.s32 %v2123_v52, %v2114_v62 }
 0x36e   :  { %v2147_v18 = vmul.u32 %v8691_v44, %v2093_v15  ;;  %v8810_v24 = vshrl.u32 %v3461_v38, 5  ;;  %v3467_v9 = vshrl.u32 %v12098_v56, %v3464_v26  ;;  %v3470_v30 = vshrl.u32 %v12099_v53, %v3464_v26 }
 0x36f   :  { %v3114_v0 = vadd.f32 0.041655596, %v3113_v49  ;;  %v3121_v51 = vadd.f32 0.008332121, %v3120_v55  ;;  %v2150_v37 = vadd.s32 1, %v2146_v13  ;;  %vm2149_vm13 = vc.u32 %v8802_v35, %v8804_v17 }
 0x370   :  { %v3466_v58 = vshll.u32 %v12097_v45, %v3463_v25  ;;  %v3469_v2 = vshll.u32 %v12098_v56, %v3463_v25  ;;  %v3472_v44 = vshll.u32 %v12099_v53, %v3463_v25  ;;  %v3473_v57 = vshrl.u32 %v12100_v34, %v3464_v26 }
 0x371   :  { %v3115_v22 = vmul.f32 %v3114_v0, %v3112_v61  ;;  %v3122_v28 = vmul.f32 %v3121_v51, %v3112_v61  ;;  %v2151_v50 = vsel %vm2149_vm13, %v2150_v37, %v2146_v13  ;;  %v3475_v46 = vshll.u32 %v12100_v34, %v3463_v25 }
 0x372   :  { %v2152_v42 = vadd.s32 %v2151_v50, %v2147_v18  ;;  %v3476_v63 = vshrl.u32 %v12101_v27, %v3464_v26  ;;  %v3468_v4 = vor.u32 %v3467_v9, %v3466_v58  ;;  %v3471_v36 = vor.u32 %v3470_v30, %v3469_v2 }
 0x373   :  { %v3116_v21 = vadd.f32 -0.4999988, %v3115_v22  ;;  %v3123_v1 = vadd.f32 -0.16666654, %v3122_v28  ;;  %v3479_v5 = vshrl.u32 %v12102_v10, %v3464_v26  ;;  %vm3130_vm14 = vcmp.lt.s32.totalorder %v8800_v31, 2 }
 0x374   :  { %v2153_v19 = vadd.s32 536870912, %v2152_v42  ;;  %vm3131_vm0 = vcmp.eq.s32.totalorder %v8800_v31, 0  ;;  %v3477_v38 = vor.u32 %v3476_v63, %v3475_v46  ;;  %vm3127_vm1 = vweird.f32 %v8435_v20 }
 0x375   :  { %v3117_v33 = vmul.f32 %v3116_v21, %v3112_v61  ;;  %v3124_v11 = vmul.f32 %v3123_v1, %v3112_v61  ;;  %v3474_v16 = vor.u32 %v3473_v57, %v3472_v44  ;;  %v3478_v15 = vshll.u32 %v12101_v27, %v3463_v25 }
 0x376   :  { %v8824_v14 = vshrl.u32 %v2153_v19, 30  ;;  %v8827_v62 = vshll.u32 %v3457_v47, 8  ;;  %vm3134_vm2 = vcmp.eq.s32.totalorder %v8800_v31, 2  ;;  %vm3481_vm3 = vcmp.lt.s32.totalorder %v8810_v24, 1 }
 0x377   :  { %v3118_v52 = vadd.f32 1.0, %v3117_v33  ;;  %v3125_v49 = vadd.f32 1.0, %v3124_v11  ;;  %v3480_v55 = vor.u32 %v3479_v5, %v3478_v15  ;;  %vm3484_vm4 = vcmp.lt.s32.totalorder %v8810_v24, 4 }
 0x378   :  { %v2155_v61 = vshll.u32 %v8824_v14, 30  ;;  %v3489_v13 = vsel %vm3481_vm3, %v3468_v4, %v3471_v36  ;;  %vm3483_vm5 = vcmp.lt.s32.totalorder %v8810_v24, 3  ;;  %v3490_v25 = vsel %vm3484_vm4, %v3477_v38, 920167782 }
 0x379   :  { %v3126_v0 = vmul.f32 %v3125_v49, %v3110_v7  ;;  %v3135_v51 = vxor.u32 2147483648, %v3118_v52  ;;  %vm3482_vm6 = vcmp.lt.s32.totalorder %v8810_v24, 2  ;;  %v3491_v18 = vsel %vm3483_vm5, %v3474_v16, %v3490_v25 }
 0x37a   :  { %v2156_v47 = vsub.s32 %v2152_v42, %v2155_v61  ;;  %v3498_v37 = vand.u32 65535, %v8827_v62  ;;  %v3465_v30 = vshrl.u32 %v12097_v45, %v3464_v26  ;;  %v3492_v7 = vsel %vm3482_vm6, %v3489_v13, %v3491_v18 }
 0x37b   :  { %v3132_v9 = vxor.u32 2147483648, %v3126_v0  ;;  %v3493_v22 = vsel %vm3481_vm3, %v3471_v36, %v3474_v16  ;;  %v3486_v50 = vsel %vm3484_vm4, %v3474_v16, 2102212464  ;;  %v3494_v58 = vsel %vm3484_vm4, %v3480_v55, 1326507024 }
 0x37c   :  { %vm2157_vm7 = vcmp.lt.s32.totalorder %v2156_v47, 0  ;;  %v2158_v28 = vsub.s32 0, %v2156_v47  ;;  %v3136_v26 = vsel %vm3134_vm2, %v3135_v51, %v3126_v0  ;;  %v3495_v2 = vsel %vm3483_vm5, %v3477_v38, %v3494_v58 }
 0x37d   :  { %v3133_v42 = vsel %vm3131_vm0, %v3118_v52, %v3132_v9  ;;  %v3522_v44 = vand.u32 65535, %v3492_v7  ;;  %v3496_v1 = vsel %vm3482_vm6, %v3493_v22, %v3495_v2  ;;  %v3523_v46 = vshrl.u32 %v3492_v7, 16 }
 0x37e   :  { %v3137_v57 = vsel %vm3130_vm14, %v3133_v42, %v3136_v26  ;;  %v2159_v21 = vsel %vm2157_vm7, %v2158_v28, %v2156_v47  ;;  %v3500_v5 = vand.u32 65535, %v3496_v1  ;;  %v3501_v33 = vshrl.u32 %v3496_v1, 16 }
 0x37f   :  { %v3138_v63 = vsel %vm3127_vm1, nan, %v3137_v57  ;;  %v2160_v19 = vclz %v2159_v21  ;;  %v3499_v11 = vshrl.u32 %v8827_v62, 16  ;;  %v2148_v38 = vadd.s32 %v8804_v17, %v8802_v35 }
 0x380   :  { %6558 = vst [vmem:[#allocation2 + $0x48] sm:$0xff] %v3138_v63  ;;  %v8868_v31 = vsel %vm3481_vm3, %v3465_v30, %v3468_v4  ;;  %v3503_v15 = vmul.u32 %v3501_v33, %v3498_v37  ;;  %v2178_v52 = vsub.s32 4, %v8824_v14  ;;  %v3487_v20 = vsel %vm3483_vm5, %v3471_v36, %v3486_v50 }
 0x381   :  { %v6609_v16 = vadd.s32 4294967294, %v2160_v19  ;;  %v3504_v49 = vmul.u32 %v3500_v5, %v3499_v11  ;;  %v3525_v61 = vmul.u32 %v3523_v46, %v3498_v37  ;;  %v3502_v55 = vmul.u32 %v3500_v5, %v3498_v37 }
 0x382   :  { %v3506_v13 = vshll.u32 %v3503_v15, 16  ;;  %v3524_v0 = vmul.u32 %v3522_v44, %v3498_v37  ;;  %vm2056_vm10 = vcmp.lt.s32.totalorder %v8653_v29, 0  ;;  %v3505_v17 = vmul.u32 %v3501_v33, %v3499_v11  ;;  %v1317_v37 = vpop.permute.xlu1 %1316 }
 0x383   :  { %vm6610_vm8 = vcmp.lt.s32.totalorder %v6609_v16, 0  ;;  %v3526_v51 = vmul.u32 %v3522_v44, %v3499_v11  ;;  %v3528_v25 = vshll.u32 %v3525_v61, 16  ;;  %v3527_v9 = vmul.u32 %v3523_v46, %v3499_v11  ;;  %v1418_v44 = vpop.permute.xlu2 %1417 }
 0x384   :  { %v2163_v35 = vsel %vm6610_vm8, 0, %v6609_v16  ;;  %vm3510_vm9 = vc.u32 %v3502_v55, %v3506_v13  ;;  %v3508_v7 = vshll.u32 %v3504_v49, 16  ;;  %v3512_v22 = vadd.s32 %v3506_v13, %v3502_v55  ;;  %v1458_v16 = vpop.permute.xlu0 %1457 }
 0x385   :  { %v2164_v4 = vsub.s32 32, %v2163_v35  ;;  %v2168_v18 = vsub.s32 4294967266, %v2163_v35  ;;  %v2165_v30 = vshll.u32 %v2156_v47, %v2163_v35  ;;  %v3511_v36 = vsel %vm3510_vm9, 1, %v12096_v54 }
 0x386   :  { %v3513_v58 = vadd.s32 %v3511_v36, %v3505_v17  ;;  %vm3532_vm11 = vc.u32 %v3524_v0, %v3528_v25  ;;  %vm3514_vm12 = vc.u32 %v3512_v22, %v3508_v7  ;;  %v3530_v42 = vshll.u32 %v3526_v51, 16 }
 0x387   :  { %v2166_v28 = vshrl.u32 %v2148_v38, %v2164_v4  ;;  %v2169_v50 = vadd.s32 127, %v2168_v18  ;;  %v3533_v26 = vsel %vm3532_vm11, 1, %v12096_v54  ;;  %v3534_v2 = vadd.s32 %v3528_v25, %v3524_v0 }
 0x388   :  { %v3515_v1 = vsel %vm3514_vm12, 1, %v12096_v54  ;;  %v3535_v47 = vadd.s32 %v3533_v26, %v3527_v9  ;;  %v3507_v46 = vshrl.u32 %v3503_v15, 16  ;;  %v1360_v19 = vmul.f32 %v8103_v12, %v1317_v37 }
 0x389   :  { %v2167_v57 = vor.u32 %v2166_v28, %v2165_v30  ;;  %v2170_v21 = vshll.u32 %v2169_v50, 23  ;;  %v3517_v63 = vadd.s32 %v3515_v1, %v3513_v58  ;;  %vm3536_vm15 = vc.u32 %v3534_v2, %v3530_v42 }
 0x38a   :  { %v3509_v33 = vshrl.u32 %v3504_v49, 16  ;;  %v3537_v11 = vsel %vm3536_vm15, 1, %v12096_v54  ;;  %v1530_v38 = vmul.f32 %v8261_v39, %v1418_v44  ;;  %v3529_v13 = vshrl.u32 %v3525_v61, 16 }
 0x38b   :  { %v2171_v5 = vor.u32 4788187, %v2170_v21  ;;  %v3518_v55 = vadd.s32 %v3517_v63, %v3507_v46  ;;  %v3539_v0 = vadd.s32 %v3537_v11, %v3535_v47  ;;  %v8881_v35 = vadd.f32 %v1360_v19, %v8161_v60 }
 0x38c   :  { %v2174_v25 = vcvt.s32.f32 %v2167_v57  ;;  %v2179_v15 = vsel %vm2056_vm10, %v2178_v52, %v8824_v14  ;;  %v8887_v4 = vadd.f32 %v1530_v38, %v8165_v48  ;;  %v3531_v18 = vshrl.u32 %v3526_v51, 16 }
 0x38d   :  { %v2172_v17 = vand.u32 2147483647, %v2171_v5  ;;  %v3519_v49 = vadd.s32 %v3518_v55, %v3509_v33  ;;  %v3540_v9 = vadd.s32 %v3539_v0, %v3529_v13  ;;  %v1540_v30 = vmul.f32 %v8261_v39, %v1458_v16 }
 0x38e   :  { %v3538_v61 = vadd.s32 %v3534_v2, %v3530_v42  ;;  %v2364_v36 = vand.u32 2147483647, %v8887_v4  ;;  %v2367_v60 = vand.u32 2139095040, %v8887_v4  ;;  %v3488_v22 = vsel %vm3482_vm6, %v8868_v31, %v3487_v20 }
 0x38f   :  { %v2175_v7 = vmul.f32 %v2174_v25, %v2172_v17  ;;  %v3541_v28 = vadd.s32 %v3540_v9, %v3531_v18  ;;  %vm2055_vm13 = vcmp.le.f32.partialorder %v2054_v3, 0.7853982  ;;  %v8900_v58 = vadd.f32 %v1540_v30, %v8183_v59 }
 0x390   :  { %vm3544_vm14 = vc.u32 %v3519_v49, %v3538_v61  ;;  %v2368_v14 = vshrl.u32 %v2367_v60, 23  ;;  %v2181_v52 = vsel %vm2055_vm13, 0, %v2179_v15  ;;  %v2371_v50 = vand.u32 8388607, %v2364_v36 }
 0x391   :  { %v2176_v48 = vxor.u32 2147483648, %v2175_v7  ;;  %v3545_v51 = vadd.s32 1, %v3541_v28  ;;  %v3542_v24 = vmul.u32 %v8827_v62, %v3488_v22  ;;  %v2198_v26 = vadd.s32 3, %v2181_v52 }
 0x392   :  { %v6614_v31 = vadd.s32 4294967169, %v2368_v14  ;;  %v2372_v57 = vor.u32 8388608, %v2371_v50  ;;  %v3917_v21 = vand.u32 2139095040, %v8900_v58  ;;  %v3914_v38 = vand.u32 2147483647, %v8900_v58 }
 0x393   :  { %v2177_v37 = vsel %vm2056_vm10, %v2176_v48, %v2175_v7  ;;  %v3546_v3 = vsel %vm3544_vm14, %v3545_v51, %v3541_v28  ;;  %v8907_v5 = vand.u32 3, %v2198_v26  ;;  %vm8914_vm1 = vcmp.le.f32.partialorder %v3449_v40, 0.7853982 }
 0x394   :  { %v2180_v20 = vsel %vm2055_vm13, %v8653_v29, %v2177_v37  ;;  %v3547_v2 = vadd.s32 %v3546_v3, %v3542_v24  ;;  %v2374_v44 = vadd.s32 1, %v6614_v31  ;;  %v8909_v11 = vshll.u32 %v2372_v57, 8 }
 0x395   :  { %v2182_v42 = vmul.f32 %v2180_v20, %v2180_v20  ;;  %v3918_v16 = vshrl.u32 %v3917_v21, 23  ;;  %vm3451_vm2 = vcmp.lt.s32.totalorder %v8684_v32, 0  ;;  %vm2204_vm3 = vcmp.eq.s32.totalorder %v8907_v5, 2 }
 0x396   :  { %v3548_v59 = vadd.s32 536870912, %v3547_v2  ;;  %vm2375_vm0 = vcmp.gt.s32.totalorder %v2374_v44, 0  ;;  %v3543_v30 = vadd.s32 %v3538_v61, %v3519_v49  ;;  %vm2201_vm4 = vcmp.eq.s32.totalorder %v8907_v5, 0 }
 0x397   :  { %v2183_v1 = vmul.f32 -0.001358992, %v2182_v42  ;;  %v2190_v47 = vmul.f32 -0.00019511016, %v2182_v42  ;;  %v2376_v46 = vsel %vm2375_vm0, %v2374_v44, 0  ;;  %v8924_v60 = vand.u32 65535, %v8909_v11 }
 0x398   :  { %v3549_v62 = vshrl.u32 %v3548_v59, 30  ;;  %v2378_v33 = vand.u32 31, %v2376_v46  ;;  %v8927_v40 = vshrl.u32 %v8909_v11, 16  ;;  %v8929_v22 = vadd.s32 4294967169, %v3918_v16 }
 0x399   :  { %v2184_v63 = vadd.f32 0.041655596, %v2183_v1  ;;  %v2191_v19 = vadd.f32 0.008332121, %v2190_v47  ;;  %v8933_v28 = vand.u32 8388607, %v3914_v38  ;;  %vm2197_vm7 = vweird.f32 %v8653_v29 }
 0x39a   :  { %v3550_v0 = vshll.u32 %v3549_v62, 30  ;;  %v3573_v25 = vsub.s32 4, %v3549_v62  ;;  %v8919_v15 = vsub.s32 32, %v2378_v33  ;;  %vm2200_vm5 = vcmp.lt.s32.totalorder %v8907_v5, 2 }
 0x39b   :  { %v2185_v55 = vmul.f32 %v2184_v63, %v2182_v42  ;;  %v2192_v13 = vmul.f32 %v2191_v19, %v2182_v42  ;;  %v8939_v52 = vshrl.u32 %v2376_v46, 5  ;;  %v2381_v51 = vshll.u32 %v12097_v45, %v2378_v33 }
 0x39c   :  { %v3551_v7 = vsub.s32 %v3547_v2, %v3550_v0  ;;  %v3574_v61 = vsel %vm3451_vm2, %v3573_v25, %v3549_v62  ;;  %v2382_v50 = vshrl.u32 %v12098_v56, %v8919_v15  ;;  %v2385_v3 = vshrl.u32 %v12099_v53, %v8919_v15 }
 0x39d   :  { %v2186_v18 = vadd.f32 -0.4999988, %v2185_v55  ;;  %v2193_v9 = vadd.f32 -0.16666654, %v2192_v13  ;;  %v2384_v26 = vshll.u32 %v12098_v56, %v2378_v33  ;;  %v2388_v2 = vshrl.u32 %v12100_v34, %v8919_v15 }
 0x39e   :  { %vm3552_vm6 = vcmp.lt.s32.totalorder %v3551_v7, 0  ;;  %v3553_v49 = vsub.s32 0, %v3551_v7  ;;  %v2391_v44 = vshrl.u32 %v12101_v27, %v8919_v15  ;;  %v2390_v1 = vshll.u32 %v12100_v34, %v2378_v33 }
 0x39f   :  { %v2187_v48 = vmul.f32 %v2186_v18, %v2182_v42  ;;  %v2194_v14 = vmul.f32 %v2193_v9, %v2182_v42  ;;  %v2394_v47 = vshrl.u32 %v12102_v10, %v8919_v15  ;;  %v3576_v46 = vsel %vm8914_vm1, 0, %v3574_v61 }
 0x3a0   :  { %v3554_v31 = vsel %vm3552_vm6, %v3553_v49, %v3551_v7  ;;  %v2387_v63 = vshll.u32 %v12099_v53, %v2378_v33  ;;  %v2393_v19 = vshll.u32 %v12101_v27, %v2378_v33  ;;  %v2383_v16 = vor.u32 %v2382_v50, %v2381_v51 }
 0x3a1   :  { %v2188_v37 = vadd.f32 1.0, %v2187_v48  ;;  %v2195_v24 = vadd.f32 1.0, %v2194_v14  ;;  %v3555_v42 = vclz %v3554_v31  ;;  %v2386_v55 = vor.u32 %v2385_v3, %v2384_v26 }
 0x3a2   :  { %v2392_v13 = vor.u32 %v2391_v44, %v2390_v1  ;;  %v2389_v0 = vor.u32 %v2388_v2, %v2387_v63  ;;  %v2395_v25 = vor.u32 %v2394_v47, %v2393_v19  ;;  %vm2396_vm10 = vcmp.lt.s32.totalorder %v8939_v52, 1 }
 0x3a3   :  { %v2196_v57 = vmul.f32 %v2195_v24, %v2180_v20  ;;  %v2205_v21 = vxor.u32 2147483648, %v2188_v37  ;;  %v6636_v59 = vadd.s32 4294967294, %v3555_v42  ;;  %vm2397_vm9 = vcmp.lt.s32.totalorder %v8939_v52, 2 }
 0x3a4   :  { %vm2399_vm11 = vcmp.lt.s32.totalorder %v8939_v52, 4  ;;  %vm2398_vm12 = vcmp.lt.s32.totalorder %v8939_v52, 3  ;;  %v2404_v61 = vsel %vm2396_vm10, %v2383_v16, %v2386_v55  ;;  %v2408_v29 = vsel %vm2396_vm10, %v2386_v55, %v2389_v0 }
 0x3a5   :  { %v2202_v62 = vxor.u32 2147483648, %v2196_v57  ;;  %v2206_v20 = vsel %vm2204_vm3, %v2205_v21, %v2196_v57  ;;  %vm6637_vm8 = vcmp.lt.s32.totalorder %v6636_v59, 0  ;;  %v2405_v51 = vsel %vm2399_vm11, %v2392_v13, 920167782 }
 0x3a6   :  { %v3558_v9 = vsel %vm6637_vm8, 0, %v6636_v59  ;;  %v2406_v5 = vsel %vm2398_vm12, %v2389_v0, %v2405_v51  ;;  %v2401_v31 = vsel %vm2399_vm11, %v2389_v0, 2102212464  ;;  %v2409_v42 = vsel %vm2399_vm11, %v2395_v25, 1326507024 }
 0x3a7   :  { %v2203_v18 = vsel %vm2201_vm4, %v2188_v37, %v2202_v62  ;;  %v3559_v48 = vsub.s32 32, %v3558_v9  ;;  %v3563_v14 = vsub.s32 4294967266, %v3558_v9  ;;  %v3560_v50 = vshll.u32 %v3551_v7, %v3558_v9 }
 0x3a8   :  { %v2207_v33 = vsel %vm2200_vm5, %v2203_v18, %v2206_v20  ;;  %v2407_v3 = vsel %vm2397_vm9, %v2404_v61, %v2406_v5  ;;  %v2410_v44 = vsel %vm2398_vm12, %v2392_v13, %v2409_v42  ;;  %v3924_v1 = vadd.s32 1, %v8929_v22 }
 0x3a9   :  { %v2208_v49 = vsel %vm2197_vm7, nan, %v2207_v33  ;;  %v3561_v37 = vshrl.u32 %v3543_v30, %v3559_v48  ;;  %v3564_v24 = vadd.s32 127, %v3563_v14  ;;  %v2437_v57 = vand.u32 65535, %v2407_v3 }
 0x3aa   :  { %6552 = vst [vmem:[#allocation2 + $0x18] sm:$0xff] %v2208_v49  ;;  %v2380_v30 = vshrl.u32 %v12097_v45, %v8919_v15  ;;  %v2411_v7 = vsel %vm2397_vm9, %v2408_v29, %v2410_v44  ;;  %v2438_v21 = vshrl.u32 %v2407_v3, 16  ;;  %v3593_v59 = vadd.s32 3, %v3576_v46 }
 0x3ab   :  { %v3562_v26 = vor.u32 %v3561_v37, %v3560_v50  ;;  %v3565_v2 = vshll.u32 %v3564_v24, 23  ;;  %v2415_v63 = vand.u32 65535, %v2411_v7  ;;  %v2416_v19 = vshrl.u32 %v2411_v7, 16 }
 0x3ac   :  { %v2400_v62 = vsel %vm2396_vm10, %v2380_v30, %v2383_v16  ;;  %v2402_v13 = vsel %vm2398_vm12, %v2386_v55, %v2401_v31  ;;  %v2440_v20 = vmul.u32 %v2438_v21, %v8924_v60  ;;  %v2441_v15 = vmul.u32 %v2437_v57, %v8927_v40 }
 0x3ad   :  { %v3566_v47 = vor.u32 4788187, %v3565_v2  ;;  %v3569_v25 = vcvt.s32.f32 %v3562_v26  ;;  %v2418_v18 = vmul.u32 %v2416_v19, %v8924_v60  ;;  %v2419_v22 = vmul.u32 %v2415_v63, %v8927_v40 }
 0x3ae   :  { %v2439_v46 = vmul.u32 %v2437_v57, %v8924_v60  ;;  %v2442_v9 = vmul.u32 %v2438_v21, %v8927_v40  ;;  %v2443_v33 = vshll.u32 %v2440_v20, 16  ;;  %vm3925_vm15 = vcmp.gt.s32.totalorder %v3924_v1, 0 }
 0x3af   :  { %v3567_v0 = vand.u32 2147483647, %v3566_v47  ;;  %v2417_v48 = vmul.u32 %v2415_v63, %v8924_v60  ;;  %v2420_v55 = vmul.u32 %v2416_v19, %v8927_v40  ;;  %v2421_v14 = vshll.u32 %v2418_v18, 16 }
 0x3b0   :  { %v2423_v49 = vshll.u32 %v2419_v22, 16  ;;  %v2445_v61 = vshll.u32 %v2441_v15, 16  ;;  %vm2447_vm13 = vc.u32 %v2439_v46, %v2443_v33  ;;  %v2449_v51 = vadd.s32 %v2443_v33, %v2439_v46 }
 0x3b1   :  { %v3570_v16 = vmul.f32 %v3569_v25, %v3567_v0  ;;  %vm2425_vm14 = vc.u32 %v2417_v48, %v2421_v14  ;;  %v2427_v37 = vadd.s32 %v2421_v14, %v2417_v48  ;;  %v2448_v24 = vsel %vm2447_vm13, 1, %v12096_v54 }
 0x3b2   :  { %v2426_v5 = vsel %vm2425_vm14, 1, %v12096_v54  ;;  %v2444_v31 = vshrl.u32 %v2440_v20, 16  ;;  %v2450_v3 = vadd.s32 %v2448_v24, %v2442_v9  ;;  %vm2451_vm0 = vc.u32 %v2449_v51, %v2445_v61 }
 0x3b3   :  { %v3571_v50 = vxor.u32 2147483648, %v3570_v16  ;;  %v2428_v29 = vadd.s32 %v2426_v5, %v2420_v55  ;;  %vm2429_vm3 = vc.u32 %v2427_v37, %v2423_v49  ;;  %v2452_v40 = vsel %vm2451_vm0, 1, %v12096_v54 }
 0x3b4   :  { %v2430_v26 = vsel %vm2429_vm3, 1, %v12096_v54  ;;  %v2454_v2 = vadd.s32 %v2452_v40, %v2450_v3  ;;  %v3926_v44 = vsel %vm3925_vm15, %v3924_v1, 0  ;;  %v2422_v30 = vshrl.u32 %v2418_v18, 16 }
 0x3b5   :  { %v3572_v60 = vsel %vm3451_vm2, %v3571_v50, %v3570_v16  ;;  %v2432_v7 = vadd.s32 %v2430_v26, %v2428_v29  ;;  %v3928_v21 = vand.u32 31, %v3926_v44  ;;  %v2403_v47 = vsel %vm2397_vm9, %v2400_v62, %v2402_v13 }
 0x3b6   :  { %v3575_v42 = vsel %vm8914_vm1, %v8684_v32, %v3572_v60  ;;  %v2424_v63 = vshrl.u32 %v2419_v22, 16  ;;  %v2446_v19 = vshrl.u32 %v2441_v15, 16  ;;  %v2455_v20 = vadd.s32 %v2454_v2, %v2444_v31 }
 0x3b7   :  { %v3577_v57 = vmul.f32 %v3575_v42, %v3575_v42  ;;  %v2433_v46 = vadd.s32 %v2432_v7, %v2422_v30  ;;  %v9009_v17 = vsub.s32 32, %v3928_v21  ;;  %v9011_v9 = vand.u32 3, %v3593_v59 }
 0x3b8   :  { %v2456_v33 = vadd.s32 %v2455_v20, %v2446_v19  ;;  %v3922_v1 = vor.u32 8388608, %v8933_v28  ;;  %v9016_v55 = vadd.s32 %v2449_v51, %v2445_v61  ;;  %v2457_v52 = vmul.u32 %v8909_v11, %v2403_v47 }
 0x3b9   :  { %v3578_v0 = vmul.f32 -0.001358992, %v3577_v57  ;;  %v3585_v25 = vmul.f32 -0.00019511016, %v3577_v57  ;;  %v9014_v48 = vadd.s32 %v2433_v46, %v2424_v63  ;;  %v9019_v13 = vshrl.u32 %v3926_v44, 5 }
 0x3ba   :  { %v2460_v62 = vadd.s32 1, %v2456_v33  ;;  %v3931_v15 = vshll.u32 %v12097_v45, %v3928_v21  ;;  %v3932_v28 = vshrl.u32 %v12098_v56, %v9009_v17  ;;  %v3934_v49 = vshll.u32 %v12098_v56, %v3928_v21 }
 0x3bb   :  { %v3579_v16 = vadd.f32 0.041655596, %v3578_v0  ;;  %v3586_v18 = vadd.f32 0.008332121, %v3585_v25  ;;  %vm2459_vm1 = vc.u32 %v9014_v48, %v9016_v55  ;;  %v3935_v61 = vshrl.u32 %v12099_v53, %v9009_v17 }
 0x3bc   :  { %v2461_v59 = vsel %vm2459_vm1, %v2460_v62, %v2456_v33  ;;  %v3938_v11 = vshrl.u32 %v12100_v34, %v9009_v17  ;;  %v3937_v24 = vshll.u32 %v12099_v53, %v3928_v21  ;;  %v3940_v5 = vshll.u32 %v12100_v34, %v3928_v21 }
 0x3bd   :  { %v3580_v22 = vmul.f32 %v3579_v16, %v3577_v57  ;;  %v3587_v14 = vmul.f32 %v3586_v18, %v3577_v57  ;;  %v2462_v37 = vadd.s32 %v2461_v59, %v2457_v52  ;;  %v3941_v31 = vshrl.u32 %v12101_v27, %v9009_v17 }
 0x3be   :  { %v3943_v3 = vshll.u32 %v12101_v27, %v3928_v21  ;;  %v3944_v60 = vshrl.u32 %v12102_v10, %v9009_v17  ;;  %v3933_v2 = vor.u32 %v3932_v28, %v3931_v15  ;;  %v9038_v44 = vor.u32 %v3935_v61, %v3934_v49 }
 0x3bf   :  { %v3581_v51 = vadd.f32 -0.4999988, %v3580_v22  ;;  %v3588_v50 = vadd.f32 -0.16666654, %v3587_v14  ;;  %v2463_v26 = vadd.s32 536870912, %v2462_v37  ;;  %v3939_v30 = vor.u32 %v3938_v11, %v3937_v24 }
 0x3c0   :  { %v3942_v7 = vor.u32 %v3941_v31, %v3940_v5  ;;  %v3945_v47 = vor.u32 %v3944_v60, %v3943_v3  ;;  %vm3949_vm2 = vcmp.lt.s32.totalorder %v9019_v13, 4  ;;  %vm3595_vm4 = vcmp.lt.s32.totalorder %v9011_v9, 2 }
 0x3c1   :  { %v3582_v29 = vmul.f32 %v3581_v51, %v3577_v57  ;;  %v3589_v40 = vmul.f32 %v3588_v50, %v3577_v57  ;;  %v9040_v20 = vshrl.u32 %v2463_v26, 30  ;;  %vm3946_vm5 = vcmp.lt.s32.totalorder %v9019_v13, 1 }
 0x3c2   :  { %v3955_v57 = vsel %vm3949_vm2, %v3942_v7, 920167782  ;;  %vm3948_vm6 = vcmp.lt.s32.totalorder %v9019_v13, 3  ;;  %vm3599_vm7 = vcmp.eq.s32.totalorder %v9011_v9, 2  ;;  %v3954_v46 = vsel %vm3946_vm5, %v3933_v2, %v9038_v44 }
 0x3c3   :  { %v3583_v63 = vadd.f32 1.0, %v3582_v29  ;;  %v3590_v19 = vadd.f32 1.0, %v3589_v40  ;;  %v2465_v25 = vshll.u32 %v9040_v20, 30  ;;  %v3956_v33 = vsel %vm3948_vm6, %v3939_v30, %v3955_v57 }
 0x3c4   :  { %v3959_v16 = vsel %vm3949_vm2, %v3945_v47, 1326507024  ;;  %v9060_v62 = vshll.u32 %v3922_v1, 8  ;;  %vm3596_vm8 = vcmp.eq.s32.totalorder %v9011_v9, 0  ;;  %vm3947_vm10 = vcmp.lt.s32.totalorder %v9019_v13, 2 }
 0x3c5   :  { %v3591_v21 = vmul.f32 %v3590_v19, %v3575_v42  ;;  %v3600_v0 = vxor.u32 2147483648, %v3583_v63  ;;  %v2466_v52 = vsub.s32 %v2462_v37, %v2465_v25  ;;  %v3958_v42 = vsel %vm3946_vm5, %v9038_v44, %v3939_v30 }
 0x3c6   :  { %v3960_v22 = vsel %vm3948_vm6, %v3942_v7, %v3959_v16  ;;  %v3957_v59 = vsel %vm3947_vm10, %v3954_v46, %v3956_v33  ;;  %vm3592_vm11 = vweird.f32 %v8684_v32  ;;  %v3930_v49 = vshrl.u32 %v12097_v45, %v9009_v17 }
 0x3c7   :  { %v3597_v18 = vxor.u32 2147483648, %v3591_v21  ;;  %v3601_v15 = vsel %vm3599_vm7, %v3600_v0, %v3591_v21  ;;  %vm2467_vm9 = vcmp.lt.s32.totalorder %v2466_v52, 0  ;;  %v2468_v28 = vsub.s32 0, %v2466_v52 }
 0x3c8   :  { %v3961_v61 = vsel %vm3947_vm10, %v3958_v42, %v3960_v22  ;;  %v3963_v50 = vand.u32 65535, %v9060_v62  ;;  %v3987_v31 = vand.u32 65535, %v3957_v59  ;;  %v3988_v3 = vshrl.u32 %v3957_v59, 16 }
 0x3c9   :  { %v3598_v14 = vsel %vm3596_vm8, %v3583_v63, %v3597_v18  ;;  %v2469_v51 = vsel %vm2467_vm9, %v2468_v28, %v2466_v52  ;;  %v3965_v37 = vand.u32 65535, %v3961_v61  ;;  %v3966_v5 = vshrl.u32 %v3961_v61, 16 }
 0x3ca   :  { %v3602_v1 = vsel %vm3595_vm4, %v3598_v14, %v3601_v15  ;;  %v2470_v24 = vclz %v2469_v51  ;;  %v3964_v32 = vshrl.u32 %v9060_v62, 16  ;;  %v2458_v9 = vadd.s32 %v9016_v55, %v9014_v48  ;;  %v1430_v14 = vpop.permute.xlu2 %1429 }
 0x3cb   :  { %v3603_v11 = vsel %vm3592_vm11, nan, %v3602_v1  ;;  %v3950_v17 = vsel %vm3946_vm5, %v3930_v49, %v3933_v2  ;;  %v3968_v29 = vmul.u32 %v3966_v5, %v3963_v50  ;;  %v2488_v40 = vsub.s32 4, %v9040_v20  ;;  %v1470_v49 = vpop.permute.xlu0 %1469 }
 0x3cc   :  { %6561 = vst [vmem:[#allocation2 + $0x60] sm:$0xff] %v3603_v11  ;;  %v6615_v60 = vadd.s32 4294967294, %v2470_v24  ;;  %v3951_v26 = vsel %vm3949_vm2, %v3939_v30, 2102212464  ;;  %v3969_v7 = vmul.u32 %v3965_v37, %v3964_v32  ;;  %v3990_v47 = vmul.u32 %v3988_v3, %v3963_v50 }
 0x3cd   :  { %v3967_v63 = vmul.u32 %v3965_v37, %v3963_v50  ;;  %v3971_v19 = vshll.u32 %v3968_v29, 16  ;;  %v3989_v57 = vmul.u32 %v3987_v31, %v3963_v50  ;;  %v3970_v0 = vmul.u32 %v3966_v5, %v3964_v32 }
 0x3ce   :  { %vm6616_vm12 = vcmp.lt.s32.totalorder %v6615_v60, 0  ;;  %v3991_v25 = vmul.u32 %v3987_v31, %v3964_v32  ;;  %v3993_v48 = vshll.u32 %v3990_v47, 16  ;;  %v3992_v2 = vmul.u32 %v3988_v3, %v3964_v32 }
 0x3cf   :  { %v2473_v21 = vsel %vm6616_vm12, 0, %v6615_v60  ;;  %vm3975_vm15 = vc.u32 %v3967_v63, %v3971_v19  ;;  %vm2366_vm13 = vcmp.lt.s32.totalorder %v8887_v4, 0  ;;  %v3973_v16 = vshll.u32 %v3969_v7, 16 }
 0x3d0   :  { %v2474_v55 = vsub.s32 32, %v2473_v21  ;;  %v2478_v46 = vsub.s32 4294967266, %v2473_v21  ;;  %v2475_v33 = vshll.u32 %v2466_v52, %v2473_v21  ;;  %v3976_v30 = vsel %vm3975_vm15, 1, %v12096_v54 }
 0x3d1   :  { %v3977_v18 = vadd.s32 %v3971_v19, %v3967_v63  ;;  %v3978_v22 = vadd.s32 %v3976_v30, %v3970_v0  ;;  %vm3997_vm14 = vc.u32 %v3989_v57, %v3993_v48  ;;  %v3995_v28 = vshll.u32 %v3991_v25, 16 }
 0x3d2   :  { %v2476_v42 = vshrl.u32 %v2458_v9, %v2474_v55  ;;  %v2479_v15 = vadd.s32 127, %v2478_v46  ;;  %v3998_v59 = vsel %vm3997_vm14, 1, %v12096_v54  ;;  %v3999_v1 = vadd.s32 %v3993_v48, %v3989_v57 }
 0x3d3   :  { %vm3979_vm0 = vc.u32 %v3977_v18, %v3973_v16  ;;  %v4000_v52 = vadd.s32 %v3998_v59, %v3992_v2  ;;  %v3972_v50 = vshrl.u32 %v3968_v29, 16  ;;  %v1533_v24 = vmul.f32 %v8261_v39, %v1430_v14 }
 0x3d4   :  { %v2477_v61 = vor.u32 %v2476_v42, %v2475_v33  ;;  %v2480_v11 = vshll.u32 %v2479_v15, 23  ;;  %v3980_v51 = vsel %vm3979_vm0, 1, %v12096_v54  ;;  %vm4001_vm3 = vc.u32 %v3999_v1, %v3995_v28 }
 0x3d5   :  { %v3982_v37 = vadd.s32 %v3980_v51, %v3978_v22  ;;  %v3974_v31 = vshrl.u32 %v3969_v7, 16  ;;  %v4002_v3 = vsel %vm4001_vm3, 1, %v12096_v54  ;;  %v1543_v32 = vmul.f32 %v8261_v39, %v1470_v49 }
 0x3d6   :  { %v2481_v5 = vor.u32 4788187, %v2480_v11  ;;  %v3994_v60 = vshrl.u32 %v3990_v47, 16  ;;  %v4004_v63 = vadd.s32 %v4002_v3, %v4000_v52  ;;  %v9092_v19 = vadd.f32 %v1533_v24, %v8180_v6 }
 0x3d7   :  { %v3983_v9 = vadd.s32 %v3982_v37, %v3972_v50  ;;  %v2484_v21 = vcvt.s32.f32 %v2477_v61  ;;  %v3952_v29 = vsel %vm3948_vm6, %v9038_v44, %v3951_v26  ;;  %v3996_v0 = vshrl.u32 %v3991_v25, 16 }
 0x3d8   :  { %v2482_v57 = vand.u32 2147483647, %v2481_v5  ;;  %v4005_v55 = vadd.s32 %v4004_v63, %v3994_v60  ;;  %v2829_v7 = vand.u32 2147483647, %v9092_v19  ;;  %v9099_v46 = vadd.f32 %v1543_v32, %v8198_v43 }
 0x3d9   :  { %v3984_v48 = vadd.s32 %v3983_v9, %v3974_v31  ;;  %v2489_v6 = vsel %vm2366_vm13, %v2488_v40, %v9040_v20  ;;  %v4003_v47 = vadd.s32 %v3999_v1, %v3995_v28  ;;  %v2832_v33 = vand.u32 2139095040, %v9092_v19 }
 0x3da   :  { %v2485_v2 = vmul.f32 %v2484_v21, %v2482_v57  ;;  %v3953_v16 = vsel %vm3947_vm10, %v3950_v17, %v3952_v29  ;;  %v4006_v44 = vadd.s32 %v4005_v55, %v3996_v0  ;;  %vm2365_vm1 = vcmp.le.f32.partialorder %v2364_v36, 0.7853982 }
 0x3db   :  { %vm4009_vm2 = vc.u32 %v3984_v48, %v4003_v47  ;;  %v2833_v25 = vshrl.u32 %v2832_v33, 23  ;;  %v2491_v43 = vsel %vm2365_vm1, 0, %v2489_v6  ;;  %v2836_v18 = vand.u32 8388607, %v2829_v7 }
 0x3dc   :  { %v2486_v26 = vxor.u32 2147483648, %v2485_v2  ;;  %v4010_v30 = vadd.s32 1, %v4006_v44  ;;  %v4382_v20 = vand.u32 2139095040, %v9099_v46  ;;  %v4007_v13 = vmul.u32 %v9060_v62, %v3953_v16 }
 0x3dd   :  { %v6623_v17 = vadd.s32 4294967169, %v2833_v25  ;;  %v2508_v22 = vadd.s32 3, %v2491_v43  ;;  %v2837_v59 = vor.u32 8388608, %v2836_v18  ;;  %v4379_v31 = vand.u32 2147483647, %v9099_v46 }
 0x3de   :  { %v2487_v40 = vsel %vm2366_vm13, %v2486_v26, %v2485_v2  ;;  %v4011_v15 = vsel %vm4009_vm2, %v4010_v30, %v4006_v44  ;;  %v4383_v1 = vshrl.u32 %v4382_v20, 23  ;;  %vm9123_vm5 = vcmp.le.f32.partialorder %v3914_v38, 0.7853982 }
 0x3df   :  { %v2490_v42 = vsel %vm2365_vm1, %v8887_v4, %v2487_v40  ;;  %v4012_v14 = vadd.s32 %v4011_v15, %v4007_v13  ;;  %v2839_v28 = vadd.s32 1, %v6623_v17  ;;  %v9116_v37 = vand.u32 3, %v2508_v22 }
 0x3e0   :  { %v2492_v36 = vmul.f32 %v2490_v42, %v2490_v42  ;;  %v9118_v5 = vshll.u32 %v2837_v59, 8  ;;  %v6653_v3 = vadd.s32 4294967169, %v4383_v1  ;;  %vm3916_vm6 = vcmp.lt.s32.totalorder %v8900_v58, 0 }
 0x3e1   :  { %v4013_v11 = vadd.s32 536870912, %v4012_v14  ;;  %vm2840_vm4 = vcmp.gt.s32.totalorder %v2839_v28, 0  ;;  %vm2514_vm7 = vcmp.eq.s32.totalorder %v9116_v37, 2  ;;  %v4008_v55 = vadd.s32 %v4003_v47, %v3984_v48 }
 0x3e2   :  { %v2493_v49 = vmul.f32 -0.001358992, %v2492_v36  ;;  %v2500_v61 = vmul.f32 -0.00019511016, %v2492_v36  ;;  %v2841_v51 = vsel %vm2840_vm4, %v2839_v28, 0  ;;  %vm2511_vm8 = vcmp.eq.s32.totalorder %v9116_v37, 0 }
 0x3e3   :  { %v4014_v62 = vshrl.u32 %v4013_v11, 30  ;;  %v2843_v24 = vand.u32 31, %v2841_v51  ;;  %v9130_v6 = vshrl.u32 %v2841_v51, 5  ;;  %v9133_v33 = vand.u32 65535, %v9118_v5 }
 0x3e4   :  { %v2494_v52 = vadd.f32 0.041655596, %v2493_v49  ;;  %v2501_v50 = vadd.f32 0.008332121, %v2500_v61  ;;  %v9137_v38 = vand.u32 8388607, %v4379_v31  ;;  %vm2507_vm11 = vweird.f32 %v8887_v4 }
 0x3e5   :  { %v4015_v60 = vshll.u32 %v4014_v62, 30  ;;  %v4038_v57 = vsub.s32 4, %v4014_v62  ;;  %v2844_v21 = vsub.s32 32, %v2843_v24  ;;  %v9139_v16 = vadd.s32 1, %v6653_v3 }
 0x3e6   :  { %v2495_v32 = vmul.f32 %v2494_v52, %v2492_v36  ;;  %v2502_v9 = vmul.f32 %v2501_v50, %v2492_v36  ;;  %vm2510_vm10 = vcmp.lt.s32.totalorder %v9116_v37, 2  ;;  %v2846_v25 = vshll.u32 %v12097_v45, %v2843_v24 }
 0x3e7   :  { %v4016_v2 = vsub.s32 %v4012_v14, %v4015_v60  ;;  %v4039_v47 = vsel %vm3916_vm6, %v4038_v57, %v4014_v62  ;;  %v2847_v43 = vshrl.u32 %v12098_v56, %v2844_v21  ;;  %v2849_v30 = vshll.u32 %v12098_v56, %v2843_v24 }
 0x3e8   :  { %v2496_v29 = vadd.f32 -0.4999988, %v2495_v32  ;;  %v2503_v0 = vadd.f32 -0.16666654, %v2502_v9  ;;  %v2850_v13 = vshrl.u32 %v12099_v53, %v2844_v21  ;;  %v2852_v15 = vshll.u32 %v12099_v53, %v2843_v24 }
 0x3e9   :  { %vm4017_vm9 = vcmp.lt.s32.totalorder %v4016_v2, 0  ;;  %v4018_v48 = vsub.s32 0, %v4016_v2  ;;  %v2856_v22 = vshrl.u32 %v12101_v27, %v2844_v21  ;;  %v2855_v59 = vshll.u32 %v12100_v34, %v2843_v24 }
 0x3ea   :  { %v2497_v44 = vmul.f32 %v2496_v29, %v2492_v36  ;;  %v2504_v26 = vmul.f32 %v2503_v0, %v2492_v36  ;;  %v2853_v36 = vshrl.u32 %v12100_v34, %v2844_v21  ;;  %v2859_v1 = vshrl.u32 %v12102_v10, %v2844_v21 }
 0x3eb   :  { %v4019_v40 = vsel %vm4017_vm9, %v4018_v48, %v4016_v2  ;;  %v4041_v61 = vsel %vm9123_vm5, 0, %v4039_v47  ;;  %v2845_v11 = vshrl.u32 %v12097_v45, %v2844_v21  ;;  %v2858_v51 = vshll.u32 %v12101_v27, %v2843_v24 }
 0x3ec   :  { %v2498_v18 = vadd.f32 1.0, %v2497_v44  ;;  %v2505_v20 = vadd.f32 1.0, %v2504_v26  ;;  %v4020_v17 = vclz %v4019_v40  ;;  %v2848_v50 = vor.u32 %v2847_v43, %v2846_v25 }
 0x3ed   :  { %v2851_v62 = vor.u32 %v2850_v13, %v2849_v30  ;;  %v2857_v3 = vor.u32 %v2856_v22, %v2855_v59  ;;  %v2854_v32 = vor.u32 %v2853_v36, %v2852_v15  ;;  %v2860_v9 = vor.u32 %v2859_v1, %v2858_v51 }
 0x3ee   :  { %v2506_v14 = vmul.f32 %v2505_v20, %v2490_v42  ;;  %v2515_v28 = vxor.u32 2147483648, %v2498_v18  ;;  %v6645_v49 = vadd.s32 4294967294, %v4020_v17  ;;  %vm2861_vm15 = vcmp.lt.s32.totalorder %v9130_v6, 1 }
 0x3ef   :  { %vm2862_vm13 = vcmp.lt.s32.totalorder %v9130_v6, 2  ;;  %vm2864_vm14 = vcmp.lt.s32.totalorder %v9130_v6, 4  ;;  %vm2863_vm0 = vcmp.lt.s32.totalorder %v9130_v6, 3  ;;  %v2869_v44 = vsel %vm2861_vm15, %v2848_v50, %v2851_v62 }
 0x3f0   :  { %v2512_v52 = vxor.u32 2147483648, %v2506_v14  ;;  %v2516_v42 = vsel %vm2514_vm7, %v2515_v28, %v2506_v14  ;;  %vm6646_vm12 = vcmp.lt.s32.totalorder %v6645_v49, 0  ;;  %v2870_v26 = vsel %vm2864_vm14, %v2857_v3, 920167782 }
 0x3f1   :  { %v4023_v57 = vsel %vm6646_vm12, 0, %v6645_v49  ;;  %v2871_v37 = vsel %vm2863_vm0, %v2854_v32, %v2870_v26  ;;  %v2866_v43 = vsel %vm2864_vm14, %v2854_v32, 2102212464  ;;  %v2873_v4 = vsel %vm2861_vm15, %v2851_v62, %v2854_v32 }
 0x3f2   :  { %v2513_v60 = vsel %vm2511_vm8, %v2498_v18, %v2512_v52  ;;  %v4024_v21 = vsub.s32 32, %v4023_v57  ;;  %v4028_v29 = vsub.s32 4294967266, %v4023_v57  ;;  %v4025_v48 = vshll.u32 %v4016_v2, %v4023_v57 }
 0x3f3   :  { %v2517_v24 = vsel %vm2510_vm10, %v2513_v60, %v2516_v42  ;;  %v2872_v30 = vsel %vm2862_vm13, %v2869_v44, %v2871_v37  ;;  %v2874_v18 = vsel %vm2864_vm14, %v2860_v9, 1326507024  ;;  %v2879_v15 = vshrl.u32 %v9118_v5, 16 }
 0x3f4   :  { %v2518_v0 = vsel %vm2507_vm11, nan, %v2517_v24  ;;  %v4026_v47 = vshrl.u32 %v4008_v55, %v4024_v21  ;;  %v4029_v25 = vadd.s32 127, %v4028_v29  ;;  %v2875_v13 = vsel %vm2863_vm0, %v2857_v3, %v2874_v18 }
 0x3f5   :  { %6554 = vst [vmem:[#allocation2 + $0x28] sm:$0xff] %v2518_v0  ;;  %v2902_v17 = vand.u32 65535, %v2872_v30  ;;  %v2865_v55 = vsel %vm2861_vm15, %v2845_v11, %v2848_v50  ;;  %v2876_v2 = vsel %vm2862_vm13, %v2873_v4, %v2875_v13  ;;  %v2903_v36 = vshrl.u32 %v2872_v30, 16 }
 0x3f6   :  { %v4027_v20 = vor.u32 %v4026_v47, %v4025_v48  ;;  %v4030_v40 = vshll.u32 %v4029_v25, 23  ;;  %v2867_v14 = vsel %vm2863_vm0, %v2851_v62, %v2866_v43  ;;  %v2880_v28 = vand.u32 65535, %v2876_v2 }
 0x3f7   :  { %v2881_v59 = vshrl.u32 %v2876_v2, 16  ;;  %v4058_v1 = vadd.s32 3, %v4041_v61  ;;  %v2905_v49 = vmul.u32 %v2903_v36, %v9133_v33  ;;  %v2906_v51 = vmul.u32 %v2902_v17, %v2879_v15 }
 0x3f8   :  { %v4031_v22 = vor.u32 4788187, %v4030_v40  ;;  %vm4390_vm3 = vcmp.gt.s32.totalorder %v9139_v16, 0  ;;  %v4034_v11 = vcvt.s32.f32 %v4027_v20  ;;  %v2884_v3 = vmul.u32 %v2880_v28, %v2879_v15 }
 0x3f9   :  { %v2883_v50 = vmul.u32 %v2881_v59, %v9133_v33  ;;  %v9192_v42 = vsel %vm2862_vm13, %v2865_v55, %v2867_v14  ;;  %v2904_v32 = vmul.u32 %v2902_v17, %v9133_v33  ;;  %v2907_v62 = vmul.u32 %v2903_v36, %v2879_v15 }
 0x3fa   :  { %v4032_v52 = vand.u32 2147483647, %v4031_v22  ;;  %v2908_v9 = vshll.u32 %v2905_v49, 16  ;;  %v2882_v61 = vmul.u32 %v2880_v28, %v9133_v33  ;;  %v2885_v57 = vmul.u32 %v2881_v59, %v2879_v15 }
 0x3fb   :  { %v2886_v24 = vshll.u32 %v2883_v50, 16  ;;  %v2888_v21 = vshll.u32 %v2884_v3, 16  ;;  %v2910_v29 = vshll.u32 %v2906_v51, 16  ;;  %v4391_v25 = vsel %vm4390_vm3, %v9139_v16, 0 }
 0x3fc   :  { %v4035_v60 = vmul.f32 %v4034_v11, %v4032_v52  ;;  %vm2912_vm1 = vc.u32 %v2904_v32, %v2908_v9  ;;  %v2914_v0 = vadd.s32 %v2908_v9, %v2904_v32  ;;  %v2909_v18 = vshrl.u32 %v2905_v49, 16 }
 0x3fd   :  { %vm2890_vm2 = vc.u32 %v2882_v61, %v2886_v24  ;;  %v2892_v26 = vadd.s32 %v2886_v24, %v2882_v61  ;;  %v2913_v6 = vsel %vm2912_vm1, 1, %v12096_v54  ;;  %v2887_v13 = vshrl.u32 %v2883_v50, 16 }
 0x3fe   :  { %v4036_v44 = vxor.u32 2147483648, %v4035_v60  ;;  %v2891_v48 = vsel %vm2890_vm2, 1, %v12096_v54  ;;  %v2915_v47 = vadd.s32 %v2913_v6, %v2907_v62  ;;  %vm2916_vm4 = vc.u32 %v2914_v0, %v2910_v29 }
 0x3ff   :  { %v2893_v37 = vadd.s32 %v2891_v48, %v2885_v57  ;;  %vm2894_vm7 = vc.u32 %v2892_v26, %v2888_v21  ;;  %v2917_v43 = vsel %vm2916_vm4, 1, %v12096_v54  ;;  %v4393_v55 = vand.u32 31, %v4391_v25 }
 0x400   :  { %v4037_v33 = vsel %vm3916_vm6, %v4036_v44, %v4035_v60  ;;  %v2895_v4 = vsel %vm2894_vm7, 1, %v12096_v54  ;;  %v2919_v20 = vadd.s32 %v2917_v43, %v2915_v47  ;;  %v2889_v16 = vshrl.u32 %v2884_v3, 16 }
 0x401   :  { %v4040_v30 = vsel %vm9123_vm5, %v8900_v58, %v4037_v33  ;;  %v2897_v17 = vadd.s32 %v2895_v4, %v2893_v37  ;;  %v2911_v2 = vshrl.u32 %v2906_v51, 16  ;;  %v4387_v36 = vor.u32 8388608, %v9137_v38 }
 0x402   :  { %v4042_v40 = vmul.f32 %v4040_v30, %v4040_v30  ;;  %v2920_v15 = vadd.s32 %v2919_v20, %v2909_v18  ;;  %v9209_v59 = vsub.s32 32, %v4393_v55  ;;  %v9211_v63 = vand.u32 3, %v4058_v1 }
 0x403   :  { %v2898_v28 = vadd.s32 %v2897_v17, %v2887_v13  ;;  %v9213_v52 = vadd.s32 %v2914_v0, %v2910_v29  ;;  %v2922_v11 = vmul.u32 %v9118_v5, %v9192_v42  ;;  %v4396_v51 = vshll.u32 %v12097_v45, %v4393_v55 }
 0x404   :  { %v4043_v22 = vmul.f32 -0.001358992, %v4042_v40  ;;  %v4050_v14 = vmul.f32 -0.00019511016, %v4042_v40  ;;  %v2921_v49 = vadd.s32 %v2920_v15, %v2911_v2  ;;  %v4397_v62 = vshrl.u32 %v12098_v56, %v9209_v59 }
 0x405   :  { %v9217_v3 = vadd.s32 %v2898_v28, %v2889_v16  ;;  %v4399_v9 = vshll.u32 %v12098_v56, %v4393_v55  ;;  %v4400_v1 = vshrl.u32 %v12099_v53, %v9209_v59  ;;  %v4403_v5 = vshrl.u32 %v12100_v34, %v9209_v59 }
 0x406   :  { %v4044_v50 = vadd.f32 0.041655596, %v4043_v22  ;;  %v4051_v32 = vadd.f32 0.008332121, %v4050_v14  ;;  %v2925_v38 = vadd.s32 1, %v2921_v49  ;;  %v9229_v57 = vshrl.u32 %v4391_v25, 5 }
 0x407   :  { %vm2924_vm5 = vc.u32 %v9217_v3, %v9213_v52  ;;  %v9231_v24 = vor.u32 %v4397_v62, %v4396_v51  ;;  %v4402_v21 = vshll.u32 %v12099_v53, %v4393_v55  ;;  %v9234_v26 = vor.u32 %v4400_v1, %v4399_v9  ;;  %v9275_v1 = vpop.permute.xlu1 %1328 }
 0x408   :  { %v4045_v60 = vmul.f32 %v4044_v50, %v4042_v40  ;;  %v4052_v61 = vmul.f32 %v4051_v32, %v4042_v40  ;;  %v2926_v42 = vsel %vm2924_vm5, %v2925_v38, %v2921_v49  ;;  %v4405_v6 = vshll.u32 %v12100_v34, %v4393_v55 }
 0x409   :  { %v2927_v44 = vadd.s32 %v2926_v42, %v2922_v11  ;;  %v4406_v48 = vshrl.u32 %v12101_v27, %v9209_v59  ;;  %v4408_v47 = vshll.u32 %v12101_v27, %v4393_v55  ;;  %v4409_v25 = vshrl.u32 %v12102_v10, %v9209_v59 }
 0x40a   :  { %v4046_v29 = vadd.f32 -0.4999988, %v4045_v60  ;;  %v4053_v0 = vadd.f32 -0.16666654, %v4052_v61  ;;  %v4404_v4 = vor.u32 %v4403_v5, %v4402_v21  ;;  %vm4411_vm6 = vcmp.lt.s32.totalorder %v9229_v57, 1 }
 0x40b   :  { %v2928_v43 = vadd.s32 536870912, %v2927_v44  ;;  %v4407_v18 = vor.u32 %v4406_v48, %v4405_v6  ;;  %v4410_v20 = vor.u32 %v4409_v25, %v4408_v47  ;;  %v9243_v13 = vshll.u32 %v4387_v36, 8 }
 0x40c   :  { %v4047_v33 = vmul.f32 %v4046_v29, %v4042_v40  ;;  %v4054_v37 = vmul.f32 %v4053_v0, %v4042_v40  ;;  %vm4414_vm8 = vcmp.lt.s32.totalorder %v9229_v57, 4  ;;  %vm4413_vm10 = vcmp.lt.s32.totalorder %v9229_v57, 3 }
 0x40d   :  { %v9245_v2 = vshrl.u32 %v2928_v43, 30  ;;  %v4419_v40 = vsel %vm4411_vm6, %v9231_v24, %v9234_v26  ;;  %v4420_v55 = vsel %vm4414_vm8, %v4407_v18, 920167782  ;;  %v4424_v15 = vsel %vm4414_vm8, %v4410_v20, 1326507024 }
 0x40e   :  { %v4048_v17 = vadd.f32 1.0, %v4047_v33  ;;  %v4055_v16 = vadd.f32 1.0, %v4054_v37  ;;  %v4423_v28 = vsel %vm4411_vm6, %v9234_v26, %v4404_v4  ;;  %vm4057_vm9 = vweird.f32 %v8900_v58 }
 0x40f   :  { %v2930_v14 = vshll.u32 %v9245_v2, 30  ;;  %vm4060_vm11 = vcmp.lt.s32.totalorder %v9211_v63, 2  ;;  %v4421_v49 = vsel %vm4413_vm10, %v4404_v4, %v4420_v55  ;;  %v4425_v11 = vsel %vm4413_vm10, %v4407_v18, %v4424_v15 }
 0x410   :  { %v4056_v36 = vmul.f32 %v4055_v16, %v4040_v30  ;;  %v4065_v22 = vxor.u32 2147483648, %v4048_v17  ;;  %vm4061_vm12 = vcmp.eq.s32.totalorder %v9211_v63, 0  ;;  %vm4412_vm15 = vcmp.lt.s32.totalorder %v9229_v57, 2 }
 0x411   :  { %v2931_v50 = vsub.s32 %v2927_v44, %v2930_v14  ;;  %vm4064_vm13 = vcmp.eq.s32.totalorder %v9211_v63, 2  ;;  %v4422_v32 = vsel %vm4412_vm15, %v4419_v40, %v4421_v49  ;;  %v4426_v51 = vsel %vm4412_vm15, %v4423_v28, %v4425_v11  ;;  %v1406_v11 = vpop.permute.xlu1 %1405 }
 0x412   :  { %v4062_v30 = vxor.u32 2147483648, %v4056_v36  ;;  %v4428_v38 = vand.u32 65535, %v9243_v13  ;;  %v4066_v9 = vsel %vm4064_vm13, %v4065_v22, %v4056_v36  ;;  %v4429_v5 = vshrl.u32 %v9243_v13, 16 }
 0x413   :  { %vm2932_vm14 = vcmp.lt.s32.totalorder %v2931_v50, 0  ;;  %v2933_v60 = vsub.s32 0, %v2931_v50  ;;  %v4430_v42 = vand.u32 65535, %v4426_v51  ;;  %v4431_v21 = vshrl.u32 %v4426_v51, 16 }
 0x414   :  { %v4063_v62 = vsel %vm4061_vm12, %v4048_v17, %v4062_v30  ;;  %v4395_v44 = vshrl.u32 %v12097_v45, %v9209_v59  ;;  %v4453_v6 = vshrl.u32 %v4422_v32, 16  ;;  %v4452_v33 = vand.u32 65535, %v4422_v32  ;;  %v1442_v30 = vpop.permute.xlu2 %1441 }
 0x415   :  { %v4067_v61 = vsel %vm4060_vm11, %v4063_v62, %v4066_v9  ;;  %v2934_v0 = vsel %vm2932_vm14, %v2933_v60, %v2931_v50  ;;  %v4433_v47 = vmul.u32 %v4431_v21, %v4428_v38  ;;  %v4434_v25 = vmul.u32 %v4430_v42, %v4429_v5 }
 0x416   :  { %v4068_v29 = vsel %vm4057_vm9, nan, %v4067_v61  ;;  %v2935_v48 = vclz %v2934_v0  ;;  %v2923_v63 = vadd.s32 %v9213_v52, %v9217_v3  ;;  %v9289_v43 = vsel %vm4411_vm6, %v4395_v44, %v9231_v24 }
 0x417   :  { %6564 = vst [vmem:[#allocation2 + $0x78] sm:$0xff] %v4068_v29  ;;  %v4432_v58 = vmul.u32 %v4430_v42, %v4428_v38  ;;  %v4436_v18 = vshll.u32 %v4433_v47, 16  ;;  %v4416_v59 = vsel %vm4414_vm8, %v4404_v4, 2102212464  ;;  %v4435_v20 = vmul.u32 %v4431_v21, %v4429_v5 }
 0x418   :  { %v6624_v37 = vadd.s32 4294967294, %v2935_v48  ;;  %v4438_v17 = vshll.u32 %v4434_v25, 16  ;;  %v4455_v16 = vmul.u32 %v4453_v6, %v4428_v38  ;;  %v4454_v55 = vmul.u32 %v4452_v33, %v4428_v38 }
 0x419   :  { %vm4440_vm3 = vc.u32 %v4432_v58, %v4436_v18  ;;  %v4442_v40 = vadd.s32 %v4436_v18, %v4432_v58  ;;  %v4456_v3 = vmul.u32 %v4452_v33, %v4429_v5  ;;  %vm2831_vm1 = vcmp.lt.s32.totalorder %v9092_v19, 0 }
 0x41a   :  { %vm6625_vm0 = vcmp.lt.s32.totalorder %v6624_v37, 0  ;;  %v4441_v52 = vsel %vm4440_vm3, 1, %v12096_v54  ;;  %v4458_v36 = vshll.u32 %v4455_v16, 16  ;;  %v4437_v14 = vshrl.u32 %v4433_v47, 16 }
 0x41b   :  { %v2938_v15 = vsel %vm6625_vm0, 0, %v6624_v37  ;;  %v4443_v28 = vadd.s32 %v4441_v52, %v4435_v20  ;;  %vm4444_vm2 = vc.u32 %v4442_v40, %v4438_v17  ;;  %v4457_v4 = vmul.u32 %v4453_v6, %v4429_v5 }
 0x41c   :  { %v2939_v24 = vsub.s32 32, %v2938_v15  ;;  %v2943_v22 = vsub.s32 4294967266, %v2938_v15  ;;  %v2940_v49 = vshll.u32 %v2931_v50, %v2938_v15  ;;  %vm4462_vm4 = vc.u32 %v4454_v55, %v4458_v36 }
 0x41d   :  { %v4445_v38 = vsel %vm4444_vm2, 1, %v12096_v54  ;;  %v4463_v62 = vsel %vm4462_vm4, 1, %v12096_v54  ;;  %v4460_v60 = vshll.u32 %v4456_v3, 16  ;;  %v4464_v61 = vadd.s32 %v4458_v36, %v4454_v55 }
 0x41e   :  { %v2941_v32 = vshrl.u32 %v2923_v63, %v2939_v24  ;;  %v2944_v51 = vadd.s32 127, %v2943_v22  ;;  %v4447_v9 = vadd.s32 %v4445_v38, %v4443_v28  ;;  %v4465_v42 = vadd.s32 %v4463_v62, %v4457_v4 }
 0x41f   :  { %v1527_v0 = vmul.f32 %v8261_v39, %v1406_v11  ;;  %v1536_v50 = vmul.f32 %v8261_v39, %v1442_v30  ;;  %v2953_v5 = vsub.s32 4, %v9245_v2  ;;  %v4417_v44 = vsel %vm4413_vm10, %v9234_v26, %v4416_v59 }
 0x420   :  { %v2942_v21 = vor.u32 %v2941_v32, %v2940_v49  ;;  %v2945_v29 = vshll.u32 %v2944_v51, 23  ;;  %v4448_v6 = vadd.s32 %v4447_v9, %v4437_v14  ;;  %vm4466_vm7 = vc.u32 %v4464_v61, %v4460_v60 }
 0x421   :  { %v4439_v47 = vshrl.u32 %v4434_v25, 16  ;;  %v4467_v33 = vsel %vm4466_vm7, 1, %v12096_v54  ;;  %v9305_v63 = vadd.f32 %v1527_v0, %v8192_v41  ;;  %v4459_v58 = vshrl.u32 %v4455_v16, 16 }
 0x422   :  { %v2946_v48 = vor.u32 4788187, %v2945_v29  ;;  %v2949_v37 = vcvt.s32.f32 %v2942_v21  ;;  %v4469_v18 = vadd.s32 %v4467_v33, %v4465_v42  ;;  %v9308_v20 = vadd.f32 %v1536_v50, %v8195_v8 }
 0x423   :  { %v4449_v40 = vadd.s32 %v4448_v6, %v4439_v47  ;;  %v1899_v55 = vand.u32 2147483647, %v9305_v63  ;;  %v1902_v26 = vand.u32 2139095040, %v9305_v63  ;;  %v2954_v25 = vsel %vm2831_vm1, %v2953_v5, %v9245_v2 }
 0x424   :  { %v2947_v17 = vand.u32 2147483647, %v2946_v48  ;;  %v4461_v59 = vshrl.u32 %v4456_v3, 16  ;;  %v4470_v15 = vadd.s32 %v4469_v18, %v4459_v58  ;;  %v4468_v52 = vadd.s32 %v4464_v61, %v4460_v60 }
 0x425   :  { %v1903_v36 = vshrl.u32 %v1902_v26, 23  ;;  %v1906_v16 = vand.u32 8388607, %v1899_v55  ;;  %vm2830_vm5 = vcmp.le.f32.partialorder %v2829_v7, 0.7853982  ;;  %v4418_v8 = vsel %vm4412_vm15, %v9289_v43, %v4417_v44 }
 0x426   :  { %v2950_v41 = vmul.f32 %v2949_v37, %v2947_v17  ;;  %v4471_v24 = vadd.s32 %v4470_v15, %v4461_v59  ;;  %v3297_v22 = vand.u32 2139095040, %v9308_v20  ;;  %v2956_v2 = vsel %vm2830_vm5, 0, %v2954_v25 }
 0x427   :  { %vm4474_vm6 = vc.u32 %v4449_v40, %v4468_v52  ;;  %v6605_v3 = vadd.s32 4294967169, %v1903_v36  ;;  %v1907_v49 = vor.u32 8388608, %v1906_v16  ;;  %v4472_v11 = vmul.u32 %v9243_v13, %v4418_v8 }
 0x428   :  { %v2951_v14 = vxor.u32 2147483648, %v2950_v41  ;;  %v4475_v28 = vadd.s32 1, %v4471_v24  ;;  %v2973_v32 = vadd.s32 3, %v2956_v2  ;;  %v3298_v43 = vshrl.u32 %v3297_v22, 23 }
 0x429   :  { %v1909_v30 = vadd.s32 1, %v6605_v3  ;;  %v9327_v9 = vshll.u32 %v1907_v49, 8  ;;  %v9331_v44 = vadd.s32 %v4468_v52, %v4449_v40  ;;  %v3294_v47 = vand.u32 2147483647, %v9308_v20 }
 0x42a   :  { %v2952_v4 = vsel %vm2831_vm1, %v2951_v14, %v2950_v41  ;;  %v4476_v57 = vsel %vm4474_vm6, %v4475_v28, %v4471_v24  ;;  %v9329_v21 = vand.u32 3, %v2973_v32  ;;  %v6632_v0 = vadd.s32 4294967169, %v3298_v43 }
 0x42b   :  { %v2955_v7 = vsel %vm2830_vm5, %v9092_v19, %v2952_v4  ;;  %v4477_v38 = vadd.s32 %v4476_v57, %v4472_v11  ;;  %vm1910_vm8 = vcmp.gt.s32.totalorder %v1909_v30, 0  ;;  %v9334_v48 = vand.u32 65535, %v9327_v9 }
 0x42c   :  { %v2957_v51 = vmul.f32 %v2955_v7, %v2955_v7  ;;  %v1911_v62 = vsel %vm1910_vm8, %v1909_v30, 0  ;;  %vm4381_vm10 = vcmp.lt.s32.totalorder %v9099_v46, 0  ;;  %v9339_v18 = vshrl.u32 %v9327_v9, 16 }
 0x42d   :  { %v4478_v42 = vadd.s32 536870912, %v4477_v38  ;;  %v1913_v29 = vand.u32 31, %v1911_v62  ;;  %vm2979_vm9 = vcmp.eq.s32.totalorder %v9329_v21, 2  ;;  %v9342_v17 = vshrl.u32 %v1911_v62, 5 }
 0x42e   :  { %v2958_v60 = vmul.f32 -0.001358992, %v2957_v51  ;;  %v2965_v61 = vmul.f32 -0.00019511016, %v2957_v51  ;;  %v9346_v25 = vadd.s32 1, %v6632_v0  ;;  %vm2976_vm11 = vcmp.eq.s32.totalorder %v9329_v21, 0 }
 0x42f   :  { %v4479_v5 = vshrl.u32 %v4478_v42, 30  ;;  %v1914_v6 = vsub.s32 32, %v1913_v29  ;;  %v1916_v52 = vshll.u32 %v12097_v45, %v1913_v29  ;;  %v1919_v16 = vshll.u32 %v12098_v56, %v1913_v29 }
 0x430   :  { %v2959_v13 = vadd.f32 0.041655596, %v2958_v60  ;;  %v2966_v50 = vadd.f32 0.008332121, %v2965_v61  ;;  %v1922_v8 = vshll.u32 %v12099_v53, %v1913_v29  ;;  %vm2975_vm12 = vcmp.lt.s32.totalorder %v9329_v21, 2 }
 0x431   :  { %v4480_v58 = vshll.u32 %v4479_v5, 30  ;;  %v1917_v40 = vshrl.u32 %v12098_v56, %v1914_v6  ;;  %v1920_v26 = vshrl.u32 %v12099_v53, %v1914_v6  ;;  %v4503_v36 = vsub.s32 4, %v4479_v5 }
 0x432   :  { %v2960_v33 = vmul.f32 %v2959_v13, %v2957_v51  ;;  %v2967_v37 = vmul.f32 %v2966_v50, %v2957_v51  ;;  %v1923_v24 = vshrl.u32 %v12100_v34, %v1914_v6  ;;  %vm2972_vm13 = vweird.f32 %v9092_v19 }
 0x433   :  { %v9348_v41 = vsub.s32 %v4477_v38, %v4480_v58  ;;  %v1918_v3 = vor.u32 %v1917_v40, %v1916_v52  ;;  %v1921_v28 = vor.u32 %v1920_v26, %v1919_v16  ;;  %v1925_v49 = vshll.u32 %v12100_v34, %v1913_v29 }
 0x434   :  { %v2961_v59 = vadd.f32 -0.4999988, %v2960_v33  ;;  %v2968_v15 = vadd.f32 -0.16666654, %v2967_v37  ;;  %v1926_v4 = vshrl.u32 %v12101_v27, %v1914_v6  ;;  %v1929_v57 = vshrl.u32 %v12102_v10, %v1914_v6 }
 0x435   :  { %vm4482_vm15 = vcmp.lt.s32.totalorder %v9348_v41, 0  ;;  %v4483_v2 = vsub.s32 0, %v9348_v41  ;;  %vm9365_vm14 = vcmp.le.f32.partialorder %v4379_v31, 0.7853982  ;;  %v1924_v38 = vor.u32 %v1923_v24, %v1922_v8 }
 0x436   :  { %v2962_v22 = vmul.f32 %v2961_v59, %v2957_v51  ;;  %v2969_v14 = vmul.f32 %v2968_v15, %v2957_v51  ;;  %v1927_v62 = vor.u32 %v1926_v4, %v1925_v49  ;;  %v1928_v60 = vshll.u32 %v12101_v27, %v1913_v29 }
 0x437   :  { %v4484_v32 = vsel %vm4482_vm15, %v4483_v2, %v9348_v41  ;;  %v1915_v0 = vshrl.u32 %v12097_v45, %v1914_v6  ;;  %vm1931_vm0 = vcmp.lt.s32.totalorder %v9342_v17, 1  ;;  %v4504_v50 = vsel %vm4381_vm10, %v4503_v36, %v4479_v5 }
 0x438   :  { %v2963_v11 = vadd.f32 1.0, %v2962_v22  ;;  %v2970_v30 = vadd.f32 1.0, %v2969_v14  ;;  %v4485_v51 = vclz %v4484_v32  ;;  %v1930_v33 = vor.u32 %v1929_v57, %v1928_v60 }
 0x439   :  { %vm1932_vm3 = vcmp.lt.s32.totalorder %v9342_v17, 2  ;;  %vm1933_vm1 = vcmp.lt.s32.totalorder %v9342_v17, 3  ;;  %vm1934_vm2 = vcmp.lt.s32.totalorder %v9342_v17, 4  ;;  %v1939_v29 = vsel %vm1931_vm0, %v1918_v3, %v1921_v28 }
 0x43a   :  { %v2971_v61 = vmul.f32 %v2970_v30, %v2955_v7  ;;  %v2980_v42 = vxor.u32 2147483648, %v2963_v11  ;;  %v6654_v13 = vadd.s32 4294967294, %v4485_v51  ;;  %v1936_v7 = vsel %vm1934_vm2, %v1924_v38, 2102212464 }
 0x43b   :  { %v1940_v5 = vsel %vm1934_vm2, %v1927_v62, 920167782  ;;  %v1935_v40 = vsel %vm1931_vm0, %v1915_v0, %v1918_v3  ;;  %v1937_v36 = vsel %vm1933_vm1, %v1921_v28, %v1936_v7  ;;  %v1943_v22 = vsel %vm1931_vm0, %v1921_v28, %v1924_v38 }
 0x43c   :  { %v2977_v31 = vxor.u32 2147483648, %v2971_v61  ;;  %v2981_v37 = vsel %vm2979_vm9, %v2980_v42, %v2971_v61  ;;  %vm6655_vm4 = vcmp.lt.s32.totalorder %v6654_v13, 0  ;;  %v1941_v26 = vsel %vm1933_vm1, %v1924_v38, %v1940_v5 }
 0x43d   :  { %v4488_v58 = vsel %vm6655_vm4, 0, %v6654_v13  ;;  %v1942_v24 = vsel %vm1932_vm3, %v1939_v29, %v1941_v26  ;;  %v1944_v2 = vsel %vm1934_vm2, %v1930_v33, 1326507024  ;;  %v4506_v19 = vsel %vm9365_vm14, 0, %v4504_v50 }
 0x43e   :  { %v2978_v6 = vsel %vm2976_vm11, %v2963_v11, %v2977_v31  ;;  %v4489_v15 = vsub.s32 32, %v4488_v58  ;;  %v4493_v52 = vsub.s32 4294967266, %v4488_v58  ;;  %v4490_v8 = vshll.u32 %v9348_v41, %v4488_v58 }
 0x43f   :  { %v2982_v59 = vsel %vm2975_vm12, %v2978_v6, %v2981_v37  ;;  %v1972_v3 = vand.u32 65535, %v1942_v24  ;;  %v9409_v41 = vsel %vm1932_vm3, %v1935_v40, %v1937_v36  ;;  %v1945_v49 = vsel %vm1933_vm1, %v1927_v62, %v1944_v2 }
 0x440   :  { %v2983_v16 = vsel %vm2972_vm13, nan, %v2982_v59  ;;  %v4491_v21 = vshrl.u32 %v9331_v44, %v4489_v15  ;;  %v4494_v14 = vadd.s32 127, %v4493_v52  ;;  %v1973_v4 = vshrl.u32 %v1942_v24, 16 }
 0x441   :  { %6557 = vst [vmem:[#allocation2 + $0x40] sm:$0xff] %v2983_v16  ;;  %v1946_v44 = vsel %vm1932_vm3, %v1943_v22, %v1945_v49  ;;  %vm3305_vm7 = vcmp.gt.s32.totalorder %v9346_v25, 0  ;;  %v1976_v51 = vmul.u32 %v1972_v3, %v9339_v18  ;;  %v9418_v60 = vadd.s32 3, %v4506_v19 }
 0x442   :  { %v4492_v28 = vor.u32 %v4491_v21, %v4490_v8  ;;  %v4495_v11 = vshll.u32 %v4494_v14, 23  ;;  %v1950_v30 = vand.u32 65535, %v1946_v44  ;;  %v1951_v32 = vshrl.u32 %v1946_v44, 16 }
 0x443   :  { %v1975_v57 = vmul.u32 %v1973_v4, %v9334_v48  ;;  %v1992_v62 = vmul.u32 %v9327_v9, %v9409_v41  ;;  %v9424_v61 = vand.u32 8388607, %v3294_v47  ;;  %v1974_v0 = vmul.u32 %v1972_v3, %v9334_v48 }
 0x444   :  { %v4496_v38 = vor.u32 4788187, %v4495_v11  ;;  %v1953_v17 = vmul.u32 %v1951_v32, %v9334_v48  ;;  %v1954_v42 = vmul.u32 %v1950_v30, %v9339_v18  ;;  %v3306_v13 = vsel %vm3305_vm7, %v9346_v25, 0 }
 0x445   :  { %v4499_v33 = vcvt.s32.f32 %v4492_v28  ;;  %v1977_v31 = vmul.u32 %v1973_v4, %v9339_v18  ;;  %v1978_v37 = vshll.u32 %v1975_v57, 16  ;;  %v1952_v7 = vmul.u32 %v1950_v30, %v9334_v48 }
 0x446   :  { %v4497_v50 = vand.u32 2147483647, %v4496_v38  ;;  %v1955_v29 = vmul.u32 %v1951_v32, %v9339_v18  ;;  %v1956_v5 = vshll.u32 %v1953_v17, 16  ;;  %v1980_v6 = vshll.u32 %v1976_v51, 16 }
 0x447   :  { %v1958_v40 = vshll.u32 %v1954_v42, 16  ;;  %vm1982_vm5 = vc.u32 %v1974_v0, %v1978_v37  ;;  %v1984_v26 = vadd.s32 %v1978_v37, %v1974_v0  ;;  %v3308_v25 = vand.u32 31, %v3306_v13 }
 0x448   :  { %v4500_v58 = vmul.f32 %v4499_v33, %v4497_v50  ;;  %vm1960_vm6 = vc.u32 %v1952_v7, %v1956_v5  ;;  %v1962_v59 = vadd.s32 %v1956_v5, %v1952_v7  ;;  %v1983_v15 = vsel %vm1982_vm5, 1, %v12096_v54 }
 0x449   :  { %v1961_v36 = vsel %vm1960_vm6, 1, %v12096_v54  ;;  %v1985_v16 = vadd.s32 %v1983_v15, %v1977_v31  ;;  %vm1986_vm8 = vc.u32 %v1984_v26, %v1980_v6  ;;  %v1979_v48 = vshrl.u32 %v1975_v57, 16 }
 0x44a   :  { %v4501_v52 = vxor.u32 2147483648, %v4500_v58  ;;  %v1963_v8 = vadd.s32 %v1961_v36, %v1955_v29  ;;  %vm1964_vm9 = vc.u32 %v1962_v59, %v1958_v40  ;;  %v1987_v18 = vsel %vm1986_vm8, 1, %v12096_v54 }
 0x44b   :  { %v1965_v22 = vsel %vm1964_vm9, 1, %v12096_v54  ;;  %v1989_v21 = vadd.s32 %v1987_v18, %v1985_v16  ;;  %v9439_v14 = vsub.s32 32, %v3308_v25  ;;  %v1957_v3 = vshrl.u32 %v1953_v17, 16 }
 0x44c   :  { %v4502_v24 = vsel %vm4381_vm10, %v4501_v52, %v4500_v58  ;;  %v1967_v19 = vadd.s32 %v1965_v22, %v1963_v8  ;;  %v9444_v49 = vshrl.u32 %v3306_v13, 5  ;;  %v1959_v28 = vshrl.u32 %v1954_v42, 16 }
 0x44d   :  { %v4505_v2 = vsel %vm9365_vm14, %v9099_v46, %v4502_v24  ;;  %v1981_v11 = vshrl.u32 %v1976_v51, 16  ;;  %v1990_v44 = vadd.s32 %v1989_v21, %v1979_v48  ;;  %v9446_v32 = vadd.s32 %v1984_v26, %v1980_v6 }
 0x44e   :  { %v4507_v4 = vmul.f32 %v4505_v2, %v4505_v2  ;;  %v1968_v30 = vadd.s32 %v1967_v19, %v1957_v3  ;;  %v3311_v57 = vshll.u32 %v12097_v45, %v3308_v25  ;;  %v3314_v38 = vshll.u32 %v12098_v56, %v3308_v25 }
 0x44f   :  { %v1991_v33 = vadd.s32 %v1990_v44, %v1981_v11  ;;  %v3312_v43 = vshrl.u32 %v12098_v56, %v9439_v14  ;;  %v3315_v42 = vshrl.u32 %v12099_v53, %v9439_v14  ;;  %v3318_v51 = vshrl.u32 %v12100_v34, %v9439_v14 }
 0x450   :  { %v4508_v0 = vmul.f32 -0.001358992, %v4507_v4  ;;  %v4515_v50 = vmul.f32 -0.00019511016, %v4507_v4  ;;  %v9452_v17 = vadd.s32 %v1968_v30, %v1959_v28  ;;  %v3320_v13 = vshll.u32 %v12100_v34, %v3308_v25 }
 0x451   :  { %v1995_v7 = vadd.s32 1, %v1991_v33  ;;  %v3321_v29 = vshrl.u32 %v12101_v27, %v9439_v14  ;;  %v3317_v5 = vshll.u32 %v12099_v53, %v3308_v25  ;;  %v3323_v6 = vshll.u32 %v12101_v27, %v3308_v25 }
 0x452   :  { %v4509_v31 = vadd.f32 0.041655596, %v4508_v0  ;;  %v4516_v37 = vadd.f32 0.008332121, %v4515_v50  ;;  %vm1994_vm10 = vc.u32 %v9452_v17, %v9446_v32  ;;  %v3324_v58 = vshrl.u32 %v12102_v10, %v9439_v14 }
 0x453   :  { %v1996_v59 = vsel %vm1994_vm10, %v1995_v7, %v1991_v33  ;;  %v3322_v15 = vor.u32 %v3321_v29, %v3320_v13  ;;  %v9470_v36 = vor.u32 %v3312_v43, %v3311_v57  ;;  %v9472_v16 = vor.u32 %v3315_v42, %v3314_v38 }
 0x454   :  { %v4510_v40 = vmul.f32 %v4509_v31, %v4507_v4  ;;  %v4517_v26 = vmul.f32 %v4516_v37, %v4507_v4  ;;  %v1997_v52 = vadd.s32 %v1996_v59, %v1992_v62  ;;  %v9474_v8 = vor.u32 %v3318_v51, %v3317_v5 }
 0x455   :  { %v3325_v25 = vor.u32 %v3324_v58, %v3323_v6  ;;  %v4524_v24 = vand.u32 3, %v9418_v60  ;;  %v3302_v21 = vor.u32 8388608, %v9424_v61  ;;  %vm3329_vm11 = vcmp.lt.s32.totalorder %v9444_v49, 4 }
 0x456   :  { %v4511_v48 = vadd.f32 -0.4999988, %v4510_v40  ;;  %v4518_v18 = vadd.f32 -0.16666654, %v4517_v26  ;;  %v1998_v22 = vadd.s32 536870912, %v1997_v52  ;;  %vm3326_vm12 = vcmp.lt.s32.totalorder %v9444_v49, 1 }
 0x457   :  { %v3335_v9 = vsel %vm3329_vm11, %v3322_v15, 920167782  ;;  %vm3328_vm15 = vcmp.lt.s32.totalorder %v9444_v49, 3  ;;  %v3334_v60 = vsel %vm3326_vm12, %v9470_v36, %v9472_v16  ;;  %v3338_v62 = vsel %vm3326_vm12, %v9472_v16, %v9474_v8 }
 0x458   :  { %v4512_v3 = vmul.f32 %v4511_v48, %v4507_v4  ;;  %v4519_v19 = vmul.f32 %v4518_v18, %v4507_v4  ;;  %v9482_v41 = vshrl.u32 %v1998_v22, 30  ;;  %v3336_v28 = vsel %vm3328_vm15, %v9474_v8, %v3335_v9 }
 0x459   :  { %v3339_v11 = vsel %vm3329_vm11, %v3325_v25, 1326507024  ;;  %vm3327_vm13 = vcmp.lt.s32.totalorder %v9444_v49, 2  ;;  %v9502_v57 = vshll.u32 %v3302_v21, 8  ;;  %vm4522_vm14 = vweird.f32 %v9099_v46 }
 0x45a   :  { %v4513_v61 = vadd.f32 1.0, %v4512_v3  ;;  %v4520_v4 = vadd.f32 1.0, %v4519_v19  ;;  %v2000_v44 = vshll.u32 %v9482_v41, 30  ;;  %v3340_v30 = vsel %vm3328_vm15, %v3322_v15, %v3339_v11 }
 0x45b   :  { %v3341_v50 = vsel %vm3327_vm13, %v3338_v62, %v3340_v30  ;;  %vm4525_vm0 = vcmp.lt.s32.totalorder %v4524_v24, 2  ;;  %vm4526_vm3 = vcmp.eq.s32.totalorder %v4524_v24, 0  ;;  %v3337_v43 = vsel %vm3327_vm13, %v3334_v60, %v3336_v28  ;;  %v1482_v30 = vpop.permute.xlu0 %1481 }
 0x45c   :  { %v4521_v38 = vmul.f32 %v4520_v4, %v4505_v2  ;;  %v4530_v0 = vxor.u32 2147483648, %v4513_v61  ;;  %v2001_v33 = vsub.s32 %v1997_v52, %v2000_v44  ;;  %vm4529_vm1 = vcmp.eq.s32.totalorder %v4524_v24, 2 }
 0x45d   :  { %v3344_v51 = vshrl.u32 %v9502_v57, 16  ;;  %v3345_v13 = vand.u32 65535, %v3341_v50  ;;  %v3343_v2 = vand.u32 65535, %v9502_v57  ;;  %v3346_v37 = vshrl.u32 %v3341_v50, 16 }
 0x45e   :  { %v4527_v42 = vxor.u32 2147483648, %v4521_v38  ;;  %vm2002_vm2 = vcmp.lt.s32.totalorder %v2001_v33, 0  ;;  %v2003_v31 = vsub.s32 0, %v2001_v33  ;;  %v4531_v29 = vsel %vm4529_vm1, %v4530_v0, %v4521_v38 }
 0x45f   :  { %v3349_v5 = vmul.u32 %v3345_v13, %v3344_v51  ;;  %v3367_v6 = vand.u32 65535, %v3337_v43  ;;  %v3348_v26 = vmul.u32 %v3346_v37, %v3343_v2  ;;  %v3368_v59 = vshrl.u32 %v3337_v43, 16 }
 0x460   :  { %v4528_v7 = vsel %vm4526_vm3, %v4513_v61, %v4527_v42  ;;  %v2004_v40 = vsel %vm2002_vm2, %v2003_v31, %v2001_v33  ;;  %v3310_v48 = vshrl.u32 %v12097_v45, %v9439_v14  ;;  %v3347_v18 = vmul.u32 %v3345_v13, %v3343_v2 }
 0x461   :  { %v4532_v58 = vsel %vm4525_vm0, %v4528_v7, %v4531_v29  ;;  %v2005_v52 = vclz %v2004_v40  ;;  %v3351_v25 = vshll.u32 %v3348_v26, 16  ;;  %v1993_v22 = vadd.s32 %v9446_v32, %v9452_v17 }
 0x462   :  { %v4533_v15 = vsel %vm4522_vm14, nan, %v4532_v58  ;;  %v3350_v3 = vmul.u32 %v3346_v37, %v3344_v51  ;;  %v3353_v24 = vshll.u32 %v3349_v5, 16  ;;  %v3370_v9 = vmul.u32 %v3368_v59, %v3343_v2 }
 0x463   :  { %6567 = vst [vmem:[#allocation2 + $0x90] sm:$0xff] %v4533_v15  ;;  %v6606_v21 = vadd.s32 4294967294, %v2005_v52  ;;  %vm3355_vm4 = vc.u32 %v3347_v18, %v3351_v25  ;;  %v3357_v19 = vadd.s32 %v3351_v25, %v3347_v18  ;;  %v3371_v60 = vmul.u32 %v3367_v6, %v3344_v51 }
 0x464   :  { %v3330_v46 = vsel %vm3326_vm12, %v3310_v48, %v9470_v36  ;;  %v3352_v62 = vshrl.u32 %v3348_v26, 16  ;;  %v3356_v14 = vsel %vm3355_vm4, 1, %v12096_v54  ;;  %v3373_v28 = vshll.u32 %v3370_v9, 16 }
 0x465   :  { %vm6607_vm7 = vcmp.lt.s32.totalorder %v6606_v21, 0  ;;  %v3358_v4 = vadd.s32 %v3356_v14, %v3350_v3  ;;  %vm3359_vm5 = vc.u32 %v3357_v19, %v3353_v24  ;;  %vm1901_vm6 = vcmp.lt.s32.totalorder %v9305_v63, 0 }
 0x466   :  { %v2008_v61 = vsel %vm6607_vm7, 0, %v6606_v21  ;;  %v3360_v11 = vsel %vm3359_vm5, 1, %v12096_v54  ;;  %v3369_v44 = vmul.u32 %v3367_v6, %v3343_v2  ;;  %v3372_v50 = vmul.u32 %v3368_v59, %v3344_v51  ;;  %v12123_v59 = vld [vmem:[#allocation83_spill] sm:$0xff] }
 0x467   :  { %v2009_v32 = vsub.s32 32, %v2008_v61  ;;  %v2013_v17 = vsub.s32 4294967266, %v2008_v61  ;;  %v2010_v38 = vshll.u32 %v2001_v33, %v2008_v61  ;;  %v3362_v0 = vadd.s32 %v3360_v11, %v3358_v4  ;;  %v1414_v33 = vpop.permute.xlu1 %1413 }
 0x468   :  { %v3375_v43 = vshll.u32 %v3371_v60, 16  ;;  %vm3377_vm8 = vc.u32 %v3369_v44, %v3373_v28  ;;  %v3379_v13 = vadd.s32 %v3373_v28, %v3369_v44  ;;  %v3331_v31 = vsel %vm3329_vm11, %v9474_v8, 2102212464 }
 0x469   :  { %v2011_v36 = vshrl.u32 %v1993_v22, %v2009_v32  ;;  %v2014_v42 = vadd.s32 127, %v2013_v17  ;;  %v3363_v37 = vadd.s32 %v3362_v0, %v3352_v62  ;;  %v3378_v7 = vsel %vm3377_vm8, 1, %v12096_v54  ;;  %v12124_v32 = vld [vmem:[#allocation77_spill] sm:$0xff] }
 0x46a   :  { %v1546_v29 = vmul.f32 %v8261_v39, %v1482_v30  ;;  %v3380_v6 = vadd.s32 %v3378_v7, %v3372_v50  ;;  %vm3381_vm9 = vc.u32 %v3379_v13, %v3375_v43  ;;  %v2023_v51 = vsub.s32 4, %v9482_v41 }
 0x46b   :  { %v2012_v58 = vor.u32 %v2011_v36, %v2010_v38  ;;  %v2015_v2 = vshll.u32 %v2014_v42, 23  ;;  %v3354_v40 = vshrl.u32 %v3349_v5, 16  ;;  %v3382_v26 = vsel %vm3381_vm9, 1, %v12096_v54 }
 0x46c   :  { %v9532_v15 = vadd.f32 %v1546_v29, %v12123_v59  ;;  %v3332_v8 = vsel %vm3328_vm15, %v9472_v16, %v3331_v31  ;;  %v3374_v48 = vshrl.u32 %v3370_v9, 16  ;;  %v3384_v18 = vadd.s32 %v3382_v26, %v3380_v6 }
 0x46d   :  { %v2016_v52 = vor.u32 4788187, %v2015_v2  ;;  %v3364_v25 = vadd.s32 %v3363_v37, %v3354_v40  ;;  %v3376_v22 = vshrl.u32 %v3371_v60, 16  ;;  %v1529_v3 = vmul.f32 %v8261_v39, %v1414_v33 }
 0x46e   :  { %v4844_v21 = vand.u32 2147483647, %v9532_v15  ;;  %v2019_v5 = vcvt.s32.f32 %v2012_v58  ;;  %v3385_v19 = vadd.s32 %v3384_v18, %v3374_v48  ;;  %v4847_v62 = vand.u32 2139095040, %v9532_v15 }
 0x46f   :  { %v2017_v24 = vand.u32 2147483647, %v2016_v52  ;;  %v2024_v14 = vsel %vm1901_vm6, %v2023_v51, %v9482_v41  ;;  %v3333_v16 = vsel %vm3327_vm13, %v3330_v46, %v3332_v8  ;;  %v3383_v9 = vadd.s32 %v3379_v13, %v3375_v43 }
 0x470   :  { %v3386_v4 = vadd.s32 %v3385_v19, %v3376_v22  ;;  %v4848_v60 = vshrl.u32 %v4847_v62, 23  ;;  %v4851_v28 = vand.u32 8388607, %v4844_v21  ;;  %v9548_v17 = vadd.f32 %v1529_v3, %v12124_v32 }
 0x471   :  { %v2020_v61 = vmul.f32 %v2019_v5, %v2017_v24  ;;  %vm3389_vm10 = vc.u32 %v3364_v25, %v3383_v9  ;;  %vm1900_vm11 = vcmp.le.f32.partialorder %v1899_v55, 0.7853982  ;;  %v3387_v49 = vmul.u32 %v9502_v57, %v3333_v16 }
 0x472   :  { %v3390_v44 = vadd.s32 1, %v3386_v4  ;;  %v6662_v41 = vadd.s32 4294967169, %v4848_v60  ;;  %v2026_v30 = vsel %vm1900_vm11, 0, %v2024_v14  ;;  %v4852_v0 = vor.u32 8388608, %v4851_v28 }
 0x473   :  { %v2021_v11 = vxor.u32 2147483648, %v2020_v61  ;;  %v2212_v42 = vand.u32 2139095040, %v9548_v17  ;;  %v2043_v31 = vadd.s32 3, %v2026_v30  ;;  %vm3296_vm15 = vcmp.lt.s32.totalorder %v9308_v20, 0 }
 0x474   :  { %v3391_v38 = vsel %vm3389_vm10, %v3390_v44, %v3386_v4  ;;  %v4854_v50 = vadd.s32 1, %v6662_v41  ;;  %v9557_v57 = vshll.u32 %v4852_v0, 8  ;;  %v9562_v26 = vadd.s32 %v3383_v9, %v3364_v25 }
 0x475   :  { %v2022_v46 = vsel %vm1901_vm6, %v2021_v11, %v2020_v61  ;;  %v3392_v36 = vadd.s32 %v3391_v38, %v3387_v49  ;;  %v2213_v6 = vshrl.u32 %v2212_v42, 23  ;;  %v9559_v40 = vand.u32 3, %v2043_v31 }
 0x476   :  { %v2025_v43 = vsel %vm1900_vm11, %v9305_v63, %v2022_v46  ;;  %vm4855_vm12 = vcmp.gt.s32.totalorder %v4854_v50, 0  ;;  %vm9566_vm13 = vcmp.le.f32.partialorder %v3294_v47, 0.7853982  ;;  %v9571_v22 = vand.u32 65535, %v9557_v57 }
 0x477   :  { %v2027_v13 = vmul.f32 %v2025_v43, %v2025_v43  ;;  %v3393_v55 = vadd.s32 536870912, %v3392_v36  ;;  %v4856_v37 = vsel %vm4855_vm12, %v4854_v50, 0  ;;  %v2209_v3 = vand.u32 2147483647, %v9548_v17 }
 0x478   :  { %v4858_v58 = vand.u32 31, %v4856_v37  ;;  %v9576_v25 = vshrl.u32 %v4856_v37, 5  ;;  %v9578_v19 = vadd.s32 4294967169, %v2213_v6  ;;  %vm2049_vm14 = vcmp.eq.s32.totalorder %v9559_v40, 2 }
 0x479   :  { %v2028_v7 = vmul.f32 -0.001358992, %v2027_v13  ;;  %v2035_v29 = vmul.f32 -0.00019511016, %v2027_v13  ;;  %v3394_v2 = vshrl.u32 %v3393_v55, 30  ;;  %vm2046_vm0 = vcmp.eq.s32.totalorder %v9559_v40, 0 }
 0x47a   :  { %v4859_v52 = vsub.s32 32, %v4858_v58  ;;  %v4861_v47 = vshll.u32 %v12097_v45, %v4858_v58  ;;  %v4864_v16 = vshll.u32 %v12098_v56, %v4858_v58  ;;  %vm2045_vm1 = vcmp.lt.s32.totalorder %v9559_v40, 2 }
 0x47b   :  { %v2029_v33 = vadd.f32 0.041655596, %v2028_v7  ;;  %v2036_v51 = vadd.f32 0.008332121, %v2035_v29  ;;  %v3395_v59 = vshll.u32 %v3394_v2, 30  ;;  %v3418_v5 = vsub.s32 4, %v3394_v2 }
 0x47c   :  { %v4862_v61 = vshrl.u32 %v12098_v56, %v4859_v52  ;;  %v4868_v4 = vshrl.u32 %v12100_v34, %v4859_v52  ;;  %v4865_v32 = vshrl.u32 %v12099_v53, %v4859_v52  ;;  %v4867_v11 = vshll.u32 %v12099_v53, %v4858_v58 }
 0x47d   :  { %v2030_v8 = vmul.f32 %v2029_v33, %v2027_v13  ;;  %v2037_v48 = vmul.f32 %v2036_v51, %v2027_v13  ;;  %v9574_v24 = vsub.s32 %v3392_v36, %v3395_v59  ;;  %vm2042_vm2 = vweird.f32 %v9305_v63 }
 0x47e   :  { %v3419_v41 = vsel %vm3296_vm15, %v3418_v5, %v3394_v2  ;;  %v4870_v30 = vshll.u32 %v12100_v34, %v4858_v58  ;;  %v4871_v49 = vshrl.u32 %v12101_v27, %v4859_v52  ;;  %v4874_v50 = vshrl.u32 %v12102_v10, %v4859_v52 }
 0x47f   :  { %v2031_v62 = vadd.f32 -0.4999988, %v2030_v8  ;;  %v2038_v14 = vadd.f32 -0.16666654, %v2037_v48  ;;  %vm3397_vm3 = vcmp.lt.s32.totalorder %v9574_v24, 0  ;;  %v3398_v9 = vsub.s32 0, %v9574_v24 }
 0x480   :  { %v4863_v36 = vor.u32 %v4862_v61, %v4861_v47  ;;  %v4869_v42 = vor.u32 %v4868_v4, %v4867_v11  ;;  %v4873_v31 = vshll.u32 %v12101_v27, %v4858_v58  ;;  %v4866_v29 = vor.u32 %v4865_v32, %v4864_v16 }
 0x481   :  { %v2032_v60 = vmul.f32 %v2031_v62, %v2027_v13  ;;  %v2039_v28 = vmul.f32 %v2038_v14, %v2027_v13  ;;  %v3399_v44 = vsel %vm3397_vm3, %v3398_v9, %v9574_v24  ;;  %v4872_v13 = vor.u32 %v4871_v49, %v4870_v30 }
 0x482   :  { %v3400_v0 = vclz %v3399_v44  ;;  %v3421_v2 = vsel %vm9566_vm13, 0, %v3419_v41  ;;  %v4860_v6 = vshrl.u32 %v12097_v45, %v4859_v52  ;;  %v4875_v33 = vor.u32 %v4874_v50, %v4873_v31 }
 0x483   :  { %v2033_v46 = vadd.f32 1.0, %v2032_v60  ;;  %v2040_v38 = vadd.f32 1.0, %v2039_v28  ;;  %vm4876_vm4 = vcmp.lt.s32.totalorder %v9576_v25, 1  ;;  %vm4878_vm5 = vcmp.lt.s32.totalorder %v9576_v25, 3 }
 0x484   :  { %v6633_v7 = vadd.s32 4294967294, %v3400_v0  ;;  %vm4879_vm6 = vcmp.lt.s32.totalorder %v9576_v25, 4  ;;  %v4884_v62 = vsel %vm4876_vm4, %v4863_v36, %v4866_v29  ;;  %vm4877_vm8 = vcmp.lt.s32.totalorder %v9576_v25, 2 }
 0x485   :  { %v2041_v55 = vmul.f32 %v2040_v38, %v2025_v43  ;;  %v2050_v37 = vxor.u32 2147483648, %v2033_v46  ;;  %v4881_v59 = vsel %vm4879_vm6, %v4869_v42, 2102212464  ;;  %v4885_v8 = vsel %vm4879_vm6, %v4872_v13, 920167782 }
 0x486   :  { %vm6634_vm7 = vcmp.lt.s32.totalorder %v6633_v7, 0  ;;  %v4886_v16 = vsel %vm4878_vm5, %v4869_v42, %v4885_v8  ;;  %v4888_v60 = vsel %vm4876_vm4, %v4866_v29, %v4869_v42  ;;  %v4880_v40 = vsel %vm4876_vm4, %v4860_v6, %v4863_v36 }
 0x487   :  { %v2047_v51 = vxor.u32 2147483648, %v2041_v55  ;;  %v2051_v43 = vsel %vm2049_vm14, %v2050_v37, %v2041_v55  ;;  %v3403_v58 = vsel %vm6634_vm7, 0, %v6633_v7  ;;  %v4887_v28 = vsel %vm4877_vm8, %v4884_v62, %v4886_v16 }
 0x488   :  { %v3404_v48 = vsub.s32 32, %v3403_v58  ;;  %v3408_v5 = vsub.s32 4294967266, %v3403_v58  ;;  %v3405_v47 = vshll.u32 %v9574_v24, %v3403_v58  ;;  %v4882_v24 = vsel %vm4878_vm5, %v4866_v29, %v4881_v59 }
 0x489   :  { %v2048_v52 = vsel %vm2046_vm0, %v2033_v46, %v2047_v51  ;;  %v4889_v63 = vsel %vm4879_vm6, %v4875_v33, 1326507024  ;;  %v4917_v44 = vand.u32 65535, %v4887_v28  ;;  %v4894_v30 = vshrl.u32 %v9557_v57, 16 }
 0x48a   :  { %v2052_v14 = vsel %vm2045_vm1, %v2048_v52, %v2051_v43  ;;  %v3406_v61 = vshrl.u32 %v9562_v26, %v3404_v48  ;;  %v3409_v4 = vadd.s32 127, %v3408_v5  ;;  %v4890_v26 = vsel %vm4878_vm5, %v4872_v13, %v4889_v63 }
 0x48b   :  { %v2053_v9 = vsel %vm2042_vm2, nan, %v2052_v14  ;;  %v4891_v41 = vsel %vm4877_vm8, %v4888_v60, %v4890_v26  ;;  %v4918_v49 = vshrl.u32 %v4887_v28, 16  ;;  %v2219_v46 = vadd.s32 1, %v9578_v19 }
 0x48c   :  { %6551 = vst [vmem:[#allocation2 + $0x10] sm:$0xff] %v2053_v9  ;;  %v3407_v32 = vor.u32 %v3406_v61, %v3405_v47  ;;  %v3410_v11 = vshll.u32 %v3409_v4, 23  ;;  %v4895_v0 = vand.u32 65535, %v4891_v41  ;;  %v4896_v50 = vshrl.u32 %v4891_v41, 16 }
 0x48d   :  { %v9642_v36 = vand.u32 8388607, %v2209_v3  ;;  %v3438_v42 = vadd.s32 3, %v3421_v2  ;;  %v9646_v13 = vsel %vm4877_vm8, %v4880_v40, %v4882_v24  ;;  %v4920_v31 = vmul.u32 %v4918_v49, %v9571_v22 }
 0x48e   :  { %v3411_v38 = vor.u32 4788187, %v3410_v11  ;;  %v4921_v55 = vmul.u32 %v4917_v44, %v4894_v30  ;;  %v3414_v7 = vcvt.s32.f32 %v3407_v32  ;;  %v4898_v29 = vmul.u32 %v4896_v50, %v9571_v22 }
 0x48f   :  { %v4899_v19 = vmul.u32 %v4895_v0, %v4894_v30  ;;  %v4919_v6 = vmul.u32 %v4917_v44, %v9571_v22  ;;  %v4922_v33 = vmul.u32 %v4918_v49, %v4894_v30  ;;  %v4923_v51 = vshll.u32 %v4920_v31, 16 }
 0x490   :  { %v3412_v37 = vand.u32 2147483647, %v3411_v38  ;;  %vm2220_vm9 = vcmp.gt.s32.totalorder %v2219_v46, 0  ;;  %v4897_v2 = vmul.u32 %v4895_v0, %v9571_v22  ;;  %v4900_v58 = vmul.u32 %v4896_v50, %v4894_v30 }
 0x491   :  { %v4901_v25 = vshll.u32 %v4898_v29, 16  ;;  %v4903_v59 = vshll.u32 %v4899_v19, 16  ;;  %v4925_v8 = vshll.u32 %v4921_v55, 16  ;;  %vm4927_vm10 = vc.u32 %v4919_v6, %v4923_v51 }
 0x492   :  { %v3415_v43 = vmul.f32 %v3414_v7, %v3412_v37  ;;  %v4929_v52 = vadd.s32 %v4923_v51, %v4919_v6  ;;  %v4928_v62 = vsel %vm4927_vm10, 1, %v12096_v54  ;;  %v2221_v16 = vsel %vm2220_vm9, %v2219_v46, 0 }
 0x493   :  { %vm4905_vm11 = vc.u32 %v4897_v2, %v4901_v25  ;;  %v4907_v5 = vadd.s32 %v4901_v25, %v4897_v2  ;;  %v4930_v47 = vadd.s32 %v4928_v62, %v4922_v33  ;;  %v4924_v40 = vshrl.u32 %v4920_v31, 16 }
 0x494   :  { %v3416_v48 = vxor.u32 2147483648, %v3415_v43  ;;  %v4906_v14 = vsel %vm4905_vm11, 1, %v12096_v54  ;;  %vm4931_vm12 = vc.u32 %v4929_v52, %v4925_v8  ;;  %v4902_v63 = vshrl.u32 %v4898_v29, 16 }
 0x495   :  { %v4908_v9 = vadd.s32 %v4906_v14, %v4900_v58  ;;  %vm4909_vm14 = vc.u32 %v4907_v5, %v4903_v59  ;;  %v4932_v61 = vsel %vm4931_vm12, 1, %v12096_v54  ;;  %v2223_v11 = vand.u32 31, %v2221_v16 }
 0x496   :  { %v3417_v22 = vsel %vm3296_vm15, %v3416_v48, %v3415_v43  ;;  %v4910_v60 = vsel %vm4909_vm14, 1, %v12096_v54  ;;  %v4934_v24 = vadd.s32 %v4932_v61, %v4930_v47  ;;  %v4904_v26 = vshrl.u32 %v4899_v19, 16 }
 0x497   :  { %v3420_v4 = vsel %vm9566_vm13, %v9308_v20, %v3417_v22  ;;  %v4912_v32 = vadd.s32 %v4910_v60, %v4908_v9  ;;  %v4926_v44 = vshrl.u32 %v4921_v55, 16  ;;  %v2217_v30 = vor.u32 8388608, %v9642_v36 }
 0x498   :  { %v3422_v28 = vmul.f32 %v3420_v4, %v3420_v4  ;;  %v4935_v41 = vadd.s32 %v4934_v24, %v4924_v40  ;;  %v9663_v0 = vsub.s32 32, %v2223_v11  ;;  %v9665_v18 = vand.u32 3, %v3438_v42 }
 0x499   :  { %v4913_v38 = vadd.s32 %v4912_v32, %v4902_v63  ;;  %v9667_v50 = vadd.s32 %v4929_v52, %v4925_v8  ;;  %v4937_v37 = vmul.u32 %v9557_v57, %v9646_v13  ;;  %v2226_v55 = vshll.u32 %v12097_v45, %v2223_v11 }
 0x49a   :  { %v3423_v49 = vmul.f32 -0.001358992, %v3422_v28  ;;  %v3430_v46 = vmul.f32 -0.00019511016, %v3422_v28  ;;  %v4936_v31 = vadd.s32 %v4935_v41, %v4926_v44  ;;  %v2227_v6 = vshrl.u32 %v12098_v56, %v9663_v0 }
 0x49b   :  { %v9671_v19 = vadd.s32 %v4913_v38, %v4904_v26  ;;  %v2229_v33 = vshll.u32 %v12098_v56, %v2223_v11  ;;  %v2230_v42 = vshrl.u32 %v12099_v53, %v9663_v0  ;;  %v2233_v57 = vshrl.u32 %v12100_v34, %v9663_v0 }
 0x49c   :  { %v3424_v7 = vadd.f32 0.041655596, %v3423_v49  ;;  %v3431_v29 = vadd.f32 0.008332121, %v3430_v46  ;;  %v4940_v36 = vadd.s32 1, %v4936_v31  ;;  %v9683_v2 = vshrl.u32 %v2221_v16, 5 }
 0x49d   :  { %vm4939_vm15 = vc.u32 %v9671_v19, %v9667_v50  ;;  %v9685_v58 = vor.u32 %v2227_v6, %v2226_v55  ;;  %v2232_v25 = vshll.u32 %v12099_v53, %v2223_v11  ;;  %v9688_v48 = vor.u32 %v2230_v42, %v2229_v33 }
 0x49e   :  { %v3425_v51 = vmul.f32 %v3424_v7, %v3422_v28  ;;  %v3432_v43 = vmul.f32 %v3431_v29, %v3422_v28  ;;  %v4941_v13 = vsel %vm4939_vm15, %v4940_v36, %v4936_v31  ;;  %v2235_v5 = vshll.u32 %v12100_v34, %v2223_v11 }
 0x49f   :  { %v4942_v52 = vadd.s32 %v4941_v13, %v4937_v37  ;;  %v2236_v62 = vshrl.u32 %v12101_v27, %v9663_v0  ;;  %v2238_v14 = vshll.u32 %v12101_v27, %v2223_v11  ;;  %v2239_v47 = vshrl.u32 %v12102_v10, %v9663_v0 }
 0x4a0   :  { %v3426_v59 = vadd.f32 -0.4999988, %v3425_v51  ;;  %v3433_v8 = vadd.f32 -0.16666654, %v3432_v43  ;;  %v2234_v61 = vor.u32 %v2233_v57, %v2232_v25  ;;  %vm2241_vm13 = vcmp.lt.s32.totalorder %v9683_v2, 1 }
 0x4a1   :  { %v4943_v9 = vadd.s32 536870912, %v4942_v52  ;;  %v2237_v60 = vor.u32 %v2236_v62, %v2235_v5  ;;  %v2240_v40 = vor.u32 %v2239_v47, %v2238_v14  ;;  %v9697_v24 = vshll.u32 %v2217_v30, 8 }
 0x4a2   :  { %v3427_v16 = vmul.f32 %v3426_v59, %v3422_v28  ;;  %v3434_v22 = vmul.f32 %v3433_v8, %v3422_v28  ;;  %vm2244_vm0 = vcmp.lt.s32.totalorder %v9683_v2, 4  ;;  %vm2243_vm3 = vcmp.lt.s32.totalorder %v9683_v2, 3 }
 0x4a3   :  { %v9699_v26 = vshrl.u32 %v4943_v9, 30  ;;  %v2249_v28 = vsel %vm2241_vm13, %v9685_v58, %v9688_v48  ;;  %v2250_v11 = vsel %vm2244_vm0, %v2237_v60, 920167782  ;;  %v2254_v44 = vsel %vm2244_vm0, %v2240_v40, 1326507024 }
 0x4a4   :  { %v3428_v63 = vadd.f32 1.0, %v3427_v16  ;;  %v3435_v32 = vadd.f32 1.0, %v3434_v22  ;;  %v2253_v46 = vsel %vm2241_vm13, %v9688_v48, %v2234_v61  ;;  %vm3437_vm1 = vweird.f32 %v9308_v20 }
 0x4a5   :  { %v4945_v49 = vshll.u32 %v9699_v26, 30  ;;  %vm3440_vm2 = vcmp.lt.s32.totalorder %v9665_v18, 2  ;;  %v2251_v38 = vsel %vm2243_vm3, %v2234_v61, %v2250_v11  ;;  %v2255_v31 = vsel %vm2243_vm3, %v2237_v60, %v2254_v44 }
 0x4a6   :  { %v3436_v41 = vmul.f32 %v3435_v32, %v3420_v4  ;;  %v3445_v30 = vxor.u32 2147483648, %v3428_v63  ;;  %vm3441_vm4 = vcmp.eq.s32.totalorder %v9665_v18, 0  ;;  %vm2242_vm7 = vcmp.lt.s32.totalorder %v9683_v2, 2 }
 0x4a7   :  { %v4946_v37 = vsub.s32 %v4942_v52, %v4945_v49  ;;  %vm3444_vm5 = vcmp.eq.s32.totalorder %v9665_v18, 2  ;;  %v2252_v7 = vsel %vm2242_vm7, %v2249_v28, %v2251_v38  ;;  %v2256_v29 = vsel %vm2242_vm7, %v2253_v46, %v2255_v31  ;;  %v1454_v49 = vpop.permute.xlu2 %1453  ;;  %v1494_v31 = vpop.permute.xlu0 %1493 }
 0x4a8   :  { %v3442_v4 = vxor.u32 2147483648, %v3436_v41  ;;  %v2258_v55 = vand.u32 65535, %v9697_v24  ;;  %v3446_v6 = vsel %vm3444_vm5, %v3445_v30, %v3436_v41  ;;  %v2259_v51 = vshrl.u32 %v9697_v24, 16 }
 0x4a9   :  { %vm4947_vm6 = vcmp.lt.s32.totalorder %v4946_v37, 0  ;;  %v4948_v33 = vsub.s32 0, %v4946_v37  ;;  %v2260_v43 = vand.u32 65535, %v2256_v29  ;;  %v2261_v57 = vshrl.u32 %v2256_v29, 16 }
 0x4aa   :  { %v3443_v36 = vsel %vm3441_vm4, %v3428_v63, %v3442_v4  ;;  %v2282_v25 = vand.u32 65535, %v2252_v7  ;;  %v2283_v59 = vshrl.u32 %v2252_v7, 16  ;;  %v4938_v62 = vadd.s32 %v9667_v50, %v9671_v19 }
 0x4ab   :  { %v3447_v42 = vsel %vm3440_vm2, %v3443_v36, %v3446_v6  ;;  %v4949_v13 = vsel %vm4947_vm6, %v4948_v33, %v4946_v37  ;;  %v2263_v52 = vmul.u32 %v2261_v57, %v2258_v55  ;;  %v2264_v5 = vmul.u32 %v2260_v43, %v2259_v51 }
 0x4ac   :  { %v3448_v18 = vsel %vm3437_vm1, nan, %v3447_v42  ;;  %v4950_v8 = vclz %v4949_v13  ;;  %v2225_v14 = vshrl.u32 %v12097_v45, %v9663_v0  ;;  %v2246_v16 = vsel %vm2244_vm0, %v2234_v61, 2102212464 }
 0x4ad   :  { %6560 = vst [vmem:[#allocation2 + $0x58] sm:$0xff] %v3448_v18  ;;  %v2262_v22 = vmul.u32 %v2260_v43, %v2258_v55  ;;  %v2266_v20 = vshll.u32 %v2263_v52, 16  ;;  %v2265_v9 = vmul.u32 %v2261_v57, %v2259_v51  ;;  %v2267_v60 = vshrl.u32 %v2263_v52, 16 }
 0x4ae   :  { %v6663_v47 = vadd.s32 4294967294, %v4950_v8  ;;  %v2285_v40 = vmul.u32 %v2283_v59, %v2258_v55  ;;  %v2286_v63 = vmul.u32 %v2282_v25, %v2259_v51  ;;  %v2268_v32 = vshll.u32 %v2264_v5, 16 }
 0x4af   :  { %vm2270_vm9 = vc.u32 %v2262_v22, %v2266_v20  ;;  %v2272_v28 = vadd.s32 %v2266_v20, %v2262_v22  ;;  %v2284_v19 = vmul.u32 %v2282_v25, %v2258_v55  ;;  %vm4846_vm10 = vcmp.lt.s32.totalorder %v9532_v15, 0  ;;  %v12127_v25 = vld [vmem:[#allocation37_spill] sm:$0xff] }
 0x4b0   :  { %vm6664_vm8 = vcmp.lt.s32.totalorder %v6663_v47, 0  ;;  %v2271_v50 = vsel %vm2270_vm9, 1, %v12096_v54  ;;  %v2288_v44 = vshll.u32 %v2285_v40, 16  ;;  %v2287_v30 = vmul.u32 %v2283_v59, %v2259_v51 }
 0x4b1   :  { %v4953_v11 = vsel %vm6664_vm8, 0, %v6663_v47  ;;  %v2273_v61 = vadd.s32 %v2271_v50, %v2265_v9  ;;  %vm2274_vm11 = vc.u32 %v2272_v28, %v2268_v32  ;;  %v2290_v38 = vshll.u32 %v2286_v63, 16 }
 0x4b2   :  { %v4954_v0 = vsub.s32 32, %v4953_v11  ;;  %v4958_v41 = vsub.s32 4294967266, %v4953_v11  ;;  %v4955_v46 = vshll.u32 %v4946_v37, %v4953_v11  ;;  %vm2292_vm12 = vc.u32 %v2284_v19, %v2288_v44 }
 0x4b3   :  { %v2275_v29 = vsel %vm2274_vm11, 1, %v12096_v54  ;;  %v2293_v36 = vsel %vm2292_vm12, 1, %v12096_v54  ;;  %v2294_v6 = vadd.s32 %v2288_v44, %v2284_v19  ;;  %v1539_v42 = vmul.f32 %v8261_v39, %v1454_v49 }
 0x4b4   :  { %v4956_v4 = vshrl.u32 %v4938_v62, %v4954_v0  ;;  %v4959_v7 = vadd.s32 127, %v4958_v41  ;;  %v2277_v55 = vadd.s32 %v2275_v29, %v2273_v61  ;;  %v2295_v33 = vadd.s32 %v2293_v36, %v2287_v30 }
 0x4b5   :  { %v2245_v37 = vsel %vm2241_vm13, %v2225_v14, %v9685_v58  ;;  %v1549_v51 = vmul.f32 %v8261_v39, %v1494_v31  ;;  %v4968_v18 = vsub.s32 4, %v9699_v26  ;;  %vm2296_vm14 = vc.u32 %v2294_v6, %v2290_v38  ;;  %v12128_v14 = vld [vmem:[#allocation54_spill] sm:$0xff] }
 0x4b6   :  { %v4957_v43 = vor.u32 %v4956_v4, %v4955_v46  ;;  %v4960_v57 = vshll.u32 %v4959_v7, 23  ;;  %v2278_v13 = vadd.s32 %v2277_v55, %v2267_v60  ;;  %v9749_v59 = vadd.f32 %v1539_v42, %v12127_v25 }
 0x4b7   :  { %v2247_v52 = vsel %vm2243_vm3, %v9688_v48, %v2246_v16  ;;  %v2269_v62 = vshrl.u32 %v2264_v5, 16  ;;  %v2297_v47 = vsel %vm2296_vm14, 1, %v12096_v54  ;;  %v2289_v22 = vshrl.u32 %v2285_v40, 16 }
 0x4b8   :  { %v4961_v8 = vor.u32 4788187, %v4960_v57  ;;  %v2299_v20 = vadd.s32 %v2297_v47, %v2295_v33  ;;  %v3759_v58 = vand.u32 2147483647, %v9749_v59  ;;  %v9757_v9 = vadd.f32 %v1549_v51, %v12128_v14 }
 0x4b9   :  { %v4964_v32 = vcvt.s32.f32 %v4957_v43  ;;  %v2279_v28 = vadd.s32 %v2278_v13, %v2269_v62  ;;  %v3762_v11 = vand.u32 2139095040, %v9749_v59  ;;  %v4969_v50 = vsel %vm4846_vm10, %v4968_v18, %v9699_v26 }
 0x4ba   :  { %v4962_v60 = vand.u32 2147483647, %v4961_v8  ;;  %v2291_v48 = vshrl.u32 %v2286_v63, 16  ;;  %v2300_v5 = vadd.s32 %v2299_v20, %v2289_v22  ;;  %v2298_v19 = vadd.s32 %v2294_v6, %v2290_v38 }
 0x4bb   :  { %v3763_v40 = vshrl.u32 %v3762_v11, 23  ;;  %v3766_v44 = vand.u32 8388607, %v3759_v58  ;;  %vm4845_vm15 = vcmp.le.f32.partialorder %v4844_v21, 0.7853982  ;;  %v2248_v0 = vsel %vm2242_vm7, %v2245_v37, %v2247_v52 }
 0x4bc   :  { %v4965_v16 = vmul.f32 %v4964_v32, %v4962_v60  ;;  %v2301_v41 = vadd.s32 %v2300_v5, %v2291_v48  ;;  %v5312_v61 = vand.u32 2139095040, %v9757_v9  ;;  %v4971_v49 = vsel %vm4845_vm15, 0, %v4969_v50 }
 0x4bd   :  { %vm2304_vm13 = vc.u32 %v2279_v28, %v2298_v19  ;;  %v6641_v26 = vadd.s32 4294967169, %v3763_v40  ;;  %v3767_v46 = vor.u32 8388608, %v3766_v44  ;;  %v2302_v31 = vmul.u32 %v9697_v24, %v2248_v0 }
 0x4be   :  { %v4966_v30 = vxor.u32 2147483648, %v4965_v16  ;;  %v2305_v63 = vadd.s32 1, %v2301_v41  ;;  %v4988_v7 = vadd.s32 3, %v4971_v49  ;;  %v5313_v29 = vshrl.u32 %v5312_v61, 23 }
 0x4bf   :  { %v3769_v4 = vadd.s32 1, %v6641_v26  ;;  %v9774_v33 = vshll.u32 %v3767_v46, 8  ;;  %v9778_v8 = vadd.s32 %v2298_v19, %v2279_v28  ;;  %v5309_v47 = vand.u32 2147483647, %v9757_v9 }
 0x4c0   :  { %v4967_v38 = vsel %vm4846_vm10, %v4966_v30, %v4965_v16  ;;  %v2306_v2 = vsel %vm2304_vm13, %v2305_v63, %v2301_v41  ;;  %v9776_v37 = vand.u32 3, %v4988_v7  ;;  %v6671_v18 = vadd.s32 4294967169, %v5313_v29 }
 0x4c1   :  { %v4970_v21 = vsel %vm4845_vm15, %v9532_v15, %v4967_v38  ;;  %v2307_v55 = vadd.s32 %v2306_v2, %v2302_v31  ;;  %vm3770_vm0 = vcmp.gt.s32.totalorder %v3769_v4, 0  ;;  %v9781_v62 = vand.u32 65535, %v9774_v33 }
 0x4c2   :  { %v4972_v36 = vmul.f32 %v4970_v21, %v4970_v21  ;;  %v3771_v6 = vsel %vm3770_vm0, %v3769_v4, 0  ;;  %vm2211_vm3 = vcmp.lt.s32.totalorder %v9548_v17, 0  ;;  %v9786_v60 = vshrl.u32 %v9774_v33, 16 }
 0x4c3   :  { %v2308_v57 = vadd.s32 536870912, %v2307_v55  ;;  %v3773_v51 = vand.u32 31, %v3771_v6  ;;  %vm4994_vm1 = vcmp.eq.s32.totalorder %v9776_v37, 2  ;;  %v9789_v32 = vshrl.u32 %v3771_v6, 5 }
 0x4c4   :  { %v4973_v42 = vmul.f32 -0.001358992, %v4972_v36  ;;  %v4980_v43 = vmul.f32 -0.00019511016, %v4972_v36  ;;  %v9793_v50 = vadd.s32 1, %v6671_v18  ;;  %vm4991_vm2 = vcmp.eq.s32.totalorder %v9776_v37, 0 }
 0x4c5   :  { %v2309_v25 = vshrl.u32 %v2308_v57, 30  ;;  %v3774_v52 = vsub.s32 32, %v3773_v51  ;;  %v3776_v19 = vshll.u32 %v12097_v45, %v3773_v51  ;;  %v3779_v44 = vshll.u32 %v12098_v56, %v3773_v51 }
 0x4c6   :  { %v4974_v24 = vadd.f32 0.041655596, %v4973_v42  ;;  %v4981_v13 = vadd.f32 0.008332121, %v4980_v43  ;;  %v3782_v0 = vshll.u32 %v12099_v53, %v3773_v51  ;;  %vm4990_vm4 = vcmp.lt.s32.totalorder %v9776_v37, 2 }
 0x4c7   :  { %v2310_v14 = vshll.u32 %v2309_v25, 30  ;;  %v3777_v28 = vshrl.u32 %v12098_v56, %v3774_v52  ;;  %v3780_v11 = vshrl.u32 %v12099_v53, %v3774_v52  ;;  %v2333_v40 = vsub.s32 4, %v2309_v25 }
 0x4c8   :  { %v4975_v22 = vmul.f32 %v4974_v24, %v4972_v36  ;;  %v4982_v20 = vmul.f32 %v4981_v13, %v4972_v36  ;;  %v3783_v41 = vshrl.u32 %v12100_v34, %v3774_v52  ;;  %vm4987_vm5 = vweird.f32 %v9532_v15 }
 0x4c9   :  { %v9795_v16 = vsub.s32 %v2307_v55, %v2310_v14  ;;  %v3778_v26 = vor.u32 %v3777_v28, %v3776_v19  ;;  %v3781_v63 = vor.u32 %v3780_v11, %v3779_v44  ;;  %v3785_v46 = vshll.u32 %v12100_v34, %v3773_v51 }
 0x4ca   :  { %v4976_v48 = vadd.f32 -0.4999988, %v4975_v22  ;;  %v4983_v5 = vadd.f32 -0.16666654, %v4982_v20  ;;  %v3786_v38 = vshrl.u32 %v12101_v27, %v3774_v52  ;;  %v3789_v2 = vshrl.u32 %v12102_v10, %v3774_v52 }
 0x4cb   :  { %vm2312_vm7 = vcmp.lt.s32.totalorder %v9795_v16, 0  ;;  %v2313_v49 = vsub.s32 0, %v9795_v16  ;;  %vm9812_vm6 = vcmp.le.f32.partialorder %v2209_v3, 0.7853982  ;;  %v3784_v55 = vor.u32 %v3783_v41, %v3782_v0 }
 0x4cc   :  { %v4977_v61 = vmul.f32 %v4976_v48, %v4972_v36  ;;  %v4984_v30 = vmul.f32 %v4983_v5, %v4972_v36  ;;  %v3787_v6 = vor.u32 %v3786_v38, %v3785_v46  ;;  %v3788_v42 = vshll.u32 %v12101_v27, %v3773_v51 }
 0x4cd   :  { %v2314_v7 = vsel %vm2312_vm7, %v2313_v49, %v9795_v16  ;;  %v3775_v18 = vshrl.u32 %v12097_v45, %v3774_v52  ;;  %vm3791_vm8 = vcmp.lt.s32.totalorder %v9789_v32, 1  ;;  %v2334_v13 = vsel %vm2211_vm3, %v2333_v40, %v2309_v25 }
 0x4ce   :  { %v4978_v31 = vadd.f32 1.0, %v4977_v61  ;;  %v4985_v4 = vadd.f32 1.0, %v4984_v30  ;;  %v2315_v36 = vclz %v2314_v7  ;;  %v3790_v22 = vor.u32 %v3789_v2, %v3788_v42 }
 0x4cf   :  { %vm3792_vm9 = vcmp.lt.s32.totalorder %v9789_v32, 2  ;;  %vm3793_vm10 = vcmp.lt.s32.totalorder %v9789_v32, 3  ;;  %vm3794_vm11 = vcmp.lt.s32.totalorder %v9789_v32, 4  ;;  %v3799_v51 = vsel %vm3791_vm8, %v3778_v26, %v3781_v63 }
 0x4d0   :  { %v4986_v43 = vmul.f32 %v4985_v4, %v4970_v21  ;;  %v4995_v57 = vxor.u32 2147483648, %v4978_v31  ;;  %v6612_v24 = vadd.s32 4294967294, %v2315_v36  ;;  %v3796_v21 = vsel %vm3794_vm11, %v3784_v55, 2102212464 }
 0x4d1   :  { %v3800_v25 = vsel %vm3794_vm11, %v3787_v6, 920167782  ;;  %v3795_v28 = vsel %vm3791_vm8, %v3775_v18, %v3778_v26  ;;  %v3797_v40 = vsel %vm3793_vm10, %v3781_v63, %v3796_v21  ;;  %v3803_v61 = vsel %vm3791_vm8, %v3781_v63, %v3784_v55 }
 0x4d2   :  { %v4992_v3 = vxor.u32 2147483648, %v4986_v43  ;;  %v4996_v20 = vsel %vm4994_vm1, %v4995_v57, %v4986_v43  ;;  %vm6613_vm12 = vcmp.lt.s32.totalorder %v6612_v24, 0  ;;  %v3801_v11 = vsel %vm3793_vm10, %v3784_v55, %v3800_v25 }
 0x4d3   :  { %v2318_v14 = vsel %vm6613_vm12, 0, %v6612_v24  ;;  %v3802_v41 = vsel %vm3792_vm9, %v3799_v51, %v3801_v11  ;;  %v3804_v49 = vsel %vm3794_vm11, %v3790_v22, 1326507024  ;;  %v2336_v15 = vsel %vm9812_vm6, 0, %v2334_v13 }
 0x4d4   :  { %v4993_v52 = vsel %vm4991_vm2, %v4978_v31, %v4992_v3  ;;  %v2319_v5 = vsub.s32 32, %v2318_v14  ;;  %v2323_v19 = vsub.s32 4294967266, %v2318_v14  ;;  %v2320_v0 = vshll.u32 %v9795_v16, %v2318_v14 }
 0x4d5   :  { %v4997_v48 = vsel %vm4990_vm4, %v4993_v52, %v4996_v20  ;;  %v3832_v26 = vand.u32 65535, %v3802_v41  ;;  %v9856_v16 = vsel %vm3792_vm9, %v3795_v28, %v3797_v40  ;;  %v3805_v46 = vsel %vm3793_vm10, %v3787_v6, %v3804_v49 }
 0x4d6   :  { %v4998_v44 = vsel %vm4987_vm5, nan, %v4997_v48  ;;  %v2321_v37 = vshrl.u32 %v9778_v8, %v2319_v5  ;;  %v2324_v30 = vadd.s32 127, %v2323_v19  ;;  %v3833_v38 = vshrl.u32 %v3802_v41, 16 }
 0x4d7   :  { %6570 = vst [vmem:[#allocation2 + $0xa8] sm:$0xff] %v4998_v44  ;;  %v3806_v8 = vsel %vm3792_vm9, %v3803_v61, %v3805_v46  ;;  %vm5320_vm14 = vcmp.gt.s32.totalorder %v9793_v50, 0  ;;  %v3836_v36 = vmul.u32 %v3832_v26, %v9786_v60  ;;  %v9865_v42 = vadd.s32 3, %v2336_v15 }
 0x4d8   :  { %v2322_v63 = vor.u32 %v2321_v37, %v2320_v0  ;;  %v2325_v31 = vshll.u32 %v2324_v30, 23  ;;  %v3810_v4 = vand.u32 65535, %v3806_v8  ;;  %v3811_v7 = vshrl.u32 %v3806_v8, 16 }
 0x4d9   :  { %v3835_v2 = vmul.u32 %v3833_v38, %v9781_v62  ;;  %v3852_v6 = vmul.u32 %v9774_v33, %v9856_v16  ;;  %v9871_v43 = vand.u32 8388607, %v5309_v47  ;;  %v3834_v18 = vmul.u32 %v3832_v26, %v9781_v62 }
 0x4da   :  { %v2326_v55 = vor.u32 4788187, %v2325_v31  ;;  %v3813_v32 = vmul.u32 %v3811_v7, %v9781_v62  ;;  %v3814_v57 = vmul.u32 %v3810_v4, %v9786_v60  ;;  %v5321_v24 = vsel %vm5320_vm14, %v9793_v50, 0 }
 0x4db   :  { %v2329_v22 = vcvt.s32.f32 %v2322_v63  ;;  %v3837_v3 = vmul.u32 %v3833_v38, %v9786_v60  ;;  %v3838_v20 = vshll.u32 %v3835_v2, 16  ;;  %v3812_v21 = vmul.u32 %v3810_v4, %v9781_v62 }
 0x4dc   :  { %v2327_v13 = vand.u32 2147483647, %v2326_v55  ;;  %v3815_v51 = vmul.u32 %v3811_v7, %v9786_v60  ;;  %v3816_v25 = vshll.u32 %v3813_v32, 16  ;;  %v3840_v52 = vshll.u32 %v3836_v36, 16 }
 0x4dd   :  { %v3818_v28 = vshll.u32 %v3814_v57, 16  ;;  %vm3842_vm15 = vc.u32 %v3834_v18, %v3838_v20  ;;  %v3844_v11 = vadd.s32 %v3838_v20, %v3834_v18  ;;  %v5323_v50 = vand.u32 31, %v5321_v24 }
 0x4de   :  { %v2330_v14 = vmul.f32 %v2329_v22, %v2327_v13  ;;  %vm3820_vm13 = vc.u32 %v3812_v21, %v3816_v25  ;;  %v3822_v48 = vadd.s32 %v3816_v25, %v3812_v21  ;;  %v3843_v5 = vsel %vm3842_vm15, 1, %v12096_v54 }
 0x4df   :  { %v3821_v40 = vsel %vm3820_vm13, 1, %v12096_v54  ;;  %v3845_v44 = vadd.s32 %v3843_v5, %v3837_v3  ;;  %vm3846_vm0 = vc.u32 %v3844_v11, %v3840_v52  ;;  %v3839_v62 = vshrl.u32 %v3835_v2, 16 }
 0x4e0   :  { %v2331_v19 = vxor.u32 2147483648, %v2330_v14  ;;  %v3823_v0 = vadd.s32 %v3821_v40, %v3815_v51  ;;  %vm3824_vm1 = vc.u32 %v3822_v48, %v3818_v28  ;;  %v3847_v60 = vsel %vm3846_vm0, 1, %v12096_v54 }
 0x4e1   :  { %v3825_v61 = vsel %vm3824_vm1, 1, %v12096_v54  ;;  %v3849_v37 = vadd.s32 %v3847_v60, %v3845_v44  ;;  %v9886_v30 = vsub.s32 32, %v5323_v50  ;;  %v3817_v26 = vshrl.u32 %v3813_v32, 16 }
 0x4e2   :  { %v2332_v41 = vsel %vm2211_vm3, %v2331_v19, %v2330_v14  ;;  %v3827_v15 = vadd.s32 %v3825_v61, %v3823_v0  ;;  %v9891_v46 = vshrl.u32 %v5321_v24, 5  ;;  %v3819_v63 = vshrl.u32 %v3814_v57, 16 }
 0x4e3   :  { %v2335_v49 = vsel %vm9812_vm6, %v9548_v17, %v2332_v41  ;;  %v3841_v31 = vshrl.u32 %v3836_v36, 16  ;;  %v3850_v8 = vadd.s32 %v3849_v37, %v3839_v62  ;;  %v9893_v7 = vadd.s32 %v3844_v11, %v3840_v52 }
 0x4e4   :  { %v2337_v38 = vmul.f32 %v2335_v49, %v2335_v49  ;;  %v3828_v4 = vadd.s32 %v3827_v15, %v3817_v26  ;;  %v5326_v2 = vshll.u32 %v12097_v45, %v5323_v50  ;;  %v5329_v55 = vshll.u32 %v12098_v56, %v5323_v50 }
 0x4e5   :  { %v3851_v22 = vadd.s32 %v3850_v8, %v3841_v31  ;;  %v5327_v29 = vshrl.u32 %v12098_v56, %v9886_v30  ;;  %v5330_v57 = vshrl.u32 %v12099_v53, %v9886_v30  ;;  %v5333_v36 = vshrl.u32 %v12100_v34, %v9886_v30 }
 0x4e6   :  { %v2338_v18 = vmul.f32 -0.001358992, %v2337_v38  ;;  %v2345_v13 = vmul.f32 -0.00019511016, %v2337_v38  ;;  %v9899_v32 = vadd.s32 %v3828_v4, %v3819_v63  ;;  %v5335_v24 = vshll.u32 %v12100_v34, %v5323_v50 }
 0x4e7   :  { %v3855_v21 = vadd.s32 1, %v3851_v22  ;;  %v5336_v51 = vshrl.u32 %v12101_v27, %v9886_v30  ;;  %v5332_v25 = vshll.u32 %v12099_v53, %v5323_v50  ;;  %v5338_v52 = vshll.u32 %v12101_v27, %v5323_v50 }
 0x4e8   :  { %v2339_v3 = vadd.f32 0.041655596, %v2338_v18  ;;  %v2346_v20 = vadd.f32 0.008332121, %v2345_v13  ;;  %vm3854_vm3 = vc.u32 %v9899_v32, %v9893_v7  ;;  %v5339_v14 = vshrl.u32 %v12102_v10, %v9886_v30 }
 0x4e9   :  { %v3856_v48 = vsel %vm3854_vm3, %v3855_v21, %v3851_v22  ;;  %v5337_v5 = vor.u32 %v5336_v51, %v5335_v24  ;;  %v9917_v40 = vor.u32 %v5327_v29, %v5326_v2  ;;  %v9919_v44 = vor.u32 %v5330_v57, %v5329_v55 }
 0x4ea   :  { %v2340_v28 = vmul.f32 %v2339_v3, %v2337_v38  ;;  %v2347_v11 = vmul.f32 %v2346_v20, %v2337_v38  ;;  %v3857_v19 = vadd.s32 %v3856_v48, %v3852_v6  ;;  %v9921_v0 = vor.u32 %v5333_v36, %v5332_v25 }
 0x4eb   :  { %v5340_v50 = vor.u32 %v5339_v14, %v5338_v52  ;;  %v2354_v41 = vand.u32 3, %v9865_v42  ;;  %v5317_v37 = vor.u32 8388608, %v9871_v43  ;;  %vm5344_vm2 = vcmp.lt.s32.totalorder %v9891_v46, 4 }
 0x4ec   :  { %v2341_v62 = vadd.f32 -0.4999988, %v2340_v28  ;;  %v2348_v60 = vadd.f32 -0.16666654, %v2347_v11  ;;  %v3858_v61 = vadd.s32 536870912, %v3857_v19  ;;  %vm5341_vm4 = vcmp.lt.s32.totalorder %v9891_v46, 1 }
 0x4ed   :  { %v5350_v33 = vsel %vm5344_vm2, %v5337_v5, 920167782  ;;  %vm5343_vm7 = vcmp.lt.s32.totalorder %v9891_v46, 3  ;;  %v5349_v42 = vsel %vm5341_vm4, %v9917_v40, %v9919_v44  ;;  %v5353_v6 = vsel %vm5341_vm4, %v9919_v44, %v9921_v0 }
 0x4ee   :  { %v2342_v26 = vmul.f32 %v2341_v62, %v2337_v38  ;;  %v2349_v15 = vmul.f32 %v2348_v60, %v2337_v38  ;;  %v9929_v16 = vshrl.u32 %v3858_v61, 30  ;;  %v5351_v63 = vsel %vm5343_vm7, %v9921_v0, %v5350_v33 }
 0x4ef   :  { %v5354_v31 = vsel %vm5344_vm2, %v5340_v50, 1326507024  ;;  %vm5342_vm5 = vcmp.lt.s32.totalorder %v9891_v46, 2  ;;  %v9949_v2 = vshll.u32 %v5317_v37, 8  ;;  %vm2352_vm6 = vweird.f32 %v9548_v17 }
 0x4f0   :  { %v2343_v43 = vadd.f32 1.0, %v2342_v26  ;;  %v2350_v38 = vadd.f32 1.0, %v2349_v15  ;;  %v3860_v8 = vshll.u32 %v9929_v16, 30  ;;  %v5355_v4 = vsel %vm5343_vm7, %v5337_v5, %v5354_v31 }
 0x4f1   :  { %v5356_v13 = vsel %vm5342_vm5, %v5353_v6, %v5355_v4  ;;  %vm2355_vm8 = vcmp.lt.s32.totalorder %v2354_v41, 2  ;;  %vm2356_vm9 = vcmp.eq.s32.totalorder %v2354_v41, 0  ;;  %v5352_v29 = vsel %vm5342_vm5, %v5349_v42, %v5351_v63  ;;  %v1426_v4 = vpop.permute.xlu1 %1425 }
 0x4f2   :  { %v2351_v55 = vmul.f32 %v2350_v38, %v2335_v49  ;;  %v2360_v18 = vxor.u32 2147483648, %v2343_v43  ;;  %v3861_v22 = vsub.s32 %v3857_v19, %v3860_v8  ;;  %vm2359_vm10 = vcmp.eq.s32.totalorder %v2354_v41, 2 }
 0x4f3   :  { %v5359_v36 = vshrl.u32 %v9949_v2, 16  ;;  %v5360_v24 = vand.u32 65535, %v5356_v13  ;;  %v5358_v49 = vand.u32 65535, %v9949_v2  ;;  %v5361_v20 = vshrl.u32 %v5356_v13, 16 }
 0x4f4   :  { %v2357_v57 = vxor.u32 2147483648, %v2351_v55  ;;  %vm3862_vm11 = vcmp.lt.s32.totalorder %v3861_v22, 0  ;;  %v3863_v3 = vsub.s32 0, %v3861_v22  ;;  %v2361_v51 = vsel %vm2359_vm10, %v2360_v18, %v2351_v55 }
 0x4f5   :  { %v5364_v25 = vmul.u32 %v5360_v24, %v5359_v36  ;;  %v5382_v52 = vand.u32 65535, %v5352_v29  ;;  %v5363_v11 = vmul.u32 %v5361_v20, %v5358_v49  ;;  %v5383_v48 = vshrl.u32 %v5352_v29, 16 }
 0x4f6   :  { %v2358_v21 = vsel %vm2356_vm9, %v2343_v43, %v2357_v57  ;;  %v3864_v28 = vsel %vm3862_vm11, %v3863_v3, %v3861_v22  ;;  %v5325_v62 = vshrl.u32 %v12097_v45, %v9886_v30  ;;  %v5362_v60 = vmul.u32 %v5360_v24, %v5358_v49 }
 0x4f7   :  { %v2362_v14 = vsel %vm2355_vm8, %v2358_v21, %v2361_v51  ;;  %v3865_v19 = vclz %v3864_v28  ;;  %v5366_v50 = vshll.u32 %v5363_v11, 16  ;;  %v3853_v61 = vadd.s32 %v9893_v7, %v9899_v32 }
 0x4f8   :  { %v2363_v5 = vsel %vm2352_vm6, nan, %v2362_v14  ;;  %v5365_v26 = vmul.u32 %v5361_v20, %v5359_v36  ;;  %v5368_v41 = vshll.u32 %v5364_v25, 16  ;;  %v5385_v33 = vmul.u32 %v5383_v48, %v5358_v49 }
 0x4f9   :  { %6553 = vst [vmem:[#allocation2 + $0x20] sm:$0xff] %v2363_v5  ;;  %v6642_v37 = vadd.s32 4294967294, %v3865_v19  ;;  %vm5370_vm12 = vc.u32 %v5362_v60, %v5366_v50  ;;  %v5372_v15 = vadd.s32 %v5366_v50, %v5362_v60  ;;  %v5386_v42 = vmul.u32 %v5382_v52, %v5359_v36 }
 0x4fa   :  { %v5345_v17 = vsel %vm5341_vm4, %v5325_v62, %v9917_v40  ;;  %v5367_v6 = vshrl.u32 %v5363_v11, 16  ;;  %v5371_v30 = vsel %vm5370_vm12, 1, %v12096_v54  ;;  %v5388_v63 = vshll.u32 %v5385_v33, 16 }
 0x4fb   :  { %vm6643_vm14 = vcmp.lt.s32.totalorder %v6642_v37, 0  ;;  %v5373_v38 = vadd.s32 %v5371_v30, %v5365_v26  ;;  %vm5374_vm15 = vc.u32 %v5372_v15, %v5368_v41  ;;  %vm3761_vm13 = vcmp.lt.s32.totalorder %v9749_v59, 0 }
 0x4fc   :  { %v3868_v43 = vsel %vm6643_vm14, 0, %v6642_v37  ;;  %v5375_v31 = vsel %vm5374_vm15, 1, %v12096_v54  ;;  %v5384_v8 = vmul.u32 %v5382_v52, %v5358_v49  ;;  %v5387_v13 = vmul.u32 %v5383_v48, %v5359_v36  ;;  %v12131_v48 = vld [vmem:[#allocation9_spill] sm:$0xff] }
 0x4fd   :  { %v3869_v7 = vsub.s32 32, %v3868_v43  ;;  %v3873_v32 = vsub.s32 4294967266, %v3868_v43  ;;  %v3870_v55 = vshll.u32 %v3861_v22, %v3868_v43  ;;  %v5377_v18 = vadd.s32 %v5375_v31, %v5373_v38  ;;  %v1466_v22 = vpop.permute.xlu2 %1465 }
 0x4fe   :  { %v5390_v29 = vshll.u32 %v5386_v42, 16  ;;  %vm5392_vm0 = vc.u32 %v5384_v8, %v5388_v63  ;;  %v5394_v24 = vadd.s32 %v5388_v63, %v5384_v8  ;;  %v5346_v3 = vsel %vm5344_vm2, %v9921_v0, 2102212464 }
 0x4ff   :  { %v3871_v40 = vshrl.u32 %v3853_v61, %v3869_v7  ;;  %v3874_v57 = vadd.s32 127, %v3873_v32  ;;  %v5378_v20 = vadd.s32 %v5377_v18, %v5367_v6  ;;  %v5393_v21 = vsel %vm5392_vm0, 1, %v12096_v54  ;;  %v12132_v7 = vld [vmem:[#allocation53_spill] sm:$0xff] }
 0x500   :  { %v1532_v51 = vmul.f32 %v8261_v39, %v1426_v4  ;;  %v5395_v52 = vadd.s32 %v5393_v21, %v5387_v13  ;;  %vm5396_vm1 = vc.u32 %v5394_v24, %v5390_v29  ;;  %v3883_v36 = vsub.s32 4, %v9929_v16 }
 0x501   :  { %v3872_v14 = vor.u32 %v3871_v40, %v3870_v55  ;;  %v3875_v49 = vshll.u32 %v3874_v57, 23  ;;  %v5369_v28 = vshrl.u32 %v5364_v25, 16  ;;  %v5397_v11 = vsel %vm5396_vm1, 1, %v12096_v54 }
 0x502   :  { %v9979_v5 = vadd.f32 %v1532_v51, %v12131_v48  ;;  %v5347_v0 = vsel %vm5343_vm7, %v9919_v44, %v5346_v3  ;;  %v5389_v62 = vshrl.u32 %v5385_v33, 16  ;;  %v5399_v60 = vadd.s32 %v5397_v11, %v5395_v52 }
 0x503   :  { %v3876_v19 = vor.u32 4788187, %v3875_v49  ;;  %v5379_v50 = vadd.s32 %v5378_v20, %v5369_v28  ;;  %v5391_v61 = vshrl.u32 %v5386_v42, 16  ;;  %v1542_v26 = vmul.f32 %v8261_v39, %v1466_v22 }
 0x504   :  { %v2674_v37 = vand.u32 2147483647, %v9979_v5  ;;  %v3879_v25 = vcvt.s32.f32 %v3872_v14  ;;  %v5400_v15 = vadd.s32 %v5399_v60, %v5389_v62  ;;  %v2677_v6 = vand.u32 2139095040, %v9979_v5 }
 0x505   :  { %v3877_v41 = vand.u32 2147483647, %v3876_v19  ;;  %v3884_v30 = vsel %vm3761_vm13, %v3883_v36, %v9929_v16  ;;  %v5348_v44 = vsel %vm5342_vm5, %v5345_v17, %v5347_v0  ;;  %v5398_v33 = vadd.s32 %v5394_v24, %v5390_v29 }
 0x506   :  { %v5401_v38 = vadd.s32 %v5400_v15, %v5391_v61  ;;  %v2678_v42 = vshrl.u32 %v2677_v6, 23  ;;  %v2681_v63 = vand.u32 8388607, %v2674_v37  ;;  %v9995_v32 = vadd.f32 %v1542_v26, %v12132_v7 }
 0x507   :  { %v3880_v43 = vmul.f32 %v3879_v25, %v3877_v41  ;;  %vm5404_vm3 = vc.u32 %v5379_v50, %v5398_v33  ;;  %vm3760_vm2 = vcmp.le.f32.partialorder %v3759_v58, 0.7853982  ;;  %v5402_v46 = vmul.u32 %v9949_v2, %v5348_v44 }
 0x508   :  { %v5405_v8 = vadd.s32 1, %v5401_v38  ;;  %v6620_v16 = vadd.s32 4294967169, %v2678_v42  ;;  %v3886_v4 = vsel %vm3760_vm2, 0, %v3884_v30  ;;  %v2682_v18 = vor.u32 8388608, %v2681_v63 }
 0x509   :  { %v3881_v31 = vxor.u32 2147483648, %v3880_v43  ;;  %v4227_v57 = vand.u32 2139095040, %v9995_v32  ;;  %v3903_v3 = vadd.s32 3, %v3886_v4  ;;  %vm5311_vm7 = vcmp.lt.s32.totalorder %v9757_v9, 0 }
 0x50a   :  { %v5406_v55 = vsel %vm5404_vm3, %v5405_v8, %v5401_v38  ;;  %v2684_v13 = vadd.s32 1, %v6620_v16  ;;  %v10004_v2 = vshll.u32 %v2682_v18, 8  ;;  %v10009_v11 = vadd.s32 %v5398_v33, %v5379_v50 }
 0x50b   :  { %v3882_v17 = vsel %vm3761_vm13, %v3881_v31, %v3880_v43  ;;  %v5407_v40 = vadd.s32 %v5406_v55, %v5402_v46  ;;  %v4228_v52 = vshrl.u32 %v4227_v57, 23  ;;  %v10006_v28 = vand.u32 3, %v3903_v3 }
 0x50c   :  { %v3885_v29 = vsel %vm3760_vm2, %v9749_v59, %v3882_v17  ;;  %vm2685_vm4 = vcmp.gt.s32.totalorder %v2684_v13, 0  ;;  %vm10013_vm5 = vcmp.le.f32.partialorder %v5309_v47, 0.7853982  ;;  %v10018_v61 = vand.u32 65535, %v10004_v2 }
 0x50d   :  { %v3887_v24 = vmul.f32 %v3885_v29, %v3885_v29  ;;  %v5408_v58 = vadd.s32 536870912, %v5407_v40  ;;  %v2686_v20 = vsel %vm2685_vm4, %v2684_v13, 0  ;;  %v4224_v26 = vand.u32 2147483647, %v9995_v32 }
 0x50e   :  { %v2688_v14 = vand.u32 31, %v2686_v20  ;;  %v10023_v50 = vshrl.u32 %v2686_v20, 5  ;;  %v10025_v15 = vadd.s32 4294967169, %v4228_v52  ;;  %vm3909_vm6 = vcmp.eq.s32.totalorder %v10006_v28, 2 }
 0x50f   :  { %v3888_v21 = vmul.f32 -0.001358992, %v3887_v24  ;;  %v3895_v51 = vmul.f32 -0.00019511016, %v3887_v24  ;;  %v5409_v49 = vshrl.u32 %v5408_v58, 30  ;;  %vm3906_vm8 = vcmp.eq.s32.totalorder %v10006_v28, 0 }
 0x510   :  { %v2689_v19 = vsub.s32 32, %v2688_v14  ;;  %v2691_v47 = vshll.u32 %v12097_v45, %v2688_v14  ;;  %v2694_v44 = vshll.u32 %v12098_v56, %v2688_v14  ;;  %vm3905_vm10 = vcmp.lt.s32.totalorder %v10006_v28, 2 }
 0x511   :  { %v3889_v22 = vadd.f32 0.041655596, %v3888_v21  ;;  %v3896_v36 = vadd.f32 0.008332121, %v3895_v51  ;;  %v5410_v48 = vshll.u32 %v5409_v49, 30  ;;  %v5433_v25 = vsub.s32 4, %v5409_v49 }
 0x512   :  { %v2692_v43 = vshrl.u32 %v12098_v56, %v2689_v19  ;;  %v2698_v38 = vshrl.u32 %v12100_v34, %v2689_v19  ;;  %v2695_v7 = vshrl.u32 %v12099_v53, %v2689_v19  ;;  %v2697_v31 = vshll.u32 %v12099_v53, %v2688_v14 }
 0x513   :  { %v3890_v0 = vmul.f32 %v3889_v22, %v3887_v24  ;;  %v3897_v62 = vmul.f32 %v3896_v36, %v3887_v24  ;;  %v10021_v41 = vsub.s32 %v5407_v40, %v5410_v48  ;;  %vm3902_vm11 = vweird.f32 %v9749_v59 }
 0x514   :  { %v5434_v16 = vsel %vm5311_vm7, %v5433_v25, %v5409_v49  ;;  %v2700_v4 = vshll.u32 %v12100_v34, %v2688_v14  ;;  %v2701_v46 = vshrl.u32 %v12101_v27, %v2689_v19  ;;  %v2704_v13 = vshrl.u32 %v12102_v10, %v2689_v19 }
 0x515   :  { %v3891_v6 = vadd.f32 -0.4999988, %v3890_v0  ;;  %v3898_v30 = vadd.f32 -0.16666654, %v3897_v62  ;;  %vm5412_vm9 = vcmp.lt.s32.totalorder %v10021_v41, 0  ;;  %v5413_v33 = vsub.s32 0, %v10021_v41 }
 0x516   :  { %v2693_v40 = vor.u32 %v2692_v43, %v2691_v47  ;;  %v2699_v57 = vor.u32 %v2698_v38, %v2697_v31  ;;  %v2703_v3 = vshll.u32 %v12101_v27, %v2688_v14  ;;  %v2696_v51 = vor.u32 %v2695_v7, %v2694_v44 }
 0x517   :  { %v3892_v42 = vmul.f32 %v3891_v6, %v3887_v24  ;;  %v3899_v63 = vmul.f32 %v3898_v30, %v3887_v24  ;;  %v5414_v8 = vsel %vm5412_vm9, %v5413_v33, %v10021_v41  ;;  %v2702_v24 = vor.u32 %v2701_v46, %v2700_v4 }
 0x518   :  { %v5415_v18 = vclz %v5414_v8  ;;  %v5436_v49 = vsel %vm10013_vm5, 0, %v5434_v16  ;;  %v2690_v52 = vshrl.u32 %v12097_v45, %v2689_v19  ;;  %v2705_v22 = vor.u32 %v2704_v13, %v2703_v3 }
 0x519   :  { %v3893_v17 = vadd.f32 1.0, %v3892_v42  ;;  %v3900_v55 = vadd.f32 1.0, %v3899_v63  ;;  %vm2706_vm12 = vcmp.lt.s32.totalorder %v10023_v50, 1  ;;  %vm2708_vm15 = vcmp.lt.s32.totalorder %v10023_v50, 3 }
 0x51a   :  { %v6672_v21 = vadd.s32 4294967294, %v5415_v18  ;;  %vm2709_vm13 = vcmp.lt.s32.totalorder %v10023_v50, 4  ;;  %v2714_v6 = vsel %vm2706_vm12, %v2693_v40, %v2696_v51  ;;  %vm2707_vm0 = vcmp.lt.s32.totalorder %v10023_v50, 2 }
 0x51b   :  { %v3901_v58 = vmul.f32 %v3900_v55, %v3885_v29  ;;  %v3910_v20 = vxor.u32 2147483648, %v3893_v17  ;;  %v2711_v48 = vsel %vm2709_vm13, %v2699_v57, 2102212464  ;;  %v2715_v0 = vsel %vm2709_vm13, %v2702_v24, 920167782 }
 0x51c   :  { %vm6673_vm14 = vcmp.lt.s32.totalorder %v6672_v21, 0  ;;  %v2716_v44 = vsel %vm2708_vm15, %v2699_v57, %v2715_v0  ;;  %v2718_v42 = vsel %vm2706_vm12, %v2696_v51, %v2699_v57  ;;  %v2710_v28 = vsel %vm2706_vm12, %v2690_v52, %v2693_v40 }
 0x51d   :  { %v3907_v36 = vxor.u32 2147483648, %v3901_v58  ;;  %v3911_v29 = vsel %vm3909_vm6, %v3910_v20, %v3901_v58  ;;  %v5418_v14 = vsel %vm6673_vm14, 0, %v6672_v21  ;;  %v2717_v63 = vsel %vm2707_vm0, %v2714_v6, %v2716_v44 }
 0x51e   :  { %v5419_v62 = vsub.s32 32, %v5418_v14  ;;  %v5423_v25 = vsub.s32 4294967266, %v5418_v14  ;;  %v5420_v47 = vshll.u32 %v10021_v41, %v5418_v14  ;;  %v2712_v41 = vsel %vm2708_vm15, %v2696_v51, %v2711_v48 }
 0x51f   :  { %v3908_v19 = vsel %vm3906_vm8, %v3893_v17, %v3907_v36  ;;  %v2719_v59 = vsel %vm2709_vm13, %v2705_v22, 1326507024  ;;  %v2747_v8 = vand.u32 65535, %v2717_v63  ;;  %v2724_v4 = vshrl.u32 %v10004_v2, 16 }
 0x520   :  { %v3912_v30 = vsel %vm3905_vm10, %v3908_v19, %v3911_v29  ;;  %v5421_v43 = vshrl.u32 %v10009_v11, %v5419_v62  ;;  %v5424_v38 = vadd.s32 127, %v5423_v25  ;;  %v2720_v11 = vsel %vm2708_vm15, %v2702_v24, %v2719_v59 }
 0x521   :  { %v3913_v33 = vsel %vm3902_vm11, nan, %v3912_v30  ;;  %v2721_v16 = vsel %vm2707_vm0, %v2718_v42, %v2720_v11  ;;  %v2748_v46 = vshrl.u32 %v2717_v63, 16  ;;  %v4234_v17 = vadd.s32 1, %v10025_v15 }
 0x522   :  { %6563 = vst [vmem:[#allocation2 + $0x70] sm:$0xff] %v3913_v33  ;;  %v5422_v7 = vor.u32 %v5421_v43, %v5420_v47  ;;  %v5425_v31 = vshll.u32 %v5424_v38, 23  ;;  %v2725_v18 = vand.u32 65535, %v2721_v16  ;;  %v2726_v13 = vshrl.u32 %v2721_v16, 16 }
 0x523   :  { %v10089_v40 = vand.u32 8388607, %v4224_v26  ;;  %v5453_v57 = vadd.s32 3, %v5436_v49  ;;  %v10093_v24 = vsel %vm2707_vm0, %v2710_v28, %v2712_v41  ;;  %v2750_v3 = vmul.u32 %v2748_v46, %v10018_v61 }
 0x524   :  { %v5426_v55 = vor.u32 4788187, %v5425_v31  ;;  %v2751_v58 = vmul.u32 %v2747_v8, %v2724_v4  ;;  %v5429_v21 = vcvt.s32.f32 %v5422_v7  ;;  %v2728_v51 = vmul.u32 %v2726_v13, %v10018_v61 }
 0x525   :  { %v2729_v15 = vmul.u32 %v2725_v18, %v2724_v4  ;;  %v2749_v52 = vmul.u32 %v2747_v8, %v10018_v61  ;;  %v2752_v22 = vmul.u32 %v2748_v46, %v2724_v4  ;;  %v2753_v36 = vshll.u32 %v2750_v3, 16 }
 0x526   :  { %v5427_v20 = vand.u32 2147483647, %v5426_v55  ;;  %vm4235_vm1 = vcmp.gt.s32.totalorder %v4234_v17, 0  ;;  %v2727_v49 = vmul.u32 %v2725_v18, %v10018_v61  ;;  %v2730_v14 = vmul.u32 %v2726_v13, %v2724_v4 }
 0x527   :  { %v2731_v50 = vshll.u32 %v2728_v51, 16  ;;  %v2733_v48 = vshll.u32 %v2729_v15, 16  ;;  %v2755_v0 = vshll.u32 %v2751_v58, 16  ;;  %vm2757_vm3 = vc.u32 %v2749_v52, %v2753_v36 }
 0x528   :  { %v5430_v29 = vmul.f32 %v5429_v21, %v5427_v20  ;;  %v2759_v19 = vadd.s32 %v2753_v36, %v2749_v52  ;;  %v2758_v6 = vsel %vm2757_vm3, 1, %v12096_v54  ;;  %v4236_v44 = vsel %vm4235_vm1, %v4234_v17, 0 }
 0x529   :  { %vm2735_vm2 = vc.u32 %v2727_v49, %v2731_v50  ;;  %v2737_v25 = vadd.s32 %v2731_v50, %v2727_v49  ;;  %v2760_v47 = vadd.s32 %v2758_v6, %v2752_v22  ;;  %v2754_v28 = vshrl.u32 %v2750_v3, 16 }
 0x52a   :  { %v5431_v62 = vxor.u32 2147483648, %v5430_v29  ;;  %v2736_v30 = vsel %vm2735_vm2, 1, %v12096_v54  ;;  %vm2761_vm4 = vc.u32 %v2759_v19, %v2755_v0  ;;  %v2732_v59 = vshrl.u32 %v2728_v51, 16 }
 0x52b   :  { %v2738_v33 = vadd.s32 %v2736_v30, %v2730_v14  ;;  %vm2739_vm6 = vc.u32 %v2737_v25, %v2733_v48  ;;  %v2762_v43 = vsel %vm2761_vm4, 1, %v12096_v54  ;;  %v4238_v31 = vand.u32 31, %v4236_v44 }
 0x52c   :  { %v5432_v61 = vsel %vm5311_vm7, %v5431_v62, %v5430_v29  ;;  %v2740_v42 = vsel %vm2739_vm6, 1, %v12096_v54  ;;  %v2764_v41 = vadd.s32 %v2762_v43, %v2760_v47  ;;  %v2734_v11 = vshrl.u32 %v2729_v15, 16 }
 0x52d   :  { %v5435_v38 = vsel %vm10013_vm5, %v9757_v9, %v5432_v61  ;;  %v2742_v7 = vadd.s32 %v2740_v42, %v2738_v33  ;;  %v2756_v8 = vshrl.u32 %v2751_v58, 16  ;;  %v4232_v4 = vor.u32 8388608, %v10089_v40 }
 0x52e   :  { %v5437_v63 = vmul.f32 %v5435_v38, %v5435_v38  ;;  %v2765_v16 = vadd.s32 %v2764_v41, %v2754_v28  ;;  %v10110_v18 = vsub.s32 32, %v4238_v31  ;;  %v10112_v60 = vand.u32 3, %v5453_v57 }
 0x52f   :  { %v2743_v55 = vadd.s32 %v2742_v7, %v2732_v59  ;;  %v10114_v13 = vadd.s32 %v2759_v19, %v2755_v0  ;;  %v2767_v20 = vmul.u32 %v10004_v2, %v10093_v24  ;;  %v4241_v58 = vshll.u32 %v12097_v45, %v4238_v31 }
 0x530   :  { %v5438_v46 = vmul.f32 -0.001358992, %v5437_v63  ;;  %v5445_v17 = vmul.f32 -0.00019511016, %v5437_v63  ;;  %v2766_v3 = vadd.s32 %v2765_v16, %v2756_v8  ;;  %v4242_v52 = vshrl.u32 %v12098_v56, %v10110_v18 }
 0x531   :  { %v10118_v15 = vadd.s32 %v2743_v55, %v2734_v11  ;;  %v4244_v22 = vshll.u32 %v12098_v56, %v4238_v31  ;;  %v4245_v57 = vshrl.u32 %v12099_v53, %v10110_v18  ;;  %v4248_v2 = vshrl.u32 %v12100_v34, %v10110_v18 }
 0x532   :  { %v5439_v21 = vadd.f32 0.041655596, %v5438_v46  ;;  %v5446_v51 = vadd.f32 0.008332121, %v5445_v17  ;;  %v2770_v40 = vadd.s32 1, %v2766_v3  ;;  %v10130_v49 = vshrl.u32 %v4236_v44, 5 }
 0x533   :  { %vm2769_vm7 = vc.u32 %v10118_v15, %v10114_v13  ;;  %v10132_v14 = vor.u32 %v4242_v52, %v4241_v58  ;;  %v4247_v50 = vshll.u32 %v12099_v53, %v4238_v31  ;;  %v10135_v62 = vor.u32 %v4245_v57, %v4244_v22 }
 0x534   :  { %v5440_v36 = vmul.f32 %v5439_v21, %v5437_v63  ;;  %v5447_v29 = vmul.f32 %v5446_v51, %v5437_v63  ;;  %v2771_v24 = vsel %vm2769_vm7, %v2770_v40, %v2766_v3  ;;  %v4250_v25 = vshll.u32 %v12100_v34, %v4238_v31 }
 0x535   :  { %v2772_v19 = vadd.s32 %v2771_v24, %v2767_v20  ;;  %v4251_v6 = vshrl.u32 %v12101_v27, %v10110_v18  ;;  %v4253_v30 = vshll.u32 %v12101_v27, %v4238_v31  ;;  %v4254_v47 = vshrl.u32 %v12102_v10, %v10110_v18 }
 0x536   :  { %v5441_v48 = vadd.f32 -0.4999988, %v5440_v36  ;;  %v5448_v0 = vadd.f32 -0.16666654, %v5447_v29  ;;  %v4249_v43 = vor.u32 %v4248_v2, %v4247_v50  ;;  %vm4256_vm5 = vcmp.lt.s32.totalorder %v10130_v49, 1 }
 0x537   :  { %v2773_v33 = vadd.s32 536870912, %v2772_v19  ;;  %v4252_v42 = vor.u32 %v4251_v6, %v4250_v25  ;;  %v4255_v28 = vor.u32 %v4254_v47, %v4253_v30  ;;  %v10144_v41 = vshll.u32 %v4232_v4, 8 }
 0x538   :  { %v5442_v44 = vmul.f32 %v5441_v48, %v5437_v63  ;;  %v5449_v61 = vmul.f32 %v5448_v0, %v5437_v63  ;;  %vm4259_vm8 = vcmp.lt.s32.totalorder %v10130_v49, 4  ;;  %vm4258_vm9 = vcmp.lt.s32.totalorder %v10130_v49, 3 }
 0x539   :  { %v10146_v11 = vshrl.u32 %v2773_v33, 30  ;;  %v4264_v63 = vsel %vm4256_vm5, %v10132_v14, %v10135_v62  ;;  %v4265_v31 = vsel %vm4259_vm8, %v4252_v42, 920167782  ;;  %v4269_v8 = vsel %vm4259_vm8, %v4255_v28, 1326507024 }
 0x53a   :  { %v5443_v59 = vadd.f32 1.0, %v5442_v44  ;;  %v5450_v7 = vadd.f32 1.0, %v5449_v61  ;;  %v4268_v17 = vsel %vm4256_vm5, %v10135_v62, %v4249_v43  ;;  %vm5452_vm10 = vweird.f32 %v9757_v9 }
 0x53b   :  { %v2775_v46 = vshll.u32 %v10146_v11, 30  ;;  %vm5455_vm11 = vcmp.lt.s32.totalorder %v10112_v60, 2  ;;  %v4266_v55 = vsel %vm4258_vm9, %v4249_v43, %v4265_v31  ;;  %v4270_v3 = vsel %vm4258_vm9, %v4252_v42, %v4269_v8 }
 0x53c   :  { %v5451_v16 = vmul.f32 %v5450_v7, %v5435_v38  ;;  %v5460_v4 = vxor.u32 2147483648, %v5443_v59  ;;  %vm5456_vm12 = vcmp.eq.s32.totalorder %v10112_v60, 0  ;;  %vm4257_vm14 = vcmp.lt.s32.totalorder %v10130_v49, 2 }
 0x53d   :  { %v2776_v20 = vsub.s32 %v2772_v19, %v2775_v46  ;;  %vm5459_vm15 = vcmp.eq.s32.totalorder %v10112_v60, 2  ;;  %v4267_v21 = vsel %vm4257_vm14, %v4264_v63, %v4266_v55  ;;  %v4271_v51 = vsel %vm4257_vm14, %v4268_v17, %v4270_v3  ;;  %v1506_v46 = vpop.permute.xlu0 %1505  ;;  %v1438_v3 = vpop.permute.xlu1 %1437 }
 0x53e   :  { %v5457_v38 = vxor.u32 2147483648, %v5451_v16  ;;  %v4273_v58 = vand.u32 65535, %v10144_v41  ;;  %v5461_v52 = vsel %vm5459_vm15, %v5460_v4, %v5451_v16  ;;  %v4274_v36 = vshrl.u32 %v10144_v41, 16 }
 0x53f   :  { %vm2777_vm13 = vcmp.lt.s32.totalorder %v2776_v20, 0  ;;  %v2778_v22 = vsub.s32 0, %v2776_v20  ;;  %v4275_v29 = vand.u32 65535, %v4271_v51  ;;  %v4276_v2 = vshrl.u32 %v4271_v51, 16 }
 0x540   :  { %v5458_v40 = vsel %vm5456_vm12, %v5443_v59, %v5457_v38  ;;  %v4297_v50 = vand.u32 65535, %v4267_v21  ;;  %v4298_v48 = vshrl.u32 %v4267_v21, 16  ;;  %v2768_v6 = vadd.s32 %v10114_v13, %v10118_v15 }
 0x541   :  { %v5462_v57 = vsel %vm5455_vm11, %v5458_v40, %v5461_v52  ;;  %v2779_v24 = vsel %vm2777_vm13, %v2778_v22, %v2776_v20  ;;  %v4278_v19 = vmul.u32 %v4276_v2, %v4273_v58  ;;  %v4279_v25 = vmul.u32 %v4275_v29, %v4274_v36 }
 0x542   :  { %v5463_v60 = vsel %vm5452_vm10, nan, %v5462_v57  ;;  %v2780_v0 = vclz %v2779_v24  ;;  %v4240_v30 = vshrl.u32 %v12097_v45, %v10110_v18  ;;  %v4261_v44 = vsel %vm4259_vm8, %v4249_v43, 2102212464 }
 0x543   :  { %6573 = vst [vmem:[#allocation2 + $0xc0] sm:$0xff] %v5463_v60  ;;  %v4277_v61 = vmul.u32 %v4275_v29, %v4273_v58  ;;  %v4281_v9 = vshll.u32 %v4278_v19, 16  ;;  %v4280_v33 = vmul.u32 %v4276_v2, %v4274_v36  ;;  %v4282_v42 = vshrl.u32 %v4278_v19, 16 }
 0x544   :  { %v6621_v47 = vadd.s32 4294967294, %v2780_v0  ;;  %v4300_v28 = vmul.u32 %v4298_v48, %v4273_v58  ;;  %v4301_v59 = vmul.u32 %v4297_v50, %v4274_v36  ;;  %v4283_v7 = vshll.u32 %v4279_v25, 16 }
 0x545   :  { %vm4285_vm1 = vc.u32 %v4277_v61, %v4281_v9  ;;  %v4287_v63 = vadd.s32 %v4281_v9, %v4277_v61  ;;  %v4299_v15 = vmul.u32 %v4297_v50, %v4273_v58  ;;  %vm2676_vm3 = vcmp.lt.s32.totalorder %v9979_v5, 0  ;;  %v12135_v50 = vld [vmem:[#allocation29_spill] sm:$0xff] }
 0x546   :  { %vm6622_vm0 = vcmp.lt.s32.totalorder %v6621_v47, 0  ;;  %v4286_v13 = vsel %vm4285_vm1, 1, %v12096_v54  ;;  %v4303_v8 = vshll.u32 %v4300_v28, 16  ;;  %v4302_v4 = vmul.u32 %v4298_v48, %v4274_v36 }
 0x547   :  { %v2783_v31 = vsel %vm6622_vm0, 0, %v6621_v47  ;;  %v4288_v43 = vadd.s32 %v4286_v13, %v4280_v33  ;;  %vm4289_vm2 = vc.u32 %v4287_v63, %v4283_v7  ;;  %v4305_v55 = vshll.u32 %v4301_v59, 16 }
 0x548   :  { %v2784_v18 = vsub.s32 32, %v2783_v31  ;;  %v2788_v16 = vsub.s32 4294967266, %v2783_v31  ;;  %v2785_v17 = vshll.u32 %v2776_v20, %v2783_v31  ;;  %vm4307_vm4 = vc.u32 %v4299_v15, %v4303_v8 }
 0x549   :  { %v4290_v51 = vsel %vm4289_vm2, 1, %v12096_v54  ;;  %v4308_v40 = vsel %vm4307_vm4, 1, %v12096_v54  ;;  %v4309_v52 = vadd.s32 %v4303_v8, %v4299_v15  ;;  %v1552_v57 = vmul.f32 %v8261_v39, %v1506_v46 }
 0x54a   :  { %v2786_v38 = vshrl.u32 %v2768_v6, %v2784_v18  ;;  %v2789_v21 = vadd.s32 127, %v2788_v16  ;;  %v4292_v58 = vadd.s32 %v4290_v51, %v4288_v43  ;;  %v4310_v22 = vadd.s32 %v4308_v40, %v4302_v4 }
 0x54b   :  { %v4260_v20 = vsel %vm4256_vm5, %v4240_v30, %v10132_v14  ;;  %v1535_v36 = vmul.f32 %v8261_v39, %v1438_v3  ;;  %v2798_v60 = vsub.s32 4, %v10146_v11  ;;  %vm4311_vm6 = vc.u32 %v4309_v52, %v4305_v55  ;;  %v12136_v30 = vld [vmem:[#allocation28_spill] sm:$0xff] }
 0x54c   :  { %v2787_v29 = vor.u32 %v2786_v38, %v2785_v17  ;;  %v2790_v2 = vshll.u32 %v2789_v21, 23  ;;  %v4293_v24 = vadd.s32 %v4292_v58, %v4282_v42  ;;  %v10196_v48 = vadd.f32 %v1552_v57, %v12135_v50 }
 0x54d   :  { %v4262_v19 = vsel %vm4258_vm9, %v10135_v62, %v4261_v44  ;;  %v4284_v6 = vshrl.u32 %v4279_v25, 16  ;;  %v4312_v47 = vsel %vm4311_vm6, 1, %v12096_v54  ;;  %v4304_v61 = vshrl.u32 %v4300_v28, 16 }
 0x54e   :  { %v2791_v0 = vor.u32 4788187, %v2790_v2  ;;  %v4314_v9 = vadd.s32 %v4312_v47, %v4310_v22  ;;  %v5774_v14 = vand.u32 2147483647, %v10196_v48  ;;  %v10204_v33 = vadd.f32 %v1535_v36, %v12136_v30 }
 0x54f   :  { %v2794_v7 = vcvt.s32.f32 %v2787_v29  ;;  %v4294_v63 = vadd.s32 %v4293_v24, %v4284_v6  ;;  %v5777_v31 = vand.u32 2139095040, %v10196_v48  ;;  %v2799_v13 = vsel %vm2676_vm3, %v2798_v60, %v10146_v11 }
 0x550   :  { %v2792_v42 = vand.u32 2147483647, %v2791_v0  ;;  %v4306_v62 = vshrl.u32 %v4301_v59, 16  ;;  %v4315_v25 = vadd.s32 %v4314_v9, %v4304_v61  ;;  %v4313_v15 = vadd.s32 %v4309_v52, %v4305_v55 }
 0x551   :  { %v5778_v28 = vshrl.u32 %v5777_v31, 23  ;;  %v5781_v8 = vand.u32 8388607, %v5774_v14  ;;  %vm2675_vm7 = vcmp.le.f32.partialorder %v2674_v37, 0.7853982  ;;  %v4263_v18 = vsel %vm4257_vm14, %v4260_v20, %v4262_v19 }
 0x552   :  { %v2795_v44 = vmul.f32 %v2794_v7, %v2792_v42  ;;  %v4316_v16 = vadd.s32 %v4315_v25, %v4306_v62  ;;  %v3142_v43 = vand.u32 2139095040, %v10204_v33  ;;  %v2801_v46 = vsel %vm2675_vm7, 0, %v2799_v13 }
 0x553   :  { %vm4319_vm5 = vc.u32 %v4294_v63, %v4313_v15  ;;  %v6680_v11 = vadd.s32 4294967169, %v5778_v28  ;;  %v5782_v17 = vor.u32 8388608, %v5781_v8  ;;  %v4317_v3 = vmul.u32 %v10144_v41, %v4263_v18 }
 0x554   :  { %v2796_v4 = vxor.u32 2147483648, %v2795_v44  ;;  %v4320_v59 = vadd.s32 1, %v4316_v16  ;;  %v2818_v21 = vadd.s32 3, %v2801_v46  ;;  %v3143_v51 = vshrl.u32 %v3142_v43, 23 }
 0x555   :  { %v5784_v38 = vadd.s32 1, %v6680_v11  ;;  %v10221_v22 = vshll.u32 %v5782_v17, 8  ;;  %v10225_v0 = vadd.s32 %v4313_v15, %v4294_v63  ;;  %v3139_v47 = vand.u32 2147483647, %v10204_v33 }
 0x556   :  { %v2797_v55 = vsel %vm2676_vm3, %v2796_v4, %v2795_v44  ;;  %v4321_v49 = vsel %vm4319_vm5, %v4320_v59, %v4316_v16  ;;  %v10223_v20 = vand.u32 3, %v2818_v21  ;;  %v6629_v60 = vadd.s32 4294967169, %v3143_v51 }
 0x557   :  { %v2800_v37 = vsel %vm2675_vm7, %v9979_v5, %v2797_v55  ;;  %v4322_v58 = vadd.s32 %v4321_v49, %v4317_v3  ;;  %vm5785_vm8 = vcmp.gt.s32.totalorder %v5784_v38, 0  ;;  %v10228_v6 = vand.u32 65535, %v10221_v22 }
 0x558   :  { %v2802_v40 = vmul.f32 %v2800_v37, %v2800_v37  ;;  %v5786_v52 = vsel %vm5785_vm8, %v5784_v38, 0  ;;  %vm4226_vm9 = vcmp.lt.s32.totalorder %v9995_v32, 0  ;;  %v10233_v42 = vshrl.u32 %v10221_v22, 16 }
 0x559   :  { %v4323_v2 = vadd.s32 536870912, %v4322_v58  ;;  %v5788_v36 = vand.u32 31, %v5786_v52  ;;  %vm2824_vm10 = vcmp.eq.s32.totalorder %v10223_v20, 2  ;;  %v10236_v7 = vshrl.u32 %v5786_v52, 5 }
 0x55a   :  { %v2803_v57 = vmul.f32 -0.001358992, %v2802_v40  ;;  %v2810_v29 = vmul.f32 -0.00019511016, %v2802_v40  ;;  %v10240_v13 = vadd.s32 1, %v6629_v60  ;;  %vm2821_vm11 = vcmp.eq.s32.totalorder %v10223_v20, 0 }
 0x55b   :  { %v4324_v50 = vshrl.u32 %v4323_v2, 30  ;;  %v5789_v19 = vsub.s32 32, %v5788_v36  ;;  %v5791_v15 = vshll.u32 %v12097_v45, %v5788_v36  ;;  %v5794_v8 = vshll.u32 %v12098_v56, %v5788_v36 }
 0x55c   :  { %v2804_v41 = vadd.f32 0.041655596, %v2803_v57  ;;  %v2811_v24 = vadd.f32 0.008332121, %v2810_v29  ;;  %v5797_v18 = vshll.u32 %v12099_v53, %v5788_v36  ;;  %vm2820_vm12 = vcmp.lt.s32.totalorder %v10223_v20, 2 }
 0x55d   :  { %v4325_v30 = vshll.u32 %v4324_v50, 30  ;;  %v5792_v63 = vshrl.u32 %v12098_v56, %v5789_v19  ;;  %v5795_v31 = vshrl.u32 %v12099_v53, %v5789_v19  ;;  %v4348_v28 = vsub.s32 4, %v4324_v50 }
 0x55e   :  { %v2805_v61 = vmul.f32 %v2804_v41, %v2802_v40  ;;  %v2812_v9 = vmul.f32 %v2811_v24, %v2802_v40  ;;  %v5798_v16 = vshrl.u32 %v12100_v34, %v5789_v19  ;;  %vm2817_vm15 = vweird.f32 %v9979_v5 }
 0x55f   :  { %v10242_v44 = vsub.s32 %v4322_v58, %v4325_v30  ;;  %v5793_v11 = vor.u32 %v5792_v63, %v5791_v15  ;;  %v5796_v59 = vor.u32 %v5795_v31, %v5794_v8  ;;  %v5800_v17 = vshll.u32 %v12100_v34, %v5788_v36 }
 0x560   :  { %v2806_v62 = vadd.f32 -0.4999988, %v2805_v61  ;;  %v2813_v25 = vadd.f32 -0.16666654, %v2812_v9  ;;  %v5801_v55 = vshrl.u32 %v12101_v27, %v5789_v19  ;;  %v5804_v49 = vshrl.u32 %v12102_v10, %v5789_v19 }
 0x561   :  { %vm4327_vm14 = vcmp.lt.s32.totalorder %v10242_v44, 0  ;;  %v4328_v46 = vsub.s32 0, %v10242_v44  ;;  %vm10259_vm13 = vcmp.le.f32.partialorder %v4224_v26, 0.7853982  ;;  %v5799_v58 = vor.u32 %v5798_v16, %v5797_v18 }
 0x562   :  { %v2807_v43 = vmul.f32 %v2806_v62, %v2802_v40  ;;  %v2814_v4 = vmul.f32 %v2813_v25, %v2802_v40  ;;  %v5802_v52 = vor.u32 %v5801_v55, %v5800_v17  ;;  %v5803_v57 = vshll.u32 %v12101_v27, %v5788_v36 }
 0x563   :  { %v4329_v21 = vsel %vm4327_vm14, %v4328_v46, %v10242_v44  ;;  %v5790_v60 = vshrl.u32 %v12097_v45, %v5789_v19  ;;  %vm5806_vm0 = vcmp.lt.s32.totalorder %v10236_v7, 1  ;;  %v4349_v24 = vsel %vm4226_vm9, %v4348_v28, %v4324_v50 }
 0x564   :  { %v2808_v3 = vadd.f32 1.0, %v2807_v43  ;;  %v2815_v38 = vadd.f32 1.0, %v2814_v4  ;;  %v4330_v40 = vclz %v4329_v21  ;;  %v5805_v61 = vor.u32 %v5804_v49, %v5803_v57 }
 0x565   :  { %vm5807_vm1 = vcmp.lt.s32.totalorder %v10236_v7, 2  ;;  %vm5808_vm3 = vcmp.lt.s32.totalorder %v10236_v7, 3  ;;  %vm5809_vm2 = vcmp.lt.s32.totalorder %v10236_v7, 4  ;;  %v5814_v36 = vsel %vm5806_vm0, %v5793_v11, %v5796_v59 }
 0x566   :  { %v2816_v29 = vmul.f32 %v2815_v38, %v2800_v37  ;;  %v2825_v2 = vxor.u32 2147483648, %v2808_v3  ;;  %v6651_v41 = vadd.s32 4294967294, %v4330_v40  ;;  %v5811_v37 = vsel %vm5809_vm2, %v5799_v58, 2102212464 }
 0x567   :  { %v5815_v50 = vsel %vm5809_vm2, %v5802_v52, 920167782  ;;  %v5810_v63 = vsel %vm5806_vm0, %v5790_v60, %v5793_v11  ;;  %v5812_v28 = vsel %vm5808_vm3, %v5796_v59, %v5811_v37  ;;  %v5818_v43 = vsel %vm5806_vm0, %v5796_v59, %v5799_v58 }
 0x568   :  { %v2822_v26 = vxor.u32 2147483648, %v2816_v29  ;;  %v2826_v9 = vsel %vm2824_vm10, %v2825_v2, %v2816_v29  ;;  %vm6652_vm4 = vcmp.lt.s32.totalorder %v6651_v41, 0  ;;  %v5816_v31 = vsel %vm5808_vm3, %v5799_v58, %v5815_v50 }
 0x569   :  { %v4333_v30 = vsel %vm6652_vm4, 0, %v6651_v41  ;;  %v5817_v16 = vsel %vm5807_vm1, %v5814_v36, %v5816_v31  ;;  %v5819_v46 = vsel %vm5809_vm2, %v5805_v61, 1326507024  ;;  %v4351_v5 = vsel %vm10259_vm13, 0, %v4349_v24 }
 0x56a   :  { %v2823_v19 = vsel %vm2821_vm11, %v2808_v3, %v2822_v26  ;;  %v4334_v25 = vsub.s32 32, %v4333_v30  ;;  %v4338_v15 = vsub.s32 4294967266, %v4333_v30  ;;  %v4335_v18 = vshll.u32 %v10242_v44, %v4333_v30 }
 0x56b   :  { %v2827_v62 = vsel %vm2820_vm12, %v2823_v19, %v2826_v9  ;;  %v5847_v11 = vand.u32 65535, %v5817_v16  ;;  %v10303_v44 = vsel %vm5807_vm1, %v5810_v63, %v5812_v28  ;;  %v5820_v17 = vsel %vm5808_vm3, %v5802_v52, %v5819_v46 }
 0x56c   :  { %v2828_v8 = vsel %vm2817_vm15, nan, %v2827_v62  ;;  %v4336_v20 = vshrl.u32 %v10225_v0, %v4334_v25  ;;  %v4339_v4 = vadd.s32 127, %v4338_v15  ;;  %v5848_v55 = vshrl.u32 %v5817_v16, 16 }
 0x56d   :  { %6556 = vst [vmem:[#allocation2 + $0x38] sm:$0xff] %v2828_v8  ;;  %v5821_v0 = vsel %vm5807_vm1, %v5818_v43, %v5820_v17  ;;  %vm3150_vm6 = vcmp.gt.s32.totalorder %v10240_v13, 0  ;;  %v5851_v40 = vmul.u32 %v5847_v11, %v10233_v42  ;;  %v10312_v57 = vadd.s32 3, %v4351_v5 }
 0x56e   :  { %v4337_v59 = vor.u32 %v4336_v20, %v4335_v18  ;;  %v4340_v3 = vshll.u32 %v4339_v4, 23  ;;  %v5825_v38 = vand.u32 65535, %v5821_v0  ;;  %v5826_v21 = vshrl.u32 %v5821_v0, 16 }
 0x56f   :  { %v5850_v49 = vmul.u32 %v5848_v55, %v10228_v6  ;;  %v5867_v52 = vmul.u32 %v10221_v22, %v10303_v44  ;;  %v10318_v29 = vand.u32 8388607, %v3139_v47  ;;  %v5849_v60 = vmul.u32 %v5847_v11, %v10228_v6 }
 0x570   :  { %v4341_v58 = vor.u32 4788187, %v4340_v3  ;;  %v5828_v7 = vmul.u32 %v5826_v21, %v10228_v6  ;;  %v5829_v2 = vmul.u32 %v5825_v38, %v10233_v42  ;;  %v3151_v41 = vsel %vm3150_vm6, %v10240_v13, 0 }
 0x571   :  { %v4344_v61 = vcvt.s32.f32 %v4337_v59  ;;  %v5852_v26 = vmul.u32 %v5848_v55, %v10233_v42  ;;  %v5853_v9 = vshll.u32 %v5850_v49, 16  ;;  %v5827_v37 = vmul.u32 %v5825_v38, %v10228_v6 }
 0x572   :  { %v4342_v24 = vand.u32 2147483647, %v4341_v58  ;;  %v5830_v36 = vmul.u32 %v5826_v21, %v10233_v42  ;;  %v5831_v50 = vshll.u32 %v5828_v7, 16  ;;  %v5855_v19 = vshll.u32 %v5851_v40, 16 }
 0x573   :  { %v5833_v63 = vshll.u32 %v5829_v2, 16  ;;  %vm5857_vm7 = vc.u32 %v5849_v60, %v5853_v9  ;;  %v5859_v31 = vadd.s32 %v5853_v9, %v5849_v60  ;;  %v3153_v13 = vand.u32 31, %v3151_v41 }
 0x574   :  { %v4345_v30 = vmul.f32 %v4344_v61, %v4342_v24  ;;  %vm5835_vm5 = vc.u32 %v5827_v37, %v5831_v50  ;;  %v5837_v62 = vadd.s32 %v5831_v50, %v5827_v37  ;;  %v5858_v25 = vsel %vm5857_vm7, 1, %v12096_v54 }
 0x575   :  { %v5836_v28 = vsel %vm5835_vm5, 1, %v12096_v54  ;;  %v5860_v8 = vadd.s32 %v5858_v25, %v5852_v26  ;;  %vm5861_vm8 = vc.u32 %v5859_v31, %v5855_v19  ;;  %v5854_v6 = vshrl.u32 %v5850_v49, 16 }
 0x576   :  { %v4346_v15 = vxor.u32 2147483648, %v4345_v30  ;;  %v5838_v18 = vadd.s32 %v5836_v28, %v5830_v36  ;;  %vm5839_vm10 = vc.u32 %v5837_v62, %v5833_v63  ;;  %v5862_v42 = vsel %vm5861_vm8, 1, %v12096_v54 }
 0x577   :  { %v5840_v43 = vsel %vm5839_vm10, 1, %v12096_v54  ;;  %v5864_v20 = vadd.s32 %v5862_v42, %v5860_v8  ;;  %v10333_v4 = vsub.s32 32, %v3153_v13  ;;  %v5832_v11 = vshrl.u32 %v5828_v7, 16 }
 0x578   :  { %v4347_v16 = vsel %vm4226_vm9, %v4346_v15, %v4345_v30  ;;  %v5842_v5 = vadd.s32 %v5840_v43, %v5838_v18  ;;  %v10338_v17 = vshrl.u32 %v3151_v41, 5  ;;  %v5834_v59 = vshrl.u32 %v5829_v2, 16 }
 0x579   :  { %v4350_v46 = vsel %vm10259_vm13, %v9995_v32, %v4347_v16  ;;  %v5856_v3 = vshrl.u32 %v5851_v40, 16  ;;  %v5865_v0 = vadd.s32 %v5864_v20, %v5854_v6  ;;  %v10340_v21 = vadd.s32 %v5859_v31, %v5855_v19 }
 0x57a   :  { %v4352_v55 = vmul.f32 %v4350_v46, %v4350_v46  ;;  %v5843_v38 = vadd.s32 %v5842_v5, %v5832_v11  ;;  %v3156_v49 = vshll.u32 %v12097_v45, %v3153_v13  ;;  %v3159_v58 = vshll.u32 %v12098_v56, %v3153_v13 }
 0x57b   :  { %v5866_v61 = vadd.s32 %v5865_v0, %v5856_v3  ;;  %v3157_v51 = vshrl.u32 %v12098_v56, %v10333_v4  ;;  %v3160_v2 = vshrl.u32 %v12099_v53, %v10333_v4  ;;  %v3163_v40 = vshrl.u32 %v12100_v34, %v10333_v4 }
 0x57c   :  { %v4353_v60 = vmul.f32 -0.001358992, %v4352_v55  ;;  %v4360_v24 = vmul.f32 -0.00019511016, %v4352_v55  ;;  %v10346_v7 = vadd.s32 %v5843_v38, %v5834_v59  ;;  %v3165_v41 = vshll.u32 %v12100_v34, %v3153_v13 }
 0x57d   :  { %v5870_v37 = vadd.s32 1, %v5866_v61  ;;  %v3166_v36 = vshrl.u32 %v12101_v27, %v10333_v4  ;;  %v3162_v50 = vshll.u32 %v12099_v53, %v3153_v13  ;;  %v3168_v19 = vshll.u32 %v12101_v27, %v3153_v13 }
 0x57e   :  { %v4354_v26 = vadd.f32 0.041655596, %v4353_v60  ;;  %v4361_v9 = vadd.f32 0.008332121, %v4360_v24  ;;  %vm5869_vm9 = vc.u32 %v10346_v7, %v10340_v21  ;;  %v3169_v30 = vshrl.u32 %v12102_v10, %v10333_v4 }
 0x57f   :  { %v5871_v62 = vsel %vm5869_vm9, %v5870_v37, %v5866_v61  ;;  %v3167_v25 = vor.u32 %v3166_v36, %v3165_v41  ;;  %v10364_v28 = vor.u32 %v3157_v51, %v3156_v49  ;;  %v10366_v8 = vor.u32 %v3160_v2, %v3159_v58 }
 0x580   :  { %v4355_v63 = vmul.f32 %v4354_v26, %v4352_v55  ;;  %v4362_v31 = vmul.f32 %v4361_v9, %v4352_v55  ;;  %v5872_v15 = vadd.s32 %v5871_v62, %v5867_v52  ;;  %v10368_v18 = vor.u32 %v3163_v40, %v3162_v50 }
 0x581   :  { %v3170_v13 = vor.u32 %v3169_v30, %v3168_v19  ;;  %v4369_v16 = vand.u32 3, %v10312_v57  ;;  %v3147_v20 = vor.u32 8388608, %v10318_v29  ;;  %vm3174_vm11 = vcmp.lt.s32.totalorder %v10338_v17, 4 }
 0x582   :  { %v4356_v6 = vadd.f32 -0.4999988, %v4355_v63  ;;  %v4363_v42 = vadd.f32 -0.16666654, %v4362_v31  ;;  %v5873_v43 = vadd.s32 536870912, %v5872_v15  ;;  %vm3171_vm12 = vcmp.lt.s32.totalorder %v10338_v17, 1 }
 0x583   :  { %v3180_v22 = vsel %vm3174_vm11, %v3167_v25, 920167782  ;;  %vm3173_vm14 = vcmp.lt.s32.totalorder %v10338_v17, 3  ;;  %v3179_v57 = vsel %vm3171_vm12, %v10364_v28, %v10366_v8  ;;  %v3183_v52 = vsel %vm3171_vm12, %v10366_v8, %v10368_v18 }
 0x584   :  { %v4357_v11 = vmul.f32 %v4356_v6, %v4352_v55  ;;  %v4364_v5 = vmul.f32 %v4363_v42, %v4352_v55  ;;  %v10376_v44 = vshrl.u32 %v5873_v43, 30  ;;  %v3181_v59 = vsel %vm3173_vm14, %v10368_v18, %v3180_v22 }
 0x585   :  { %v3184_v3 = vsel %vm3174_vm11, %v3170_v13, 1326507024  ;;  %vm3172_vm15 = vcmp.lt.s32.totalorder %v10338_v17, 2  ;;  %v10396_v49 = vshll.u32 %v3147_v20, 8  ;;  %vm4367_vm13 = vweird.f32 %v9995_v32 }
 0x586   :  { %v4358_v29 = vadd.f32 1.0, %v4357_v11  ;;  %v4365_v55 = vadd.f32 1.0, %v4364_v5  ;;  %v5875_v0 = vshll.u32 %v10376_v44, 30  ;;  %v3185_v38 = vsel %vm3173_vm14, %v3167_v25, %v3184_v3 }
 0x587   :  { %v3186_v24 = vsel %vm3172_vm15, %v3183_v52, %v3185_v38  ;;  %vm4370_vm0 = vcmp.lt.s32.totalorder %v4369_v16, 2  ;;  %vm4371_vm1 = vcmp.eq.s32.totalorder %v4369_v16, 0  ;;  %v3182_v51 = vsel %vm3172_vm15, %v3179_v57, %v3181_v59  ;;  %v1478_v38 = vpop.permute.xlu2 %1477 }
 0x588   :  { %v4366_v58 = vmul.f32 %v4365_v55, %v4350_v46  ;;  %v4375_v60 = vxor.u32 2147483648, %v4358_v29  ;;  %v5876_v61 = vsub.s32 %v5872_v15, %v5875_v0  ;;  %vm4374_vm3 = vcmp.eq.s32.totalorder %v4369_v16, 2 }
 0x589   :  { %v3189_v40 = vshrl.u32 %v10396_v49, 16  ;;  %v3190_v41 = vand.u32 65535, %v3186_v24  ;;  %v3188_v46 = vand.u32 65535, %v10396_v49  ;;  %v3191_v9 = vshrl.u32 %v3186_v24, 16 }
 0x58a   :  { %v4372_v2 = vxor.u32 2147483648, %v4366_v58  ;;  %vm5877_vm2 = vcmp.lt.s32.totalorder %v5876_v61, 0  ;;  %v5878_v26 = vsub.s32 0, %v5876_v61  ;;  %v4376_v36 = vsel %vm4374_vm3, %v4375_v60, %v4366_v58 }
 0x58b   :  { %v3194_v50 = vmul.u32 %v3190_v41, %v3189_v40  ;;  %v3212_v19 = vand.u32 65535, %v3182_v51  ;;  %v3193_v31 = vmul.u32 %v3191_v9, %v3188_v46  ;;  %v3213_v62 = vshrl.u32 %v3182_v51, 16 }
 0x58c   :  { %v4373_v37 = vsel %vm4371_vm1, %v4358_v29, %v4372_v2  ;;  %v5879_v63 = vsel %vm5877_vm2, %v5878_v26, %v5876_v61  ;;  %v3155_v6 = vshrl.u32 %v12097_v45, %v10333_v4  ;;  %v3192_v42 = vmul.u32 %v3190_v41, %v3188_v46 }
 0x58d   :  { %v4377_v30 = vsel %vm4370_vm0, %v4373_v37, %v4376_v36  ;;  %v5880_v15 = vclz %v5879_v63  ;;  %v3196_v13 = vshll.u32 %v3193_v31, 16  ;;  %v5868_v43 = vadd.s32 %v10340_v21, %v10346_v7 }
 0x58e   :  { %v4378_v25 = vsel %vm4367_vm13, nan, %v4377_v30  ;;  %v3195_v11 = vmul.u32 %v3191_v9, %v3189_v40  ;;  %v3198_v16 = vshll.u32 %v3194_v50, 16  ;;  %v3215_v22 = vmul.u32 %v3213_v62, %v3188_v46 }
 0x58f   :  { %6566 = vst [vmem:[#allocation2 + $0x88] sm:$0xff] %v4378_v25  ;;  %v6681_v20 = vadd.s32 4294967294, %v5880_v15  ;;  %vm3200_vm4 = vc.u32 %v3192_v42, %v3196_v13  ;;  %v3202_v5 = vadd.s32 %v3196_v13, %v3192_v42  ;;  %v3216_v57 = vmul.u32 %v3212_v19, %v3189_v40 }
 0x590   :  { %v3175_v32 = vsel %vm3171_vm12, %v3155_v6, %v10364_v28  ;;  %v3197_v52 = vshrl.u32 %v3193_v31, 16  ;;  %v3201_v4 = vsel %vm3200_vm4, 1, %v12096_v54  ;;  %v3218_v59 = vshll.u32 %v3215_v22, 16 }
 0x591   :  { %vm6682_vm6 = vcmp.lt.s32.totalorder %v6681_v20, 0  ;;  %v3203_v55 = vadd.s32 %v3201_v4, %v3195_v11  ;;  %vm3204_vm7 = vc.u32 %v3202_v5, %v3198_v16  ;;  %vm5776_vm5 = vcmp.lt.s32.totalorder %v10196_v48, 0 }
 0x592   :  { %v5883_v29 = vsel %vm6682_vm6, 0, %v6681_v20  ;;  %v3205_v3 = vsel %vm3204_vm7, 1, %v12096_v54  ;;  %v3214_v0 = vmul.u32 %v3212_v19, %v3188_v46  ;;  %v3217_v24 = vmul.u32 %v3213_v62, %v3189_v40  ;;  %v12139_v62 = vld [vmem:[#allocation62_spill] sm:$0xff] }
 0x593   :  { %v5884_v21 = vsub.s32 32, %v5883_v29  ;;  %v5888_v7 = vsub.s32 4294967266, %v5883_v29  ;;  %v5885_v58 = vshll.u32 %v5876_v61, %v5883_v29  ;;  %v3207_v60 = vadd.s32 %v3205_v3, %v3203_v55  ;;  %v1518_v61 = vpop.permute.xlu0 %1517 }
 0x594   :  { %v3220_v51 = vshll.u32 %v3216_v57, 16  ;;  %vm3222_vm8 = vc.u32 %v3214_v0, %v3218_v59  ;;  %v3224_v41 = vadd.s32 %v3218_v59, %v3214_v0  ;;  %v3176_v26 = vsel %vm3174_vm11, %v10368_v18, 2102212464 }
 0x595   :  { %v5886_v28 = vshrl.u32 %v5868_v43, %v5884_v21  ;;  %v5889_v2 = vadd.s32 127, %v5888_v7  ;;  %v3208_v9 = vadd.s32 %v3207_v60, %v3197_v52  ;;  %v3223_v37 = vsel %vm3222_vm8, 1, %v12096_v54  ;;  %v12140_v21 = vld [vmem:[#allocation40_spill] sm:$0xff] }
 0x596   :  { %v1545_v36 = vmul.f32 %v8261_v39, %v1478_v38  ;;  %v3225_v19 = vadd.s32 %v3223_v37, %v3217_v24  ;;  %vm3226_vm10 = vc.u32 %v3224_v41, %v3220_v51  ;;  %v5898_v40 = vsub.s32 4, %v10376_v44 }
 0x597   :  { %v5887_v30 = vor.u32 %v5886_v28, %v5885_v58  ;;  %v5890_v46 = vshll.u32 %v5889_v2, 23  ;;  %v3199_v63 = vshrl.u32 %v3194_v50, 16  ;;  %v3227_v31 = vsel %vm3226_vm10, 1, %v12096_v54 }
 0x598   :  { %v10426_v25 = vadd.f32 %v1545_v36, %v12139_v62  ;;  %v3177_v18 = vsel %vm3173_vm14, %v10366_v8, %v3176_v26  ;;  %v3219_v6 = vshrl.u32 %v3215_v22, 16  ;;  %v3229_v42 = vadd.s32 %v3227_v31, %v3225_v19 }
 0x599   :  { %v5891_v15 = vor.u32 4788187, %v5890_v46  ;;  %v3209_v13 = vadd.s32 %v3208_v9, %v3199_v63  ;;  %v3221_v43 = vshrl.u32 %v3216_v57, 16  ;;  %v1555_v11 = vmul.f32 %v8261_v39, %v1518_v61 }
 0x59a   :  { %v4689_v20 = vand.u32 2147483647, %v10426_v25  ;;  %v5894_v50 = vcvt.s32.f32 %v5887_v30  ;;  %v3230_v5 = vadd.s32 %v3229_v42, %v3219_v6  ;;  %v4692_v52 = vand.u32 2139095040, %v10426_v25 }
 0x59b   :  { %v5892_v16 = vand.u32 2147483647, %v5891_v15  ;;  %v5899_v4 = vsel %vm5776_vm5, %v5898_v40, %v10376_v44  ;;  %v3178_v8 = vsel %vm3172_vm15, %v3175_v32, %v3177_v18  ;;  %v3228_v22 = vadd.s32 %v3224_v41, %v3220_v51 }
 0x59c   :  { %v3231_v55 = vadd.s32 %v3230_v5, %v3221_v43  ;;  %v4693_v57 = vshrl.u32 %v4692_v52, 23  ;;  %v4696_v59 = vand.u32 8388607, %v4689_v20  ;;  %v10442_v7 = vadd.f32 %v1555_v11, %v12140_v21 }
 0x59d   :  { %v5895_v29 = vmul.f32 %v5894_v50, %v5892_v16  ;;  %vm3234_vm9 = vc.u32 %v3209_v13, %v3228_v22  ;;  %vm5775_vm11 = vcmp.le.f32.partialorder %v5774_v14, 0.7853982  ;;  %v3232_v17 = vmul.u32 %v10396_v49, %v3178_v8 }
 0x59e   :  { %v3235_v0 = vadd.s32 1, %v3231_v55  ;;  %v6659_v44 = vadd.s32 4294967169, %v4693_v57  ;;  %v5901_v38 = vsel %vm5775_vm11, 0, %v5899_v4  ;;  %v4697_v60 = vor.u32 8388608, %v4696_v59 }
 0x59f   :  { %v5896_v3 = vxor.u32 2147483648, %v5895_v29  ;;  %v6242_v2 = vand.u32 2139095040, %v10442_v7  ;;  %v5918_v26 = vadd.s32 3, %v5901_v38  ;;  %vm3141_vm14 = vcmp.lt.s32.totalorder %v10204_v33, 0 }
 0x5a0   :  { %v3236_v58 = vsel %vm3234_vm9, %v3235_v0, %v3231_v55  ;;  %v4699_v24 = vadd.s32 1, %v6659_v44  ;;  %v10451_v49 = vshll.u32 %v4697_v60, 8  ;;  %v10456_v31 = vadd.s32 %v3228_v22, %v3209_v13 }
 0x5a1   :  { %v5897_v32 = vsel %vm5776_vm5, %v5896_v3, %v5895_v29  ;;  %v3237_v28 = vadd.s32 %v3236_v58, %v3232_v17  ;;  %v6243_v19 = vshrl.u32 %v6242_v2, 23  ;;  %v10453_v63 = vand.u32 3, %v5918_v26 }
 0x5a2   :  { %v5900_v51 = vsel %vm5775_vm11, %v10196_v48, %v5897_v32  ;;  %vm4700_vm12 = vcmp.gt.s32.totalorder %v4699_v24, 0  ;;  %vm10460_vm15 = vcmp.le.f32.partialorder %v3139_v47, 0.7853982  ;;  %v10465_v43 = vand.u32 65535, %v10451_v49 }
 0x5a3   :  { %v5902_v41 = vmul.f32 %v5900_v51, %v5900_v51  ;;  %v3238_v14 = vadd.s32 536870912, %v3237_v28  ;;  %v4701_v9 = vsel %vm4700_vm12, %v4699_v24, 0  ;;  %v6239_v11 = vand.u32 2147483647, %v10442_v7 }
 0x5a4   :  { %v4703_v30 = vand.u32 31, %v4701_v9  ;;  %v10470_v13 = vshrl.u32 %v4701_v9, 5  ;;  %v10472_v5 = vadd.s32 4294967169, %v6243_v19  ;;  %vm5924_vm13 = vcmp.eq.s32.totalorder %v10453_v63, 2 }
 0x5a5   :  { %v5903_v37 = vmul.f32 -0.001358992, %v5902_v41  ;;  %v5910_v36 = vmul.f32 -0.00019511016, %v5902_v41  ;;  %v3239_v46 = vshrl.u32 %v3238_v14, 30  ;;  %vm5921_vm0 = vcmp.eq.s32.totalorder %v10453_v63, 0 }
 0x5a6   :  { %v4704_v15 = vsub.s32 32, %v4703_v30  ;;  %v4706_v47 = vshll.u32 %v12097_v45, %v4703_v30  ;;  %v4709_v8 = vshll.u32 %v12098_v56, %v4703_v30  ;;  %vm5920_vm3 = vcmp.lt.s32.totalorder %v10453_v63, 2 }
 0x5a7   :  { %v5904_v61 = vadd.f32 0.041655596, %v5903_v37  ;;  %v5911_v40 = vadd.f32 0.008332121, %v5910_v36  ;;  %v3240_v62 = vshll.u32 %v3239_v46, 30  ;;  %v3263_v50 = vsub.s32 4, %v3239_v46 }
 0x5a8   :  { %v4707_v29 = vshrl.u32 %v12098_v56, %v4704_v15  ;;  %v4713_v55 = vshrl.u32 %v12100_v34, %v4704_v15  ;;  %v4710_v21 = vshrl.u32 %v12099_v53, %v4704_v15  ;;  %v4712_v3 = vshll.u32 %v12099_v53, %v4703_v30 }
 0x5a9   :  { %v5905_v18 = vmul.f32 %v5904_v61, %v5902_v41  ;;  %v5912_v6 = vmul.f32 %v5911_v40, %v5902_v41  ;;  %v10468_v16 = vsub.s32 %v3237_v28, %v3240_v62  ;;  %vm5917_vm2 = vweird.f32 %v10196_v48 }
 0x5aa   :  { %v3264_v44 = vsel %vm3141_vm14, %v3263_v50, %v3239_v46  ;;  %v4715_v38 = vshll.u32 %v12100_v34, %v4703_v30  ;;  %v4716_v17 = vshrl.u32 %v12101_v27, %v4704_v15  ;;  %v4719_v24 = vshrl.u32 %v12102_v10, %v4704_v15 }
 0x5ab   :  { %v5906_v52 = vadd.f32 -0.4999988, %v5905_v18  ;;  %v5913_v4 = vadd.f32 -0.16666654, %v5912_v6  ;;  %vm3242_vm1 = vcmp.lt.s32.totalorder %v10468_v16, 0  ;;  %v3243_v22 = vsub.s32 0, %v10468_v16 }
 0x5ac   :  { %v4708_v28 = vor.u32 %v4707_v29, %v4706_v47  ;;  %v4714_v2 = vor.u32 %v4713_v55, %v4712_v3  ;;  %v4718_v26 = vshll.u32 %v12101_v27, %v4703_v30  ;;  %v4711_v36 = vor.u32 %v4710_v21, %v4709_v8 }
 0x5ad   :  { %v5907_v57 = vmul.f32 %v5906_v52, %v5902_v41  ;;  %v5914_v59 = vmul.f32 %v5913_v4, %v5902_v41  ;;  %v3244_v0 = vsel %vm3242_vm1, %v3243_v22, %v10468_v16  ;;  %v4717_v41 = vor.u32 %v4716_v17, %v4715_v38 }
 0x5ae   :  { %v3245_v60 = vclz %v3244_v0  ;;  %v3266_v46 = vsel %vm10460_vm15, 0, %v3264_v44  ;;  %v4705_v19 = vshrl.u32 %v12097_v45, %v4704_v15  ;;  %v4720_v61 = vor.u32 %v4719_v24, %v4718_v26 }
 0x5af   :  { %v5908_v32 = vadd.f32 1.0, %v5907_v57  ;;  %v5915_v58 = vadd.f32 1.0, %v5914_v59  ;;  %vm4721_vm4 = vcmp.lt.s32.totalorder %v10470_v13, 1  ;;  %vm4723_vm7 = vcmp.lt.s32.totalorder %v10470_v13, 3 }
 0x5b0   :  { %v6630_v37 = vadd.s32 4294967294, %v3245_v60  ;;  %vm4724_vm5 = vcmp.lt.s32.totalorder %v10470_v13, 4  ;;  %v4729_v52 = vsel %vm4721_vm4, %v4708_v28, %v4711_v36  ;;  %vm4722_vm8 = vcmp.lt.s32.totalorder %v10470_v13, 2 }
 0x5b1   :  { %v5916_v14 = vmul.f32 %v5915_v58, %v5900_v51  ;;  %v5925_v9 = vxor.u32 2147483648, %v5908_v32  ;;  %v4726_v62 = vsel %vm4724_vm5, %v4714_v2, 2102212464  ;;  %v4730_v18 = vsel %vm4724_vm5, %v4717_v41, 920167782 }
 0x5b2   :  { %vm6631_vm6 = vcmp.lt.s32.totalorder %v6630_v37, 0  ;;  %v4731_v8 = vsel %vm4723_vm7, %v4714_v2, %v4730_v18  ;;  %v4733_v57 = vsel %vm4721_vm4, %v4711_v36, %v4714_v2  ;;  %v4725_v63 = vsel %vm4721_vm4, %v4705_v19, %v4708_v28 }
 0x5b3   :  { %v5922_v40 = vxor.u32 2147483648, %v5916_v14  ;;  %v5926_v51 = vsel %vm5924_vm13, %v5925_v9, %v5916_v14  ;;  %v3248_v30 = vsel %vm6631_vm6, 0, %v6630_v37  ;;  %v4732_v59 = vsel %vm4722_vm8, %v4729_v52, %v4731_v8 }
 0x5b4   :  { %v3249_v6 = vsub.s32 32, %v3248_v30  ;;  %v3253_v50 = vsub.s32 4294967266, %v3248_v30  ;;  %v3250_v47 = vshll.u32 %v10468_v16, %v3248_v30  ;;  %v4727_v16 = vsel %vm4723_vm7, %v4711_v36, %v4726_v62 }
 0x5b5   :  { %v5923_v15 = vsel %vm5921_vm0, %v5908_v32, %v5922_v40  ;;  %v4734_v48 = vsel %vm4724_vm5, %v4720_v61, 1326507024  ;;  %v4762_v0 = vand.u32 65535, %v4732_v59  ;;  %v4739_v38 = vshrl.u32 %v10451_v49, 16 }
 0x5b6   :  { %v5927_v4 = vsel %vm5920_vm3, %v5923_v15, %v5926_v51  ;;  %v3251_v29 = vshrl.u32 %v10456_v31, %v3249_v6  ;;  %v3254_v55 = vadd.s32 127, %v3253_v50  ;;  %v4735_v31 = vsel %vm4723_vm7, %v4717_v41, %v4734_v48 }
 0x5b7   :  { %v5928_v22 = vsel %vm5917_vm2, nan, %v5927_v4  ;;  %v4736_v44 = vsel %vm4722_vm8, %v4733_v57, %v4735_v31  ;;  %v4763_v17 = vshrl.u32 %v4732_v59, 16  ;;  %v6249_v32 = vadd.s32 1, %v10472_v5 }
 0x5b8   :  { %6576 = vst [vmem:[#allocation2 + $0xd8] sm:$0xff] %v5928_v22  ;;  %v3252_v21 = vor.u32 %v3251_v29, %v3250_v47  ;;  %v3255_v3 = vshll.u32 %v3254_v55, 23  ;;  %v4740_v60 = vand.u32 65535, %v4736_v44  ;;  %v4741_v24 = vshrl.u32 %v4736_v44, 16 }
 0x5b9   :  { %v10536_v28 = vand.u32 8388607, %v6239_v11  ;;  %v3283_v2 = vadd.s32 3, %v3266_v46  ;;  %v10540_v41 = vsel %vm4722_vm8, %v4725_v63, %v4727_v16  ;;  %v4765_v26 = vmul.u32 %v4763_v17, %v10465_v43 }
 0x5ba   :  { %v3256_v58 = vor.u32 4788187, %v3255_v3  ;;  %v4766_v14 = vmul.u32 %v4762_v0, %v4739_v38  ;;  %v3259_v37 = vcvt.s32.f32 %v3252_v21  ;;  %v4743_v36 = vmul.u32 %v4741_v24, %v10465_v43 }
 0x5bb   :  { %v4744_v5 = vmul.u32 %v4740_v60, %v4739_v38  ;;  %v4764_v19 = vmul.u32 %v4762_v0, %v10465_v43  ;;  %v4767_v61 = vmul.u32 %v4763_v17, %v4739_v38  ;;  %v4768_v40 = vshll.u32 %v4765_v26, 16 }
 0x5bc   :  { %v3257_v9 = vand.u32 2147483647, %v3256_v58  ;;  %vm6250_vm10 = vcmp.gt.s32.totalorder %v6249_v32, 0  ;;  %v4742_v46 = vmul.u32 %v4740_v60, %v10465_v43  ;;  %v4745_v30 = vmul.u32 %v4741_v24, %v4739_v38 }
 0x5bd   :  { %v4746_v13 = vshll.u32 %v4743_v36, 16  ;;  %v4748_v62 = vshll.u32 %v4744_v5, 16  ;;  %v4770_v18 = vshll.u32 %v4766_v14, 16  ;;  %vm4772_vm9 = vc.u32 %v4764_v19, %v4768_v40 }
 0x5be   :  { %v3260_v51 = vmul.f32 %v3259_v37, %v3257_v9  ;;  %v4774_v15 = vadd.s32 %v4768_v40, %v4764_v19  ;;  %v4773_v52 = vsel %vm4772_vm9, 1, %v12096_v54  ;;  %v6251_v8 = vsel %vm6250_vm10, %v6249_v32, 0 }
 0x5bf   :  { %vm4750_vm11 = vc.u32 %v4742_v46, %v4746_v13  ;;  %v4752_v50 = vadd.s32 %v4746_v13, %v4742_v46  ;;  %v4775_v47 = vadd.s32 %v4773_v52, %v4767_v61  ;;  %v4769_v63 = vshrl.u32 %v4765_v26, 16 }
 0x5c0   :  { %v3261_v6 = vxor.u32 2147483648, %v3260_v51  ;;  %v4751_v4 = vsel %vm4750_vm11, 1, %v12096_v54  ;;  %vm4776_vm12 = vc.u32 %v4774_v15, %v4770_v18  ;;  %v4747_v48 = vshrl.u32 %v4743_v36, 16 }
 0x5c1   :  { %v4753_v22 = vadd.s32 %v4751_v4, %v4745_v30  ;;  %vm4754_vm13 = vc.u32 %v4752_v50, %v4748_v62  ;;  %v4777_v29 = vsel %vm4776_vm12, 1, %v12096_v54  ;;  %v6253_v3 = vand.u32 31, %v6251_v8 }
 0x5c2   :  { %v3262_v43 = vsel %vm3141_vm14, %v3261_v6, %v3260_v51  ;;  %v4755_v57 = vsel %vm4754_vm13, 1, %v12096_v54  ;;  %v4779_v16 = vadd.s32 %v4777_v29, %v4775_v47  ;;  %v4749_v31 = vshrl.u32 %v4744_v5, 16 }
 0x5c3   :  { %v3265_v55 = vsel %vm10460_vm15, %v10204_v33, %v3262_v43  ;;  %v4757_v21 = vadd.s32 %v4755_v57, %v4753_v22  ;;  %v4771_v0 = vshrl.u32 %v4766_v14, 16  ;;  %v6247_v38 = vor.u32 8388608, %v10536_v28 }
 0x5c4   :  { %v3267_v59 = vmul.f32 %v3265_v55, %v3265_v55  ;;  %v4780_v44 = vadd.s32 %v4779_v16, %v4769_v63  ;;  %v10557_v60 = vsub.s32 32, %v6253_v3  ;;  %v10559_v42 = vand.u32 3, %v3283_v2 }
 0x5c5   :  { %v4758_v58 = vadd.s32 %v4757_v21, %v4747_v48  ;;  %v10561_v24 = vadd.s32 %v4774_v15, %v4770_v18  ;;  %v4782_v9 = vmul.u32 %v10451_v49, %v10540_v41  ;;  %v6256_v14 = vshll.u32 %v12097_v45, %v6253_v3 }
 0x5c6   :  { %v3268_v17 = vmul.f32 -0.001358992, %v3267_v59  ;;  %v3275_v32 = vmul.f32 -0.00019511016, %v3267_v59  ;;  %v4781_v26 = vadd.s32 %v4780_v44, %v4771_v0  ;;  %v6257_v19 = vshrl.u32 %v12098_v56, %v10557_v60 }
 0x5c7   :  { %v10565_v5 = vadd.s32 %v4758_v58, %v4749_v31  ;;  %v6259_v61 = vshll.u32 %v12098_v56, %v6253_v3  ;;  %v6260_v2 = vshrl.u32 %v12099_v53, %v10557_v60  ;;  %v6263_v49 = vshrl.u32 %v12100_v34, %v10557_v60 }
 0x5c8   :  { %v3269_v37 = vadd.f32 0.041655596, %v3268_v17  ;;  %v3276_v36 = vadd.f32 0.008332121, %v3275_v32  ;;  %v4785_v28 = vadd.s32 1, %v4781_v26  ;;  %v10577_v46 = vshrl.u32 %v6251_v8, 5 }
 0x5c9   :  { %vm4784_vm14 = vc.u32 %v10565_v5, %v10561_v24  ;;  %v10579_v30 = vor.u32 %v6257_v19, %v6256_v14  ;;  %v6262_v13 = vshll.u32 %v12099_v53, %v6253_v3  ;;  %v10582_v6 = vor.u32 %v6260_v2, %v6259_v61 }
 0x5ca   :  { %v3270_v40 = vmul.f32 %v3269_v37, %v3267_v59  ;;  %v3277_v51 = vmul.f32 %v3276_v36, %v3267_v59  ;;  %v4786_v41 = vsel %vm4784_vm14, %v4785_v28, %v4781_v26  ;;  %v6265_v50 = vshll.u32 %v12100_v34, %v6253_v3 }
 0x5cb   :  { %v4787_v15 = vadd.s32 %v4786_v41, %v4782_v9  ;;  %v6266_v52 = vshrl.u32 %v12101_v27, %v10557_v60  ;;  %v6268_v4 = vshll.u32 %v12101_v27, %v6253_v3  ;;  %v6269_v47 = vshrl.u32 %v12102_v10, %v10557_v60 }
 0x5cc   :  { %v3271_v62 = vadd.f32 -0.4999988, %v3270_v40  ;;  %v3278_v18 = vadd.f32 -0.16666654, %v3277_v51  ;;  %v6264_v29 = vor.u32 %v6263_v49, %v6262_v13  ;;  %vm6271_vm15 = vcmp.lt.s32.totalorder %v10577_v46, 1 }
 0x5cd   :  { %v4788_v22 = vadd.s32 536870912, %v4787_v15  ;;  %v6267_v57 = vor.u32 %v6266_v52, %v6265_v50  ;;  %v6270_v63 = vor.u32 %v6269_v47, %v6268_v4  ;;  %v10591_v16 = vshll.u32 %v6247_v38, 8 }
 0x5ce   :  { %v3272_v8 = vmul.f32 %v3271_v62, %v3267_v59  ;;  %v3279_v43 = vmul.f32 %v3278_v18, %v3267_v59  ;;  %vm6274_vm0 = vcmp.lt.s32.totalorder %v10577_v46, 4  ;;  %vm6273_vm1 = vcmp.lt.s32.totalorder %v10577_v46, 3 }
 0x5cf   :  { %v10593_v31 = vshrl.u32 %v4788_v22, 30  ;;  %v6279_v59 = vsel %vm6271_vm15, %v10579_v30, %v10582_v6  ;;  %v6280_v3 = vsel %vm6274_vm0, %v6267_v57, 920167782  ;;  %v6284_v0 = vsel %vm6274_vm0, %v6270_v63, 1326507024 }
 0x5d0   :  { %v3273_v48 = vadd.f32 1.0, %v3272_v8  ;;  %v3280_v21 = vadd.f32 1.0, %v3279_v43  ;;  %v6283_v32 = vsel %vm6271_vm15, %v10582_v6, %v6264_v29  ;;  %vm3282_vm3 = vweird.f32 %v10204_v33 }
 0x5d1   :  { %v4790_v17 = vshll.u32 %v10593_v31, 30  ;;  %vm3285_vm2 = vcmp.lt.s32.totalorder %v10559_v42, 2  ;;  %v6281_v58 = vsel %vm6273_vm1, %v6264_v29, %v6280_v3  ;;  %v6285_v26 = vsel %vm6273_vm1, %v6267_v57, %v6284_v0 }
 0x5d2   :  { %v3281_v44 = vmul.f32 %v3280_v21, %v3265_v55  ;;  %v3290_v38 = vxor.u32 2147483648, %v3273_v48  ;;  %vm3286_vm4 = vcmp.eq.s32.totalorder %v10559_v42, 0  ;;  %vm6272_vm6 = vcmp.lt.s32.totalorder %v10577_v46, 2 }
 0x5d3   :  { %v4791_v9 = vsub.s32 %v4787_v15, %v4790_v17  ;;  %vm3289_vm7 = vcmp.eq.s32.totalorder %v10559_v42, 2  ;;  %v6282_v37 = vsel %vm6272_vm6, %v6279_v59, %v6281_v58  ;;  %v6286_v36 = vsel %vm6272_vm6, %v6283_v32, %v6285_v26  ;;  %v1450_v17 = vpop.permute.xlu1 %1449  ;;  %v1490_v26 = vpop.permute.xlu2 %1489 }
 0x5d4   :  { %v3287_v55 = vxor.u32 2147483648, %v3281_v44  ;;  %v6288_v14 = vand.u32 65535, %v10591_v16  ;;  %v3291_v19 = vsel %vm3289_vm7, %v3290_v38, %v3281_v44  ;;  %v6289_v40 = vshrl.u32 %v10591_v16, 16 }
 0x5d5   :  { %vm4792_vm5 = vcmp.lt.s32.totalorder %v4791_v9, 0  ;;  %v4793_v61 = vsub.s32 0, %v4791_v9  ;;  %v6290_v51 = vand.u32 65535, %v6286_v36  ;;  %v6291_v49 = vshrl.u32 %v6286_v36, 16 }
 0x5d6   :  { %v3288_v28 = vsel %vm3286_vm4, %v3273_v48, %v3287_v55  ;;  %v6312_v13 = vand.u32 65535, %v6282_v37  ;;  %v6313_v62 = vshrl.u32 %v6282_v37, 16  ;;  %v4783_v52 = vadd.s32 %v10561_v24, %v10565_v5 }
 0x5d7   :  { %v3292_v2 = vsel %vm3285_vm2, %v3288_v28, %v3291_v19  ;;  %v4794_v41 = vsel %vm4792_vm5, %v4793_v61, %v4791_v9  ;;  %v6293_v15 = vmul.u32 %v6291_v49, %v6288_v14  ;;  %v6294_v50 = vmul.u32 %v6290_v51, %v6289_v40 }
 0x5d8   :  { %v3293_v42 = vsel %vm3282_vm3, nan, %v3292_v2  ;;  %v4795_v18 = vclz %v4794_v41  ;;  %v6255_v4 = vshrl.u32 %v12097_v45, %v10557_v60  ;;  %v6276_v8 = vsel %vm6274_vm0, %v6264_v29, 2102212464 }
 0x5d9   :  { %6559 = vst [vmem:[#allocation2 + $0x50] sm:$0xff] %v3293_v42  ;;  %v6292_v43 = vmul.u32 %v6290_v51, %v6288_v14  ;;  %v6296_v33 = vshll.u32 %v6293_v15, 16  ;;  %v6295_v22 = vmul.u32 %v6291_v49, %v6289_v40  ;;  %v6297_v57 = vshrl.u32 %v6293_v15, 16 }
 0x5da   :  { %v6660_v47 = vadd.s32 4294967294, %v4795_v18  ;;  %v6315_v63 = vmul.u32 %v6313_v62, %v6288_v14  ;;  %v6316_v48 = vmul.u32 %v6312_v13, %v6289_v40  ;;  %v6298_v21 = vshll.u32 %v6294_v50, 16 }
 0x5db   :  { %vm6300_vm10 = vc.u32 %v6292_v43, %v6296_v33  ;;  %v6302_v59 = vadd.s32 %v6296_v33, %v6292_v43  ;;  %v6314_v5 = vmul.u32 %v6312_v13, %v6288_v14  ;;  %vm4691_vm9 = vcmp.lt.s32.totalorder %v10426_v25, 0  ;;  %v12143_v13 = vld [vmem:[#allocation79_spill] sm:$0xff] }
 0x5dc   :  { %vm6661_vm8 = vcmp.lt.s32.totalorder %v6660_v47, 0  ;;  %v6301_v24 = vsel %vm6300_vm10, 1, %v12096_v54  ;;  %v6318_v0 = vshll.u32 %v6315_v63, 16  ;;  %v6317_v38 = vmul.u32 %v6313_v62, %v6289_v40 }
 0x5dd   :  { %v4798_v3 = vsel %vm6661_vm8, 0, %v6660_v47  ;;  %v6303_v29 = vadd.s32 %v6301_v24, %v6295_v22  ;;  %vm6304_vm11 = vc.u32 %v6302_v59, %v6298_v21  ;;  %v6320_v58 = vshll.u32 %v6316_v48, 16 }
 0x5de   :  { %v4799_v60 = vsub.s32 32, %v4798_v3  ;;  %v4803_v44 = vsub.s32 4294967266, %v4798_v3  ;;  %v4800_v32 = vshll.u32 %v4791_v9, %v4798_v3  ;;  %vm6322_vm12 = vc.u32 %v6314_v5, %v6318_v0 }
 0x5df   :  { %v6305_v36 = vsel %vm6304_vm11, 1, %v12096_v54  ;;  %v6323_v28 = vsel %vm6322_vm12, 1, %v12096_v54  ;;  %v6324_v19 = vadd.s32 %v6318_v0, %v6314_v5  ;;  %v1538_v2 = vmul.f32 %v8261_v39, %v1450_v17 }
 0x5e0   :  { %v4801_v55 = vshrl.u32 %v4783_v52, %v4799_v60  ;;  %v4804_v37 = vadd.s32 127, %v4803_v44  ;;  %v6307_v14 = vadd.s32 %v6305_v36, %v6303_v29  ;;  %v6325_v61 = vadd.s32 %v6323_v28, %v6317_v38 }
 0x5e1   :  { %v6275_v9 = vsel %vm6271_vm15, %v6255_v4, %v10579_v30  ;;  %v1548_v40 = vmul.f32 %v8261_v39, %v1490_v26  ;;  %v4813_v42 = vsub.s32 4, %v10593_v31  ;;  %vm6326_vm13 = vc.u32 %v6324_v19, %v6320_v58  ;;  %v12144_v4 = vld [vmem:[#allocation80_spill] sm:$0xff] }
 0x5e2   :  { %v4802_v51 = vor.u32 %v4801_v55, %v4800_v32  ;;  %v4805_v49 = vshll.u32 %v4804_v37, 23  ;;  %v6308_v41 = vadd.s32 %v6307_v14, %v6297_v57  ;;  %v10643_v62 = vadd.f32 %v1538_v2, %v12143_v13 }
 0x5e3   :  { %v6277_v15 = vsel %vm6273_vm1, %v10582_v6, %v6276_v8  ;;  %v6299_v52 = vshrl.u32 %v6294_v50, 16  ;;  %v6327_v47 = vsel %vm6326_vm13, 1, %v12096_v54  ;;  %v6319_v43 = vshrl.u32 %v6315_v63, 16 }
 0x5e4   :  { %v4806_v18 = vor.u32 4788187, %v4805_v49  ;;  %v6329_v33 = vadd.s32 %v6327_v47, %v6325_v61  ;;  %v3604_v30 = vand.u32 2147483647, %v10643_v62  ;;  %v10651_v22 = vadd.f32 %v1548_v40, %v12144_v4 }
 0x5e5   :  { %v4809_v21 = vcvt.s32.f32 %v4802_v51  ;;  %v6309_v59 = vadd.s32 %v6308_v41, %v6299_v52  ;;  %v3607_v3 = vand.u32 2139095040, %v10643_v62  ;;  %v4814_v24 = vsel %vm4691_vm9, %v4813_v42, %v10593_v31 }
 0x5e6   :  { %v4807_v57 = vand.u32 2147483647, %v4806_v18  ;;  %v6321_v6 = vshrl.u32 %v6316_v48, 16  ;;  %v6330_v50 = vadd.s32 %v6329_v33, %v6319_v43  ;;  %v6328_v5 = vadd.s32 %v6324_v19, %v6320_v58 }
 0x5e7   :  { %v3608_v63 = vshrl.u32 %v3607_v3, 23  ;;  %v3611_v0 = vand.u32 8388607, %v3604_v30  ;;  %vm4690_vm14 = vcmp.le.f32.partialorder %v4689_v20, 0.7853982  ;;  %v6278_v60 = vsel %vm6272_vm6, %v6275_v9, %v6277_v15 }
 0x5e8   :  { %v4810_v8 = vmul.f32 %v4809_v21, %v4807_v57  ;;  %v6331_v44 = vadd.s32 %v6330_v50, %v6321_v6  ;;  %v5157_v29 = vand.u32 2139095040, %v10651_v22  ;;  %v4816_v17 = vsel %vm4690_vm14, 0, %v4814_v24 }
 0x5e9   :  { %vm6334_vm15 = vc.u32 %v6309_v59, %v6328_v5  ;;  %v6638_v31 = vadd.s32 4294967169, %v3608_v63  ;;  %v3612_v32 = vor.u32 8388608, %v3611_v0  ;;  %v6332_v26 = vmul.u32 %v10591_v16, %v6278_v60 }
 0x5ea   :  { %v4811_v38 = vxor.u32 2147483648, %v4810_v8  ;;  %v6335_v48 = vadd.s32 1, %v6331_v44  ;;  %v4833_v37 = vadd.s32 3, %v4816_v17  ;;  %v5158_v36 = vshrl.u32 %v5157_v29, 23 }
 0x5eb   :  { %v3614_v55 = vadd.s32 1, %v6638_v31  ;;  %v10668_v61 = vshll.u32 %v3612_v32, 8  ;;  %v10672_v18 = vadd.s32 %v6328_v5, %v6309_v59  ;;  %v5154_v47 = vand.u32 2147483647, %v10651_v22 }
 0x5ec   :  { %v4812_v58 = vsel %vm4691_vm9, %v4811_v38, %v4810_v8  ;;  %v6336_v46 = vsel %vm6334_vm15, %v6335_v48, %v6331_v44  ;;  %v10670_v9 = vand.u32 3, %v4833_v37  ;;  %v6668_v42 = vadd.s32 4294967169, %v5158_v36 }
 0x5ed   :  { %v4815_v20 = vsel %vm4690_vm14, %v10426_v25, %v4812_v58  ;;  %v6337_v14 = vadd.s32 %v6336_v46, %v6332_v26  ;;  %vm3615_vm0 = vcmp.gt.s32.totalorder %v3614_v55, 0  ;;  %v10675_v52 = vand.u32 65535, %v10668_v61 }
 0x5ee   :  { %v4817_v28 = vmul.f32 %v4815_v20, %v4815_v20  ;;  %v3616_v19 = vsel %vm3615_vm0, %v3614_v55, 0  ;;  %vm6241_vm1 = vcmp.lt.s32.totalorder %v10442_v7, 0  ;;  %v10680_v57 = vshrl.u32 %v10668_v61, 16 }
 0x5ef   :  { %v6338_v49 = vadd.s32 536870912, %v6337_v14  ;;  %v3618_v40 = vand.u32 31, %v3616_v19  ;;  %vm4839_vm3 = vcmp.eq.s32.totalorder %v10670_v9, 2  ;;  %v10683_v21 = vshrl.u32 %v3616_v19, 5 }
 0x5f0   :  { %v4818_v2 = vmul.f32 -0.001358992, %v4817_v28  ;;  %v4825_v51 = vmul.f32 -0.00019511016, %v4817_v28  ;;  %v10687_v24 = vadd.s32 1, %v6668_v42  ;;  %vm4836_vm2 = vcmp.eq.s32.totalorder %v10670_v9, 0 }
 0x5f1   :  { %v6339_v13 = vshrl.u32 %v6338_v49, 30  ;;  %v3619_v15 = vsub.s32 32, %v3618_v40  ;;  %v3621_v5 = vshll.u32 %v12097_v45, %v3618_v40  ;;  %v3624_v0 = vshll.u32 %v12098_v56, %v3618_v40 }
 0x5f2   :  { %v4819_v16 = vadd.f32 0.041655596, %v4818_v2  ;;  %v4826_v41 = vadd.f32 0.008332121, %v4825_v51  ;;  %v3627_v60 = vshll.u32 %v12099_v53, %v3618_v40  ;;  %vm4835_vm4 = vcmp.lt.s32.totalorder %v10670_v9, 2 }
 0x5f3   :  { %v6340_v4 = vshll.u32 %v6339_v13, 30  ;;  %v3622_v59 = vshrl.u32 %v12098_v56, %v3619_v15  ;;  %v3625_v3 = vshrl.u32 %v12099_v53, %v3619_v15  ;;  %v6363_v63 = vsub.s32 4, %v6339_v13 }
 0x5f4   :  { %v4820_v43 = vmul.f32 %v4819_v16, %v4817_v28  ;;  %v4827_v33 = vmul.f32 %v4826_v41, %v4817_v28  ;;  %v3628_v44 = vshrl.u32 %v12100_v34, %v3619_v15  ;;  %vm4832_vm7 = vweird.f32 %v10426_v25 }
 0x5f5   :  { %v10689_v8 = vsub.s32 %v6337_v14, %v6340_v4  ;;  %v3623_v31 = vor.u32 %v3622_v59, %v3621_v5  ;;  %v3626_v48 = vor.u32 %v3625_v3, %v3624_v0  ;;  %v3630_v32 = vshll.u32 %v12100_v34, %v3618_v40 }
 0x5f6   :  { %v4821_v6 = vadd.f32 -0.4999988, %v4820_v43  ;;  %v4828_v50 = vadd.f32 -0.16666654, %v4827_v33  ;;  %v3631_v58 = vshrl.u32 %v12101_v27, %v3619_v15  ;;  %v3634_v46 = vshrl.u32 %v12102_v10, %v3619_v15 }
 0x5f7   :  { %vm6342_vm6 = vcmp.lt.s32.totalorder %v10689_v8, 0  ;;  %v6343_v17 = vsub.s32 0, %v10689_v8  ;;  %vm10706_vm5 = vcmp.le.f32.partialorder %v6239_v11, 0.7853982  ;;  %v3629_v14 = vor.u32 %v3628_v44, %v3627_v60 }
 0x5f8   :  { %v4822_v29 = vmul.f32 %v4821_v6, %v4817_v28  ;;  %v4829_v38 = vmul.f32 %v4828_v50, %v4817_v28  ;;  %v3632_v19 = vor.u32 %v3631_v58, %v3630_v32  ;;  %v3633_v2 = vshll.u32 %v12101_v27, %v3618_v40 }
 0x5f9   :  { %v6344_v37 = vsel %vm6342_vm6, %v6343_v17, %v10689_v8  ;;  %v3620_v42 = vshrl.u32 %v12097_v45, %v3619_v15  ;;  %vm3636_vm8 = vcmp.lt.s32.totalorder %v10683_v21, 1  ;;  %v6364_v41 = vsel %vm6241_vm1, %v6363_v63, %v6339_v13 }
 0x5fa   :  { %v4823_v26 = vadd.f32 1.0, %v4822_v29  ;;  %v4830_v55 = vadd.f32 1.0, %v4829_v38  ;;  %v6345_v28 = vclz %v6344_v37  ;;  %v3635_v43 = vor.u32 %v3634_v46, %v3633_v2 }
 0x5fb   :  { %vm3637_vm10 = vcmp.lt.s32.totalorder %v10683_v21, 2  ;;  %vm3638_vm9 = vcmp.lt.s32.totalorder %v10683_v21, 3  ;;  %vm3639_vm11 = vcmp.lt.s32.totalorder %v10683_v21, 4  ;;  %v3644_v40 = vsel %vm3636_vm8, %v3623_v31, %v3626_v48 }
 0x5fc   :  { %v4831_v51 = vmul.f32 %v4830_v55, %v4815_v20  ;;  %v4840_v49 = vxor.u32 2147483648, %v4823_v26  ;;  %v6690_v16 = vadd.s32 4294967294, %v6345_v28  ;;  %v3641_v20 = vsel %vm3639_vm11, %v3629_v14, 2102212464 }
 0x5fd   :  { %v3645_v13 = vsel %vm3639_vm11, %v3632_v19, 920167782  ;;  %v3640_v59 = vsel %vm3636_vm8, %v3620_v42, %v3623_v31  ;;  %v3642_v63 = vsel %vm3638_vm9, %v3626_v48, %v3641_v20  ;;  %v3648_v29 = vsel %vm3636_vm8, %v3626_v48, %v3629_v14 }
 0x5fe   :  { %v4837_v11 = vxor.u32 2147483648, %v4831_v51  ;;  %v4841_v33 = vsel %vm4839_vm3, %v4840_v49, %v4831_v51  ;;  %vm6691_vm12 = vcmp.lt.s32.totalorder %v6690_v16, 0  ;;  %v3646_v3 = vsel %vm3638_vm9, %v3629_v14, %v3645_v13 }
 0x5ff   :  { %v6348_v4 = vsel %vm6691_vm12, 0, %v6690_v16  ;;  %v3647_v44 = vsel %vm3637_vm10, %v3644_v40, %v3646_v3  ;;  %v3649_v17 = vsel %vm3639_vm11, %v3635_v43, 1326507024  ;;  %v6366_v25 = vsel %vm10706_vm5, 0, %v6364_v41 }
 0x600   :  { %v4838_v15 = vsel %vm4836_vm2, %v4823_v26, %v4837_v11  ;;  %v6349_v50 = vsub.s32 32, %v6348_v4  ;;  %v6353_v5 = vsub.s32 4294967266, %v6348_v4  ;;  %v6350_v60 = vshll.u32 %v10689_v8, %v6348_v4 }
 0x601   :  { %v4842_v6 = vsel %vm4835_vm4, %v4838_v15, %v4841_v33  ;;  %v3677_v31 = vand.u32 65535, %v3647_v44  ;;  %v10750_v8 = vsel %vm3637_vm10, %v3640_v59, %v3642_v63  ;;  %v3650_v32 = vsel %vm3638_vm9, %v3632_v19, %v3649_v17 }
 0x602   :  { %v4843_v0 = vsel %vm4832_vm7, nan, %v4842_v6  ;;  %v6351_v9 = vshrl.u32 %v10672_v18, %v6349_v50  ;;  %v6354_v38 = vadd.s32 127, %v6353_v5  ;;  %v3678_v58 = vshrl.u32 %v3647_v44, 16 }
 0x603   :  { %6569 = vst [vmem:[#allocation2 + $0xa0] sm:$0xff] %v4843_v0  ;;  %v3651_v18 = vsel %vm3637_vm10, %v3648_v29, %v3650_v32  ;;  %vm5165_vm13 = vcmp.gt.s32.totalorder %v10687_v24, 0  ;;  %v3681_v28 = vmul.u32 %v3677_v31, %v10680_v57  ;;  %v10759_v2 = vadd.s32 3, %v6366_v25 }
 0x604   :  { %v6352_v48 = vor.u32 %v6351_v9, %v6350_v60  ;;  %v6355_v26 = vshll.u32 %v6354_v38, 23  ;;  %v3655_v55 = vand.u32 65535, %v3651_v18  ;;  %v3656_v37 = vshrl.u32 %v3651_v18, 16 }
 0x605   :  { %v3680_v46 = vmul.u32 %v3678_v58, %v10675_v52  ;;  %v3697_v19 = vmul.u32 %v10668_v61, %v10750_v8  ;;  %v10765_v51 = vand.u32 8388607, %v5154_v47  ;;  %v3679_v42 = vmul.u32 %v3677_v31, %v10675_v52 }
 0x606   :  { %v6356_v14 = vor.u32 4788187, %v6355_v26  ;;  %v3658_v21 = vmul.u32 %v3656_v37, %v10675_v52  ;;  %v3659_v49 = vmul.u32 %v3655_v55, %v10680_v57  ;;  %v5166_v16 = vsel %vm5165_vm13, %v10687_v24, 0 }
 0x607   :  { %v6359_v43 = vcvt.s32.f32 %v6352_v48  ;;  %v3682_v11 = vmul.u32 %v3678_v58, %v10680_v57  ;;  %v3683_v33 = vshll.u32 %v3680_v46, 16  ;;  %v3657_v20 = vmul.u32 %v3655_v55, %v10675_v52 }
 0x608   :  { %v6357_v41 = vand.u32 2147483647, %v6356_v14  ;;  %v3660_v40 = vmul.u32 %v3656_v37, %v10680_v57  ;;  %v3661_v13 = vshll.u32 %v3658_v21, 16  ;;  %v3685_v15 = vshll.u32 %v3681_v28, 16 }
 0x609   :  { %v3663_v59 = vshll.u32 %v3659_v49, 16  ;;  %vm3687_vm14 = vc.u32 %v3679_v42, %v3683_v33  ;;  %v3689_v3 = vadd.s32 %v3683_v33, %v3679_v42  ;;  %v5168_v24 = vand.u32 31, %v5166_v16 }
 0x60a   :  { %v6360_v4 = vmul.f32 %v6359_v43, %v6357_v41  ;;  %vm3665_vm15 = vc.u32 %v3657_v20, %v3661_v13  ;;  %v3667_v6 = vadd.s32 %v3661_v13, %v3657_v20  ;;  %v3688_v50 = vsel %vm3687_vm14, 1, %v12096_v54 }
 0x60b   :  { %v3666_v63 = vsel %vm3665_vm15, 1, %v12096_v54  ;;  %v3690_v0 = vadd.s32 %v3688_v50, %v3682_v11  ;;  %vm3691_vm0 = vc.u32 %v3689_v3, %v3685_v15  ;;  %v3684_v52 = vshrl.u32 %v3680_v46, 16 }
 0x60c   :  { %v6361_v5 = vxor.u32 2147483648, %v6360_v4  ;;  %v3668_v60 = vadd.s32 %v3666_v63, %v3660_v40  ;;  %vm3669_vm3 = vc.u32 %v3667_v6, %v3663_v59  ;;  %v3692_v57 = vsel %vm3691_vm0, 1, %v12096_v54 }
 0x60d   :  { %v3670_v29 = vsel %vm3669_vm3, 1, %v12096_v54  ;;  %v3694_v9 = vadd.s32 %v3692_v57, %v3690_v0  ;;  %v10780_v38 = vsub.s32 32, %v5168_v24  ;;  %v3662_v31 = vshrl.u32 %v3658_v21, 16 }
 0x60e   :  { %v6362_v44 = vsel %vm6241_vm1, %v6361_v5, %v6360_v4  ;;  %v3672_v25 = vadd.s32 %v3670_v29, %v3668_v60  ;;  %v10785_v32 = vshrl.u32 %v5166_v16, 5  ;;  %v3664_v48 = vshrl.u32 %v3659_v49, 16 }
 0x60f   :  { %v6365_v17 = vsel %vm10706_vm5, %v10442_v7, %v6362_v44  ;;  %v3686_v26 = vshrl.u32 %v3681_v28, 16  ;;  %v3695_v18 = vadd.s32 %v3694_v9, %v3684_v52  ;;  %v10787_v37 = vadd.s32 %v3689_v3, %v3685_v15 }
 0x610   :  { %v6367_v58 = vmul.f32 %v6365_v17, %v6365_v17  ;;  %v3673_v55 = vadd.s32 %v3672_v25, %v3662_v31  ;;  %v5171_v46 = vshll.u32 %v12097_v45, %v5168_v24  ;;  %v5174_v14 = vshll.u32 %v12098_v56, %v5168_v24 }
 0x611   :  { %v3696_v43 = vadd.s32 %v3695_v18, %v3686_v26  ;;  %v5172_v36 = vshrl.u32 %v12098_v56, %v10780_v38  ;;  %v5175_v49 = vshrl.u32 %v12099_v53, %v10780_v38  ;;  %v5178_v28 = vshrl.u32 %v12100_v34, %v10780_v38 }
 0x612   :  { %v6368_v42 = vmul.f32 -0.001358992, %v6367_v58  ;;  %v6375_v41 = vmul.f32 -0.00019511016, %v6367_v58  ;;  %v10793_v21 = vadd.s32 %v3673_v55, %v3664_v48  ;;  %v5180_v16 = vshll.u32 %v12100_v34, %v5168_v24 }
 0x613   :  { %v3700_v20 = vadd.s32 1, %v3696_v43  ;;  %v5181_v40 = vshrl.u32 %v12101_v27, %v10780_v38  ;;  %v5177_v13 = vshll.u32 %v12099_v53, %v5168_v24  ;;  %v5183_v15 = vshll.u32 %v12101_v27, %v5168_v24 }
 0x614   :  { %v6369_v11 = vadd.f32 0.041655596, %v6368_v42  ;;  %v6376_v33 = vadd.f32 0.008332121, %v6375_v41  ;;  %vm3699_vm1 = vc.u32 %v10793_v21, %v10787_v37  ;;  %v5184_v4 = vshrl.u32 %v12102_v10, %v10780_v38 }
 0x615   :  { %v3701_v6 = vsel %vm3699_vm1, %v3700_v20, %v3696_v43  ;;  %v5182_v50 = vor.u32 %v5181_v40, %v5180_v16  ;;  %v10811_v63 = vor.u32 %v5172_v36, %v5171_v46  ;;  %v10813_v0 = vor.u32 %v5175_v49, %v5174_v14 }
 0x616   :  { %v6370_v59 = vmul.f32 %v6369_v11, %v6367_v58  ;;  %v6377_v3 = vmul.f32 %v6376_v33, %v6367_v58  ;;  %v3702_v5 = vadd.s32 %v3701_v6, %v3697_v19  ;;  %v10815_v60 = vor.u32 %v5178_v28, %v5177_v13 }
 0x617   :  { %v5185_v24 = vor.u32 %v5184_v4, %v5183_v15  ;;  %v6384_v44 = vand.u32 3, %v10759_v2  ;;  %v5162_v9 = vor.u32 8388608, %v10765_v51  ;;  %vm5189_vm2 = vcmp.lt.s32.totalorder %v10785_v32, 4 }
 0x618   :  { %v6371_v52 = vadd.f32 -0.4999988, %v6370_v59  ;;  %v6378_v57 = vadd.f32 -0.16666654, %v6377_v3  ;;  %v3703_v29 = vadd.s32 536870912, %v3702_v5  ;;  %vm5186_vm4 = vcmp.lt.s32.totalorder %v10785_v32, 1 }
 0x619   :  { %v5195_v61 = vsel %vm5189_vm2, %v5182_v50, 920167782  ;;  %vm5188_vm6 = vcmp.lt.s32.totalorder %v10785_v32, 3  ;;  %v5194_v2 = vsel %vm5186_vm4, %v10811_v63, %v10813_v0  ;;  %v5198_v19 = vsel %vm5186_vm4, %v10813_v0, %v10815_v60 }
 0x61a   :  { %v6372_v31 = vmul.f32 %v6371_v52, %v6367_v58  ;;  %v6379_v25 = vmul.f32 %v6378_v57, %v6367_v58  ;;  %v10823_v8 = vshrl.u32 %v3703_v29, 30  ;;  %v5196_v48 = vsel %vm5188_vm6, %v10815_v60, %v5195_v61 }
 0x61b   :  { %v5199_v26 = vsel %vm5189_vm2, %v5185_v24, 1326507024  ;;  %vm5187_vm7 = vcmp.lt.s32.totalorder %v10785_v32, 2  ;;  %v10843_v46 = vshll.u32 %v5162_v9, 8  ;;  %vm6382_vm5 = vweird.f32 %v10442_v7 }
 0x61c   :  { %v6373_v51 = vadd.f32 1.0, %v6372_v31  ;;  %v6380_v58 = vadd.f32 1.0, %v6379_v25  ;;  %v3705_v18 = vshll.u32 %v10823_v8, 30  ;;  %v5200_v55 = vsel %vm5188_vm6, %v5182_v50, %v5199_v26 }
 0x61d   :  { %v5201_v41 = vsel %vm5187_vm7, %v5198_v19, %v5200_v55  ;;  %vm6385_vm8 = vcmp.lt.s32.totalorder %v6384_v44, 2  ;;  %vm6386_vm10 = vcmp.eq.s32.totalorder %v6384_v44, 0  ;;  %v5197_v36 = vsel %vm5187_vm7, %v5194_v2, %v5196_v48  ;;  %v1462_v55 = vpop.permute.xlu1 %1461 }
 0x61e   :  { %v6381_v14 = vmul.f32 %v6380_v58, %v6365_v17  ;;  %v6390_v42 = vxor.u32 2147483648, %v6373_v51  ;;  %v3706_v43 = vsub.s32 %v3702_v5, %v3705_v18  ;;  %vm6389_vm9 = vcmp.eq.s32.totalorder %v6384_v44, 2 }
 0x61f   :  { %v5204_v28 = vshrl.u32 %v10843_v46, 16  ;;  %v5205_v16 = vand.u32 65535, %v5201_v41  ;;  %v5203_v17 = vand.u32 65535, %v10843_v46  ;;  %v5206_v33 = vshrl.u32 %v5201_v41, 16 }
 0x620   :  { %v6387_v49 = vxor.u32 2147483648, %v6381_v14  ;;  %vm3707_vm11 = vcmp.lt.s32.totalorder %v3706_v43, 0  ;;  %v3708_v11 = vsub.s32 0, %v3706_v43  ;;  %v6391_v40 = vsel %vm6389_vm9, %v6390_v42, %v6381_v14 }
 0x621   :  { %v5209_v13 = vmul.u32 %v5205_v16, %v5204_v28  ;;  %v5227_v15 = vand.u32 65535, %v5197_v36  ;;  %v5208_v3 = vmul.u32 %v5206_v33, %v5203_v17  ;;  %v5228_v6 = vshrl.u32 %v5197_v36, 16 }
 0x622   :  { %v6388_v20 = vsel %vm6386_vm10, %v6373_v51, %v6387_v49  ;;  %v3709_v59 = vsel %vm3707_vm11, %v3708_v11, %v3706_v43  ;;  %v5170_v52 = vshrl.u32 %v12097_v45, %v10780_v38  ;;  %v5207_v57 = vmul.u32 %v5205_v16, %v5203_v17 }
 0x623   :  { %v6392_v4 = vsel %vm6385_vm8, %v6388_v20, %v6391_v40  ;;  %v3710_v5 = vclz %v3709_v59  ;;  %v5211_v24 = vshll.u32 %v5208_v3, 16  ;;  %v3698_v29 = vadd.s32 %v10787_v37, %v10793_v21 }
 0x624   :  { %v6393_v50 = vsel %vm6382_vm5, nan, %v6392_v4  ;;  %v5210_v31 = vmul.u32 %v5206_v33, %v5204_v28  ;;  %v5213_v44 = vshll.u32 %v5209_v13, 16  ;;  %v5230_v61 = vmul.u32 %v5228_v6, %v5203_v17 }
 0x625   :  { %6579 = vst [vmem:[#allocation2 + $0xf0] sm:$0xff] %v6393_v50  ;;  %v6639_v9 = vadd.s32 4294967294, %v3710_v5  ;;  %vm5215_vm12 = vc.u32 %v5207_v57, %v5211_v24  ;;  %v5217_v25 = vadd.s32 %v5211_v24, %v5207_v57  ;;  %v5231_v2 = vmul.u32 %v5227_v15, %v5204_v28 }
 0x626   :  { %v5190_v7 = vsel %vm5186_vm4, %v5170_v52, %v10811_v63  ;;  %v5212_v19 = vshrl.u32 %v5208_v3, 16  ;;  %v5216_v38 = vsel %vm5215_vm12, 1, %v12096_v54  ;;  %v5233_v48 = vshll.u32 %v5230_v61, 16 }
 0x627   :  { %vm6640_vm13 = vcmp.lt.s32.totalorder %v6639_v9, 0  ;;  %v5218_v58 = vadd.s32 %v5216_v38, %v5210_v31  ;;  %vm5219_vm14 = vc.u32 %v5217_v25, %v5213_v44  ;;  %vm3606_vm15 = vcmp.lt.s32.totalorder %v10643_v62, 0 }
 0x628   :  { %v3713_v51 = vsel %vm6640_vm13, 0, %v6639_v9  ;;  %v5220_v26 = vsel %vm5219_vm14, 1, %v12096_v54  ;;  %v5229_v18 = vmul.u32 %v5227_v15, %v5203_v17  ;;  %v5232_v41 = vmul.u32 %v5228_v6, %v5204_v28  ;;  %v12147_v6 = vld [vmem:[#allocation86_spill] sm:$0xff] }
 0x629   :  { %v3714_v37 = vsub.s32 32, %v3713_v51  ;;  %v3718_v21 = vsub.s32 4294967266, %v3713_v51  ;;  %v3715_v14 = vshll.u32 %v3706_v43, %v3713_v51  ;;  %v5222_v42 = vadd.s32 %v5220_v26, %v5218_v58  ;;  %v1502_v43 = vpop.permute.xlu2 %1501 }
 0x62a   :  { %v5235_v36 = vshll.u32 %v5231_v2, 16  ;;  %vm5237_vm0 = vc.u32 %v5229_v18, %v5233_v48  ;;  %v5239_v16 = vadd.s32 %v5233_v48, %v5229_v18  ;;  %v5191_v11 = vsel %vm5189_vm2, %v10815_v60, 2102212464 }
 0x62b   :  { %v3716_v63 = vshrl.u32 %v3698_v29, %v3714_v37  ;;  %v3719_v49 = vadd.s32 127, %v3718_v21  ;;  %v5223_v33 = vadd.s32 %v5222_v42, %v5212_v19  ;;  %v5238_v20 = vsel %vm5237_vm0, 1, %v12096_v54  ;;  %v12148_v37 = vld [vmem:[#allocation101_spill] sm:$0xff] }
 0x62c   :  { %v1541_v40 = vmul.f32 %v8261_v39, %v1462_v55  ;;  %v5240_v15 = vadd.s32 %v5238_v20, %v5232_v41  ;;  %vm5241_vm3 = vc.u32 %v5239_v16, %v5235_v36  ;;  %v3728_v28 = vsub.s32 4, %v10823_v8 }
 0x62d   :  { %v3717_v4 = vor.u32 %v3716_v63, %v3715_v14  ;;  %v3720_v17 = vshll.u32 %v3719_v49, 23  ;;  %v5214_v59 = vshrl.u32 %v5209_v13, 16  ;;  %v5242_v3 = vsel %vm5241_vm3, 1, %v12096_v54 }
 0x62e   :  { %v10873_v50 = vadd.f32 %v1541_v40, %v12147_v6  ;;  %v5192_v60 = vsel %vm5188_vm6, %v10813_v0, %v5191_v11  ;;  %v5234_v52 = vshrl.u32 %v5230_v61, 16  ;;  %v5244_v57 = vadd.s32 %v5242_v3, %v5240_v15 }
 0x62f   :  { %v3721_v5 = vor.u32 4788187, %v3720_v17  ;;  %v5224_v24 = vadd.s32 %v5223_v33, %v5214_v59  ;;  %v5236_v29 = vshrl.u32 %v5231_v2, 16  ;;  %v1551_v31 = vmul.f32 %v8261_v39, %v1502_v43 }
 0x630   :  { %v4069_v9 = vand.u32 2147483647, %v10873_v50  ;;  %v3724_v13 = vcvt.s32.f32 %v3717_v4  ;;  %v5245_v25 = vadd.s32 %v5244_v57, %v5234_v52  ;;  %v4072_v19 = vand.u32 2139095040, %v10873_v50 }
 0x631   :  { %v3722_v44 = vand.u32 2147483647, %v3721_v5  ;;  %v3729_v38 = vsel %vm3606_vm15, %v3728_v28, %v10823_v8  ;;  %v5193_v0 = vsel %vm5187_vm7, %v5190_v7, %v5192_v60  ;;  %v5243_v61 = vadd.s32 %v5239_v16, %v5235_v36 }
 0x632   :  { %v5246_v58 = vadd.s32 %v5245_v25, %v5236_v29  ;;  %v4073_v2 = vshrl.u32 %v4072_v19, 23  ;;  %v4076_v48 = vand.u32 8388607, %v4069_v9  ;;  %v10889_v21 = vadd.f32 %v1551_v31, %v12148_v37 }
 0x633   :  { %v3725_v51 = vmul.f32 %v3724_v13, %v3722_v44  ;;  %vm5249_vm1 = vc.u32 %v5224_v24, %v5243_v61  ;;  %vm3605_vm2 = vcmp.le.f32.partialorder %v3604_v30, 0.7853982  ;;  %v5247_v32 = vmul.u32 %v10843_v46, %v5193_v0 }
 0x634   :  { %v5250_v18 = vadd.s32 1, %v5246_v58  ;;  %v6647_v8 = vadd.s32 4294967169, %v4073_v2  ;;  %v3731_v55 = vsel %vm3605_vm2, 0, %v3729_v38  ;;  %v4077_v42 = vor.u32 8388608, %v4076_v48 }
 0x635   :  { %v3726_v26 = vxor.u32 2147483648, %v3725_v51  ;;  %v5622_v49 = vand.u32 2139095040, %v10889_v21  ;;  %v3748_v11 = vadd.s32 3, %v3731_v55  ;;  %vm5156_vm6 = vcmp.lt.s32.totalorder %v10651_v22, 0 }
 0x636   :  { %v5251_v14 = vsel %vm5249_vm1, %v5250_v18, %v5246_v58  ;;  %v4079_v41 = vadd.s32 1, %v6647_v8  ;;  %v10898_v46 = vshll.u32 %v4077_v42, 8  ;;  %v10903_v3 = vadd.s32 %v5243_v61, %v5224_v24 }
 0x637   :  { %v3727_v7 = vsel %vm3606_vm15, %v3726_v26, %v3725_v51  ;;  %v5252_v63 = vadd.s32 %v5251_v14, %v5247_v32  ;;  %v5623_v15 = vshrl.u32 %v5622_v49, 23  ;;  %v10900_v59 = vand.u32 3, %v3748_v11 }
 0x638   :  { %v3730_v36 = vsel %vm3605_vm2, %v10643_v62, %v3727_v7  ;;  %vm4080_vm4 = vcmp.gt.s32.totalorder %v4079_v41, 0  ;;  %vm10907_vm7 = vcmp.le.f32.partialorder %v5154_v47, 0.7853982  ;;  %v10912_v29 = vand.u32 65535, %v10898_v46 }
 0x639   :  { %v3732_v16 = vmul.f32 %v3730_v36, %v3730_v36  ;;  %v5253_v30 = vadd.s32 536870912, %v5252_v63  ;;  %v4081_v33 = vsel %vm4080_vm4, %v4079_v41, 0  ;;  %v5619_v31 = vand.u32 2147483647, %v10889_v21 }
 0x63a   :  { %v4083_v4 = vand.u32 31, %v4081_v33  ;;  %v10917_v24 = vshrl.u32 %v4081_v33, 5  ;;  %v10919_v25 = vadd.s32 4294967169, %v5623_v15  ;;  %vm3754_vm5 = vcmp.eq.s32.totalorder %v10900_v59, 2 }
 0x63b   :  { %v3733_v20 = vmul.f32 -0.001358992, %v3732_v16  ;;  %v3740_v40 = vmul.f32 -0.00019511016, %v3732_v16  ;;  %v5254_v17 = vshrl.u32 %v5253_v30, 30  ;;  %vm3751_vm8 = vcmp.eq.s32.totalorder %v10900_v59, 0 }
 0x63c   :  { %v4084_v5 = vsub.s32 32, %v4083_v4  ;;  %v4086_v47 = vshll.u32 %v12097_v45, %v4083_v4  ;;  %v4089_v0 = vshll.u32 %v12098_v56, %v4083_v4  ;;  %vm3750_vm9 = vcmp.lt.s32.totalorder %v10900_v59, 2 }
 0x63d   :  { %v3734_v43 = vadd.f32 0.041655596, %v3733_v20  ;;  %v3741_v28 = vadd.f32 0.008332121, %v3740_v40  ;;  %v5255_v6 = vshll.u32 %v5254_v17, 30  ;;  %v5278_v13 = vsub.s32 4, %v5254_v17 }
 0x63e   :  { %v4087_v51 = vshrl.u32 %v12098_v56, %v4084_v5  ;;  %v4093_v58 = vshrl.u32 %v12100_v34, %v4084_v5  ;;  %v4090_v37 = vshrl.u32 %v12099_v53, %v4084_v5  ;;  %v4092_v26 = vshll.u32 %v12099_v53, %v4083_v4 }
 0x63f   :  { %v3735_v60 = vmul.f32 %v3734_v43, %v3732_v16  ;;  %v3742_v52 = vmul.f32 %v3741_v28, %v3732_v16  ;;  %v10915_v44 = vsub.s32 %v5252_v63, %v5255_v6  ;;  %vm3747_vm11 = vweird.f32 %v10643_v62 }
 0x640   :  { %v5279_v8 = vsel %vm5156_vm6, %v5278_v13, %v5254_v17  ;;  %v4095_v55 = vshll.u32 %v12100_v34, %v4083_v4  ;;  %v4096_v32 = vshrl.u32 %v12101_v27, %v4084_v5  ;;  %v4099_v41 = vshrl.u32 %v12102_v10, %v4084_v5 }
 0x641   :  { %v3736_v19 = vadd.f32 -0.4999988, %v3735_v60  ;;  %v3743_v38 = vadd.f32 -0.16666654, %v3742_v52  ;;  %vm5257_vm10 = vcmp.lt.s32.totalorder %v10915_v44, 0  ;;  %v5258_v61 = vsub.s32 0, %v10915_v44 }
 0x642   :  { %v4088_v63 = vor.u32 %v4087_v51, %v4086_v47  ;;  %v4094_v49 = vor.u32 %v4093_v58, %v4092_v26  ;;  %v4098_v11 = vshll.u32 %v12101_v27, %v4083_v4  ;;  %v4091_v40 = vor.u32 %v4090_v37, %v4089_v0 }
 0x643   :  { %v3737_v2 = vmul.f32 %v3736_v19, %v3732_v16  ;;  %v3744_v48 = vmul.f32 %v3743_v38, %v3732_v16  ;;  %v5259_v18 = vsel %vm5257_vm10, %v5258_v61, %v10915_v44  ;;  %v4097_v16 = vor.u32 %v4096_v32, %v4095_v55 }
 0x644   :  { %v5260_v42 = vclz %v5259_v18  ;;  %v5281_v17 = vsel %vm10907_vm7, 0, %v5279_v8  ;;  %v4085_v15 = vshrl.u32 %v12097_v45, %v4084_v5  ;;  %v4100_v43 = vor.u32 %v4099_v41, %v4098_v11 }
 0x645   :  { %v3738_v7 = vadd.f32 1.0, %v3737_v2  ;;  %v3745_v14 = vadd.f32 1.0, %v3744_v48  ;;  %vm4101_vm12 = vcmp.lt.s32.totalorder %v10917_v24, 1  ;;  %vm4103_vm14 = vcmp.lt.s32.totalorder %v10917_v24, 3 }
 0x646   :  { %v6669_v20 = vadd.s32 4294967294, %v5260_v42  ;;  %vm4104_vm15 = vcmp.lt.s32.totalorder %v10917_v24, 4  ;;  %v4109_v19 = vsel %vm4101_vm12, %v4088_v63, %v4091_v40  ;;  %vm4102_vm0 = vcmp.lt.s32.totalorder %v10917_v24, 2 }
 0x647   :  { %v3746_v30 = vmul.f32 %v3745_v14, %v3730_v36  ;;  %v3755_v33 = vxor.u32 2147483648, %v3738_v7  ;;  %v4106_v6 = vsel %vm4104_vm15, %v4094_v49, 2102212464  ;;  %v4110_v60 = vsel %vm4104_vm15, %v4097_v16, 920167782 }
 0x648   :  { %vm6670_vm13 = vcmp.lt.s32.totalorder %v6669_v20, 0  ;;  %v4111_v0 = vsel %vm4103_vm14, %v4094_v49, %v4110_v60  ;;  %v4113_v2 = vsel %vm4101_vm12, %v4091_v40, %v4094_v49  ;;  %v4105_v59 = vsel %vm4101_vm12, %v4085_v15, %v4088_v63 }
 0x649   :  { %v3752_v28 = vxor.u32 2147483648, %v3746_v30  ;;  %v3756_v36 = vsel %vm3754_vm5, %v3755_v33, %v3746_v30  ;;  %v5263_v4 = vsel %vm6670_vm13, 0, %v6669_v20  ;;  %v4112_v48 = vsel %vm4102_vm0, %v4109_v19, %v4111_v0 }
 0x64a   :  { %v5264_v52 = vsub.s32 32, %v5263_v4  ;;  %v5268_v13 = vsub.s32 4294967266, %v5263_v4  ;;  %v5265_v47 = vshll.u32 %v10915_v44, %v5263_v4  ;;  %v4107_v44 = vsel %vm4103_vm14, %v4091_v40, %v4106_v6 }
 0x64b   :  { %v3753_v5 = vsel %vm3751_vm8, %v3738_v7, %v3752_v28  ;;  %v4114_v62 = vsel %vm4104_vm15, %v4100_v43, 1326507024  ;;  %v4142_v18 = vand.u32 65535, %v4112_v48  ;;  %v4119_v55 = vshrl.u32 %v10898_v46, 16 }
 0x64c   :  { %v3757_v38 = vsel %vm3750_vm9, %v3753_v5, %v3756_v36  ;;  %v5266_v51 = vshrl.u32 %v10903_v3, %v5264_v52  ;;  %v5269_v58 = vadd.s32 127, %v5268_v13  ;;  %v4115_v3 = vsel %vm4103_vm14, %v4097_v16, %v4114_v62 }
 0x64d   :  { %v3758_v61 = vsel %vm3747_vm11, nan, %v3757_v38  ;;  %v4116_v8 = vsel %vm4102_vm0, %v4113_v2, %v4115_v3  ;;  %v4143_v32 = vshrl.u32 %v4112_v48, 16  ;;  %v5629_v7 = vadd.s32 1, %v10919_v25 }
 0x64e   :  { %6562 = vst [vmem:[#allocation2 + $0x68] sm:$0xff] %v3758_v61  ;;  %v5267_v37 = vor.u32 %v5266_v51, %v5265_v47  ;;  %v5270_v26 = vshll.u32 %v5269_v58, 23  ;;  %v4120_v42 = vand.u32 65535, %v4116_v8  ;;  %v4121_v41 = vshrl.u32 %v4116_v8, 16 }
 0x64f   :  { %v10983_v63 = vand.u32 8388607, %v5619_v31  ;;  %v5298_v49 = vadd.s32 3, %v5281_v17  ;;  %v10987_v16 = vsel %vm4102_vm0, %v4105_v59, %v4107_v44  ;;  %v4145_v11 = vmul.u32 %v4143_v32, %v10912_v29 }
 0x650   :  { %v5271_v14 = vor.u32 4788187, %v5270_v26  ;;  %v4146_v30 = vmul.u32 %v4142_v18, %v4119_v55  ;;  %v5274_v20 = vcvt.s32.f32 %v5267_v37  ;;  %v4123_v40 = vmul.u32 %v4121_v41, %v10912_v29 }
 0x651   :  { %v4124_v25 = vmul.u32 %v4120_v42, %v4119_v55  ;;  %v4144_v15 = vmul.u32 %v4142_v18, %v10912_v29  ;;  %v4147_v43 = vmul.u32 %v4143_v32, %v4119_v55  ;;  %v4148_v28 = vshll.u32 %v4145_v11, 16 }
 0x652   :  { %v5272_v33 = vand.u32 2147483647, %v5271_v14  ;;  %vm5630_vm3 = vcmp.gt.s32.totalorder %v5629_v7, 0  ;;  %v4122_v17 = vmul.u32 %v4120_v42, %v10912_v29  ;;  %v4125_v4 = vmul.u32 %v4121_v41, %v4119_v55 }
 0x653   :  { %v4126_v24 = vshll.u32 %v4123_v40, 16  ;;  %v4128_v6 = vshll.u32 %v4124_v25, 16  ;;  %v4150_v60 = vshll.u32 %v4146_v30, 16  ;;  %vm4152_vm1 = vc.u32 %v4144_v15, %v4148_v28 }
 0x654   :  { %v5275_v36 = vmul.f32 %v5274_v20, %v5272_v33  ;;  %v4154_v5 = vadd.s32 %v4148_v28, %v4144_v15  ;;  %v4153_v19 = vsel %vm4152_vm1, 1, %v12096_v54  ;;  %v5631_v0 = vsel %vm5630_vm3, %v5629_v7, 0 }
 0x655   :  { %vm4130_vm2 = vc.u32 %v4122_v17, %v4126_v24  ;;  %v4132_v13 = vadd.s32 %v4126_v24, %v4122_v17  ;;  %v4155_v47 = vadd.s32 %v4153_v19, %v4147_v43  ;;  %v4149_v59 = vshrl.u32 %v4145_v11, 16 }
 0x656   :  { %v5276_v52 = vxor.u32 2147483648, %v5275_v36  ;;  %v4131_v38 = vsel %vm4130_vm2, 1, %v12096_v54  ;;  %vm4156_vm4 = vc.u32 %v4154_v5, %v4150_v60  ;;  %v4127_v62 = vshrl.u32 %v4123_v40, 16 }
 0x657   :  { %v4133_v61 = vadd.s32 %v4131_v38, %v4125_v4  ;;  %vm4134_vm5 = vc.u32 %v4132_v13, %v4128_v6  ;;  %v4157_v51 = vsel %vm4156_vm4, 1, %v12096_v54  ;;  %v5633_v26 = vand.u32 31, %v5631_v0 }
 0x658   :  { %v5277_v29 = vsel %vm5156_vm6, %v5276_v52, %v5275_v36  ;;  %v4135_v2 = vsel %vm4134_vm5, 1, %v12096_v54  ;;  %v4159_v44 = vadd.s32 %v4157_v51, %v4155_v47  ;;  %v4129_v3 = vshrl.u32 %v4124_v25, 16 }
 0x659   :  { %v5280_v58 = vsel %vm10907_vm7, %v10651_v22, %v5277_v29  ;;  %v4137_v37 = vadd.s32 %v4135_v2, %v4133_v61  ;;  %v4151_v18 = vshrl.u32 %v4146_v30, 16  ;;  %v5627_v55 = vor.u32 8388608, %v10983_v63 }
 0x65a   :  { %v5282_v48 = vmul.f32 %v5280_v58, %v5280_v58  ;;  %v4160_v8 = vadd.s32 %v4159_v44, %v4149_v59  ;;  %v11004_v42 = vsub.s32 32, %v5633_v26  ;;  %v11006_v57 = vand.u32 3, %v5298_v49 }
 0x65b   :  { %v4138_v14 = vadd.s32 %v4137_v37, %v4127_v62  ;;  %v11008_v41 = vadd.s32 %v4154_v5, %v4150_v60  ;;  %v4162_v33 = vmul.u32 %v10898_v46, %v10987_v16  ;;  %v5636_v30 = vshll.u32 %v12097_v45, %v5633_v26 }
 0x65c   :  { %v5283_v32 = vmul.f32 -0.001358992, %v5282_v48  ;;  %v5290_v7 = vmul.f32 -0.00019511016, %v5282_v48  ;;  %v4161_v11 = vadd.s32 %v4160_v8, %v4151_v18  ;;  %v5637_v15 = vshrl.u32 %v12098_v56, %v11004_v42 }
 0x65d   :  { %v11012_v25 = vadd.s32 %v4138_v14, %v4129_v3  ;;  %v5639_v43 = vshll.u32 %v12098_v56, %v5633_v26  ;;  %v5640_v49 = vshrl.u32 %v12099_v53, %v11004_v42  ;;  %v5643_v46 = vshrl.u32 %v12100_v34, %v11004_v42 }
 0x65e   :  { %v5284_v20 = vadd.f32 0.041655596, %v5283_v32  ;;  %v5291_v40 = vadd.f32 0.008332121, %v5290_v7  ;;  %v4165_v63 = vadd.s32 1, %v4161_v11  ;;  %v11024_v17 = vshrl.u32 %v5631_v0, 5 }
 0x65f   :  { %vm4164_vm6 = vc.u32 %v11012_v25, %v11008_v41  ;;  %v11026_v4 = vor.u32 %v5637_v15, %v5636_v30  ;;  %v5642_v24 = vshll.u32 %v12099_v53, %v5633_v26  ;;  %v11029_v52 = vor.u32 %v5640_v49, %v5639_v43 }
 0x660   :  { %v5285_v28 = vmul.f32 %v5284_v20, %v5282_v48  ;;  %v5292_v36 = vmul.f32 %v5291_v40, %v5282_v48  ;;  %v4166_v16 = vsel %vm4164_vm6, %v4165_v63, %v4161_v11  ;;  %v5645_v13 = vshll.u32 %v12100_v34, %v5633_v26 }
 0x661   :  { %v4167_v5 = vadd.s32 %v4166_v16, %v4162_v33  ;;  %v5646_v19 = vshrl.u32 %v12101_v27, %v11004_v42  ;;  %v5648_v38 = vshll.u32 %v12101_v27, %v5633_v26  ;;  %v5649_v47 = vshrl.u32 %v12102_v10, %v11004_v42 }
 0x662   :  { %v5286_v6 = vadd.f32 -0.4999988, %v5285_v28  ;;  %v5293_v60 = vadd.f32 -0.16666654, %v5292_v36  ;;  %v5644_v51 = vor.u32 %v5643_v46, %v5642_v24  ;;  %vm5651_vm7 = vcmp.lt.s32.totalorder %v11024_v17, 1 }
 0x663   :  { %v4168_v61 = vadd.s32 536870912, %v4167_v5  ;;  %v5647_v2 = vor.u32 %v5646_v19, %v5645_v13  ;;  %v5650_v59 = vor.u32 %v5649_v47, %v5648_v38  ;;  %v11038_v44 = vshll.u32 %v5627_v55, 8 }
 0x664   :  { %v5287_v0 = vmul.f32 %v5286_v6, %v5282_v48  ;;  %v5294_v29 = vmul.f32 %v5293_v60, %v5282_v48  ;;  %vm5654_vm8 = vcmp.lt.s32.totalorder %v11024_v17, 4  ;;  %vm5653_vm10 = vcmp.lt.s32.totalorder %v11024_v17, 3 }
 0x665   :  { %v11040_v3 = vshrl.u32 %v4168_v61, 30  ;;  %v5659_v48 = vsel %vm5651_vm7, %v11026_v4, %v11029_v52  ;;  %v5660_v26 = vsel %vm5654_vm8, %v5647_v2, 920167782  ;;  %v5664_v18 = vsel %vm5654_vm8, %v5650_v59, 1326507024 }
 0x666   :  { %v5288_v62 = vadd.f32 1.0, %v5287_v0  ;;  %v5295_v37 = vadd.f32 1.0, %v5294_v29  ;;  %v5663_v7 = vsel %vm5651_vm7, %v11029_v52, %v5644_v51  ;;  %vm5297_vm9 = vweird.f32 %v10651_v22 }
 0x667   :  { %v4170_v32 = vshll.u32 %v11040_v3, 30  ;;  %vm5300_vm11 = vcmp.lt.s32.totalorder %v11006_v57, 2  ;;  %v5661_v14 = vsel %vm5653_vm10, %v5644_v51, %v5660_v26  ;;  %v5665_v11 = vsel %vm5653_vm10, %v5647_v2, %v5664_v18 }
 0x668   :  { %v5296_v8 = vmul.f32 %v5295_v37, %v5280_v58  ;;  %v5305_v55 = vxor.u32 2147483648, %v5288_v62  ;;  %vm5301_vm12 = vcmp.eq.s32.totalorder %v11006_v57, 0  ;;  %vm5652_vm13 = vcmp.lt.s32.totalorder %v11024_v17, 2 }
 0x669   :  { %v4171_v33 = vsub.s32 %v4167_v5, %v4170_v32  ;;  %vm5304_vm14 = vcmp.eq.s32.totalorder %v11006_v57, 2  ;;  %v5662_v20 = vsel %vm5652_vm13, %v5659_v48, %v5661_v14  ;;  %v5666_v40 = vsel %vm5652_vm13, %v5663_v7, %v5665_v11  ;;  %v1474_v32 = vpop.permute.xlu1 %1473  ;;  %v1514_v11 = vpop.permute.xlu2 %1513 }
 0x66a   :  { %v5302_v58 = vxor.u32 2147483648, %v5296_v8  ;;  %v5668_v30 = vand.u32 65535, %v11038_v44  ;;  %v5306_v15 = vsel %vm5304_vm14, %v5305_v55, %v5296_v8  ;;  %v5669_v28 = vshrl.u32 %v11038_v44, 16 }
 0x66b   :  { %vm4172_vm15 = vcmp.lt.s32.totalorder %v4171_v33, 0  ;;  %v4173_v43 = vsub.s32 0, %v4171_v33  ;;  %v5670_v36 = vand.u32 65535, %v5666_v40  ;;  %v5671_v46 = vshrl.u32 %v5666_v40, 16 }
 0x66c   :  { %v5303_v63 = vsel %vm5301_vm12, %v5288_v62, %v5302_v58  ;;  %v5692_v24 = vand.u32 65535, %v5662_v20  ;;  %v5693_v6 = vshrl.u32 %v5662_v20, 16  ;;  %v4163_v19 = vadd.s32 %v11008_v41, %v11012_v25 }
 0x66d   :  { %v5307_v49 = vsel %vm5300_vm11, %v5303_v63, %v5306_v15  ;;  %v4174_v16 = vsel %vm4172_vm15, %v4173_v43, %v4171_v33  ;;  %v5673_v5 = vmul.u32 %v5671_v46, %v5668_v30  ;;  %v5674_v13 = vmul.u32 %v5670_v36, %v5669_v28 }
 0x66e   :  { %v5308_v57 = vsel %vm5297_vm9, nan, %v5307_v49  ;;  %v4175_v60 = vclz %v4174_v16  ;;  %v5635_v38 = vshrl.u32 %v12097_v45, %v11004_v42  ;;  %v5656_v0 = vsel %vm5654_vm8, %v5644_v51, 2102212464 }
 0x66f   :  { %6572 = vst [vmem:[#allocation2 + $0xb8] sm:$0xff] %v5308_v57  ;;  %v5672_v29 = vmul.u32 %v5670_v36, %v5668_v30  ;;  %v5676_v22 = vshll.u32 %v5673_v5, 16  ;;  %v5675_v61 = vmul.u32 %v5671_v46, %v5669_v28  ;;  %v5677_v2 = vshrl.u32 %v5673_v5, 16 }
 0x670   :  { %v6648_v47 = vadd.s32 4294967294, %v4175_v60  ;;  %v5695_v59 = vmul.u32 %v5693_v6, %v5668_v30  ;;  %v5696_v62 = vmul.u32 %v5692_v24, %v5669_v28  ;;  %v5678_v37 = vshll.u32 %v5674_v13, 16 }
 0x671   :  { %vm5680_vm3 = vc.u32 %v5672_v29, %v5676_v22  ;;  %v5682_v48 = vadd.s32 %v5676_v22, %v5672_v29  ;;  %v5694_v25 = vmul.u32 %v5692_v24, %v5668_v30  ;;  %vm4071_vm1 = vcmp.lt.s32.totalorder %v10873_v50, 0  ;;  %v12151_v24 = vld [vmem:[#allocation102_spill] sm:$0xff] }
 0x672   :  { %vm6649_vm0 = vcmp.lt.s32.totalorder %v6648_v47, 0  ;;  %v5681_v41 = vsel %vm5680_vm3, 1, %v12096_v54  ;;  %v5698_v18 = vshll.u32 %v5695_v59, 16  ;;  %v5697_v55 = vmul.u32 %v5693_v6, %v5669_v28 }
 0x673   :  { %v4178_v26 = vsel %vm6649_vm0, 0, %v6648_v47  ;;  %v5683_v51 = vadd.s32 %v5681_v41, %v5675_v61  ;;  %vm5684_vm2 = vc.u32 %v5682_v48, %v5678_v37  ;;  %v5700_v14 = vshll.u32 %v5696_v62, 16 }
 0x674   :  { %v4179_v42 = vsub.s32 32, %v4178_v26  ;;  %v4183_v8 = vsub.s32 4294967266, %v4178_v26  ;;  %v4180_v7 = vshll.u32 %v4171_v33, %v4178_v26  ;;  %vm5702_vm4 = vc.u32 %v5694_v25, %v5698_v18 }
 0x675   :  { %v5685_v40 = vsel %vm5684_vm2, 1, %v12096_v54  ;;  %v5703_v63 = vsel %vm5702_vm4, 1, %v12096_v54  ;;  %v5704_v15 = vadd.s32 %v5698_v18, %v5694_v25  ;;  %v1544_v49 = vmul.f32 %v8261_v39, %v1474_v32 }
 0x676   :  { %v4181_v58 = vshrl.u32 %v4163_v19, %v4179_v42  ;;  %v4184_v20 = vadd.s32 127, %v4183_v8  ;;  %v5687_v30 = vadd.s32 %v5685_v40, %v5683_v51  ;;  %v5705_v43 = vadd.s32 %v5703_v63, %v5697_v55 }
 0x677   :  { %v5655_v33 = vsel %vm5651_vm7, %v5635_v38, %v11026_v4  ;;  %v1554_v28 = vmul.f32 %v8261_v39, %v1514_v11  ;;  %v4193_v57 = vsub.s32 4, %v11040_v3  ;;  %vm5706_vm5 = vc.u32 %v5704_v15, %v5700_v14  ;;  %v12152_v38 = vld [vmem:[#allocation18_spill] sm:$0xff] }
 0x678   :  { %v4182_v36 = vor.u32 %v4181_v58, %v4180_v7  ;;  %v4185_v46 = vshll.u32 %v4184_v20, 23  ;;  %v5688_v16 = vadd.s32 %v5687_v30, %v5677_v2  ;;  %v11090_v6 = vadd.f32 %v1544_v49, %v12151_v24 }
 0x679   :  { %v5657_v5 = vsel %vm5653_vm10, %v11029_v52, %v5656_v0  ;;  %v5679_v19 = vshrl.u32 %v5674_v13, 16  ;;  %v5707_v47 = vsel %vm5706_vm5, 1, %v12096_v54  ;;  %v5699_v29 = vshrl.u32 %v5695_v59, 16 }
 0x67a   :  { %v4186_v60 = vor.u32 4788187, %v4185_v46  ;;  %v5709_v22 = vadd.s32 %v5707_v47, %v5705_v43  ;;  %v4534_v4 = vand.u32 2147483647, %v11090_v6  ;;  %v11098_v61 = vadd.f32 %v1554_v28, %v12152_v38 }
 0x67b   :  { %v4189_v37 = vcvt.s32.f32 %v4182_v36  ;;  %v5689_v48 = vadd.s32 %v5688_v16, %v5679_v19  ;;  %v4537_v26 = vand.u32 2139095040, %v11090_v6  ;;  %v4194_v41 = vsel %vm4071_vm1, %v4193_v57, %v11040_v3 }
 0x67c   :  { %v4187_v2 = vand.u32 2147483647, %v4186_v60  ;;  %v5701_v52 = vshrl.u32 %v5696_v62, 16  ;;  %v5710_v13 = vadd.s32 %v5709_v22, %v5699_v29  ;;  %v5708_v25 = vadd.s32 %v5704_v15, %v5700_v14 }
 0x67d   :  { %v4538_v59 = vshrl.u32 %v4537_v26, 23  ;;  %v4541_v18 = vand.u32 8388607, %v4534_v4  ;;  %vm4070_vm6 = vcmp.le.f32.partialorder %v4069_v9, 0.7853982  ;;  %v5658_v42 = vsel %vm5652_vm13, %v5655_v33, %v5657_v5 }
 0x67e   :  { %v4190_v0 = vmul.f32 %v4189_v37, %v4187_v2  ;;  %v5711_v8 = vadd.s32 %v5710_v13, %v5701_v52  ;;  %v6087_v51 = vand.u32 2139095040, %v11098_v61  ;;  %v4196_v32 = vsel %vm4070_vm6, 0, %v4194_v41 }
 0x67f   :  { %vm5714_vm7 = vc.u32 %v5689_v48, %v5708_v25  ;;  %v6656_v3 = vadd.s32 4294967169, %v4538_v59  ;;  %v4542_v7 = vor.u32 8388608, %v4541_v18  ;;  %v5712_v11 = vmul.u32 %v11038_v44, %v5658_v42 }
 0x680   :  { %v4191_v55 = vxor.u32 2147483648, %v4190_v0  ;;  %v5715_v62 = vadd.s32 1, %v5711_v8  ;;  %v4213_v20 = vadd.s32 3, %v4196_v32  ;;  %v6088_v40 = vshrl.u32 %v6087_v51, 23 }
 0x681   :  { %v4544_v58 = vadd.s32 1, %v6656_v3  ;;  %v11115_v43 = vshll.u32 %v4542_v7, 8  ;;  %v11119_v60 = vadd.s32 %v5708_v25, %v5689_v48  ;;  %v6084_v47 = vand.u32 2147483647, %v11098_v61 }
 0x682   :  { %v4192_v14 = vsel %vm4071_vm1, %v4191_v55, %v4190_v0  ;;  %v5716_v17 = vsel %vm5714_vm7, %v5715_v62, %v5711_v8  ;;  %v11117_v33 = vand.u32 3, %v4213_v20  ;;  %v6686_v57 = vadd.s32 4294967169, %v6088_v40 }
 0x683   :  { %v4195_v9 = vsel %vm4070_vm6, %v10873_v50, %v4192_v14  ;;  %v5717_v30 = vadd.s32 %v5716_v17, %v5712_v11  ;;  %vm4545_vm8 = vcmp.gt.s32.totalorder %v4544_v58, 0  ;;  %v11122_v19 = vand.u32 65535, %v11115_v43 }
 0x684   :  { %v4197_v63 = vmul.f32 %v4195_v9, %v4195_v9  ;;  %v4546_v15 = vsel %vm4545_vm8, %v4544_v58, 0  ;;  %vm5621_vm10 = vcmp.lt.s32.totalorder %v10889_v21, 0  ;;  %v11127_v2 = vshrl.u32 %v11115_v43, 16 }
 0x685   :  { %v5718_v46 = vadd.s32 536870912, %v5717_v30  ;;  %v4548_v28 = vand.u32 31, %v4546_v15  ;;  %vm4219_vm9 = vcmp.eq.s32.totalorder %v11117_v33, 2  ;;  %v11130_v37 = vshrl.u32 %v4546_v15, 5 }
 0x686   :  { %v4198_v49 = vmul.f32 -0.001358992, %v4197_v63  ;;  %v4205_v36 = vmul.f32 -0.00019511016, %v4197_v63  ;;  %v11134_v41 = vadd.s32 1, %v6686_v57  ;;  %vm4216_vm11 = vcmp.eq.s32.totalorder %v11117_v33, 0 }
 0x687   :  { %v5719_v24 = vshrl.u32 %v5718_v46, 30  ;;  %v4549_v5 = vsub.s32 32, %v4548_v28  ;;  %v4551_v25 = vshll.u32 %v12097_v45, %v4548_v28  ;;  %v4554_v18 = vshll.u32 %v12098_v56, %v4548_v28 }
 0x688   :  { %v4199_v44 = vadd.f32 0.041655596, %v4198_v49  ;;  %v4206_v16 = vadd.f32 0.008332121, %v4205_v36  ;;  %v4557_v42 = vshll.u32 %v12099_v53, %v4548_v28  ;;  %vm4215_vm12 = vcmp.lt.s32.totalorder %v11117_v33, 2 }
 0x689   :  { %v5720_v38 = vshll.u32 %v5719_v24, 30  ;;  %v4552_v48 = vshrl.u32 %v12098_v56, %v4549_v5  ;;  %v4555_v26 = vshrl.u32 %v12099_v53, %v4549_v5  ;;  %v5743_v59 = vsub.s32 4, %v5719_v24 }
 0x68a   :  { %v4200_v29 = vmul.f32 %v4199_v44, %v4197_v63  ;;  %v4207_v22 = vmul.f32 %v4206_v16, %v4197_v63  ;;  %v4558_v8 = vshrl.u32 %v12100_v34, %v4549_v5  ;;  %vm4212_vm14 = vweird.f32 %v10873_v50 }
 0x68b   :  { %v11136_v0 = vsub.s32 %v5717_v30, %v5720_v38  ;;  %v4553_v3 = vor.u32 %v4552_v48, %v4551_v25  ;;  %v4556_v62 = vor.u32 %v4555_v26, %v4554_v18  ;;  %v4560_v7 = vshll.u32 %v12100_v34, %v4548_v28 }
 0x68c   :  { %v4201_v52 = vadd.f32 -0.4999988, %v4200_v29  ;;  %v4208_v13 = vadd.f32 -0.16666654, %v4207_v22  ;;  %v4561_v14 = vshrl.u32 %v12101_v27, %v4549_v5  ;;  %v4564_v17 = vshrl.u32 %v12102_v10, %v4549_v5 }
 0x68d   :  { %vm5722_vm13 = vcmp.lt.s32.totalorder %v11136_v0, 0  ;;  %v5723_v32 = vsub.s32 0, %v11136_v0  ;;  %vm11153_vm15 = vcmp.le.f32.partialorder %v5619_v31, 0.7853982  ;;  %v4559_v30 = vor.u32 %v4558_v8, %v4557_v42 }
 0x68e   :  { %v4202_v51 = vmul.f32 %v4201_v52, %v4197_v63  ;;  %v4209_v55 = vmul.f32 %v4208_v13, %v4197_v63  ;;  %v4562_v15 = vor.u32 %v4561_v14, %v4560_v7  ;;  %v4563_v49 = vshll.u32 %v12101_v27, %v4548_v28 }
 0x68f   :  { %v5724_v20 = vsel %vm5722_vm13, %v5723_v32, %v11136_v0  ;;  %v4550_v57 = vshrl.u32 %v12097_v45, %v4549_v5  ;;  %vm4566_vm0 = vcmp.lt.s32.totalorder %v11130_v37, 1  ;;  %v5744_v16 = vsel %vm5621_vm10, %v5743_v59, %v5719_v24 }
 0x690   :  { %v4203_v11 = vadd.f32 1.0, %v4202_v51  ;;  %v4210_v58 = vadd.f32 1.0, %v4209_v55  ;;  %v5725_v63 = vclz %v5724_v20  ;;  %v4565_v29 = vor.u32 %v4564_v17, %v4563_v49 }
 0x691   :  { %vm4567_vm3 = vcmp.lt.s32.totalorder %v11130_v37, 2  ;;  %vm4568_vm1 = vcmp.lt.s32.totalorder %v11130_v37, 3  ;;  %vm4569_vm2 = vcmp.lt.s32.totalorder %v11130_v37, 4  ;;  %v4574_v28 = vsel %vm4566_vm0, %v4553_v3, %v4556_v62 }
 0x692   :  { %v4211_v36 = vmul.f32 %v4210_v58, %v4195_v9  ;;  %v4220_v46 = vxor.u32 2147483648, %v4203_v11  ;;  %v6678_v44 = vadd.s32 4294967294, %v5725_v63  ;;  %v4571_v9 = vsel %vm4569_vm2, %v4559_v30, 2102212464 }
 0x693   :  { %v4575_v24 = vsel %vm4569_vm2, %v4562_v15, 920167782  ;;  %v4570_v48 = vsel %vm4566_vm0, %v4550_v57, %v4553_v3  ;;  %v4572_v59 = vsel %vm4568_vm1, %v4556_v62, %v4571_v9  ;;  %v4578_v51 = vsel %vm4566_vm0, %v4556_v62, %v4559_v30 }
 0x694   :  { %v4217_v31 = vxor.u32 2147483648, %v4211_v36  ;;  %v4221_v22 = vsel %vm4219_vm9, %v4220_v46, %v4211_v36  ;;  %vm6679_vm4 = vcmp.lt.s32.totalorder %v6678_v44, 0  ;;  %v4576_v26 = vsel %vm4568_vm1, %v4559_v30, %v4575_v24 }
 0x695   :  { %v5728_v38 = vsel %vm6679_vm4, 0, %v6678_v44  ;;  %v4577_v8 = vsel %vm4567_vm3, %v4574_v28, %v4576_v26  ;;  %v4579_v32 = vsel %vm4569_vm2, %v4565_v29, 1326507024  ;;  %v5746_v50 = vsel %vm11153_vm15, 0, %v5744_v16 }
 0x696   :  { %v4218_v5 = vsel %vm4216_vm11, %v4203_v11, %v4217_v31  ;;  %v5729_v13 = vsub.s32 32, %v5728_v38  ;;  %v5733_v25 = vsub.s32 4294967266, %v5728_v38  ;;  %v5730_v42 = vshll.u32 %v11136_v0, %v5728_v38 }
 0x697   :  { %v4222_v52 = vsel %vm4215_vm12, %v4218_v5, %v4221_v22  ;;  %v4607_v3 = vand.u32 65535, %v4577_v8  ;;  %v11197_v0 = vsel %vm4567_vm3, %v4570_v48, %v4572_v59  ;;  %v4580_v7 = vsel %vm4568_vm1, %v4562_v15, %v4579_v32 }
 0x698   :  { %v4223_v18 = vsel %vm4212_vm14, nan, %v4222_v52  ;;  %v5731_v33 = vshrl.u32 %v11119_v60, %v5729_v13  ;;  %v5734_v55 = vadd.s32 127, %v5733_v25  ;;  %v4608_v14 = vshrl.u32 %v4577_v8, 16 }
 0x699   :  { %6565 = vst [vmem:[#allocation2 + $0x80] sm:$0xff] %v4223_v18  ;;  %v4581_v60 = vsel %vm4567_vm3, %v4578_v51, %v4580_v7  ;;  %vm6095_vm5 = vcmp.gt.s32.totalorder %v11134_v41, 0  ;;  %v4611_v63 = vmul.u32 %v4607_v3, %v11127_v2  ;;  %v11206_v49 = vadd.s32 3, %v5746_v50 }
 0x69a   :  { %v5732_v62 = vor.u32 %v5731_v33, %v5730_v42  ;;  %v5735_v11 = vshll.u32 %v5734_v55, 23  ;;  %v4585_v58 = vand.u32 65535, %v4581_v60  ;;  %v4586_v20 = vshrl.u32 %v4581_v60, 16 }
 0x69b   :  { %v4610_v17 = vmul.u32 %v4608_v14, %v11122_v19  ;;  %v4627_v15 = vmul.u32 %v11115_v43, %v11197_v0  ;;  %v11212_v36 = vand.u32 8388607, %v6084_v47  ;;  %v4609_v57 = vmul.u32 %v4607_v3, %v11122_v19 }
 0x69c   :  { %v5736_v30 = vor.u32 4788187, %v5735_v11  ;;  %v4588_v37 = vmul.u32 %v4586_v20, %v11122_v19  ;;  %v4589_v46 = vmul.u32 %v4585_v58, %v11127_v2  ;;  %v6096_v44 = vsel %vm6095_vm5, %v11134_v41, 0 }
 0x69d   :  { %v5739_v29 = vcvt.s32.f32 %v5732_v62  ;;  %v4612_v31 = vmul.u32 %v4608_v14, %v11127_v2  ;;  %v4613_v22 = vshll.u32 %v4610_v17, 16  ;;  %v4587_v9 = vmul.u32 %v4585_v58, %v11122_v19 }
 0x69e   :  { %v5737_v16 = vand.u32 2147483647, %v5736_v30  ;;  %v4590_v28 = vmul.u32 %v4586_v20, %v11127_v2  ;;  %v4591_v24 = vshll.u32 %v4588_v37, 16  ;;  %v4615_v5 = vshll.u32 %v4611_v63, 16 }
 0x69f   :  { %v4593_v48 = vshll.u32 %v4589_v46, 16  ;;  %vm4617_vm6 = vc.u32 %v4609_v57, %v4613_v22  ;;  %v4619_v26 = vadd.s32 %v4613_v22, %v4609_v57  ;;  %v6098_v41 = vand.u32 31, %v6096_v44 }
 0x6a0   :  { %v5740_v38 = vmul.f32 %v5739_v29, %v5737_v16  ;;  %vm4595_vm7 = vc.u32 %v4587_v9, %v4591_v24  ;;  %v4597_v52 = vadd.s32 %v4591_v24, %v4587_v9  ;;  %v4618_v13 = vsel %vm4617_vm6, 1, %v12096_v54 }
 0x6a1   :  { %v4596_v59 = vsel %vm4595_vm7, 1, %v12096_v54  ;;  %v4620_v18 = vadd.s32 %v4618_v13, %v4612_v31  ;;  %vm4621_vm8 = vc.u32 %v4619_v26, %v4615_v5  ;;  %v4614_v19 = vshrl.u32 %v4610_v17, 16 }
 0x6a2   :  { %v5741_v25 = vxor.u32 2147483648, %v5740_v38  ;;  %v4598_v42 = vadd.s32 %v4596_v59, %v4590_v28  ;;  %vm4599_vm9 = vc.u32 %v4597_v52, %v4593_v48  ;;  %v4622_v2 = vsel %vm4621_vm8, 1, %v12096_v54 }
 0x6a3   :  { %v4600_v51 = vsel %vm4599_vm9, 1, %v12096_v54  ;;  %v4624_v33 = vadd.s32 %v4622_v2, %v4620_v18  ;;  %v11227_v55 = vsub.s32 32, %v6098_v41  ;;  %v4592_v3 = vshrl.u32 %v4588_v37, 16 }
 0x6a4   :  { %v5742_v8 = vsel %vm5621_vm10, %v5741_v25, %v5740_v38  ;;  %v4602_v50 = vadd.s32 %v4600_v51, %v4598_v42  ;;  %v11232_v7 = vshrl.u32 %v6096_v44, 5  ;;  %v4594_v62 = vshrl.u32 %v4589_v46, 16 }
 0x6a5   :  { %v5745_v32 = vsel %vm11153_vm15, %v10889_v21, %v5742_v8  ;;  %v4616_v11 = vshrl.u32 %v4611_v63, 16  ;;  %v4625_v60 = vadd.s32 %v4624_v33, %v4614_v19  ;;  %v11234_v20 = vadd.s32 %v4619_v26, %v4615_v5  ;;  %v12155_v19 = vld [vmem:[#allocation104_spill] sm:$0xff] }
 0x6a6   :  { %v5747_v14 = vmul.f32 %v5745_v32, %v5745_v32  ;;  %v4603_v58 = vadd.s32 %v4602_v50, %v4592_v3  ;;  %v6101_v17 = vshll.u32 %v12097_v45, %v6098_v41  ;;  %v6104_v30 = vshll.u32 %v12098_v56, %v6098_v41 }
 0x6a7   :  { %v4626_v29 = vadd.s32 %v4625_v60, %v4616_v11  ;;  %v6102_v40 = vshrl.u32 %v12098_v56, %v11227_v55  ;;  %v6105_v46 = vshrl.u32 %v12099_v53, %v11227_v55  ;;  %v6108_v63 = vshrl.u32 %v12100_v34, %v11227_v55 }
 0x6a8   :  { %v5748_v57 = vmul.f32 -0.001358992, %v5747_v14  ;;  %v5755_v16 = vmul.f32 -0.00019511016, %v5747_v14  ;;  %v11240_v37 = vadd.s32 %v4603_v58, %v4594_v62  ;;  %v6110_v44 = vshll.u32 %v12100_v34, %v6098_v41 }
 0x6a9   :  { %v4630_v9 = vadd.s32 1, %v4626_v29  ;;  %v6111_v28 = vshrl.u32 %v12101_v27, %v11227_v55  ;;  %v6107_v24 = vshll.u32 %v12099_v53, %v6098_v41  ;;  %v6113_v5 = vshll.u32 %v12101_v27, %v6098_v41 }
 0x6aa   :  { %v5749_v31 = vadd.f32 0.041655596, %v5748_v57  ;;  %v5756_v22 = vadd.f32 0.008332121, %v5755_v16  ;;  %vm4629_vm10 = vc.u32 %v11240_v37, %v11234_v20  ;;  %v6114_v38 = vshrl.u32 %v12102_v10, %v11227_v55 }
 0x6ab   :  { %v4631_v52 = vsel %vm4629_vm10, %v4630_v9, %v4626_v29  ;;  %v6112_v13 = vor.u32 %v6111_v28, %v6110_v44  ;;  %v11258_v59 = vor.u32 %v6102_v40, %v6101_v17  ;;  %v11260_v18 = vor.u32 %v6105_v46, %v6104_v30 }
 0x6ac   :  { %v5750_v48 = vmul.f32 %v5749_v31, %v5747_v14  ;;  %v5757_v26 = vmul.f32 %v5756_v22, %v5747_v14  ;;  %v4632_v25 = vadd.s32 %v4631_v52, %v4627_v15  ;;  %v11262_v42 = vor.u32 %v6108_v63, %v6107_v24 }
 0x6ad   :  { %v1354_v41 = vmul.f32 %v8103_v12, %v12155_v19  ;;  %v6115_v51 = vor.u32 %v6114_v38, %v6113_v5  ;;  %v5764_v33 = vand.u32 3, %v11206_v49  ;;  %v6092_v50 = vor.u32 8388608, %v11212_v36 }
 0x6ae   :  { %v5751_v2 = vadd.f32 -0.4999988, %v5750_v48  ;;  %v5758_v8 = vadd.f32 -0.16666654, %v5757_v26  ;;  %v4633_v3 = vadd.s32 536870912, %v4632_v25  ;;  %vm6119_vm11 = vcmp.lt.s32.totalorder %v11232_v7, 4 }
 0x6af   :  { %vm6116_vm12 = vcmp.lt.s32.totalorder %v11232_v7, 1  ;;  %v6125_v15 = vsel %vm6119_vm11, %v6112_v13, 920167782  ;;  %vm6118_vm13 = vcmp.lt.s32.totalorder %v11232_v7, 3  ;;  %v6129_v58 = vsel %vm6119_vm11, %v6115_v51, 1326507024 }
 0x6b0   :  { %v5752_v43 = vmul.f32 %v5751_v2, %v5747_v14  ;;  %v5759_v0 = vmul.f32 %v5758_v8, %v5747_v14  ;;  %v11272_v62 = vshrl.u32 %v4633_v3, 30  ;;  %v6124_v49 = vsel %vm6116_vm12, %v11258_v59, %v11260_v18  ;;  %v1486_v8 = vpop.permute.xlu1 %1485  ;;  %v12156_v51 = vld [vmem:[#allocation59_spill] sm:$0xff] }
 0x6b1   :  { %v6128_v36 = vsel %vm6116_vm12, %v11260_v18, %v11262_v42  ;;  %v6126_v60 = vsel %vm6118_vm13, %v11262_v42, %v6125_v15  ;;  %vm6117_vm14 = vcmp.lt.s32.totalorder %v11232_v7, 2  ;;  %v6130_v30 = vsel %vm6118_vm13, %v6112_v13, %v6129_v58 }
 0x6b2   :  { %v5753_v14 = vadd.f32 1.0, %v5752_v43  ;;  %v5760_v11 = vadd.f32 1.0, %v5759_v0  ;;  %v4635_v17 = vshll.u32 %v11272_v62, 30  ;;  %v11292_v57 = vshll.u32 %v6092_v50, 8 }
 0x6b3   :  { %vm5762_vm15 = vweird.f32 %v10889_v21  ;;  %v6131_v40 = vsel %vm6117_vm14, %v6128_v36, %v6130_v30  ;;  %vm5765_vm0 = vcmp.lt.s32.totalorder %v5764_v33, 2  ;;  %vm5766_vm3 = vcmp.eq.s32.totalorder %v5764_v33, 0 }
 0x6b4   :  { %v5761_v16 = vmul.f32 %v5760_v11, %v5745_v32  ;;  %v5770_v29 = vxor.u32 2147483648, %v5753_v14  ;;  %v4636_v46 = vsub.s32 %v4632_v25, %v4635_v17  ;;  %v6127_v63 = vsel %vm6117_vm14, %v6124_v49, %v6126_v60 }
 0x6b5   :  { %vm5769_vm1 = vcmp.eq.s32.totalorder %v5764_v33, 2  ;;  %v6134_v31 = vshrl.u32 %v11292_v57, 16  ;;  %v6135_v22 = vand.u32 65535, %v6131_v40  ;;  %v6133_v32 = vand.u32 65535, %v11292_v57 }
 0x6b6   :  { %v5767_v44 = vxor.u32 2147483648, %v5761_v16  ;;  %vm4637_vm2 = vcmp.lt.s32.totalorder %v4636_v46, 0  ;;  %v4638_v9 = vsub.s32 0, %v4636_v46  ;;  %v6136_v28 = vshrl.u32 %v6131_v40, 16 }
 0x6b7   :  { %v5771_v5 = vsel %vm5769_vm1, %v5770_v29, %v5761_v16  ;;  %v6139_v38 = vmul.u32 %v6135_v22, %v6134_v31  ;;  %v6157_v48 = vand.u32 65535, %v6127_v63  ;;  %v6158_v25 = vshrl.u32 %v6127_v63, 16 }
 0x6b8   :  { %v5768_v24 = vsel %vm5766_vm3, %v5753_v14, %v5767_v44  ;;  %v4639_v52 = vsel %vm4637_vm2, %v4638_v9, %v4636_v46  ;;  %v6138_v13 = vmul.u32 %v6136_v28, %v6133_v32  ;;  %v1386_v3 = vadd.f32 %v1354_v41, %v12156_v51 }
 0x6b9   :  { %v5772_v26 = vsel %vm5765_vm0, %v5768_v24, %v5771_v5  ;;  %v4640_v2 = vclz %v4639_v52  ;;  %v6100_v50 = vshrl.u32 %v12097_v45, %v11227_v55  ;;  %v6137_v43 = vmul.u32 %v6135_v22, %v6133_v32 }
 0x6ba   :  { %v5773_v19 = vsel %vm5762_vm15, nan, %v5772_v26  ;;  %v6141_v0 = vshll.u32 %v6138_v13, 16  ;;  %v4628_v33 = vadd.s32 %v11234_v20, %v11240_v37  ;;  %v6140_v49 = vmul.u32 %v6136_v28, %v6134_v31 }
 0x6bb   :  { %6575 = vst [vmem:[#allocation2 + $0xd0] sm:$0xff] %v5773_v19  ;;  %v6657_v15 = vadd.s32 4294967294, %v4640_v2  ;;  %v6143_v36 = vshll.u32 %v6139_v38, 16  ;;  %v6160_v21 = vmul.u32 %v6158_v25, %v6133_v32  ;;  %v6161_v11 = vmul.u32 %v6157_v48, %v6134_v31 }
 0x6bc   :  { %vm6145_vm4 = vc.u32 %v6137_v43, %v6141_v0  ;;  %v6147_v14 = vadd.s32 %v6141_v0, %v6137_v43  ;;  %v6120_v41 = vsel %vm6116_vm12, %v6100_v50, %v11258_v59  ;;  %v6142_v60 = vshrl.u32 %v6138_v13, 16 }
 0x6bd   :  { %vm6658_vm5 = vcmp.lt.s32.totalorder %v6657_v15, 0  ;;  %v6146_v55 = vsel %vm6145_vm4, 1, %v12096_v54  ;;  %v6163_v30 = vshll.u32 %v6160_v21, 16  ;;  %vm4536_vm7 = vcmp.lt.s32.totalorder %v11090_v6, 0 }
 0x6be   :  { %v4643_v58 = vsel %vm6658_vm5, 0, %v6657_v15  ;;  %v6148_v17 = vadd.s32 %v6146_v55, %v6140_v49  ;;  %vm6149_vm6 = vc.u32 %v6147_v14, %v6143_v36  ;;  %v6159_v29 = vmul.u32 %v6157_v48, %v6133_v32 }
 0x6bf   :  { %v4644_v20 = vsub.s32 32, %v4643_v58  ;;  %v4648_v37 = vsub.s32 4294967266, %v4643_v58  ;;  %v6150_v16 = vsel %vm6149_vm6, 1, %v12096_v54  ;;  %v4645_v40 = vshll.u32 %v4636_v46, %v4643_v58  ;;  %v1498_v46 = vpop.permute.xlu1 %1497 }
 0x6c0   :  { %v6152_v63 = vadd.s32 %v6150_v16, %v6148_v17  ;;  %v6162_v44 = vmul.u32 %v6158_v25, %v6134_v31  ;;  %v6165_v22 = vshll.u32 %v6161_v11, 16  ;;  %vm6167_vm8 = vc.u32 %v6159_v29, %v6163_v30 }
 0x6c1   :  { %v4646_v9 = vshrl.u32 %v4628_v33, %v4644_v20  ;;  %v4649_v59 = vadd.s32 127, %v4648_v37  ;;  %v6169_v28 = vadd.s32 %v6163_v30, %v6159_v29  ;;  %v6121_v24 = vsel %vm6119_vm11, %v11262_v42, 2102212464 }
 0x6c2   :  { %v6153_v5 = vadd.s32 %v6152_v63, %v6142_v60  ;;  %v6168_v26 = vsel %vm6167_vm8, 1, %v12096_v54  ;;  %v1547_v52 = vmul.f32 %v8261_v39, %v1486_v8  ;;  %v4658_v31 = vsub.s32 4, %v11272_v62 }
 0x6c3   :  { %v4647_v13 = vor.u32 %v4646_v9, %v4645_v40  ;;  %v4650_v19 = vshll.u32 %v4649_v59, 23  ;;  %v6170_v32 = vadd.s32 %v6168_v26, %v6162_v44  ;;  %vm6171_vm9 = vc.u32 %v6169_v28, %v6165_v22 }
 0x6c4   :  { %v6144_v48 = vshrl.u32 %v6139_v38, 16  ;;  %v6172_v25 = vsel %vm6171_vm9, 1, %v12096_v54  ;;  %v11322_v2 = vadd.f32 %v1547_v52, %v1386_v3  ;;  %v6122_v42 = vsel %vm6118_vm13, %v11260_v18, %v6121_v24 }
 0x6c5   :  { %v4651_v51 = vor.u32 4788187, %v4650_v19  ;;  %v6164_v50 = vshrl.u32 %v6160_v21, 16  ;;  %v6174_v43 = vadd.s32 %v6172_v25, %v6170_v32  ;;  %v6166_v0 = vshrl.u32 %v6161_v11, 16 }
 0x6c6   :  { %v6154_v8 = vadd.s32 %v6153_v5, %v6144_v48  ;;  %v4999_v33 = vand.u32 2147483647, %v11322_v2  ;;  %v1550_v15 = vmul.f32 %v8261_v39, %v1498_v46  ;;  %v4654_v36 = vcvt.s32.f32 %v4647_v13 }
 0x6c7   :  { %v4652_v49 = vand.u32 2147483647, %v4651_v51  ;;  %v6175_v38 = vadd.s32 %v6174_v43, %v6164_v50  ;;  %v5002_v14 = vand.u32 2139095040, %v11322_v2  ;;  %v4659_v3 = vsel %vm4536_vm7, %v4658_v31, %v11272_v62 }
 0x6c8   :  { %v6123_v18 = vsel %vm6117_vm14, %v6120_v41, %v6122_v42  ;;  %v6173_v21 = vadd.s32 %v6169_v28, %v6165_v22  ;;  %v5006_v58 = vand.u32 8388607, %v4999_v33  ;;  %v11338_v17 = vadd.f32 %v1550_v15, %v8581_v23 }
 0x6c9   :  { %v4655_v60 = vmul.f32 %v4654_v36, %v4652_v49  ;;  %v6176_v55 = vadd.s32 %v6175_v38, %v6166_v0  ;;  %v5003_v11 = vshrl.u32 %v5002_v14, 23  ;;  %vm4535_vm11 = vcmp.le.f32.partialorder %v4534_v4, 0.7853982 }
 0x6ca   :  { %vm6179_vm10 = vc.u32 %v6154_v8, %v6173_v21  ;;  %v4661_v37 = vsel %vm4535_vm11, 0, %v4659_v3  ;;  %v6177_v7 = vmul.u32 %v11292_v57, %v6123_v18  ;;  %v5007_v29 = vor.u32 8388608, %v5006_v58 }
 0x6cb   :  { %v4656_v30 = vxor.u32 2147483648, %v4655_v60  ;;  %v6180_v20 = vadd.s32 1, %v6176_v55  ;;  %v6665_v62 = vadd.s32 4294967169, %v5003_v11  ;;  %v5467_v23 = vand.u32 2139095040, %v11338_v17 }
 0x6cc   :  { %v4678_v9 = vadd.s32 3, %v4661_v37  ;;  %v11347_v57 = vshll.u32 %v5007_v29, 8  ;;  %v11351_v13 = vmul.f32 %v8103_v12, %v9275_v1  ;;  %vm6086_vm13 = vcmp.lt.s32.totalorder %v11098_v61, 0 }
 0x6cd   :  { %v4657_v41 = vsel %vm4536_vm7, %v4656_v30, %v4655_v60  ;;  %v6181_v16 = vsel %vm6179_vm10, %v6180_v20, %v6176_v55  ;;  %v5009_v40 = vadd.s32 1, %v6665_v62  ;;  %v5468_v52 = vshrl.u32 %v5467_v23, 23 }
 0x6ce   :  { %v4660_v63 = vsel %vm4535_vm11, %v11090_v6, %v4657_v41  ;;  %v6182_v44 = vadd.s32 %v6181_v16, %v6177_v7  ;;  %v11353_v46 = vand.u32 3, %v4678_v9  ;;  %v11356_v31 = vadd.s32 %v6173_v21, %v6154_v8 }
 0x6cf   :  { %v4662_v22 = vmul.f32 %v4660_v63, %v4660_v63  ;;  %vm5010_vm12 = vcmp.gt.s32.totalorder %v5009_v40, 0  ;;  %vm11360_vm14 = vcmp.le.f32.partialorder %v6084_v47, 0.7853982  ;;  %v11365_v12 = vand.u32 65535, %v11347_v57 }
 0x6d0   :  { %v6183_v4 = vadd.s32 536870912, %v6182_v44  ;;  %v5011_v59 = vsel %vm5010_vm12, %v5009_v40, 0  ;;  %v5464_v1 = vand.u32 2147483647, %v11338_v17  ;;  %v11372_v15 = vadd.s32 4294967169, %v5468_v52 }
 0x6d1   :  { %v4663_v28 = vmul.f32 -0.001358992, %v4662_v22  ;;  %v4670_v24 = vmul.f32 -0.00019511016, %v4662_v22  ;;  %v5013_v5 = vand.u32 31, %v5011_v59  ;;  %v11370_v8 = vshrl.u32 %v5011_v59, 5 }
 0x6d2   :  { %v6184_v26 = vshrl.u32 %v6183_v4, 30  ;;  %vm4684_vm15 = vcmp.eq.s32.totalorder %v11353_v46, 2  ;;  %vm4681_vm0 = vcmp.eq.s32.totalorder %v11353_v46, 0  ;;  %vm4680_vm1 = vcmp.lt.s32.totalorder %v11353_v46, 2 }
 0x6d3   :  { %v4664_v19 = vadd.f32 0.041655596, %v4663_v28  ;;  %v4671_v32 = vadd.f32 0.008332121, %v4670_v24  ;;  %v5014_v25 = vsub.s32 32, %v5013_v5  ;;  %v5016_v47 = vshll.u32 %v12097_v45, %v5013_v5 }
 0x6d4   :  { %v6185_v48 = vshll.u32 %v6184_v26, 30  ;;  %v6208_v0 = vsub.s32 4, %v6184_v26  ;;  %v5019_v38 = vshll.u32 %v12098_v56, %v5013_v5  ;;  %v5022_v11 = vshll.u32 %v12099_v53, %v5013_v5 }
 0x6d5   :  { %v4665_v51 = vmul.f32 %v4664_v19, %v4662_v22  ;;  %v4672_v42 = vmul.f32 %v4671_v32, %v4662_v22  ;;  %v5017_v3 = vshrl.u32 %v12098_v56, %v5014_v25  ;;  %v5023_v18 = vshrl.u32 %v12100_v34, %v5014_v25 }
 0x6d6   :  { %v11368_v43 = vsub.s32 %v6182_v44, %v6185_v48  ;;  %v5020_v55 = vshrl.u32 %v12099_v53, %v5014_v25  ;;  %vm4677_vm2 = vweird.f32 %v11090_v6  ;;  %v6209_v30 = vsel %vm6086_vm13, %v6208_v0, %v6184_v26 }
 0x6d7   :  { %v4666_v49 = vadd.f32 -0.4999988, %v4665_v51  ;;  %v4673_v36 = vadd.f32 -0.16666654, %v4672_v42  ;;  %v5025_v20 = vshll.u32 %v12100_v34, %v5013_v5  ;;  %v5026_v62 = vshrl.u32 %v12101_v27, %v5014_v25 }
 0x6d8   :  { %vm6187_vm3 = vcmp.lt.s32.totalorder %v11368_v43, 0  ;;  %v6188_v14 = vsub.s32 0, %v11368_v43  ;;  %v5029_v16 = vshrl.u32 %v12102_v10, %v5014_v25  ;;  %v5018_v29 = vor.u32 %v5017_v3, %v5016_v47 }
 0x6d9   :  { %v4667_v21 = vmul.f32 %v4666_v49, %v4662_v22  ;;  %v4674_v60 = vmul.f32 %v4673_v36, %v4662_v22  ;;  %v5024_v40 = vor.u32 %v5023_v18, %v5022_v11  ;;  %v5027_v44 = vor.u32 %v5026_v62, %v5025_v20 }
 0x6da   :  { %v6189_v58 = vsel %vm6187_vm3, %v6188_v14, %v11368_v43  ;;  %v5028_v23 = vshll.u32 %v12101_v27, %v5013_v5  ;;  %v5021_v59 = vor.u32 %v5020_v55, %v5019_v38  ;;  %v6211_v28 = vsel %vm11360_vm14, 0, %v6209_v30 }
 0x6db   :  { %v4668_v37 = vadd.f32 1.0, %v4667_v21  ;;  %v4675_v7 = vadd.f32 1.0, %v4674_v60  ;;  %v6190_v41 = vclz %v6189_v58  ;;  %v5015_v24 = vshrl.u32 %v12097_v45, %v5014_v25 }
 0x6dc   :  { %v5030_v26 = vor.u32 %v5029_v16, %v5028_v23  ;;  %vm5031_vm4 = vcmp.lt.s32.totalorder %v11370_v8, 1  ;;  %vm5033_vm6 = vcmp.lt.s32.totalorder %v11370_v8, 3  ;;  %vm5034_vm7 = vcmp.lt.s32.totalorder %v11370_v8, 4 }
 0x6dd   :  { %v4676_v22 = vmul.f32 %v4675_v7, %v4660_v63  ;;  %v4685_v9 = vxor.u32 2147483648, %v4668_v37  ;;  %v6687_v4 = vadd.s32 4294967294, %v6190_v41  ;;  %v5036_v19 = vsel %vm5034_vm7, %v5024_v40, 2102212464 }
 0x6de   :  { %v5040_v32 = vsel %vm5034_vm7, %v5027_v44, 920167782  ;;  %v5039_v42 = vsel %vm5031_vm4, %v5018_v29, %v5021_v59  ;;  %vm5032_vm8 = vcmp.lt.s32.totalorder %v11370_v8, 2  ;;  %v5043_v3 = vsel %vm5031_vm4, %v5021_v59, %v5024_v40 }
 0x6df   :  { %v4682_v52 = vxor.u32 2147483648, %v4676_v22  ;;  %vm6688_vm5 = vcmp.lt.s32.totalorder %v6687_v4, 0  ;;  %v4686_v63 = vsel %vm4684_vm15, %v4685_v9, %v4676_v22  ;;  %v5041_v36 = vsel %vm5033_vm6, %v5024_v40, %v5040_v32 }
 0x6e0   :  { %v6193_v5 = vsel %vm6688_vm5, 0, %v6687_v4  ;;  %v5035_v46 = vsel %vm5031_vm4, %v5015_v24, %v5018_v29  ;;  %v5042_v18 = vsel %vm5032_vm8, %v5039_v42, %v5041_v36  ;;  %v5044_v6 = vsel %vm5034_vm7, %v5030_v26, 1326507024 }
 0x6e1   :  { %v4683_v48 = vsel %vm4681_vm0, %v4668_v37, %v4682_v52  ;;  %v6194_v25 = vsub.s32 32, %v6193_v5  ;;  %v6198_v51 = vsub.s32 4294967266, %v6193_v5  ;;  %v6195_v49 = vshll.u32 %v11368_v43, %v6193_v5 }
 0x6e2   :  { %v4687_v0 = vsel %vm4680_vm1, %v4683_v48, %v4686_v63  ;;  %v5037_v43 = vsel %vm5033_vm6, %v5021_v59, %v5036_v19  ;;  %v5072_v55 = vand.u32 65535, %v5042_v18  ;;  %v5049_v58 = vshrl.u32 %v11347_v57, 16 }
 0x6e3   :  { %v4688_v47 = vsel %vm4677_vm2, nan, %v4687_v0  ;;  %v6196_v38 = vshrl.u32 %v11356_v31, %v6194_v25  ;;  %v6199_v14 = vadd.s32 127, %v6198_v51  ;;  %v5045_v31 = vsel %vm5033_vm6, %v5027_v44, %v5044_v6 }
 0x6e4   :  { %6568 = vst [vmem:[#allocation2 + $0x98] sm:$0xff] %v4688_v47  ;;  %v5046_v11 = vsel %vm5032_vm8, %v5043_v3, %v5045_v31  ;;  %v5073_v30 = vshrl.u32 %v5042_v18, 16  ;;  %v5474_v20 = vadd.s32 1, %v11372_v15  ;;  %v11436_v41 = vand.u32 8388607, %v5464_v1 }
 0x6e5   :  { %v6197_v21 = vor.u32 %v6196_v38, %v6195_v49  ;;  %v6200_v60 = vshll.u32 %v6199_v14, 23  ;;  %v5050_v37 = vand.u32 65535, %v5046_v11  ;;  %v5051_v7 = vshrl.u32 %v5046_v11, 16 }
 0x6e6   :  { %v6228_v16 = vadd.s32 3, %v6211_v28  ;;  %v11440_v29 = vsel %vm5032_vm8, %v5035_v46, %v5037_v43  ;;  %v5075_v40 = vmul.u32 %v5073_v30, %v11365_v12  ;;  %v5076_v44 = vmul.u32 %v5072_v55, %v5049_v58 }
 0x6e7   :  { %v6201_v62 = vor.u32 4788187, %v6200_v60  ;;  %v6204_v22 = vcvt.s32.f32 %v6197_v21  ;;  %v5053_v9 = vmul.u32 %v5051_v7, %v11365_v12  ;;  %v5054_v15 = vmul.u32 %v5050_v37, %v5049_v58 }
 0x6e8   :  { %v5074_v4 = vmul.u32 %v5072_v55, %v11365_v12  ;;  %v5077_v59 = vmul.u32 %v5073_v30, %v5049_v58  ;;  %v5078_v24 = vshll.u32 %v5075_v40, 16  ;;  %vm5475_vm9 = vcmp.gt.s32.totalorder %v5474_v20, 0 }
 0x6e9   :  { %v6202_v23 = vand.u32 2147483647, %v6201_v62  ;;  %v5052_v28 = vmul.u32 %v5050_v37, %v11365_v12  ;;  %v5055_v52 = vmul.u32 %v5051_v7, %v5049_v58  ;;  %v5056_v8 = vshll.u32 %v5053_v9, 16 }
 0x6ea   :  { %v5058_v63 = vshll.u32 %v5054_v15, 16  ;;  %v5080_v5 = vshll.u32 %v5076_v44, 16  ;;  %vm5082_vm10 = vc.u32 %v5074_v4, %v5078_v24  ;;  %v5084_v19 = vadd.s32 %v5078_v24, %v5074_v4 }
 0x6eb   :  { %v6205_v26 = vmul.f32 %v6204_v22, %v6202_v23  ;;  %vm5060_vm11 = vc.u32 %v5052_v28, %v5056_v8  ;;  %v5062_v48 = vadd.s32 %v5056_v8, %v5052_v28  ;;  %v5083_v25 = vsel %vm5082_vm10, 1, %v12096_v54 }
 0x6ec   :  { %v5061_v51 = vsel %vm5060_vm11, 1, %v12096_v54  ;;  %v5085_v42 = vadd.s32 %v5083_v25, %v5077_v59  ;;  %vm5086_vm12 = vc.u32 %v5084_v19, %v5080_v5  ;;  %v5476_v0 = vsel %vm5475_vm9, %v5474_v20, 0 }
 0x6ed   :  { %v6206_v32 = vxor.u32 2147483648, %v6205_v26  ;;  %v5063_v49 = vadd.s32 %v5061_v51, %v5055_v52  ;;  %vm5064_vm15 = vc.u32 %v5062_v48, %v5058_v63  ;;  %v5087_v36 = vsel %vm5086_vm12, 1, %v12096_v54 }
 0x6ee   :  { %v5065_v38 = vsel %vm5064_vm15, 1, %v12096_v54  ;;  %v5079_v14 = vshrl.u32 %v5075_v40, 16  ;;  %v5089_v3 = vadd.s32 %v5087_v36, %v5085_v42  ;;  %v5057_v43 = vshrl.u32 %v5053_v9, 16 }
 0x6ef   :  { %v6207_v12 = vsel %vm6086_vm13, %v6206_v32, %v6205_v26  ;;  %v5067_v18 = vadd.s32 %v5065_v38, %v5063_v49  ;;  %v5478_v6 = vand.u32 31, %v5476_v0  ;;  %v5059_v21 = vshrl.u32 %v5054_v15, 16 }
 0x6f0   :  { %v6210_v47 = vsel %vm11360_vm14, %v11098_v61, %v6207_v12  ;;  %v5081_v60 = vshrl.u32 %v5076_v44, 16  ;;  %v5090_v31 = vadd.s32 %v5089_v3, %v5079_v14  ;;  %v5472_v55 = vor.u32 8388608, %v11436_v41 }
 0x6f1   :  { %v6212_v46 = vmul.f32 %v6210_v47, %v6210_v47  ;;  %v5068_v30 = vadd.s32 %v5067_v18, %v5057_v43  ;;  %v11457_v20 = vsub.s32 32, %v5478_v6  ;;  %v11459_v50 = vand.u32 3, %v6228_v16 }
 0x6f2   :  { %v11461_v62 = vadd.s32 %v5084_v19, %v5080_v5  ;;  %v5091_v37 = vadd.s32 %v5090_v31, %v5081_v60  ;;  %v5092_v7 = vmul.u32 %v11347_v57, %v11440_v29  ;;  %v5481_v44 = vshll.u32 %v12097_v45, %v5478_v6 }
 0x6f3   :  { %v6213_v11 = vmul.f32 -0.001358992, %v6212_v46  ;;  %v6220_v58 = vmul.f32 -0.00019511016, %v6212_v46  ;;  %v11465_v22 = vadd.s32 %v5068_v30, %v5059_v21  ;;  %v5482_v9 = vshrl.u32 %v12098_v56, %v11457_v20 }
 0x6f4   :  { %v5095_v41 = vadd.s32 1, %v5091_v37  ;;  %v5484_v15 = vshll.u32 %v12098_v56, %v5478_v6  ;;  %v5485_v16 = vshrl.u32 %v12099_v53, %v11457_v20  ;;  %v5488_v57 = vshrl.u32 %v12100_v34, %v11457_v20 }
 0x6f5   :  { %v6214_v40 = vadd.f32 0.041655596, %v6213_v11  ;;  %v6221_v23 = vadd.f32 0.008332121, %v6220_v58  ;;  %vm5094_vm13 = vc.u32 %v11465_v22, %v11461_v62  ;;  %v11477_v24 = vshrl.u32 %v5476_v0, 5 }
 0x6f6   :  { %v5096_v29 = vsel %vm5094_vm13, %v5095_v41, %v5091_v37  ;;  %v11479_v26 = vor.u32 %v5482_v9, %v5481_v44  ;;  %v5487_v28 = vshll.u32 %v12099_v53, %v5478_v6  ;;  %v11482_v5 = vor.u32 %v5485_v16, %v5484_v15  ;;  %v1510_v9 = vpop.permute.xlu1 %1509 }
 0x6f7   :  { %v6215_v4 = vmul.f32 %v6214_v40, %v6212_v46  ;;  %v6222_v59 = vmul.f32 %v6221_v23, %v6212_v46  ;;  %v5097_v63 = vadd.s32 %v5096_v29, %v5092_v7  ;;  %v5490_v19 = vshll.u32 %v12100_v34, %v5478_v6 }
 0x6f8   :  { %v5491_v32 = vshrl.u32 %v12101_v27, %v11457_v20  ;;  %v5493_v48 = vshll.u32 %v12101_v27, %v5478_v6  ;;  %v5494_v25 = vshrl.u32 %v12102_v10, %v11457_v20  ;;  %v5489_v12 = vor.u32 %v5488_v57, %v5487_v28 }
 0x6f9   :  { %v6216_v52 = vadd.f32 -0.4999988, %v6215_v4  ;;  %v6223_v8 = vadd.f32 -0.16666654, %v6222_v59  ;;  %v5098_v0 = vadd.s32 536870912, %v5097_v63  ;;  %vm5496_vm14 = vcmp.lt.s32.totalorder %v11477_v24, 1 }
 0x6fa   :  { %v5492_v49 = vor.u32 %v5491_v32, %v5490_v19  ;;  %v5495_v36 = vor.u32 %v5494_v25, %v5493_v48  ;;  %v11491_v38 = vshll.u32 %v5472_v55, 8  ;;  %vm5499_vm0 = vcmp.lt.s32.totalorder %v11477_v24, 4  ;;  %v12159_v32 = vld [vmem:[#allocation26_spill] sm:$0xff] }
 0x6fb   :  { %v6217_v51 = vmul.f32 %v6216_v52, %v6212_v46  ;;  %v6224_v42 = vmul.f32 %v6223_v8, %v6212_v46  ;;  %v11493_v43 = vshrl.u32 %v5098_v0, 30  ;;  %vm5498_vm3 = vcmp.lt.s32.totalorder %v11477_v24, 3 }
 0x6fc   :  { %v5504_v46 = vsel %vm5496_vm14, %v11479_v26, %v11482_v5  ;;  %v5505_v18 = vsel %vm5499_vm0, %v5492_v49, 920167782  ;;  %v5509_v6 = vsel %vm5499_vm0, %v5495_v36, 1326507024  ;;  %v5508_v55 = vsel %vm5496_vm14, %v11482_v5, %v5489_v12 }
 0x6fd   :  { %v6218_v14 = vadd.f32 1.0, %v6217_v51  ;;  %v6225_v3 = vadd.f32 1.0, %v6224_v42  ;;  %v5100_v31 = vshll.u32 %v11493_v43, 30  ;;  %vm6227_vm1 = vweird.f32 %v11098_v61 }
 0x6fe   :  { %vm6230_vm2 = vcmp.lt.s32.totalorder %v11459_v50, 2  ;;  %v5506_v11 = vsel %vm5498_vm3, %v5489_v12, %v5505_v18  ;;  %v5510_v58 = vsel %vm5498_vm3, %v5492_v49, %v5509_v6  ;;  %vm6231_vm4 = vcmp.eq.s32.totalorder %v11459_v50, 0 }
 0x6ff   :  { %v6226_v21 = vmul.f32 %v6225_v3, %v6210_v47  ;;  %v6235_v60 = vxor.u32 2147483648, %v6218_v14  ;;  %v5101_v30 = vsub.s32 %v5097_v63, %v5100_v31  ;;  %vm5497_vm5 = vcmp.lt.s32.totalorder %v11477_v24, 2 }
 0x700   :  { %vm6234_vm6 = vcmp.eq.s32.totalorder %v11459_v50, 2  ;;  %v5507_v37 = vsel %vm5497_vm5, %v5504_v46, %v5506_v11  ;;  %v5511_v7 = vsel %vm5497_vm5, %v5508_v55, %v5510_v58  ;;  %v5513_v40 = vand.u32 65535, %v11491_v38  ;;  %v1522_v11 = vpop.permute.xlu1 %1521 }
 0x701   :  { %v6232_v47 = vxor.u32 2147483648, %v6226_v21  ;;  %v6236_v44 = vsel %vm6234_vm6, %v6235_v60, %v6226_v21  ;;  %vm5102_vm7 = vcmp.lt.s32.totalorder %v5101_v30, 0  ;;  %v5103_v41 = vsub.s32 0, %v5101_v30 }
 0x702   :  { %v5514_v16 = vshrl.u32 %v11491_v38, 16  ;;  %v5515_v4 = vand.u32 65535, %v5511_v7  ;;  %v5516_v59 = vshrl.u32 %v5511_v7, 16  ;;  %v5537_v28 = vand.u32 65535, %v5507_v37 }
 0x703   :  { %v6233_v23 = vsel %vm6231_vm4, %v6218_v14, %v6232_v47  ;;  %v5104_v29 = vsel %vm5102_vm7, %v5103_v41, %v5101_v30  ;;  %v5538_v52 = vshrl.u32 %v5507_v37, 16  ;;  %v1395_v48 = vadd.f32 %v11351_v13, %v12159_v32 }
 0x704   :  { %v6237_v15 = vsel %vm6230_vm2, %v6233_v23, %v6236_v44  ;;  %v5105_v8 = vclz %v5104_v29  ;;  %v5518_v63 = vmul.u32 %v5516_v59, %v5513_v40  ;;  %v5519_v19 = vmul.u32 %v5515_v4, %v5514_v16 }
 0x705   :  { %v6238_v57 = vsel %vm6227_vm1, nan, %v6237_v15  ;;  %v5093_v50 = vadd.s32 %v11461_v62, %v11465_v22  ;;  %v5480_v25 = vshrl.u32 %v12097_v45, %v11457_v20  ;;  %v5501_v61 = vsel %vm5499_vm0, %v5489_v12, 2102212464 }
 0x706   :  { %6578 = vst [vmem:[#allocation2 + $0xe8] sm:$0xff] %v6238_v57  ;;  %v6666_v51 = vadd.s32 4294967294, %v5105_v8  ;;  %v5517_v42 = vmul.u32 %v5515_v4, %v5513_v40  ;;  %v5521_v0 = vshll.u32 %v5518_v63, 16  ;;  %v5520_v49 = vmul.u32 %v5516_v59, %v5514_v16 }
 0x707   :  { %v5522_v36 = vshrl.u32 %v5518_v63, 16  ;;  %v5540_v14 = vmul.u32 %v5538_v52, %v5513_v40  ;;  %v5541_v3 = vmul.u32 %v5537_v28, %v5514_v16  ;;  %v5523_v46 = vshll.u32 %v5519_v19, 16 }
 0x708   :  { %vm6667_vm8 = vcmp.lt.s32.totalorder %v6666_v51, 0  ;;  %vm5525_vm9 = vc.u32 %v5517_v42, %v5521_v0  ;;  %v5527_v13 = vadd.s32 %v5521_v0, %v5517_v42  ;;  %v5539_v22 = vmul.u32 %v5537_v28, %v5513_v40 }
 0x709   :  { %v5108_v18 = vsel %vm6667_vm8, 0, %v6666_v51  ;;  %v5526_v62 = vsel %vm5525_vm9, 1, %v12096_v54  ;;  %v5543_v6 = vshll.u32 %v5540_v14, 16  ;;  %vm5001_vm10 = vcmp.lt.s32.totalorder %v11322_v2, 0 }
 0x70a   :  { %v5109_v20 = vsub.s32 32, %v5108_v18  ;;  %v5113_v21 = vsub.s32 4294967266, %v5108_v18  ;;  %v5528_v12 = vadd.s32 %v5526_v62, %v5520_v49  ;;  %v5542_v60 = vmul.u32 %v5538_v52, %v5514_v16 }
 0x70b   :  { %v5110_v31 = vshll.u32 %v5101_v30, %v5108_v18  ;;  %vm5529_vm11 = vc.u32 %v5527_v13, %v5523_v46  ;;  %v5545_v55 = vshll.u32 %v5541_v3, 16  ;;  %vm5547_vm12 = vc.u32 %v5539_v22, %v5543_v6 }
 0x70c   :  { %v5111_v58 = vshrl.u32 %v5093_v50, %v5109_v20  ;;  %v5114_v47 = vadd.s32 127, %v5113_v21  ;;  %v5530_v37 = vsel %vm5529_vm11, 1, %v12096_v54  ;;  %v5548_v7 = vsel %vm5547_vm12, 1, %v12096_v54 }
 0x70d   :  { %v5532_v23 = vadd.s32 %v5530_v37, %v5528_v12  ;;  %v5549_v40 = vadd.s32 %v5543_v6, %v5539_v22  ;;  %v5550_v44 = vadd.s32 %v5548_v7, %v5542_v60  ;;  %v1553_v41 = vmul.f32 %v8261_v39, %v1510_v9 }
 0x70e   :  { %v5112_v15 = vor.u32 %v5111_v58, %v5110_v31  ;;  %v5115_v4 = vshll.u32 %v5114_v47, 23  ;;  %v5500_v30 = vsel %vm5496_vm14, %v5480_v25, %v11479_v26  ;;  %v1556_v16 = vmul.f32 %v8261_v39, %v1522_v11 }
 0x70f   :  { %v5123_v59 = vsub.s32 4, %v11493_v43  ;;  %v5533_v57 = vadd.s32 %v5532_v23, %v5522_v36  ;;  %vm5551_vm15 = vc.u32 %v5549_v40, %v5545_v55  ;;  %v11547_v29 = vadd.f32 %v1553_v41, %v8881_v35 }
 0x710   :  { %v5116_v28 = vor.u32 4788187, %v5115_v4  ;;  %v5502_v9 = vsel %vm5498_vm3, %v11482_v5, %v5501_v61  ;;  %v5524_v52 = vshrl.u32 %v5519_v19, 16  ;;  %v5552_v8 = vsel %vm5551_vm15, 1, %v12096_v54 }
 0x711   :  { %v5544_v63 = vshrl.u32 %v5540_v14, 16  ;;  %v5554_v32 = vadd.s32 %v5552_v8, %v5550_v44  ;;  %v5929_v26 = vand.u32 2147483647, %v11547_v29  ;;  %v11554_v39 = vadd.f32 %v1556_v16, %v1395_v48 }
 0x712   :  { %v5117_v50 = vand.u32 2147483647, %v5116_v28  ;;  %v5119_v25 = vcvt.s32.f32 %v5112_v15  ;;  %v5534_v51 = vadd.s32 %v5533_v57, %v5524_v52  ;;  %v5932_v35 = vand.u32 2139095040, %v11547_v29 }
 0x713   :  { %v5124_v42 = vsel %vm5001_vm10, %v5123_v59, %v11493_v43  ;;  %v5546_v0 = vshrl.u32 %v5541_v3, 16  ;;  %v5555_v5 = vadd.s32 %v5554_v32, %v5544_v63  ;;  %v5553_v61 = vadd.s32 %v5549_v40, %v5545_v55 }
 0x714   :  { %v5120_v19 = vmul.f32 %v5119_v25, %v5117_v50  ;;  %v5933_v49 = vshrl.u32 %v5932_v35, 23  ;;  %v5936_v36 = vand.u32 8388607, %v5929_v26  ;;  %vm5000_vm13 = vcmp.le.f32.partialorder %v4999_v33, 0.7853982 }
 0x715   :  { %v5503_v48 = vsel %vm5497_vm5, %v5500_v30, %v5502_v9  ;;  %v5556_v14 = vadd.s32 %v5555_v5, %v5546_v0  ;;  %v6397_v46 = vand.u32 2139095040, %v11554_v39  ;;  %v5126_v18 = vsel %vm5000_vm13, 0, %v5124_v42 }
 0x716   :  { %v5121_v13 = vxor.u32 2147483648, %v5120_v19  ;;  %vm5559_vm14 = vc.u32 %v5534_v51, %v5553_v61  ;;  %v6683_v43 = vadd.s32 4294967169, %v5933_v49  ;;  %v5937_v62 = vor.u32 8388608, %v5936_v36 }
 0x717   :  { %v5560_v3 = vadd.s32 1, %v5556_v14  ;;  %v5557_v6 = vmul.u32 %v11491_v38, %v5503_v48  ;;  %v5143_v21 = vadd.s32 3, %v5126_v18  ;;  %v6398_v12 = vshrl.u32 %v6397_v46, 23 }
 0x718   :  { %v5122_v22 = vsel %vm5001_vm10, %v5121_v13, %v5120_v19  ;;  %v5939_v20 = vadd.s32 1, %v6683_v43  ;;  %v11571_v11 = vshll.u32 %v5937_v62, 8  ;;  %v11575_v15 = vadd.s32 %v5553_v61, %v5534_v51 }
 0x719   :  { %v5125_v33 = vsel %vm5000_vm13, %v11322_v2, %v5122_v22  ;;  %v5561_v24 = vsel %vm5559_vm14, %v5560_v3, %v5556_v14  ;;  %v11573_v7 = vand.u32 3, %v5143_v21  ;;  %v6692_v40 = vadd.s32 4294967169, %v6398_v12 }
 0x71a   :  { %v5127_v60 = vmul.f32 %v5125_v33, %v5125_v33  ;;  %v5562_v31 = vadd.s32 %v5561_v24, %v5557_v6  ;;  %vm5940_vm0 = vcmp.gt.s32.totalorder %v5939_v20, 0  ;;  %v11578_v30 = vand.u32 65535, %v11571_v11 }
 0x71b   :  { %v5941_v55 = vsel %vm5940_vm0, %v5939_v20, 0  ;;  %v6394_v16 = vand.u32 2147483647, %v11554_v39  ;;  %vm5466_vm3 = vcmp.lt.s32.totalorder %v11338_v17, 0  ;;  %v11583_v9 = vshrl.u32 %v11571_v11, 16 }
 0x71c   :  { %v5128_v58 = vmul.f32 -0.001358992, %v5127_v60  ;;  %v5135_v47 = vmul.f32 -0.00019511016, %v5127_v60  ;;  %v5563_v37 = vadd.s32 536870912, %v5562_v31  ;;  %v5943_v23 = vand.u32 31, %v5941_v55 }
 0x71d   :  { %vm5149_vm1 = vcmp.eq.s32.totalorder %v11573_v7, 2  ;;  %v11586_v52 = vshrl.u32 %v5941_v55, 5  ;;  %v11590_v32 = vadd.s32 1, %v6692_v40  ;;  %vm5146_vm2 = vcmp.eq.s32.totalorder %v11573_v7, 0 }
 0x71e   :  { %v5129_v38 = vadd.f32 0.041655596, %v5128_v58  ;;  %v5136_v44 = vadd.f32 0.008332121, %v5135_v47  ;;  %v5564_v41 = vshrl.u32 %v5563_v37, 30  ;;  %v5944_v4 = vsub.s32 32, %v5943_v23 }
 0x71f   :  { %v5946_v35 = vshll.u32 %v12097_v45, %v5943_v23  ;;  %v5949_v0 = vshll.u32 %v12098_v56, %v5943_v23  ;;  %v5952_v5 = vshll.u32 %v12099_v53, %v5943_v23  ;;  %vm5145_vm4 = vcmp.lt.s32.totalorder %v11573_v7, 2 }
 0x720   :  { %v5130_v59 = vmul.f32 %v5129_v38, %v5127_v60  ;;  %v5137_v57 = vmul.f32 %v5136_v44, %v5127_v60  ;;  %v5565_v28 = vshll.u32 %v5564_v41, 30  ;;  %v5947_v8 = vshrl.u32 %v12098_v56, %v5944_v4 }
 0x721   :  { %v5950_v63 = vshrl.u32 %v12099_v53, %v5944_v4  ;;  %v5588_v42 = vsub.s32 4, %v5564_v41  ;;  %v5953_v19 = vshrl.u32 %v12100_v34, %v5944_v4  ;;  %vm5142_vm6 = vweird.f32 %v11322_v2 }
 0x722   :  { %v5131_v50 = vadd.f32 -0.4999988, %v5130_v59  ;;  %v5138_v25 = vadd.f32 -0.16666654, %v5137_v57  ;;  %v11592_v51 = vsub.s32 %v5562_v31, %v5565_v28  ;;  %v5948_v48 = vor.u32 %v5947_v8, %v5946_v35 }
 0x723   :  { %v5951_v14 = vor.u32 %v5950_v63, %v5949_v0  ;;  %v5955_v46 = vshll.u32 %v12100_v34, %v5943_v23  ;;  %v5956_v13 = vshrl.u32 %v12101_v27, %v5944_v4  ;;  %v5959_v62 = vshrl.u32 %v12102_v10, %v5944_v4 }
 0x724   :  { %v5132_v61 = vmul.f32 %v5131_v50, %v5127_v60  ;;  %v5139_v49 = vmul.f32 %v5138_v25, %v5127_v60  ;;  %vm5567_vm5 = vcmp.lt.s32.totalorder %v11592_v51, 0  ;;  %v5568_v36 = vsub.s32 0, %v11592_v51 }
 0x725   :  { %vm11609_vm7 = vcmp.le.f32.partialorder %v5464_v1, 0.7853982  ;;  %v5954_v20 = vor.u32 %v5953_v19, %v5952_v5  ;;  %v5957_v21 = vor.u32 %v5956_v13, %v5955_v46  ;;  %v5958_v24 = vshll.u32 %v12101_v27, %v5943_v23 }
 0x726   :  { %v5133_v18 = vadd.f32 1.0, %v5132_v61  ;;  %v5140_v43 = vadd.f32 1.0, %v5139_v49  ;;  %v5569_v3 = vsel %vm5567_vm5, %v5568_v36, %v11592_v51  ;;  %v5945_v31 = vshrl.u32 %v12097_v45, %v5944_v4 }
 0x727   :  { %v5570_v6 = vclz %v5569_v3  ;;  %vm5961_vm8 = vcmp.lt.s32.totalorder %v11586_v52, 1  ;;  %v5589_v58 = vsel %vm5466_vm3, %v5588_v42, %v5564_v41  ;;  %v5960_v47 = vor.u32 %v5959_v62, %v5958_v24 }
 0x728   :  { %v5141_v12 = vmul.f32 %v5140_v43, %v5125_v33  ;;  %v5150_v60 = vxor.u32 2147483648, %v5133_v18  ;;  %vm5962_vm9 = vcmp.lt.s32.totalorder %v11586_v52, 2  ;;  %vm5963_vm10 = vcmp.lt.s32.totalorder %v11586_v52, 3 }
 0x729   :  { %v6675_v55 = vadd.s32 4294967294, %v5570_v6  ;;  %vm5964_vm11 = vcmp.lt.s32.totalorder %v11586_v52, 4  ;;  %v5969_v23 = vsel %vm5961_vm8, %v5948_v48, %v5951_v14  ;;  %v5965_v41 = vsel %vm5961_vm8, %v5945_v31, %v5948_v48 }
 0x72a   :  { %v5147_v1 = vxor.u32 2147483648, %v5141_v12  ;;  %v5151_v37 = vsel %vm5149_vm1, %v5150_v60, %v5141_v12  ;;  %v5966_v33 = vsel %vm5964_vm11, %v5954_v20, 2102212464  ;;  %v5970_v40 = vsel %vm5964_vm11, %v5957_v21, 920167782 }
 0x72b   :  { %vm6676_vm12 = vcmp.lt.s32.totalorder %v6675_v55, 0  ;;  %v5971_v4 = vsel %vm5963_vm10, %v5954_v20, %v5970_v40  ;;  %v5967_v8 = vsel %vm5963_vm10, %v5951_v14, %v5966_v33  ;;  %v5973_v35 = vsel %vm5961_vm8, %v5951_v14, %v5954_v20 }
 0x72c   :  { %v5148_v38 = vsel %vm5146_vm2, %v5133_v18, %v5147_v1  ;;  %v5573_v44 = vsel %vm6676_vm12, 0, %v6675_v55  ;;  %v5972_v25 = vsel %vm5962_vm9, %v5969_v23, %v5971_v4  ;;  %v5974_v0 = vsel %vm5964_vm11, %v5960_v47, 1326507024 }
 0x72d   :  { %v5152_v59 = vsel %vm5145_vm4, %v5148_v38, %v5151_v37  ;;  %v5574_v57 = vsub.s32 32, %v5573_v44  ;;  %v5578_v28 = vsub.s32 4294967266, %v5573_v44  ;;  %v5575_v50 = vshll.u32 %v11592_v51, %v5573_v44 }
 0x72e   :  { %v5153_v63 = vsel %vm5142_vm6, nan, %v5152_v59  ;;  %v6002_v5 = vand.u32 65535, %v5972_v25  ;;  %v5591_v2 = vsel %vm11609_vm7, 0, %v5589_v58  ;;  %v11653_v51 = vsel %vm5962_vm9, %v5965_v41, %v5967_v8 }
 0x72f   :  { %6571 = vst [vmem:[#allocation2 + $0xb0] sm:$0xff] %v5153_v63  ;;  %v5576_v7 = vshrl.u32 %v11575_v15, %v5574_v57  ;;  %v5579_v42 = vadd.s32 127, %v5578_v28  ;;  %v5975_v19 = vsel %vm5963_vm10, %v5957_v21, %v5974_v0  ;;  %v6003_v61 = vshrl.u32 %v5972_v25, 16 }
 0x730   :  { %v5976_v15 = vsel %vm5962_vm9, %v5973_v35, %v5975_v19  ;;  %vm6405_vm15 = vcmp.gt.s32.totalorder %v11590_v32, 0  ;;  %v6006_v13 = vmul.u32 %v6002_v5, %v11583_v9  ;;  %v11662_v43 = vadd.s32 3, %v5591_v2 }
 0x731   :  { %v5577_v49 = vor.u32 %v5576_v7, %v5575_v50  ;;  %v5580_v36 = vshll.u32 %v5579_v42, 23  ;;  %v5980_v48 = vand.u32 65535, %v5976_v15  ;;  %v5981_v14 = vshrl.u32 %v5976_v15, 16 }
 0x732   :  { %v6005_v46 = vmul.u32 %v6003_v61, %v11578_v30  ;;  %v6022_v3 = vmul.u32 %v11571_v11, %v11653_v51  ;;  %v11668_v62 = vand.u32 8388607, %v6394_v16  ;;  %v6004_v20 = vmul.u32 %v6002_v5, %v11578_v30 }
 0x733   :  { %v5581_v18 = vor.u32 4788187, %v5580_v36  ;;  %v5983_v52 = vmul.u32 %v5981_v14, %v11578_v30  ;;  %v5984_v6 = vmul.u32 %v5980_v48, %v11583_v9  ;;  %v6406_v21 = vsel %vm6405_vm15, %v11590_v32, 0 }
 0x734   :  { %v5584_v12 = vcvt.s32.f32 %v5577_v49  ;;  %v6007_v60 = vmul.u32 %v6003_v61, %v11583_v9  ;;  %v6008_v31 = vshll.u32 %v6005_v46, 16  ;;  %v5982_v55 = vmul.u32 %v5980_v48, %v11578_v30 }
 0x735   :  { %v5582_v24 = vand.u32 2147483647, %v5581_v18  ;;  %v5985_v58 = vmul.u32 %v5981_v14, %v11583_v9  ;;  %v5986_v47 = vshll.u32 %v5983_v52, 16  ;;  %v6010_v1 = vshll.u32 %v6006_v13, 16 }
 0x736   :  { %v5988_v33 = vshll.u32 %v5984_v6, 16  ;;  %vm6012_vm13 = vc.u32 %v6004_v20, %v6008_v31  ;;  %v6014_v23 = vadd.s32 %v6008_v31, %v6004_v20  ;;  %v6408_v32 = vand.u32 31, %v6406_v21 }
 0x737   :  { %v5585_v37 = vmul.f32 %v5584_v12, %v5582_v24  ;;  %vm5990_vm14 = vc.u32 %v5982_v55, %v5986_v47  ;;  %v5992_v40 = vadd.s32 %v5986_v47, %v5982_v55  ;;  %v6013_v38 = vsel %vm6012_vm13, 1, %v12096_v54 }
 0x738   :  { %v5991_v41 = vsel %vm5990_vm14, 1, %v12096_v54  ;;  %v6015_v4 = vadd.s32 %v6013_v38, %v6007_v60  ;;  %vm6016_vm0 = vc.u32 %v6014_v23, %v6010_v1  ;;  %v6009_v30 = vshrl.u32 %v6005_v46, 16 }
 0x739   :  { %v5586_v44 = vxor.u32 2147483648, %v5585_v37  ;;  %v5993_v59 = vadd.s32 %v5991_v41, %v5985_v58  ;;  %vm5994_vm1 = vc.u32 %v5992_v40, %v5988_v33  ;;  %v6017_v9 = vsel %vm6016_vm0, 1, %v12096_v54 }
 0x73a   :  { %v5995_v28 = vsel %vm5994_vm1, 1, %v12096_v54  ;;  %v6019_v8 = vadd.s32 %v6017_v9, %v6015_v4  ;;  %v11683_v63 = vsub.s32 32, %v6408_v32  ;;  %v5987_v25 = vshrl.u32 %v5983_v52, 16 }
 0x73b   :  { %v5587_v57 = vsel %vm5466_vm3, %v5586_v44, %v5585_v37  ;;  %v5997_v35 = vadd.s32 %v5995_v28, %v5993_v59  ;;  %v11688_v7 = vshrl.u32 %v6406_v21, 5  ;;  %v5989_v0 = vshrl.u32 %v5984_v6, 16 }
 0x73c   :  { %v5590_v50 = vsel %vm11609_vm7, %v11338_v17, %v5587_v57  ;;  %v6011_v5 = vshrl.u32 %v6006_v13, 16  ;;  %v6020_v2 = vadd.s32 %v6019_v8, %v6009_v30  ;;  %v11690_v61 = vadd.s32 %v6014_v23, %v6010_v1 }
 0x73d   :  { %v5592_v42 = vmul.f32 %v5590_v50, %v5590_v50  ;;  %v5998_v19 = vadd.s32 %v5997_v35, %v5987_v25  ;;  %v6411_v49 = vshll.u32 %v12097_v45, %v6408_v32  ;;  %v6414_v36 = vshll.u32 %v12098_v56, %v6408_v32 }
 0x73e   :  { %v6021_v14 = vadd.s32 %v6020_v2, %v6011_v5  ;;  %v6412_v22 = vshrl.u32 %v12098_v56, %v11683_v63  ;;  %v6415_v18 = vshrl.u32 %v12099_v53, %v11683_v63  ;;  %v6418_v13 = vshrl.u32 %v12100_v34, %v11683_v63 }
 0x73f   :  { %v5593_v15 = vmul.f32 -0.001358992, %v5592_v42  ;;  %v5600_v48 = vmul.f32 -0.00019511016, %v5592_v42  ;;  %v11696_v46 = vadd.s32 %v5998_v19, %v5989_v0  ;;  %v6420_v52 = vshll.u32 %v12100_v34, %v6408_v32 }
 0x740   :  { %v6025_v21 = vadd.s32 1, %v6021_v14  ;;  %v6421_v24 = vshrl.u32 %v12101_v27, %v11683_v63  ;;  %v6417_v56 = vshll.u32 %v12099_v53, %v6408_v32  ;;  %v6423_v12 = vshll.u32 %v12101_v27, %v6408_v32 }
 0x741   :  { %v5594_v6 = vadd.f32 0.041655596, %v5593_v15  ;;  %v5601_v20 = vadd.f32 0.008332121, %v5600_v48  ;;  %vm6024_vm3 = vc.u32 %v11696_v46, %v11690_v61  ;;  %v6424_v60 = vshrl.u32 %v12102_v10, %v11683_v63 }
 0x742   :  { %v6026_v58 = vsel %vm6024_vm3, %v6025_v21, %v6021_v14  ;;  %v6422_v34 = vor.u32 %v6421_v24, %v6420_v52  ;;  %v11714_v1 = vor.u32 %v6412_v22, %v6411_v49  ;;  %v11716_v37 = vor.u32 %v6415_v18, %v6414_v36 }
 0x743   :  { %v5595_v31 = vmul.f32 %v5594_v6, %v5592_v42  ;;  %v5602_v55 = vmul.f32 %v5601_v20, %v5592_v42  ;;  %v6027_v47 = vadd.s32 %v6026_v58, %v6022_v3  ;;  %v11718_v33 = vor.u32 %v6418_v13, %v6417_v56 }
 0x744   :  { %v6425_v27 = vor.u32 %v6424_v60, %v6423_v12  ;;  %v5609_v40 = vand.u32 3, %v11662_v43  ;;  %v6402_v38 = vor.u32 8388608, %v11668_v62  ;;  %vm6429_vm2 = vcmp.lt.s32.totalorder %v11688_v7, 4 }
 0x745   :  { %v5596_v53 = vadd.f32 -0.4999988, %v5595_v31  ;;  %v5603_v23 = vadd.f32 -0.16666654, %v5602_v55  ;;  %v6028_v10 = vadd.s32 536870912, %v6027_v47  ;;  %vm6426_vm4 = vcmp.lt.s32.totalorder %v11688_v7, 1 }
 0x746   :  { %v6435_v11 = vsel %vm6429_vm2, %v6422_v34, 920167782  ;;  %vm6428_vm5 = vcmp.lt.s32.totalorder %v11688_v7, 3  ;;  %v6434_v43 = vsel %vm6426_vm4, %v11714_v1, %v11716_v37  ;;  %v6438_v3 = vsel %vm6426_vm4, %v11716_v37, %v11718_v33 }
 0x747   :  { %v5597_v32 = vmul.f32 %v5596_v53, %v5592_v42  ;;  %v5604_v44 = vmul.f32 %v5603_v23, %v5592_v42  ;;  %v11726_v51 = vshrl.u32 %v6028_v10, 30  ;;  %v6436_v4 = vsel %vm6428_vm5, %v11718_v33, %v6435_v11 }
 0x748   :  { %v6439_v59 = vsel %vm6429_vm2, %v6425_v27, 1326507024  ;;  %vm6427_vm6 = vcmp.lt.s32.totalorder %v11688_v7, 2  ;;  %v11746_v57 = vshll.u32 %v6402_v38, 8  ;;  %vm5607_vm7 = vweird.f32 %v11338_v17 }
 0x749   :  { %v5598_v62 = vadd.f32 1.0, %v5597_v32  ;;  %v5605_v41 = vadd.f32 1.0, %v5604_v44  ;;  %v6030_v30 = vshll.u32 %v11726_v51, 30  ;;  %v6440_v9 = vsel %vm6428_vm5, %v6422_v34, %v6439_v59 }
 0x74a   :  { %v6441_v25 = vsel %vm6427_vm6, %v6438_v3, %v6440_v9  ;;  %vm5610_vm8 = vcmp.lt.s32.totalorder %v5609_v40, 2  ;;  %vm5611_vm9 = vcmp.eq.s32.totalorder %v5609_v40, 0  ;;  %v6437_v42 = vsel %vm6427_vm6, %v6434_v43, %v6436_v4 }
 0x74b   :  { %v5606_v28 = vmul.f32 %v5605_v41, %v5590_v50  ;;  %v5615_v8 = vxor.u32 2147483648, %v5598_v62  ;;  %v6031_v35 = vsub.s32 %v6027_v47, %v6030_v30  ;;  %vm5614_vm10 = vcmp.eq.s32.totalorder %v5609_v40, 2 }
 0x74c   :  { %v6444_v5 = vshrl.u32 %v11746_v57, 16  ;;  %v6445_v2 = vand.u32 65535, %v6441_v25  ;;  %v6443_v50 = vand.u32 65535, %v11746_v57  ;;  %v6446_v49 = vshrl.u32 %v6441_v25, 16 }
 0x74d   :  { %v5612_v0 = vxor.u32 2147483648, %v5606_v28  ;;  %vm6032_vm11 = vcmp.lt.s32.totalorder %v6031_v35, 0  ;;  %v6033_v19 = vsub.s32 0, %v6031_v35  ;;  %v5616_v15 = vsel %vm5614_vm10, %v5615_v8, %v5606_v28 }
 0x74e   :  { %v6449_v48 = vmul.u32 %v6445_v2, %v6444_v5  ;;  %v6467_v14 = vand.u32 65535, %v6437_v42  ;;  %v6448_v13 = vmul.u32 %v6446_v49, %v6443_v50  ;;  %v6468_v52 = vshrl.u32 %v6437_v42, 16 }
 0x74f   :  { %v5613_v36 = vsel %vm5611_vm9, %v5598_v62, %v5612_v0  ;;  %v6034_v18 = vsel %vm6032_vm11, %v6033_v19, %v6031_v35  ;;  %v6447_v21 = vmul.u32 %v6445_v2, %v6443_v50  ;;  %v6450_v12 = vmul.u32 %v6446_v49, %v6444_v5 }
 0x750   :  { %v5617_v22 = vsel %vm5610_vm8, %v5613_v36, %v5616_v15  ;;  %v6035_v20 = vclz %v6034_v18  ;;  %v6451_v24 = vshll.u32 %v6448_v13, 16  ;;  %v6453_v60 = vshll.u32 %v6449_v48, 16 }
 0x751   :  { %v5618_v6 = vsel %vm5607_vm7, nan, %v5617_v22  ;;  %v6470_v55 = vmul.u32 %v6468_v52, %v6443_v50  ;;  %v6471_v58 = vmul.u32 %v6467_v14, %v6444_v5  ;;  %v6023_v34 = vadd.s32 %v11690_v61, %v11696_v46 }
 0x752   :  { %6574 = vst [vmem:[#allocation2 + $0xc8] sm:$0xff] %v5618_v6  ;;  %v6684_v56 = vadd.s32 4294967294, %v6035_v20  ;;  %vm6455_vm12 = vc.u32 %v6447_v21, %v6451_v24  ;;  %v6457_v31 = vadd.s32 %v6451_v24, %v6447_v21  ;;  %v6452_v47 = vshrl.u32 %v6448_v13, 16 }
 0x753   :  { %v6456_v53 = vsel %vm6455_vm12, 1, %v12096_v54  ;;  %v6473_v27 = vshll.u32 %v6470_v55, 16  ;;  %v6469_v32 = vmul.u32 %v6467_v14, %v6443_v50  ;;  %v6472_v43 = vmul.u32 %v6468_v52, %v6444_v5 }
 0x754   :  { %vm6685_vm15 = vcmp.lt.s32.totalorder %v6684_v56, 0  ;;  %v6458_v23 = vadd.s32 %v6456_v53, %v6450_v12  ;;  %vm6459_vm13 = vc.u32 %v6457_v31, %v6453_v60  ;;  %v6475_v3 = vshll.u32 %v6471_v58, 16 }
 0x755   :  { %v6038_v17 = vsel %vm6685_vm15, 0, %v6684_v56  ;;  %v6460_v38 = vsel %vm6459_vm13, 1, %v12096_v54  ;;  %vm6477_vm14 = vc.u32 %v6469_v32, %v6473_v27  ;;  %v6479_v61 = vadd.s32 %v6473_v27, %v6469_v32 }
 0x756   :  { %v6039_v40 = vsub.s32 32, %v6038_v17  ;;  %v6043_v10 = vsub.s32 4294967266, %v6038_v17  ;;  %v6040_v44 = vshll.u32 %v6031_v35, %v6038_v17  ;;  %v6462_v11 = vadd.s32 %v6460_v38, %v6458_v23 }
 0x757   :  { %v6431_v46 = vsel %vm6429_vm2, %v11718_v33, 2102212464  ;;  %v6478_v59 = vsel %vm6477_vm14, 1, %v12096_v54  ;;  %vm6481_vm0 = vc.u32 %v6479_v61, %v6475_v3  ;;  %v6410_v8 = vshrl.u32 %v12097_v45, %v11683_v63 }
 0x758   :  { %v6041_v62 = vshrl.u32 %v6023_v34, %v6039_v40  ;;  %v6044_v41 = vadd.s32 127, %v6043_v10  ;;  %v6463_v4 = vadd.s32 %v6462_v11, %v6452_v47  ;;  %v6480_v28 = vadd.s32 %v6478_v59, %v6472_v43 }
 0x759   :  { %v6454_v25 = vshrl.u32 %v6449_v48, 16  ;;  %v6482_v35 = vsel %vm6481_vm0, 1, %v12096_v54  ;;  %v6474_v0 = vshrl.u32 %v6470_v55, 16  ;;  %v6430_v33 = vsel %vm6426_vm4, %v6410_v8, %v11714_v1 }
 0x75a   :  { %v6042_v30 = vor.u32 %v6041_v62, %v6040_v44  ;;  %v6045_v9 = vshll.u32 %v6044_v41, 23  ;;  %v6484_v5 = vadd.s32 %v6482_v35, %v6480_v28  ;;  %v6432_v2 = vsel %vm6428_vm5, %v11716_v37, %v6431_v46 }
 0x75b   :  { %v6464_v19 = vadd.s32 %v6463_v4, %v6454_v25  ;;  %v6476_v36 = vshrl.u32 %v6471_v58, 16  ;;  %v6483_v45 = vadd.s32 %v6479_v61, %v6475_v3  ;;  %v6433_v54 = vsel %vm6427_vm6, %v6430_v33, %v6432_v2 }
 0x75c   :  { %v6046_v42 = vor.u32 4788187, %v6045_v9  ;;  %v6049_v49 = vcvt.s32.f32 %v6042_v30  ;;  %v6485_v15 = vadd.s32 %v6484_v5, %v6474_v0  ;;  %vm5931_vm3 = vcmp.lt.s32.totalorder %v11547_v29, 0 }
 0x75d   :  { %vm6489_vm1 = vc.u32 %v6464_v19, %v6483_v45  ;;  %v6487_v1 = vmul.u32 %v11746_v57, %v6433_v54  ;;  %vm11781_vm2 = vcmp.le.f32.partialorder %v5929_v26, 0.7853982  ;;  %v6053_v13 = vsub.s32 4, %v11726_v51 }
 0x75e   :  { %v6047_v50 = vand.u32 2147483647, %v6046_v42  ;;  %v6486_v48 = vadd.s32 %v6485_v15, %v6476_v36  ;;  %v6488_v61 = vadd.s32 %v6483_v45, %v6464_v19  ;;  %vm6072_vm9 = vweird.f32 %v11547_v29 }
 0x75f   :  { %v6054_v24 = vsel %vm5931_vm3, %v6053_v13, %v11726_v51  ;;  %vm6396_vm10 = vcmp.lt.s32.totalorder %v11554_v39, 0  ;;  %vm6395_vm11 = vcmp.le.f32.partialorder %v6394_v16, 0.7853982  ;;  %vm6537_vm14 = vweird.f32 %v11554_v39 }
 0x760   :  { %v6050_v63 = vmul.f32 %v6049_v49, %v6047_v50  ;;  %v6490_v22 = vadd.s32 1, %v6486_v48  ;;  %v6056_v31 = vsel %vm11781_vm2, 0, %v6054_v24 }
 0x761   :  { %v6073_v23 = vadd.s32 3, %v6056_v31 }
 0x762   :  { %v6051_v14 = vxor.u32 2147483648, %v6050_v63  ;;  %v6491_v52 = vsel %vm6489_vm1, %v6490_v22, %v6486_v48 }
 0x763   :  { %v6492_v6 = vadd.s32 %v6491_v52, %v6487_v1  ;;  %v6074_v44 = vand.u32 3, %v6073_v23 }
 0x764   :  { %v6052_v18 = vsel %vm5931_vm3, %v6051_v14, %v6050_v63 }
 0x765   :  { %v6055_v7 = vsel %vm11781_vm2, %v11547_v29, %v6052_v18  ;;  %v6493_v21 = vadd.s32 536870912, %v6492_v6  ;;  %vm6075_vm5 = vcmp.lt.s32.totalorder %v6074_v44, 2  ;;  %vm6076_vm7 = vcmp.eq.s32.totalorder %v6074_v44, 0 }
 0x766   :  { %v6057_v20 = vmul.f32 %v6055_v7, %v6055_v7  ;;  %vm6079_vm8 = vcmp.eq.s32.totalorder %v6074_v44, 2 }
 0x767   :  { %v6494_v12 = vshrl.u32 %v6493_v21, 30 }
 0x768   :  { %v6058_v57 = vmul.f32 -0.001358992, %v6057_v20  ;;  %v6065_v56 = vmul.f32 -0.00019511016, %v6057_v20 }
 0x769   :  { %v6495_v55 = vshll.u32 %v6494_v12, 30  ;;  %v6518_v29 = vsub.s32 4, %v6494_v12 }
 0x76a   :  { %v6059_v26 = vadd.f32 0.041655596, %v6058_v57  ;;  %v6066_v60 = vadd.f32 0.008332121, %v6065_v56 }
 0x76b   :  { %v6496_v47 = vsub.s32 %v6492_v6, %v6495_v55  ;;  %v6519_v48 = vsel %vm6396_vm10, %v6518_v29, %v6494_v12 }
 0x76c   :  { %v6060_v58 = vmul.f32 %v6059_v26, %v6057_v20  ;;  %v6067_v34 = vmul.f32 %v6066_v60, %v6057_v20  ;;  %v6521_v1 = vsel %vm6395_vm11, 0, %v6519_v48 }
 0x76d   :  { %vm6497_vm4 = vcmp.lt.s32.totalorder %v6496_v47, 0  ;;  %v6498_v27 = vsub.s32 0, %v6496_v47 }
 0x76e   :  { %v6061_v53 = vadd.f32 -0.4999988, %v6060_v58  ;;  %v6068_v17 = vadd.f32 -0.16666654, %v6067_v34 }
 0x76f   :  { %v6499_v51 = vsel %vm6497_vm4, %v6498_v27, %v6496_v47 }
 0x770   :  { %v6062_v40 = vmul.f32 %v6061_v53, %v6057_v20  ;;  %v6069_v10 = vmul.f32 %v6068_v17, %v6057_v20  ;;  %v6500_v11 = vclz %v6499_v51 }
 0x772   :  { %v6063_v38 = vadd.f32 1.0, %v6062_v40  ;;  %v6070_v32 = vadd.f32 1.0, %v6069_v10  ;;  %v6693_v62 = vadd.s32 4294967294, %v6500_v11 }
 0x774   :  { %v6071_v43 = vmul.f32 %v6070_v32, %v6055_v7  ;;  %v6080_v3 = vxor.u32 2147483648, %v6063_v38  ;;  %vm6694_vm6 = vcmp.lt.s32.totalorder %v6693_v62, 0  ;;  %v6538_v7 = vadd.s32 3, %v6521_v1 }
 0x775   :  { %v6503_v46 = vsel %vm6694_vm6, 0, %v6693_v62 }
 0x776   :  { %v6077_v41 = vxor.u32 2147483648, %v6071_v43  ;;  %v6081_v59 = vsel %vm6079_vm8, %v6080_v3, %v6071_v43  ;;  %v6504_v30 = vsub.s32 32, %v6503_v46  ;;  %v6508_v9 = vsub.s32 4294967266, %v6503_v46 }
 0x777   :  { %v6505_v25 = vshll.u32 %v6496_v47, %v6503_v46  ;;  %v6539_v24 = vand.u32 3, %v6538_v7 }
 0x778   :  { %v6078_v4 = vsel %vm6076_vm7, %v6063_v38, %v6077_v41  ;;  %v6506_v35 = vshrl.u32 %v6488_v61, %v6504_v30  ;;  %v6509_v42 = vadd.s32 127, %v6508_v9 }
 0x779   :  { %v6082_v28 = vsel %vm6075_vm5, %v6078_v4, %v6081_v59  ;;  %vm6541_vm12 = vcmp.eq.s32.totalorder %v6539_v24, 0  ;;  %vm6544_vm15 = vcmp.eq.s32.totalorder %v6539_v24, 2  ;;  %vm6540_vm13 = vcmp.lt.s32.totalorder %v6539_v24, 2 }
 0x77a   :  { %v6083_v8 = vsel %vm6072_vm9, nan, %v6082_v28  ;;  %v6507_v0 = vor.u32 %v6506_v35, %v6505_v25  ;;  %v6510_v5 = vshll.u32 %v6509_v42, 23 }
 0x77b   :  { %6577 = vst [vmem:[#allocation2 + $0xe0] sm:$0xff] %v6083_v8 }
 0x77c   :  { %v6511_v33 = vor.u32 4788187, %v6510_v5  ;;  %v6514_v50 = vcvt.s32.f32 %v6507_v0 }
 0x77e   :  { %v6512_v2 = vand.u32 2147483647, %v6511_v33 }
 0x780   :  { %v6515_v49 = vmul.f32 %v6514_v50, %v6512_v2 }
 0x782   :  { %v6516_v19 = vxor.u32 2147483648, %v6515_v49 }
 0x784   :  { %v6517_v36 = vsel %vm6396_vm10, %v6516_v19, %v6515_v49 }
 0x785   :  { %v6520_v15 = vsel %vm6395_vm11, %v11554_v39, %v6517_v36 }
 0x786   :  { %v6522_v45 = vmul.f32 %v6520_v15, %v6520_v15 }
 0x788   :  { %v6523_v63 = vmul.f32 -0.001358992, %v6522_v45  ;;  %v6530_v54 = vmul.f32 -0.00019511016, %v6522_v45 }
 0x78a   :  { %v6524_v14 = vadd.f32 0.041655596, %v6523_v63  ;;  %v6531_v22 = vadd.f32 0.008332121, %v6530_v54 }
 0x78c   :  { %v6525_v37 = vmul.f32 %v6524_v14, %v6522_v45  ;;  %v6532_v18 = vmul.f32 %v6531_v22, %v6522_v45 }
 0x78e   :  { %v6526_v13 = vadd.f32 -0.4999988, %v6525_v37  ;;  %v6533_v52 = vadd.f32 -0.16666654, %v6532_v18 }
 0x790   :  { %v6527_v6 = vmul.f32 %v6526_v13, %v6522_v45  ;;  %v6534_v20 = vmul.f32 %v6533_v52, %v6522_v45 }
 0x792   :  { %v6528_v21 = vadd.f32 1.0, %v6527_v6  ;;  %v6535_v16 = vadd.f32 1.0, %v6534_v20 }
 0x794   :  { %v6536_v57 = vmul.f32 %v6535_v16, %v6520_v15  ;;  %v6545_v56 = vxor.u32 2147483648, %v6528_v21 }
 0x796   :  { %v6542_v12 = vxor.u32 2147483648, %v6536_v57  ;;  %v6546_v60 = vsel %vm6544_vm15, %v6545_v56, %v6536_v57 }
 0x798   :  { %v6543_v26 = vsel %vm6541_vm12, %v6528_v21, %v6542_v12 }
 0x799   :  { %v6547_v31 = vsel %vm6540_vm13, %v6543_v26, %v6546_v60 }
 0x79a   :  { %v6548_v55 = vsel %vm6537_vm14, nan, %v6547_v31 }
 0x79b   :  { %6580 = vst [vmem:[#allocation2 + $0xf8] sm:$0xff] %v6548_v55 }
 0x79c   :  { %6593 = dma.vmem_to_hbm [thread:$0]  %s6586_s28, 4096, %s6588_s3, [#allocation3], %s6810_s4, %s6810_s4, %s6811_s5  }
 0x79d   :  { %6793 = dma.done.wait [#allocation3], 4096  }
 0x79e   :  { %6794 = vsyncadd [#allocation3], 4294963200 }
 0x79f   :  { %6598 = vsyncpa [#allocation3], 1 }

</bundles_post_ra>
